<compile_context>
chip_gen: v5e
topology: v5e:2x2
jax: 0.10.0
libtpu: 0.0.40
codegen_flags: <defaults>
</compile_context>

<pallas_src>
import functools

import numpy as np
import jax
import jax.numpy as jnp
from jax import lax
from jax.experimental import pallas as pl
from jax.experimental.pallas import tpu as pltpu

LANES = 128
_VMEM_LIMIT = 32 * 1024 * 1024


def _batch_tile(B):
    # Single grid step (block == full array) for small batches; multiple-of-8
    # tiles and >= 2 grid steps for larger batches (megacore on v7x).
    if B <= 32:
        return B
    if B < 64:
        return 16
    return 32


# ----------------------------------------------------------------------------
# Fully fused SimpleCNN forward kernel (one batch tile per grid step)
# ----------------------------------------------------------------------------
def _simple_cnn_kernel(x_ref, w1e_ref, w1o_ref, b1_ref,
                       w2e_ref, w2o_ref, b2_ref,
                       wf1_ref, bf1_ref, wf2_ref, bf2_ref,
                       o_ref,
                       xpad1_ref, lhs1_ref, xpad2_ref, lhs2_ref, *, TB):
    f32 = jnp.float32
    bf16 = jnp.bfloat16

    # ---- conv1: in-kernel zero padding 28x28 -> 32x32 (W on the lane axis) --
    xpad1_ref[...] = jnp.zeros_like(xpad1_ref)
    xpad1_ref[:, 2:30, 2:30] = x_ref[:, 0, :, :].astype(bf16)

    # Row-window unfold: lhs1[(b,y), ky*32 + xj] = xpad1[b, y+ky, xj]
    # (5 lane-dense 32-wide writes instead of 25 narrow im2col writes).
    for ky in range(5):
        lhs1_ref[:, ky * 32:(ky + 1) * 32] = (
            xpad1_ref[:, ky:ky + 28, :].reshape(TB * 28, 32))

    # conv1 + bias + ReLU + 2x2 maxpool.  Even/odd output columns come from
    # two Toeplitz weight matrices, so the W-pool is an element-wise max.
    b1 = b1_ref[...]
    z1e = jnp.dot(lhs1_ref[...], w1e_ref[...], preferred_element_type=f32)
    z1o = jnp.dot(lhs1_ref[...], w1o_ref[...], preferred_element_type=f32)
    z1 = jnp.maximum(jnp.maximum(z1e + b1, 0.0),
                     jnp.maximum(z1o + b1, 0.0)).astype(bf16)   # [TB*28, 224]
    z1 = z1.reshape(TB, 14, 2, 14 * 16)
    p1 = jnp.maximum(z1[:, :, 0, :], z1[:, :, 1, :])            # [TB, 14, 224]

    # ---- conv2: in-kernel zero padding 14x14x16 -> 18x18x16 -----------------
    xpad2_ref[...] = jnp.zeros_like(xpad2_ref)
    xpad2_ref[:, 2:16, 32:256] = p1
    for ky in range(5):
        lhs2_ref[:, ky * 288:(ky + 1) * 288] = (
            xpad2_ref[:, ky:ky + 14, :].reshape(TB * 14, 288))

    b2 = b2_ref[...]
    z2e = jnp.dot(lhs2_ref[...], w2e_ref[...], preferred_element_type=f32)
    z2o = jnp.dot(lhs2_ref[...], w2o_ref[...], preferred_element_type=f32)
    z2 = jnp.maximum(jnp.maximum(z2e + b2, 0.0),
                     jnp.maximum(z2o + b2, 0.0)).astype(bf16)   # [TB*14, 224]
    z2 = z2.reshape(TB, 7, 2, 7 * 32)
    p2 = jnp.maximum(z2[:, :, 0, :], z2[:, :, 1, :])            # [TB, 7, 224]

    # ---- fc1 (+bias+ReLU) + fc2 (output padded to 128 lanes) ----------------
    # fc1 is contracted per pooled row h so no flatten relayout is needed.
    h = jnp.dot(p2[:, 0, :], wf1_ref[0], preferred_element_type=f32)
    for r in range(1, 7):
        h = h + jnp.dot(p2[:, r, :], wf1_ref[r], preferred_element_type=f32)
    h = jnp.maximum(h + bf1_ref[...], 0.0).astype(bf16)
    o_ref[...] = (jnp.dot(h, wf2_ref[...], preferred_element_type=f32)
                  + bf2_ref[...])


def _full_spec(arr):
    n = arr.ndim
    return pl.BlockSpec(arr.shape, lambda b, _n=n: (0,) * _n)


def simple_cnn_forward_impl(kparams, x):
    # x: [B, 1, 28, 28] NCHW (PyTorch layout)
    B = x.shape[0]
    TB = _batch_tile(B)
    B_pad = ((B + TB - 1) // TB) * TB
    if B_pad != B:
        x = jnp.pad(x, ((0, B_pad - B), (0, 0), (0, 0), (0, 0)))

    kernel = functools.partial(_simple_cnn_kernel, TB=TB)
    out = pl.pallas_call(
        kernel,
        out_shape=jax.ShapeDtypeStruct((B_pad, LANES), jnp.float32),
        grid=(B_pad // TB,),
        in_specs=[
            pl.BlockSpec((TB, 1, 28, 28), lambda b: (b, 0, 0, 0)),
            _full_spec(kparams["w1e"]), _full_spec(kparams["w1o"]),
            _full_spec(kparams["b1"]),
            _full_spec(kparams["w2e"]), _full_spec(kparams["w2o"]),
            _full_spec(kparams["b2"]),
            _full_spec(kparams["wf1"]), _full_spec(kparams["bf1"]),
            _full_spec(kparams["wf2"]), _full_spec(kparams["bf2"]),
        ],
        out_specs=pl.BlockSpec((TB, LANES), lambda b: (b, 0)),
        scratch_shapes=[
            pltpu.VMEM((TB, 32, 32), jnp.bfloat16),        # padded conv1 input
            pltpu.VMEM((TB * 28, 5 * 32), jnp.bfloat16),   # conv1 row-window LHS
            pltpu.VMEM((TB, 18, 18 * 16), jnp.bfloat16),   # padded conv2 input
            pltpu.VMEM((TB * 14, 5 * 288), jnp.bfloat16),  # conv2 row-window LHS
        ],
        compiler_params=pltpu.CompilerParams(
            dimension_semantics=("parallel",),
            vmem_limit_bytes=_VMEM_LIMIT),
    )(x, kparams["w1e"], kparams["w1o"], kparams["b1"],
      kparams["w2e"], kparams["w2o"], kparams["b2"],
      kparams["wf1"], kparams["bf1"], kparams["wf2"], kparams["bf2"])
    return out[:B, :10]


simple_cnn_forward = jax.jit(simple_cnn_forward_impl)


# ----------------------------------------------------------------------------
# Parameters (PyTorch layout) + one-time kernel re-layout
# ----------------------------------------------------------------------------
def init_params(key):
    ks = jax.random.split(key, 8)

    def u(k, shape, fan_in):
        bound = 1.0 / jnp.sqrt(fan_in)
        return jax.random.uniform(k, shape, jnp.float32, -bound, bound)

    return {
        "w1": u(ks[0], (16, 1, 5, 5), 1 * 25),
        "b1": u(ks[1], (16,), 1 * 25),
        "w2": u(ks[2], (32, 16, 5, 5), 16 * 25),
        "b2": u(ks[3], (32,), 16 * 25),
        "wf1": u(ks[4], (128, 32 * 7 * 7), 32 * 7 * 7),
        "bf1": u(ks[5], (128,), 32 * 7 * 7),
        "wf2": u(ks[6], (10, 128), 128),
        "bf2": u(ks[7], (10,), 128),
    }


def prepare_params(p):
    """One-time re-layout of PyTorch-style params into kernel-ready tensors."""
    w1 = np.asarray(p["w1"], np.float32)    # [16, 1, 5, 5]
    b1 = np.asarray(p["b1"], np.float32)
    w2 = np.asarray(p["w2"], np.float32)    # [32, 16, 5, 5]
    b2 = np.asarray(p["b2"], np.float32)
    wf1 = np.asarray(p["wf1"], np.float32)  # [128, 1568]
    bf1 = np.asarray(p["bf1"], np.float32)
    wf2 = np.asarray(p["wf2"], np.float32)  # [10, 128]
    bf2 = np.asarray(p["bf2"], np.float32)

    # conv1 Toeplitz weights: rows = ky*32 + xj (padded col), cols = xo*16 + co
    # parity 0/1 -> even/odd output x, i.e. the two 2x2-pool candidates along W.
    t1 = np.zeros((2, 5 * 32, 14 * 16), np.float32)
    for parity in range(2):
        for ky in range(5):
            for xo in range(14):
                for kx in range(5):
                    xj = 2 * xo + parity + kx
                    t1[parity, ky * 32 + xj, xo * 16:(xo + 1) * 16] = w1[:, 0, ky, kx]

    # conv2 Toeplitz weights: rows = ky*288 + xj*16 + cin, cols = xo*32 + co
    t2 = np.zeros((2, 5 * 288, 7 * 32), np.float32)
    for parity in range(2):
        for ky in range(5):
            for xo in range(7):
                for kx in range(5):
                    xj = 2 * xo + parity + kx
                    r = ky * 288 + xj * 16
                    t2[parity, r:r + 16, xo * 32:(xo + 1) * 32] = w2[:, :, ky, kx].T

    # fc1: kernel flatten order is (h, w, c) with lanes (w*32 + c) per row h.
    wf1k = wf1.reshape(128, 32, 7, 7).transpose(2, 3, 1, 0).reshape(7, 7 * 32, 128)

    wf2k = np.zeros((128, LANES), np.float32)
    wf2k[:, :10] = wf2.T

    return {
        "w1e": jnp.asarray(t1[0], jnp.bfloat16),
        "w1o": jnp.asarray(t1[1], jnp.bfloat16),
        "b1": jnp.asarray(np.tile(b1, 14)[None, :], jnp.float32),
        "w2e": jnp.asarray(t2[0], jnp.bfloat16),
        "w2o": jnp.asarray(t2[1], jnp.bfloat16),
        "b2": jnp.asarray(np.tile(b2, 7)[None, :], jnp.float32),
        "wf1": jnp.asarray(wf1k, jnp.bfloat16),
        "bf1": jnp.asarray(bf1[None, :], jnp.float32),
        "wf2": jnp.asarray(wf2k, jnp.bfloat16),
        "bf2": jnp.asarray(np.pad(bf2, (0, LANES - 10))[None, :], jnp.float32),
    }


# ----------------------------------------------------------------------------
# Pure-JAX float32 reference (mirrors the PyTorch module)
# ----------------------------------------------------------------------------
@jax.jit
def reference_forward(p, x):
    def conv(h, w, b):
        out = lax.conv_general_dilated(
            h, w, window_strides=(1, 1), padding=((2, 2), (2, 2)),
            dimension_numbers=("NCHW", "OIHW", "NCHW"))
        return out + b[None, :, None, None]

    h = jax.nn.relu(conv(x, p["w1"], p["b1"]))
    h = lax.reduce_window(h, -jnp.inf, lax.max, (1, 1, 2, 2), (1, 1, 2, 2), "VALID")
    h = jax.nn.relu(conv(h, p["w2"], p["b2"]))
    h = lax.reduce_window(h, -jnp.inf, lax.max, (1, 1, 2, 2), (1, 1, 2, 2), "VALID")
    h = h.reshape(h.shape[0], -1)
    h = jax.nn.relu(h @ p["wf1"].T + p["bf1"])
    return h @ p["wf2"].T + p["bf2"]


if __name__ == "__main__":
    key = jax.random.PRNGKey(0)
    pkey, xkey = jax.random.split(key)
    params = init_params(pkey)
    kparams = prepare_params(params)
    x = jax.random.normal(xkey, (2, 1, 28, 28), dtype=jnp.float32)

    out = simple_cnn_forward(kparams, x)
    jax.block_until_ready(out)
    assert out.shape == (2, 10), out.shape

    # bf16-in / f32-accumulate kernel vs. float32 reference (loose tolerance).
    ref = reference_forward(params, x)
    err = float(jnp.max(jnp.abs(out - ref)))
    assert err < 5e-2, f"max abs error vs reference: {err}"
    print("KERNEL_OK")
</pallas_src>

<mosaic_0001>
module attributes {stable_mosaic.version = 11 : i64} {
  func.func @_simple_cnn_kernel(%arg0: i32, %arg1: memref<2x1x28x28xf32, #tpu.memory_space<vmem>>, %arg2: memref<160x224xbf16, #tpu.memory_space<vmem>>, %arg3: memref<160x224xbf16, #tpu.memory_space<vmem>>, %arg4: memref<1x224xf32, #tpu.memory_space<vmem>>, %arg5: memref<1440x224xbf16, #tpu.memory_space<vmem>>, %arg6: memref<1440x224xbf16, #tpu.memory_space<vmem>>, %arg7: memref<1x224xf32, #tpu.memory_space<vmem>>, %arg8: memref<7x224x128xbf16, #tpu.memory_space<vmem>>, %arg9: memref<1x128xf32, #tpu.memory_space<vmem>>, %arg10: memref<128x128xbf16, #tpu.memory_space<vmem>>, %arg11: memref<1x128xf32, #tpu.memory_space<vmem>>, %arg12: memref<2x128xf32, #tpu.memory_space<vmem>>, %arg13: memref<2x32x32xbf16, #tpu.memory_space<vmem>>, %arg14: memref<56x160xbf16, #tpu.memory_space<vmem>>, %arg15: memref<2x18x288xbf16, #tpu.memory_space<vmem>>, %arg16: memref<28x1440xbf16, #tpu.memory_space<vmem>>) attributes {dimension_semantics = [#tpu.dimension_semantics<parallel>], iteration_bounds = array<i64: 1>, scalar_prefetch = 0 : i64, scratch_operands = 4 : i64, tpu.core_type = #tpu.core_type<tc>, window_params = [{transform_indices = @transform_0, window_bounds = array<i64: 2, 1, 28, 28>}, {pipeline_mode = #tpu.pipeline_mode<synchronous>, transform_indices = @transform_1, window_bounds = array<i64: 160, 224>}, {pipeline_mode = #tpu.pipeline_mode<synchronous>, transform_indices = @transform_2, window_bounds = array<i64: 160, 224>}, {pipeline_mode = #tpu.pipeline_mode<synchronous>, transform_indices = @transform_3, window_bounds = array<i64: 1, 224>}, {pipeline_mode = #tpu.pipeline_mode<synchronous>, transform_indices = @transform_4, window_bounds = array<i64: 1440, 224>}, {pipeline_mode = #tpu.pipeline_mode<synchronous>, transform_indices = @transform_5, window_bounds = array<i64: 1440, 224>}, {pipeline_mode = #tpu.pipeline_mode<synchronous>, transform_indices = @transform_6, window_bounds = array<i64: 1, 224>}, {pipeline_mode = #tpu.pipeline_mode<synchronous>, transform_indices = @transform_7, window_bounds = array<i64: 7, 224, 128>}, {pipeline_mode = #tpu.pipeline_mode<synchronous>, transform_indices = @transform_8, window_bounds = array<i64: 1, 128>}, {pipeline_mode = #tpu.pipeline_mode<synchronous>, transform_indices = @transform_9, window_bounds = array<i64: 128, 128>}, {pipeline_mode = #tpu.pipeline_mode<synchronous>, transform_indices = @transform_10, window_bounds = array<i64: 1, 128>}, {transform_indices = @transform_11, window_bounds = array<i64: 2, 128>}]} {
    %cst = arith.constant 0.000000e+00 : bf16
    %0 = vector.broadcast %cst : bf16 to vector<2x32x32xbf16>
    %c0 = arith.constant 0 : index
    %c0_0 = arith.constant 0 : index
    %c0_1 = arith.constant 0 : index
    %1 = vector.load %arg13[%c0, %c0_0, %c0_1] : memref<2x32x32xbf16, #tpu.memory_space<vmem>>, vector<2x32x32xbf16>
    tpu.vector_store %arg13[%c0, %c0_0, %c0_1], %0 {strides = array<i32>} : memref<2x32x32xbf16, #tpu.memory_space<vmem>>, vector<2x32x32xbf16>,
    %c0_2 = arith.constant 0 : index
    %c0_3 = arith.constant 0 : index
    %c0_4 = arith.constant 0 : index
    %c0_5 = arith.constant 0 : index
    %2 = vector.load %arg1[%c0_2, %c0_3, %c0_4, %c0_5] : memref<2x1x28x28xf32, #tpu.memory_space<vmem>>, vector<2x1x28x28xf32>
    %3 = vector.shape_cast %2 : vector<2x1x28x28xf32> to vector<2x28x28xf32>
    %4 = arith.truncf %3 : vector<2x28x28xf32> to vector<2x28x28xbf16>
    %c0_6 = arith.constant 0 : index
    %c2 = arith.constant 2 : index
    %c2_7 = arith.constant 2 : index
    %5 = vector.load %arg13[%c0_6, %c2, %c2_7] : memref<2x32x32xbf16, #tpu.memory_space<vmem>>, vector<2x28x28xbf16>
    tpu.vector_store %arg13[%c0_6, %c2, %c2_7], %4 {strides = array<i32>} : memref<2x32x32xbf16, #tpu.memory_space<vmem>>, vector<2x28x28xbf16>,
    %c0_8 = arith.constant 0 : index
    %c0_9 = arith.constant 0 : index
    %c0_10 = arith.constant 0 : index
    %6 = vector.load %arg13[%c0_8, %c0_9, %c0_10] : memref<2x32x32xbf16, #tpu.memory_space<vmem>>, vector<2x28x32xbf16>
    %7 = vector.shape_cast %6 : vector<2x28x32xbf16> to vector<56x32xbf16>
    %c0_11 = arith.constant 0 : index
    %c0_12 = arith.constant 0 : index
    %8 = vector.load %arg14[%c0_11, %c0_12] : memref<56x160xbf16, #tpu.memory_space<vmem>>, vector<56x32xbf16>
    tpu.vector_store %arg14[%c0_11, %c0_12], %7 {strides = array<i32>} : memref<56x160xbf16, #tpu.memory_space<vmem>>, vector<56x32xbf16>,
    %c0_13 = arith.constant 0 : index
    %c1 = arith.constant 1 : index
    %c0_14 = arith.constant 0 : index
    %9 = vector.load %arg13[%c0_13, %c1, %c0_14] : memref<2x32x32xbf16, #tpu.memory_space<vmem>>, vector<2x28x32xbf16>
    %10 = vector.shape_cast %9 : vector<2x28x32xbf16> to vector<56x32xbf16>
    %c0_15 = arith.constant 0 : index
    %c32 = arith.constant 32 : index
    %11 = vector.load %arg14[%c0_15, %c32] : memref<56x160xbf16, #tpu.memory_space<vmem>>, vector<56x32xbf16>
    tpu.vector_store %arg14[%c0_15, %c32], %10 {strides = array<i32>} : memref<56x160xbf16, #tpu.memory_space<vmem>>, vector<56x32xbf16>,
    %c0_16 = arith.constant 0 : index
    %c2_17 = arith.constant 2 : index
    %c0_18 = arith.constant 0 : index
    %12 = vector.load %arg13[%c0_16, %c2_17, %c0_18] : memref<2x32x32xbf16, #tpu.memory_space<vmem>>, vector<2x28x32xbf16>
    %13 = vector.shape_cast %12 : vector<2x28x32xbf16> to vector<56x32xbf16>
    %c0_19 = arith.constant 0 : index
    %c64 = arith.constant 64 : index
    %14 = vector.load %arg14[%c0_19, %c64] : memref<56x160xbf16, #tpu.memory_space<vmem>>, vector<56x32xbf16>
    tpu.vector_store %arg14[%c0_19, %c64], %13 {strides = array<i32>} : memref<56x160xbf16, #tpu.memory_space<vmem>>, vector<56x32xbf16>,
    %c0_20 = arith.constant 0 : index
    %c3 = arith.constant 3 : index
    %c0_21 = arith.constant 0 : index
    %15 = vector.load %arg13[%c0_20, %c3, %c0_21] : memref<2x32x32xbf16, #tpu.memory_space<vmem>>, vector<2x28x32xbf16>
    %16 = vector.shape_cast %15 : vector<2x28x32xbf16> to vector<56x32xbf16>
    %c0_22 = arith.constant 0 : index
    %c96 = arith.constant 96 : index
    %17 = vector.load %arg14[%c0_22, %c96] : memref<56x160xbf16, #tpu.memory_space<vmem>>, vector<56x32xbf16>
    tpu.vector_store %arg14[%c0_22, %c96], %16 {strides = array<i32>} : memref<56x160xbf16, #tpu.memory_space<vmem>>, vector<56x32xbf16>,
    %c0_23 = arith.constant 0 : index
    %c4 = arith.constant 4 : index
    %c0_24 = arith.constant 0 : index
    %18 = vector.load %arg13[%c0_23, %c4, %c0_24] : memref<2x32x32xbf16, #tpu.memory_space<vmem>>, vector<2x28x32xbf16>
    %19 = vector.shape_cast %18 : vector<2x28x32xbf16> to vector<56x32xbf16>
    %c0_25 = arith.constant 0 : index
    %c128 = arith.constant 128 : index
    %20 = vector.load %arg14[%c0_25, %c128] : memref<56x160xbf16, #tpu.memory_space<vmem>>, vector<56x32xbf16>
    tpu.vector_store %arg14[%c0_25, %c128], %19 {strides = array<i32>} : memref<56x160xbf16, #tpu.memory_space<vmem>>, vector<56x32xbf16>,
    %c0_26 = arith.constant 0 : index
    %c0_27 = arith.constant 0 : index
    %21 = vector.load %arg4[%c0_26, %c0_27] : memref<1x224xf32, #tpu.memory_space<vmem>>, vector<1x224xf32>
    %c0_28 = arith.constant 0 : index
    %c0_29 = arith.constant 0 : index
    %22 = vector.load %arg14[%c0_28, %c0_29] : memref<56x160xbf16, #tpu.memory_space<vmem>>, vector<56x160xbf16>
    %c0_30 = arith.constant 0 : index
    %c0_31 = arith.constant 0 : index
    %23 = vector.load %arg2[%c0_30, %c0_31] : memref<160x224xbf16, #tpu.memory_space<vmem>>, vector<160x224xbf16>
    %cst_32 = arith.constant dense<0.000000e+00> : vector<56x224xf32>
    %24 = tpu.matmul %22, %23, %cst_32 {dimension_numbers = #tpu.dot_dimension_numbers<[1], [0], [0], [1], [0, 0, 1, 1], [], []>} : vector<56x160xbf16>, vector<160x224xbf16>, vector<56x224xf32> -> vector<56x224xf32>
    %c0_33 = arith.constant 0 : index
    %c0_34 = arith.constant 0 : index
    %25 = vector.load %arg14[%c0_33, %c0_34] : memref<56x160xbf16, #tpu.memory_space<vmem>>, vector<56x160xbf16>
    %c0_35 = arith.constant 0 : index
    %c0_36 = arith.constant 0 : index
    %26 = vector.load %arg3[%c0_35, %c0_36] : memref<160x224xbf16, #tpu.memory_space<vmem>>, vector<160x224xbf16>
    %cst_37 = arith.constant dense<0.000000e+00> : vector<56x224xf32>
    %27 = tpu.matmul %25, %26, %cst_37 {dimension_numbers = #tpu.dot_dimension_numbers<[1], [0], [0], [1], [0, 0, 1, 1], [], []>} : vector<56x160xbf16>, vector<160x224xbf16>, vector<56x224xf32> -> vector<56x224xf32>
    %28 = vector.broadcast %21 : vector<1x224xf32> to vector<56x224xf32>
    %29 = arith.addf %24, %28 : vector<56x224xf32>
    %cst_38 = arith.constant 0.000000e+00 : f32
    %30 = vector.broadcast %cst_38 : f32 to vector<56x224xf32>
    %31 = arith.maximumf %29, %30 : vector<56x224xf32>
    %32 = vector.broadcast %21 : vector<1x224xf32> to vector<56x224xf32>
    %33 = arith.addf %27, %32 : vector<56x224xf32>
    %cst_39 = arith.constant 0.000000e+00 : f32
    %34 = vector.broadcast %cst_39 : f32 to vector<56x224xf32>
    %35 = arith.maximumf %33, %34 : vector<56x224xf32>
    %36 = arith.maximumf %31, %35 : vector<56x224xf32>
    %37 = arith.truncf %36 : vector<56x224xf32> to vector<56x224xbf16>
    %38 = vector.shape_cast %37 : vector<56x224xbf16> to vector<2x14x2x224xbf16>
    %39 = vector.extract_strided_slice %38 {offsets = [0, 0, 0, 0], sizes = [2, 14, 1, 224], strides = [1, 1, 1, 1]} : vector<2x14x2x224xbf16> to vector<2x14x1x224xbf16>
    %40 = vector.shape_cast %39 : vector<2x14x1x224xbf16> to vector<2x14x224xbf16>
    %41 = vector.extract_strided_slice %38 {offsets = [0, 0, 1, 0], sizes = [2, 14, 1, 224], strides = [1, 1, 1, 1]} : vector<2x14x2x224xbf16> to vector<2x14x1x224xbf16>
    %42 = vector.shape_cast %41 : vector<2x14x1x224xbf16> to vector<2x14x224xbf16>
    %43 = arith.maximumf %40, %42 : vector<2x14x224xbf16>
    %cst_40 = arith.constant 0.000000e+00 : bf16
    %44 = vector.broadcast %cst_40 : bf16 to vector<2x18x288xbf16>
    %c0_41 = arith.constant 0 : index
    %c0_42 = arith.constant 0 : index
    %c0_43 = arith.constant 0 : index
    %45 = vector.load %arg15[%c0_41, %c0_42, %c0_43] : memref<2x18x288xbf16, #tpu.memory_space<vmem>>, vector<2x18x288xbf16>
    tpu.vector_store %arg15[%c0_41, %c0_42, %c0_43], %44 {strides = array<i32>} : memref<2x18x288xbf16, #tpu.memory_space<vmem>>, vector<2x18x288xbf16>,
    %c0_44 = arith.constant 0 : index
    %c2_45 = arith.constant 2 : index
    %c32_46 = arith.constant 32 : index
    %46 = vector.load %arg15[%c0_44, %c2_45, %c32_46] : memref<2x18x288xbf16, #tpu.memory_space<vmem>>, vector<2x14x224xbf16>
    tpu.vector_store %arg15[%c0_44, %c2_45, %c32_46], %43 {strides = array<i32>} : memref<2x18x288xbf16, #tpu.memory_space<vmem>>, vector<2x14x224xbf16>,
    %c0_47 = arith.constant 0 : index
    %c0_48 = arith.constant 0 : index
    %c0_49 = arith.constant 0 : index
    %47 = vector.load %arg15[%c0_47, %c0_48, %c0_49] : memref<2x18x288xbf16, #tpu.memory_space<vmem>>, vector<2x14x288xbf16>
    %48 = vector.shape_cast %47 : vector<2x14x288xbf16> to vector<28x288xbf16>
    %c0_50 = arith.constant 0 : index
    %c0_51 = arith.constant 0 : index
    %49 = vector.load %arg16[%c0_50, %c0_51] : memref<28x1440xbf16, #tpu.memory_space<vmem>>, vector<28x288xbf16>
    tpu.vector_store %arg16[%c0_50, %c0_51], %48 {strides = array<i32>} : memref<28x1440xbf16, #tpu.memory_space<vmem>>, vector<28x288xbf16>,
    %c0_52 = arith.constant 0 : index
    %c1_53 = arith.constant 1 : index
    %c0_54 = arith.constant 0 : index
    %50 = vector.load %arg15[%c0_52, %c1_53, %c0_54] : memref<2x18x288xbf16, #tpu.memory_space<vmem>>, vector<2x14x288xbf16>
    %51 = vector.shape_cast %50 : vector<2x14x288xbf16> to vector<28x288xbf16>
    %c0_55 = arith.constant 0 : index
    %c288 = arith.constant 288 : index
    %52 = vector.load %arg16[%c0_55, %c288] : memref<28x1440xbf16, #tpu.memory_space<vmem>>, vector<28x288xbf16>
    tpu.vector_store %arg16[%c0_55, %c288], %51 {strides = array<i32>} : memref<28x1440xbf16, #tpu.memory_space<vmem>>, vector<28x288xbf16>,
    %c0_56 = arith.constant 0 : index
    %c2_57 = arith.constant 2 : index
    %c0_58 = arith.constant 0 : index
    %53 = vector.load %arg15[%c0_56, %c2_57, %c0_58] : memref<2x18x288xbf16, #tpu.memory_space<vmem>>, vector<2x14x288xbf16>
    %54 = vector.shape_cast %53 : vector<2x14x288xbf16> to vector<28x288xbf16>
    %c0_59 = arith.constant 0 : index
    %c576 = arith.constant 576 : index
    %55 = vector.load %arg16[%c0_59, %c576] : memref<28x1440xbf16, #tpu.memory_space<vmem>>, vector<28x288xbf16>
    tpu.vector_store %arg16[%c0_59, %c576], %54 {strides = array<i32>} : memref<28x1440xbf16, #tpu.memory_space<vmem>>, vector<28x288xbf16>,
    %c0_60 = arith.constant 0 : index
    %c3_61 = arith.constant 3 : index
    %c0_62 = arith.constant 0 : index
    %56 = vector.load %arg15[%c0_60, %c3_61, %c0_62] : memref<2x18x288xbf16, #tpu.memory_space<vmem>>, vector<2x14x288xbf16>
    %57 = vector.shape_cast %56 : vector<2x14x288xbf16> to vector<28x288xbf16>
    %c0_63 = arith.constant 0 : index
    %c864 = arith.constant 864 : index
    %58 = vector.load %arg16[%c0_63, %c864] : memref<28x1440xbf16, #tpu.memory_space<vmem>>, vector<28x288xbf16>
    tpu.vector_store %arg16[%c0_63, %c864], %57 {strides = array<i32>} : memref<28x1440xbf16, #tpu.memory_space<vmem>>, vector<28x288xbf16>,
    %c0_64 = arith.constant 0 : index
    %c4_65 = arith.constant 4 : index
    %c0_66 = arith.constant 0 : index
    %59 = vector.load %arg15[%c0_64, %c4_65, %c0_66] : memref<2x18x288xbf16, #tpu.memory_space<vmem>>, vector<2x14x288xbf16>
    %60 = vector.shape_cast %59 : vector<2x14x288xbf16> to vector<28x288xbf16>
    %c0_67 = arith.constant 0 : index
    %c1152 = arith.constant 1152 : index
    %61 = vector.load %arg16[%c0_67, %c1152] : memref<28x1440xbf16, #tpu.memory_space<vmem>>, vector<28x288xbf16>
    tpu.vector_store %arg16[%c0_67, %c1152], %60 {strides = array<i32>} : memref<28x1440xbf16, #tpu.memory_space<vmem>>, vector<28x288xbf16>,
    %c0_68 = arith.constant 0 : index
    %c0_69 = arith.constant 0 : index
    %62 = vector.load %arg7[%c0_68, %c0_69] : memref<1x224xf32, #tpu.memory_space<vmem>>, vector<1x224xf32>
    %c0_70 = arith.constant 0 : index
    %c0_71 = arith.constant 0 : index
    %63 = vector.load %arg16[%c0_70, %c0_71] : memref<28x1440xbf16, #tpu.memory_space<vmem>>, vector<28x1440xbf16>
    %c0_72 = arith.constant 0 : index
    %c0_73 = arith.constant 0 : index
    %64 = vector.load %arg5[%c0_72, %c0_73] : memref<1440x224xbf16, #tpu.memory_space<vmem>>, vector<1440x224xbf16>
    %cst_74 = arith.constant dense<0.000000e+00> : vector<28x224xf32>
    %65 = tpu.matmul %63, %64, %cst_74 {dimension_numbers = #tpu.dot_dimension_numbers<[1], [0], [0], [1], [0, 0, 1, 1], [], []>} : vector<28x1440xbf16>, vector<1440x224xbf16>, vector<28x224xf32> -> vector<28x224xf32>
    %c0_75 = arith.constant 0 : index
    %c0_76 = arith.constant 0 : index
    %66 = vector.load %arg16[%c0_75, %c0_76] : memref<28x1440xbf16, #tpu.memory_space<vmem>>, vector<28x1440xbf16>
    %c0_77 = arith.constant 0 : index
    %c0_78 = arith.constant 0 : index
    %67 = vector.load %arg6[%c0_77, %c0_78] : memref<1440x224xbf16, #tpu.memory_space<vmem>>, vector<1440x224xbf16>
    %cst_79 = arith.constant dense<0.000000e+00> : vector<28x224xf32>
    %68 = tpu.matmul %66, %67, %cst_79 {dimension_numbers = #tpu.dot_dimension_numbers<[1], [0], [0], [1], [0, 0, 1, 1], [], []>} : vector<28x1440xbf16>, vector<1440x224xbf16>, vector<28x224xf32> -> vector<28x224xf32>
    %69 = vector.broadcast %62 : vector<1x224xf32> to vector<28x224xf32>
    %70 = arith.addf %65, %69 : vector<28x224xf32>
    %cst_80 = arith.constant 0.000000e+00 : f32
    %71 = vector.broadcast %cst_80 : f32 to vector<28x224xf32>
    %72 = arith.maximumf %70, %71 : vector<28x224xf32>
    %73 = vector.broadcast %62 : vector<1x224xf32> to vector<28x224xf32>
    %74 = arith.addf %68, %73 : vector<28x224xf32>
    %cst_81 = arith.constant 0.000000e+00 : f32
    %75 = vector.broadcast %cst_81 : f32 to vector<28x224xf32>
    %76 = arith.maximumf %74, %75 : vector<28x224xf32>
    %77 = arith.maximumf %72, %76 : vector<28x224xf32>
    %78 = arith.truncf %77 : vector<28x224xf32> to vector<28x224xbf16>
    %79 = vector.shape_cast %78 : vector<28x224xbf16> to vector<2x7x2x224xbf16>
    %80 = vector.extract_strided_slice %79 {offsets = [0, 0, 0, 0], sizes = [2, 7, 1, 224], strides = [1, 1, 1, 1]} : vector<2x7x2x224xbf16> to vector<2x7x1x224xbf16>
    %81 = vector.shape_cast %80 : vector<2x7x1x224xbf16> to vector<2x7x224xbf16>
    %82 = vector.extract_strided_slice %79 {offsets = [0, 0, 1, 0], sizes = [2, 7, 1, 224], strides = [1, 1, 1, 1]} : vector<2x7x2x224xbf16> to vector<2x7x1x224xbf16>
    %83 = vector.shape_cast %82 : vector<2x7x1x224xbf16> to vector<2x7x224xbf16>
    %84 = arith.maximumf %81, %83 : vector<2x7x224xbf16>
    %85 = vector.extract_strided_slice %84 {offsets = [0, 0, 0], sizes = [2, 1, 224], strides = [1, 1, 1]} : vector<2x7x224xbf16> to vector<2x1x224xbf16>
    %86 = vector.shape_cast %85 : vector<2x1x224xbf16> to vector<2x224xbf16>
    %c0_82 = arith.constant 0 : index
    %c0_83 = arith.constant 0 : index
    %c0_84 = arith.constant 0 : index
    %87 = vector.load %arg8[%c0_82, %c0_83, %c0_84] : memref<7x224x128xbf16, #tpu.memory_space<vmem>>, vector<1x224x128xbf16>
    %88 = vector.shape_cast %87 : vector<1x224x128xbf16> to vector<224x128xbf16>
    %cst_85 = arith.constant dense<0.000000e+00> : vector<2x128xf32>
    %89 = tpu.matmul %86, %88, %cst_85 {dimension_numbers = #tpu.dot_dimension_numbers<[1], [0], [0], [1], [0, 0, 1, 1], [], []>} : vector<2x224xbf16>, vector<224x128xbf16>, vector<2x128xf32> -> vector<2x128xf32>
    %90 = vector.extract_strided_slice %84 {offsets = [0, 1, 0], sizes = [2, 1, 224], strides = [1, 1, 1]} : vector<2x7x224xbf16> to vector<2x1x224xbf16>
    %91 = vector.shape_cast %90 : vector<2x1x224xbf16> to vector<2x224xbf16>
    %c1_86 = arith.constant 1 : index
    %c0_87 = arith.constant 0 : index
    %c0_88 = arith.constant 0 : index
    %92 = vector.load %arg8[%c1_86, %c0_87, %c0_88] : memref<7x224x128xbf16, #tpu.memory_space<vmem>>, vector<1x224x128xbf16>
    %93 = vector.shape_cast %92 : vector<1x224x128xbf16> to vector<224x128xbf16>
    %cst_89 = arith.constant dense<0.000000e+00> : vector<2x128xf32>
    %94 = tpu.matmul %91, %93, %cst_89 {dimension_numbers = #tpu.dot_dimension_numbers<[1], [0], [0], [1], [0, 0, 1, 1], [], []>} : vector<2x224xbf16>, vector<224x128xbf16>, vector<2x128xf32> -> vector<2x128xf32>
    %95 = arith.addf %89, %94 : vector<2x128xf32>
    %96 = vector.extract_strided_slice %84 {offsets = [0, 2, 0], sizes = [2, 1, 224], strides = [1, 1, 1]} : vector<2x7x224xbf16> to vector<2x1x224xbf16>
    %97 = vector.shape_cast %96 : vector<2x1x224xbf16> to vector<2x224xbf16>
    %c2_90 = arith.constant 2 : index
    %c0_91 = arith.constant 0 : index
    %c0_92 = arith.constant 0 : index
    %98 = vector.load %arg8[%c2_90, %c0_91, %c0_92] : memref<7x224x128xbf16, #tpu.memory_space<vmem>>, vector<1x224x128xbf16>
    %99 = vector.shape_cast %98 : vector<1x224x128xbf16> to vector<224x128xbf16>
    %cst_93 = arith.constant dense<0.000000e+00> : vector<2x128xf32>
    %100 = tpu.matmul %97, %99, %cst_93 {dimension_numbers = #tpu.dot_dimension_numbers<[1], [0], [0], [1], [0, 0, 1, 1], [], []>} : vector<2x224xbf16>, vector<224x128xbf16>, vector<2x128xf32> -> vector<2x128xf32>
    %101 = arith.addf %95, %100 : vector<2x128xf32>
    %102 = vector.extract_strided_slice %84 {offsets = [0, 3, 0], sizes = [2, 1, 224], strides = [1, 1, 1]} : vector<2x7x224xbf16> to vector<2x1x224xbf16>
    %103 = vector.shape_cast %102 : vector<2x1x224xbf16> to vector<2x224xbf16>
    %c3_94 = arith.constant 3 : index
    %c0_95 = arith.constant 0 : index
    %c0_96 = arith.constant 0 : index
    %104 = vector.load %arg8[%c3_94, %c0_95, %c0_96] : memref<7x224x128xbf16, #tpu.memory_space<vmem>>, vector<1x224x128xbf16>
    %105 = vector.shape_cast %104 : vector<1x224x128xbf16> to vector<224x128xbf16>
    %cst_97 = arith.constant dense<0.000000e+00> : vector<2x128xf32>
    %106 = tpu.matmul %103, %105, %cst_97 {dimension_numbers = #tpu.dot_dimension_numbers<[1], [0], [0], [1], [0, 0, 1, 1], [], []>} : vector<2x224xbf16>, vector<224x128xbf16>, vector<2x128xf32> -> vector<2x128xf32>
    %107 = arith.addf %101, %106 : vector<2x128xf32>
    %108 = vector.extract_strided_slice %84 {offsets = [0, 4, 0], sizes = [2, 1, 224], strides = [1, 1, 1]} : vector<2x7x224xbf16> to vector<2x1x224xbf16>
    %109 = vector.shape_cast %108 : vector<2x1x224xbf16> to vector<2x224xbf16>
    %c4_98 = arith.constant 4 : index
    %c0_99 = arith.constant 0 : index
    %c0_100 = arith.constant 0 : index
    %110 = vector.load %arg8[%c4_98, %c0_99, %c0_100] : memref<7x224x128xbf16, #tpu.memory_space<vmem>>, vector<1x224x128xbf16>
    %111 = vector.shape_cast %110 : vector<1x224x128xbf16> to vector<224x128xbf16>
    %cst_101 = arith.constant dense<0.000000e+00> : vector<2x128xf32>
    %112 = tpu.matmul %109, %111, %cst_101 {dimension_numbers = #tpu.dot_dimension_numbers<[1], [0], [0], [1], [0, 0, 1, 1], [], []>} : vector<2x224xbf16>, vector<224x128xbf16>, vector<2x128xf32> -> vector<2x128xf32>
    %113 = arith.addf %107, %112 : vector<2x128xf32>
    %114 = vector.extract_strided_slice %84 {offsets = [0, 5, 0], sizes = [2, 1, 224], strides = [1, 1, 1]} : vector<2x7x224xbf16> to vector<2x1x224xbf16>
    %115 = vector.shape_cast %114 : vector<2x1x224xbf16> to vector<2x224xbf16>
    %c5 = arith.constant 5 : index
    %c0_102 = arith.constant 0 : index
    %c0_103 = arith.constant 0 : index
    %116 = vector.load %arg8[%c5, %c0_102, %c0_103] : memref<7x224x128xbf16, #tpu.memory_space<vmem>>, vector<1x224x128xbf16>
    %117 = vector.shape_cast %116 : vector<1x224x128xbf16> to vector<224x128xbf16>
    %cst_104 = arith.constant dense<0.000000e+00> : vector<2x128xf32>
    %118 = tpu.matmul %115, %117, %cst_104 {dimension_numbers = #tpu.dot_dimension_numbers<[1], [0], [0], [1], [0, 0, 1, 1], [], []>} : vector<2x224xbf16>, vector<224x128xbf16>, vector<2x128xf32> -> vector<2x128xf32>
    %119 = arith.addf %113, %118 : vector<2x128xf32>
    %120 = vector.extract_strided_slice %84 {offsets = [0, 6, 0], sizes = [2, 1, 224], strides = [1, 1, 1]} : vector<2x7x224xbf16> to vector<2x1x224xbf16>
    %121 = vector.shape_cast %120 : vector<2x1x224xbf16> to vector<2x224xbf16>
    %c6 = arith.constant 6 : index
    %c0_105 = arith.constant 0 : index
    %c0_106 = arith.constant 0 : index
    %122 = vector.load %arg8[%c6, %c0_105, %c0_106] : memref<7x224x128xbf16, #tpu.memory_space<vmem>>, vector<1x224x128xbf16>
    %123 = vector.shape_cast %122 : vector<1x224x128xbf16> to vector<224x128xbf16>
    %cst_107 = arith.constant dense<0.000000e+00> : vector<2x128xf32>
    %124 = tpu.matmul %121, %123, %cst_107 {dimension_numbers = #tpu.dot_dimension_numbers<[1], [0], [0], [1], [0, 0, 1, 1], [], []>} : vector<2x224xbf16>, vector<224x128xbf16>, vector<2x128xf32> -> vector<2x128xf32>
    %125 = arith.addf %119, %124 : vector<2x128xf32>
    %c0_108 = arith.constant 0 : index
    %c0_109 = arith.constant 0 : index
    %126 = vector.load %arg9[%c0_108, %c0_109] : memref<1x128xf32, #tpu.memory_space<vmem>>, vector<1x128xf32>
    %127 = vector.broadcast %126 : vector<1x128xf32> to vector<2x128xf32>
    %128 = arith.addf %125, %127 : vector<2x128xf32>
    %cst_110 = arith.constant 0.000000e+00 : f32
    %129 = vector.broadcast %cst_110 : f32 to vector<2x128xf32>
    %130 = arith.maximumf %128, %129 : vector<2x128xf32>
    %131 = arith.truncf %130 : vector<2x128xf32> to vector<2x128xbf16>
    %c0_111 = arith.constant 0 : index
    %c0_112 = arith.constant 0 : index
    %132 = vector.load %arg10[%c0_111, %c0_112] : memref<128x128xbf16, #tpu.memory_space<vmem>>, vector<128x128xbf16>
    %cst_113 = arith.constant dense<0.000000e+00> : vector<2x128xf32>
    %133 = tpu.matmul %131, %132, %cst_113 {dimension_numbers = #tpu.dot_dimension_numbers<[1], [0], [0], [1], [0, 0, 1, 1], [], []>} : vector<2x128xbf16>, vector<128x128xbf16>, vector<2x128xf32> -> vector<2x128xf32>
    %c0_114 = arith.constant 0 : index
    %c0_115 = arith.constant 0 : index
    %134 = vector.load %arg11[%c0_114, %c0_115] : memref<1x128xf32, #tpu.memory_space<vmem>>, vector<1x128xf32>
    %135 = vector.broadcast %134 : vector<1x128xf32> to vector<2x128xf32>
    %136 = arith.addf %133, %135 : vector<2x128xf32>
    %c0_116 = arith.constant 0 : index
    %c0_117 = arith.constant 0 : index
    %137 = vector.load %arg12[%c0_116, %c0_117] : memref<2x128xf32, #tpu.memory_space<vmem>>, vector<2x128xf32>
    tpu.vector_store %arg12[%c0_116, %c0_117], %136 {strides = array<i32>} : memref<2x128xf32, #tpu.memory_space<vmem>>, vector<2x128xf32>,
    return
  }
  func.func @transform_0(%arg0: i32) -> (i32, i32, i32, i32) {
    %c0_i32 = arith.constant 0 : i32
    %c0_i32_0 = arith.constant 0 : i32
    %c0_i32_1 = arith.constant 0 : i32
    %c0_i32_2 = arith.constant 0 : i32
    return %arg0, %c0_i32, %c0_i32_0, %c0_i32_1 : i32, i32, i32, i32
  }
  func.func @transform_1(%arg0: i32) -> (i32, i32) {
    %c0_i32 = arith.constant 0 : i32
    %c0_i32_0 = arith.constant 0 : i32
    %c0_i32_1 = arith.constant 0 : i32
    return %c0_i32, %c0_i32_0 : i32, i32
  }
  func.func @transform_2(%arg0: i32) -> (i32, i32) {
    %c0_i32 = arith.constant 0 : i32
    %c0_i32_0 = arith.constant 0 : i32
    %c0_i32_1 = arith.constant 0 : i32
    return %c0_i32, %c0_i32_0 : i32, i32
  }
  func.func @transform_3(%arg0: i32) -> (i32, i32) {
    %c0_i32 = arith.constant 0 : i32
    %c0_i32_0 = arith.constant 0 : i32
    %c0_i32_1 = arith.constant 0 : i32
    return %c0_i32, %c0_i32_0 : i32, i32
  }
  func.func @transform_4(%arg0: i32) -> (i32, i32) {
    %c0_i32 = arith.constant 0 : i32
    %c0_i32_0 = arith.constant 0 : i32
    %c0_i32_1 = arith.constant 0 : i32
    return %c0_i32, %c0_i32_0 : i32, i32
  }
  func.func @transform_5(%arg0: i32) -> (i32, i32) {
    %c0_i32 = arith.constant 0 : i32
    %c0_i32_0 = arith.constant 0 : i32
    %c0_i32_1 = arith.constant 0 : i32
    return %c0_i32, %c0_i32_0 : i32, i32
  }
  func.func @transform_6(%arg0: i32) -> (i32, i32) {
    %c0_i32 = arith.constant 0 : i32
    %c0_i32_0 = arith.constant 0 : i32
    %c0_i32_1 = arith.constant 0 : i32
    return %c0_i32, %c0_i32_0 : i32, i32
  }
  func.func @transform_7(%arg0: i32) -> (i32, i32, i32) {
    %c0_i32 = arith.constant 0 : i32
    %c0_i32_0 = arith.constant 0 : i32
    %c0_i32_1 = arith.constant 0 : i32
    %c0_i32_2 = arith.constant 0 : i32
    return %c0_i32, %c0_i32_0, %c0_i32_1 : i32, i32, i32
  }
  func.func @transform_8(%arg0: i32) -> (i32, i32) {
    %c0_i32 = arith.constant 0 : i32
    %c0_i32_0 = arith.constant 0 : i32
    %c0_i32_1 = arith.constant 0 : i32
    return %c0_i32, %c0_i32_0 : i32, i32
  }
  func.func @transform_9(%arg0: i32) -> (i32, i32) {
    %c0_i32 = arith.constant 0 : i32
    %c0_i32_0 = arith.constant 0 : i32
    %c0_i32_1 = arith.constant 0 : i32
    return %c0_i32, %c0_i32_0 : i32, i32
  }
  func.func @transform_10(%arg0: i32) -> (i32, i32) {
    %c0_i32 = arith.constant 0 : i32
    %c0_i32_0 = arith.constant 0 : i32
    %c0_i32_1 = arith.constant 0 : i32
    return %c0_i32, %c0_i32_0 : i32, i32
  }
  func.func @transform_11(%arg0: i32) -> (i32, i32) {
    %c0_i32 = arith.constant 0 : i32
    %c0_i32_0 = arith.constant 0 : i32
    return %arg0, %c0_i32 : i32, i32
  }
}

</mosaic_0001>

<bundles_post_ra>
// kernel: simple_cnn_forward_impl.1
= control target key start
LH: loop header
LB: loop body
LE: loop exit
PB: predicated region body
PF: predicated region fallthrough
CT: control target
= control target key end

     0   :  { %vm73_vm0 = vcmask 1040384   ;;  %vm15978_vm1 = vcmask 1044484   ;;  %s15965_s0 = inlined_call_operand.vmem [shape: f32[2,1,28,28], index: 0, kind: input, shape index: {}]   ;;  %s15966_s1 = inlined_call_operand.vmem [shape: bf16[160,224], index: 1, kind: input, shape index: {}]   ;;  %s15967_s2 = inlined_call_operand.vmem [shape: bf16[160,224], index: 2, kind: input, shape index: {}]   ;;  %s15968_s3 = inlined_call_operand.vmem [shape: f32[1,224], index: 3, kind: input, shape index: {}]   ;;  %s15969_s4 = inlined_call_operand.vmem [shape: bf16[1440,224], index: 4, kind: input, shape index: {}]   ;;  %s15970_s5 = inlined_call_operand.vmem [shape: bf16[1440,224], index: 5, kind: input, shape index: {}]   ;;  %s15971_s6 = inlined_call_operand.vmem [shape: f32[1,224], index: 6, kind: input, shape index: {}]   ;;  %s15972_s7 = inlined_call_operand.vmem [shape: bf16[7,224,128], index: 7, kind: input, shape index: {}]   ;;  %s15973_s8 = inlined_call_operand.vmem [shape: f32[1,128], index: 8, kind: input, shape index: {}]   ;;  %s15974_s9 = inlined_call_operand.vmem [shape: bf16[128,128], index: 9, kind: input, shape index: {}]   ;;  %s15975_s10 = inlined_call_operand.vmem [shape: f32[1,128], index: 10, kind: input, shape index: {}]   ;;  %s15976_s11 = inlined_call_operand.hbm [shape: f32[2,128], index: 11, kind: output, shape index: {}]  }
   0x1   :  { %v53_v0 = vld [vmem:[%s15965_s0 + $0x20] sm:$0xff]  ;;  %v54_v2 = vld [vmem:[%s15965_s0 + $0x28] sm:$0xff]  ;;  %v51_v8 = vld [vmem:[%s15965_s0 + $0x10] sm:$0xff] }
   0x2   :  { %v49_v1 = vld [vmem:[%s15965_s0] sm:$0xff]  ;;  %v61_v3 = vpack.c.bf16 %v53_v0, %v53_v0  ;;  %v62_v5 = vpack.c.bf16 %v54_v2, %v54_v2  ;;  %v50_v6 = vld [vmem:[%s15965_s0 + $0x8] sm:$0xff]  ;;  %v55_v9 = vld [vmem:[%s15965_s0 + $0x30] sm:$0xff] }
   0x3   :  { %v57_v4 = vpack.c.bf16 %v49_v1, %v49_v1  ;;  %v58_v7 = vpack.c.bf16 %v50_v6, %v50_v6  ;;  %v63_v13 = vpack.c.bf16 %v55_v9, %v55_v9 }
   0x4   :  { %v86_v10 = vrot.slane %v61_v3, 7  ;;  %v88_v12 = vrot.slane %v62_v5, 7 }
   0x5   :  { %v76_v11 = vrot.slane %v57_v4, 7 }
   0x6   :  { %16 = vsyncpa [#allocation7], 0  ;;  %s11142_s29 = smov 2   ;;  %v59_v14 = vpack.c.bf16 %v51_v8, %v51_v8  ;;  %v90_v15 = vrot.slane %v88_v12, 4  ;;  %v87_v16 = vrot.slane %v86_v10, 4  ;;  %v78_v18 = vrot.slane %v58_v7, 7 }
   0x7   :  { %104 = vrot.lane.b32.xlu1 %v86_v10, %s11142_s29  ;;  %96 = vrot.lane.b32.xlu0 %v76_v11, %s11142_s29  ;;  %v77_v17 = vrot.slane %v76_v11, 4  ;;  %v52_v19 = vld [vmem:[%s15965_s0 + $0x18] sm:$0xf]  ;;  %v91_v20 = vrot.slane %v63_v13, 7  ;;  %vm11233_vm2 = vmor %vm73_vm0, %vm15978_vm1  ;;  %vm40_vm3 = vcmask 257024   ;;  %v15979_v37 = vmov 0  }
   0x8   :  { %v56_v22 = vld [vmem:[%s15965_s0 + $0x38] sm:$0xf]  ;;  %v60_v24 = vpack.c.bf16 %v52_v19, %v52_v19  ;;  %v81_v25 = vrot.slane %v59_v14, 7  ;;  %v89_v26 = vsel %vm11233_vm2, %v87_v16, %v88_v12  ;;  %v80_v29 = vrot.slane %v78_v18, 4  ;;  %47 = vst.msk [vmem:[#allocation2 + $0x18] sm:$0xf] %vm40_vm3, %v15979_v37 }
   0x9   :  { %v92_v23 = vsel %vm11233_vm2, %v90_v15, %v91_v20  ;;  %v79_v27 = vsel %vm11233_vm2, %v77_v17, %v78_v18  ;;  %v64_v28 = vpack.c.bf16 %v56_v22, %v56_v22  ;;  %v93_v32 = vrot.slane %v91_v20, 4  ;;  %41 = vst.msk [vmem:[#allocation2] sm:$0xf] %vm40_vm3, %v15979_v37  ;;  %s11144_s0 = smov 32   ;;  %s11145_s15 = smov 64  }
   0xa   :  { %108 = vrot.lane.b32.xlu2 %v92_v23, %s11142_s29  ;;  %v84_v30 = vrot.slane %v60_v24, 7  ;;  %v83_v31 = vrot.slane %v81_v25, 4  ;;  %v82_v34 = vsel %vm11233_vm2, %v80_v29, %v81_v25  ;;  %42 = vst.msk [vmem:[#allocation2 + $0x4] sm:$0xf] %vm40_vm3, %v15979_v37  ;;  %vm122_vm4 = vcmask 240656   ;;  %s11146_s16 = smov 96  }
   0xb   :  { %v94_v33 = vrot.slane %v64_v28, 7  ;;  %43 = vst.msk [vmem:[#allocation2 + $0x8] sm:$0xf] %vm40_vm3, %v15979_v37  ;;  %vm15977_vm5 = vsmask.f32 256  ;;  %vm120_vm11 = vcmask 240657  }
   0xc   :  { %v85_v35 = vsel %vm11233_vm2, %v83_v31, %v84_v30  ;;  %44 = vst.msk [vmem:[#allocation2 + $0xc] sm:$0xf] %vm40_vm3, %v15979_v37  ;;  %vm2675_vm6 = vsmask.f32 1284  ;;  %vm824_vm7 = vsmask.f32 2312 }
   0xd   :  { %v95_v36 = vsel %vm11233_vm2, %v93_v32, %v94_v33  ;;  %45 = vst.msk [vmem:[#allocation2 + $0x10] sm:$0xf] %vm40_vm3, %v15979_v37  ;;  %vm2676_vm8 = vmor %vm15977_vm5, %vm2675_vm6  ;;  %vm2678_vm10 = vsmask.f32 3340  ;;  %vm826_vm12 = vsmask.f32 4368 }
   0xe   :  { %46 = vst.msk [vmem:[#allocation2 + $0x14] sm:$0xf] %vm40_vm3, %v15979_v37  ;;  %vm2677_vm9 = vmor %vm2676_vm8, %vm824_vm7  ;;  %vm828_vm14 = vsmask.f32 6424  ;;  %vm2681_vm2 = vsmask.f32 5396 }
   0xf   :  { %106 = vrot.lane.b32.xlu1 %v89_v26, %s11142_s29  ;;  %98 = vrot.lane.b32.xlu0 %v79_v27, %s11142_s29  ;;  %48 = vst.msk [vmem:[#allocation2 + $0x1c] sm:$0xf] %vm40_vm3, %v15979_v37  ;;  %vm2679_vm13 = vmor %vm2677_vm9, %vm2678_vm10  ;;  %vm155_vm5 = vcmask 1041408   ;;  %vm159_vm1 = vcmask 1043458   ;;  %vm319_vm9 = vsmask.f32 1280 }
  0x10   :  { %2159 = vst [vmem:[#allocation4] sm:$0xff] %v15979_v37  ;;  %vm2680_vm15 = vmor %vm2679_vm13, %vm826_vm12  ;;  %vm320_vm10 = vsmask.f32 3336  ;;  %s11147_s18 = smov [#allocation6]  }
  0x11   :  { %2160 = vst.msk [vmem:[#allocation4 + $0x8] sm:$0xf] %vm40_vm3, %v15979_v37  ;;  %vm2682_vm6 = vmor %vm2680_vm15, %vm2681_vm2 }
  0x12   :  { %100 = vrot.lane.b32.xlu2 %v82_v34, %s11142_s29  ;;  %2161 = vst [vmem:[#allocation4 + $0xc] sm:$0xff] %v15979_v37  ;;  %vm11297_vm8 = vmor %vm2682_vm6, %vm828_vm14  ;;  %vm624_vm6 = vcmask 1042434  }
  0x13   :  { %2162 = vst.msk [vmem:[#allocation4 + $0x14] sm:$0xf] %vm40_vm3, %v15979_v37  ;;  %vm11359_vm13 = vmor %vm319_vm9, %vm320_vm10  ;;  %vm627_vm9 = vcmask 1046534   ;;  %vm125_vm10 = vcmask 239632  }
  0x14   :  { %2163 = vst [vmem:[#allocation4 + $0x18] sm:$0x11] %v15979_v37 }
  0x15   :  { %2166 = vst [vmem:[#allocation4 + $0x24] sm:$0xff] %v15979_v37 }
  0x16   :  { %2167 = vst.msk [vmem:[#allocation4 + $0x2c] sm:$0xf] %vm40_vm3, %v15979_v37 }
  0x17   :  { %102 = vrot.lane.b32.xlu1 %v85_v35, %s11142_s29  ;;  %110 = vrot.lane.b32.xlu0 %v95_v36, %s11142_s29  ;;  %2168 = vst [vmem:[#allocation4 + $0x30] sm:$0xff] %v15979_v37 }
  0x18   :  { %2169 = vst.msk [vmem:[#allocation4 + $0x38] sm:$0xf] %vm40_vm3, %v15979_v37 }
  0x19   :  { %2170 = vst [vmem:[#allocation4 + $0x3c] sm:$0x11] %v15979_v37 }
  0x64   :  { %v109_v38 = vpop.permute.xlu2 %108 }
  0x65   :  { %129 = vst.msk [vmem:[#allocation2 + $0x18] sm:$0xf] %vm122_vm4, %v109_v38 }
  0x6c   :  { %v101_v39 = vpop.permute.xlu2 %100  ;;  %v11293_v43 = vld [vmem:[#allocation2 + $0x18] sm:$0xf] }
  0x6d   :  { %124 = vst.msk [vmem:[#allocation2 + $0x8] sm:$0xf] %vm122_vm4, %v101_v39  ;;  %v153_v48 = vrot.slane %v11293_v43, 2  ;;  %v253_v50 = vld [vmem:[#allocation2 + $0x18] sm:$0xf] }
  0x6e   :  { %v269_v53 = vrot.slane %v253_v50, 2  ;;  %v550_v60 = vld [vmem:[#allocation2 + $0x18] sm:$0xf] }
  0x6f   :  { %v193_v51 = vsel %vm159_vm1, %v11293_v43, %v153_v48  ;;  %v757_v1 = vld [vmem:[#allocation2 + $0x18] sm:$0xf]  ;;  %v566_v7 = vrot.slane %v550_v60, 2 }
  0x70   :  { %v195_v55 = vrot.slane %v193_v51, 2  ;;  %v310_v57 = vsel %vm159_vm1, %v253_v50, %v269_v53  ;;  %v309_v0 = vsel %vm155_vm5, %v253_v50, %v269_v53  ;;  %v773_v9 = vrot.slane %v757_v1, 2 }
  0x71   :  { %v312_v3 = vrot.slane %v310_v57, 2  ;;  %v433_v8 = vshll.u32 %v309_v0, 16  ;;  %v437_v10 = vshrl.u32 %v309_v0, 16  ;;  %v614_v15 = vsel %vm159_vm1, %v550_v60, %v566_v7 }
  0x72   :  { %v11330_v17 = vsel %vm155_vm5, %v550_v60, %v566_v7  ;;  %v11333_v18 = vsel %vm159_vm1, %v757_v1, %v773_v9  ;;  %v616_v26 = vrot.slane %v614_v15, 2  ;;  %v11339_v30 = vsel %vm155_vm5, %v757_v1, %v773_v9 }
  0x73   :  { %v11319_v11 = vshll.u32 %v312_v3, 16  ;;  %v447_v12 = vshrl.u32 %v312_v3, 16  ;;  %v11327_v16 = vrot.slane %v433_v8, 7  ;;  %v439_v20 = vrot.slane %v437_v10, 6 }
  0x74   :  { %v133_v40 = vld [vmem:[#allocation2 + $0x8] sm:$0xf]  ;;  %v15982_v29 = vrot.slane %v11330_v17, 7 }
  0x75   :  { %v149_v44 = vrot.slane %v133_v40, 2  ;;  %v249_v19 = vld [vmem:[#allocation2 + $0x8] sm:$0xf]  ;;  %v445_v24 = vrot.slane %v11319_v11, 7  ;;  %v449_v25 = vrot.slane %v447_v12, 6 }
  0x76   :  { %v265_v31 = vrot.slane %v249_v19, 2  ;;  %v546_v34 = vld [vmem:[#allocation2 + $0x8] sm:$0xf]  ;;  %v11371_v53 = vrot.slane %v15982_v29, 2 }
  0x77   :  { %v171_v46 = vsel %vm155_vm5, %v133_v40, %v149_v44  ;;  %v172_v47 = vsel %vm159_vm1, %v133_v40, %v149_v44  ;;  %v440_v40 = vor.u32 %v439_v20, %v11327_v16  ;;  %v562_v50 = vrot.slane %v546_v34, 2 }
  0x78   :  { %v174_v49 = vrot.slane %v172_v47, 2  ;;  %209 = vst [vmem:[#allocation1 + $0x20] ss:$2 sm:$0xff] %v171_v46  ;;  %v285_v47 = vsel %vm155_vm5, %v249_v19, %v265_v31 }
  0x79   :  { %v105_v41 = vpop.permute.xlu1 %104  ;;  %v97_v42 = vpop.permute.xlu0 %96  ;;  %v363_v0 = vshll.u32 %v285_v47, 16  ;;  %v367_v1 = vshrl.u32 %v285_v47, 16  ;;  %v11391_v3 = vrot.slane %v440_v40, 2  ;;  %v11402_v12 = vsel %vm159_vm1, %v546_v34, %v562_v50 }
  0x7a   :  { %127 = vst.msk [vmem:[#allocation2 + $0x10] sm:$0xe] %vm120_vm11, %v105_v41  ;;  %v11350_v41 = vor.u32 %v449_v25, %v445_v24 }
  0x7b   :  { %121 = vst.msk [vmem:[#allocation2] sm:$0xe] %vm120_vm11, %v97_v42  ;;  %vm322_vm11 = vsmask.f32 5392 }
  0x7c   :  { %212 = vst [vmem:[#allocation1 + $0x21] ss:$2 sm:$0xff] %v174_v49  ;;  %v286_v49 = vsel %vm159_vm1, %v249_v19, %v265_v31  ;;  %vm323_vm15 = vmor %vm11359_vm13, %vm322_vm11  ;;  %v588_v31 = vrot.slane %v11402_v12, 2 }
  0x7d   :  { %vm11476_vm11 = vmor %vm73_vm0, %vm624_vm6 }
  0x81   :  { %v107_v52 = vpop.permute.xlu1 %106  ;;  %v11310_v58 = vld [vmem:[#allocation2 + $0x10] sm:$0xf]  ;;  %v99_v6 = vpop.permute.xlu0 %98 }
  0x82   :  { %v131_v54 = vld [vmem:[#allocation2] sm:$0xf]  ;;  %128 = vst.msk [vmem:[#allocation2 + $0x14] sm:$0xf] %vm122_vm4, %v107_v52  ;;  %v151_v4 = vrot.slane %v11310_v58, 2  ;;  %v11367_v52 = vsel %vm155_vm5, %v11293_v43, %v153_v48 }
  0x83   :  { %v147_v56 = vrot.slane %v131_v54, 2  ;;  %v247_v59 = vld [vmem:[#allocation2] sm:$0xf]  ;;  %v219_v63 = vld.sshfl [vmem:[#allocation1 + $0x20] sm:$0xff pattern:$0x75643120] }
  0x84   :  { %v263_v5 = vrot.slane %v247_v59, 2  ;;  %228 = vst [vmem:[#allocation1 + $0x20] ss:$2 sm:$0xff] %v195_v55  ;;  %v181_v13 = vsel %vm159_vm1, %v11310_v58, %v151_v4  ;;  %v11343_v33 = vld [vmem:[#allocation2 + $0x10] sm:$0xf] }
  0x85   :  { %v158_v61 = vsel %vm155_vm5, %v131_v54, %v147_v56  ;;  %v160_v62 = vsel %vm159_vm1, %v131_v54, %v147_v56  ;;  %242 = vst.msk [vmem:[#allocation3 + $0x10] sm:$0xf] %vm40_vm3, %v219_v63  ;;  %v183_v21 = vrot.slane %v181_v13, 2  ;;  %v267_v46 = vrot.slane %v11343_v33, 2  ;;  %v11374_v55 = vld [vmem:[#allocation2 + $0x10] sm:$0xe] }
  0x86   :  { %v162_v2 = vrot.slane %v160_v62, 2  ;;  %199 = vst [vmem:[#allocation1] ss:$2 sm:$0xff] %v158_v61  ;;  %v273_v14 = vsel %vm155_vm5, %v247_v59, %v263_v5  ;;  %v274_v28 = vsel %vm159_vm1, %v247_v59, %v263_v5  ;;  %v11376_v56 = vld [vmem:[#allocation2 + $0x8] sm:$0xf]  ;;  %v11386_v62 = vrot.slane %v616_v26, 7 }
  0x87   :  { %123 = vst.msk [vmem:[#allocation2 + $0x4] sm:$0xf] %vm122_vm4, %v99_v6  ;;  %v326_v22 = vshrl.u32 %v273_v14, 16  ;;  %v329_v23 = vshll.u32 %v273_v14, 16  ;;  %vm324_vm4 = vsmask.f32 7448  ;;  %v298_v43 = vsel %vm159_vm1, %v11343_v33, %v267_v46 }
  0x88   :  { %202 = vst [vmem:[#allocation1 + $0x1] ss:$2 sm:$0xff] %v162_v2  ;;  %v276_v36 = vrot.slane %v274_v28, 2  ;;  %v288_v63 = vrot.slane %v286_v49, 2  ;;  %v11395_v6 = vsel %vm155_vm5, %v546_v34, %v562_v50  ;;  %v15981_v7 = vrot.slane %v11376_v56, 2  ;;  %vm11405_vm2 = vmor %vm323_vm15, %vm324_vm4 }
  0x89   :  { %v11341_v32 = vld [vmem:[#allocation2 + $0x14] sm:$0xf]  ;;  %v328_v38 = vrot.slane %v326_v22, 6  ;;  %v331_v39 = vrot.slane %v329_v23, 7  ;;  %v300_v8 = vrot.slane %v298_v43, 2  ;;  %v15983_v9 = vrot.slane %v11374_v55, 2 }
  0x8a   :  { %v152_v44 = vrot.slane %v11341_v32, 2  ;;  %v335_v59 = vshll.u32 %v276_v36, 16  ;;  %v339_v60 = vshrl.u32 %v276_v36, 16  ;;  %v252_v2 = vld [vmem:[#allocation2 + $0x14] sm:$0xf]  ;;  %v11409_v22 = vrot.slane %v363_v0, 7 }
  0x8b   :  { %v332_v48 = vor.u32 %v331_v39, %v328_v38  ;;  %v11399_v10 = vld [vmem:[#allocation2] sm:$0xe]  ;;  %v268_v20 = vrot.slane %v252_v2, 2  ;;  %v11411_v23 = vrot.slane %v367_v1, 6  ;;  %v11413_v25 = vshll.u32 %v288_v63, 16 }
  0x8c   :  { %v186_v57 = vsel %vm155_vm5, %v11341_v32, %v152_v44  ;;  %v337_v15 = vrot.slane %v335_v59, 7  ;;  %v341_v19 = vrot.slane %v339_v60, 6  ;;  %v11415_v26 = vshrl.u32 %v288_v63, 16  ;;  %v751_v28 = vld [vmem:[#allocation2] sm:$0xe] }
  0x8d   :  { %v333_v14 = vrot.slane %v332_v48, 2  ;;  %v11423_v34 = vsel %vm155_vm5, %v11376_v56, %v15981_v7  ;;  %v303_v36 = vsel %vm155_vm5, %v252_v2, %v268_v20  ;;  %v11426_v39 = vshll.u32 %v300_v8, 16 }
  0x8e   :  { %v132_v61 = vld [vmem:[#allocation2 + $0x4] sm:$0xf]  ;;  %v409_v40 = vshrl.u32 %v300_v8, 16  ;;  %v600_v47 = vsel %vm159_vm1, %v11374_v55, %v15983_v9  ;;  %v15985_v43 = vrot.slane %v11395_v6, 7  ;;  %v414_v59 = vshll.u32 %v303_v36, 16 }
  0x8f   :  { %v217_v27 = vld.sshfl [vmem:[#allocation1] sm:$0xff pattern:$0x75643120]  ;;  %v148_v13 = vrot.slane %v132_v61, 2  ;;  %v248_v38 = vld [vmem:[#allocation2 + $0x4] sm:$0xf]  ;;  %v338_v51 = vsel %vm11405_vm2, %v333_v14, %v337_v15 }
  0x90   :  { %222 = vst [vmem:[#allocation1] ss:$2 sm:$0xff] %v183_v21  ;;  %v418_v60 = vshrl.u32 %v303_v36, 16  ;;  %v264_v0 = vrot.slane %v248_v38, 2  ;;  %v602_v1 = vrot.slane %v600_v47, 2  ;;  %v767_v37 = vrot.slane %v751_v28, 2 }
  0x91   :  { %240 = vst.msk [vmem:[#allocation3] sm:$0xf] %vm40_vm3, %v217_v27  ;;  %v560_v27 = vrot.slane %v11399_v10, 2  ;;  %v165_v50 = vsel %vm155_vm5, %v132_v61, %v148_v13  ;;  %v166_v48 = vsel %vm159_vm1, %v132_v61, %v148_v13  ;;  %v860_v14 = vshrl.u32 %v11423_v34, 16 }
  0x92   :  { %223 = vst [vmem:[#allocation1 + $0x1] ss:$2 sm:$0xff] %v186_v57  ;;  %v342_v57 = vor.u32 %v341_v19, %v337_v15  ;;  %v168_v63 = vrot.slane %v166_v48, 2  ;;  %v15984_v15 = vrot.slane %v11426_v39, 7  ;;  %v411_v19 = vrot.slane %v409_v40, 6 }
  0x93   :  { %v572_v8 = vsel %vm159_vm1, %v11399_v10, %v560_v27  ;;  %204 = vst [vmem:[#allocation1 + $0x10] ss:$2 sm:$0xff] %v165_v50  ;;  %v279_v61 = vsel %vm155_vm5, %v248_v38, %v264_v0  ;;  %v280_v13 = vsel %vm159_vm1, %v248_v38, %v264_v0  ;;  %v304_v36 = vsel %vm159_vm1, %v252_v2, %v268_v20 }
  0x94   :  { %207 = vst [vmem:[#allocation1 + $0x11] ss:$2 sm:$0xff] %v168_v63  ;;  %v348_v47 = vshrl.u32 %v279_v61, 16  ;;  %v343_v48 = vrot.slane %v342_v57, 2  ;;  %v574_v54 = vrot.slane %v572_v8, 2  ;;  %v416_v42 = vrot.slane %v414_v59, 7 }
  0x95   :  { %v420_v35 = vrot.slane %v418_v60, 6  ;;  %v187_v50 = vsel %vm159_vm1, %v11341_v32, %v152_v44  ;;  %v11451_v29 = vrot.slane %v602_v1, 7  ;;  %v778_v2 = vsel %vm159_vm1, %v751_v28, %v767_v37 }
  0x96   :  { %v306_v20 = vrot.slane %v304_v36, 2  ;;  %v350_v38 = vrot.slane %v348_v47, 6  ;;  %v412_v57 = vor.u32 %v411_v19, %v15984_v15  ;;  %v11461_v44 = vsel %vm155_vm5, %v11399_v10, %v560_v27  ;;  %v103_v10 = vpop.permute.xlu1 %102 }
  0x97   :  { %v375_v0 = vrot.slane %v11413_v25, 7  ;;  %v189_v1 = vrot.slane %v187_v50, 2  ;;  %v421_v8 = vor.u32 %v420_v35, %v416_v42  ;;  %v777_v19 = vsel %vm155_vm5, %v751_v28, %v767_v37  ;;  %v549_v50 = vld [vmem:[#allocation2 + $0x14] sm:$0xf]  ;;  %126 = vst.msk [vmem:[#allocation2 + $0xc] sm:$0x7] %vm125_vm10, %v103_v10 }
  0x98   :  { %v780_v36 = vrot.slane %v778_v2, 2  ;;  %v428_v47 = vshrl.u32 %v306_v20, 16  ;;  %v413_v27 = vrot.slane %v412_v57, 2  ;;  %v379_v35 = vrot.slane %v11415_v26, 6 }
  0x99   :  { %v230_v49 = vld.sshfl [vmem:[#allocation1] sm:$0xff pattern:$0x75643120]  ;;  %v830_v2 = vshrl.u32 %v777_v19, 16  ;;  %vm15997_vm4 = vcmask 1044484  }
  0x9a   :  { %244 = vst.msk [vmem:[#allocation3 + $0x20] sm:$0xf] %vm40_vm3, %v230_v49  ;;  %v282_v49 = vrot.slane %v280_v13, 2  ;;  %v11465_v13 = vrot.slane %v574_v54, 7  ;;  %v111_v54 = vpop.permute.xlu0 %110  ;;  %v11487_v26 = vshrl.u32 %v780_v36, 16  ;;  %vm11496_vm13 = vmor %vm11476_vm11, %vm15997_vm4  ;;  %vm743_vm4 = vcmask 781824  }
  0x9b   :  { %467 = vst [vmem:[#allocation1] ss:$2 sm:$0xff] %v338_v51  ;;  %v344_v51 = vshll.u32 %v279_v61, 16  ;;  %v655_v61 = vrot.slane %v11451_v29, 2  ;;  %vm11529_vm15 = vmor %vm11496_vm13, %vm627_vm9  ;;  %vm15986_vm13 = vcmask 1044224  }
  0x9c   :  { %v11449_v63 = vshll.u32 %v282_v49, 16  ;;  %v358_v7 = vshrl.u32 %v282_v49, 16  ;;  %v218_v49 = vld.sshfl [vmem:[#allocation1 + $0x10] sm:$0xff pattern:$0x75643120] }
  0x9d   :  { %v346_v40 = vrot.slane %v344_v51, 7  ;;  %v424_v51 = vshll.u32 %v306_v20, 16  ;;  %225 = vst [vmem:[#allocation1 + $0x10] ss:$2 sm:$0xff] %v189_v1  ;;  %v422_v20 = vrot.slane %v421_v8, 2  ;;  %v417_v8 = vsel %vm11405_vm2, %v413_v27, %v416_v42 }
  0x9e   :  { %v356_v60 = vrot.slane %v11449_v63, 7  ;;  %v360_v32 = vrot.slane %v358_v7, 6  ;;  %226 = vst [vmem:[#allocation1 + $0x11] ss:$2 sm:$0xff] %v11367_v52  ;;  %v180_v52 = vsel %vm155_vm5, %v11310_v58, %v151_v4  ;;  %v11502_v4 = vor.u32 %v379_v35, %v375_v0 }
  0x9f   :  { %v347_v59 = vsel %vm11405_vm2, %v343_v48, %v346_v40  ;;  %v351_v7 = vor.u32 %v350_v38, %v346_v40  ;;  %v370_v48 = vor.u32 %v11411_v23, %v11409_v22  ;;  %v8124_v40 = vrot.slane %v11461_v44, 9  ;;  %241 = vst.msk [vmem:[#allocation3 + $0x8] sm:$0xf] %vm40_vm3, %v218_v49  ;;  %v545_v38 = vld [vmem:[#allocation2 + $0x4] sm:$0xf] }
  0xa0   :  { %470 = vst [vmem:[#allocation1 + $0x1] ss:$2 sm:$0xff] %v347_v59  ;;  %v361_v37 = vor.u32 %v360_v32, %v356_v60  ;;  %v633_v23 = vrot.slane %v11465_v13, 2  ;;  %v426_v57 = vrot.slane %v424_v51, 7  ;;  %v430_v59 = vrot.slane %v428_v47, 6 }
  0xa1   :  { %v565_v32 = vrot.slane %v549_v50, 2  ;;  %v11490_v44 = vld [vmem:[#allocation2 + $0x14] sm:$0xf]  ;;  %v352_v1 = vrot.slane %v351_v7, 2  ;;  %130 = vst.msk [vmem:[#allocation2 + $0x1c] sm:$0x7] %vm125_vm10, %v111_v54  ;;  %v446_v63 = vsel %vm11405_vm2, %v11391_v3, %v445_v24 }
  0xa2   :  { %v362_v19 = vrot.slane %v361_v37, 2  ;;  %216 = vst [vmem:[#allocation1 + $0x31] ss:$2 sm:$0xff] %v180_v52  ;;  %v11506_v51 = vrot.slane %v830_v2, 9  ;;  %v11508_v47 = vshll.u32 %v780_v36, 16  ;;  %v371_v7 = vrot.slane %v370_v48, 2 }
  0xa3   :  { %v427_v10 = vsel %vm11405_vm2, %v422_v20, %v426_v57  ;;  %v11516_v42 = vrot.slane %v15985_v43, 2  ;;  %v11520_v27 = vrot.slane %v588_v31, 7  ;;  %v11524_v36 = vrot.slane %v860_v14, 7 }
  0xa4   :  { %v431_v37 = vor.u32 %v430_v59, %v426_v57  ;;  %v607_v54 = vsel %vm159_vm1, %v549_v50, %v565_v32  ;;  %v357_v12 = vsel %vm11405_vm2, %v352_v1, %v356_v60  ;;  %v561_v31 = vrot.slane %v545_v38, 2  ;;  %v250_v60 = vld [vmem:[#allocation2 + $0xc] sm:$0x7] }
  0xa5   :  { %v231_v28 = vld.sshfl [vmem:[#allocation1 + $0x10] sm:$0xff pattern:$0x75643120]  ;;  %v381_v14 = vrot.slane %v11502_v4, 2  ;;  %v11540_v2 = vsel %vm155_vm5, %v549_v50, %v565_v32  ;;  %v772_v20 = vrot.slane %v11490_v44, 2  ;;  %v366_v52 = vsel %vm11405_vm2, %v362_v19, %v11409_v22 }
  0xa6   :  { %473 = vst [vmem:[#allocation1 + $0x10] ss:$2 sm:$0xff] %v357_v12  ;;  %v134_v57 = vld [vmem:[#allocation2 + $0xc] sm:$0x3]  ;;  %v297_v50 = vsel %vm155_vm5, %v11343_v33, %v267_v46  ;;  %v632_v59 = vsel %vm11529_vm15, %v8124_v40, %v11465_v13  ;;  %v11562_v11 = vsel %vm11405_vm2, %v371_v7, %v375_v0  ;;  %v609_v22 = vrot.slane %v607_v54, 2 }
  0xa7   :  { %v489_v49 = vld.sshfl [vmem:[#allocation1] sm:$0xff pattern:$0x75643120]  ;;  %476 = vst [vmem:[#allocation1 + $0x11] ss:$2 sm:$0xff] %v366_v52  ;;  %v266_v24 = vrot.slane %v250_v60, 2  ;;  %v577_v33 = vsel %vm155_vm5, %v545_v38, %v561_v31  ;;  %v579_v0 = vsel %vm159_vm1, %v545_v38, %v561_v31  ;;  %v11574_v54 = vsel %vm155_vm5, %v11490_v44, %v772_v20 }
  0xa8   :  { %515 = vrot.lane.b32.xlu2 %v489_v49, %s11144_s0  ;;  %498 = vst [vmem:[#allocation1] ss:$2 sm:$0xff] %v417_v8  ;;  %v138_v3 = vld [vmem:[#allocation2 + $0x1c] sm:$0x3]  ;;  %v432_v32 = vrot.slane %v431_v37, 2  ;;  %v656_v1 = vrot.slane %v11540_v2, 7 }
  0xa9   :  { %500 = vst [vmem:[#allocation1 + $0x1] ss:$2 sm:$0xff] %v427_v10  ;;  %v154_v46 = vrot.slane %v138_v3, 2  ;;  %v254_v58 = vld [vmem:[#allocation2 + $0x1c] sm:$0x7]  ;;  %v291_v40 = vsel %vm155_vm5, %v250_v60, %v266_v24  ;;  %v396_v8 = vshrl.u32 %v297_v50, 16 }
  0xaa   :  { %245 = vst.msk [vmem:[#allocation3 + $0x28] sm:$0xf] %vm40_vm3, %v231_v28  ;;  %v752_v4 = vld [vmem:[#allocation2 + $0x4] sm:$0xf]  ;;  %v270_v25 = vrot.slane %v254_v58, 2  ;;  %v399_v19 = vshll.u32 %v297_v50, 16  ;;  %v11580_v50 = vsel %vm159_vm1, %v11490_v44, %v772_v20 }
  0xab   :  { %v382_v49 = vshll.u32 %v291_v40, 16  ;;  %v198_v7 = vsel %vm155_vm5, %v138_v3, %v154_v46  ;;  %v150_v37 = vrot.slane %v134_v57, 2  ;;  %v634_v28 = vrot.slane %v577_v33, 7 }
  0xac   :  { %229 = vst [vmem:[#allocation1 + $0x21] ss:$2 sm:$0xff] %v198_v7  ;;  %v315_v12 = vsel %vm155_vm5, %v254_v58, %v270_v25  ;;  %v316_v52 = vsel %vm159_vm1, %v254_v58, %v270_v25  ;;  %v768_v38 = vrot.slane %v752_v4, 2  ;;  %v436_v46 = vsel %vm11405_vm2, %v432_v32, %v11327_v16 }
  0xad   :  { %v452_v31 = vshll.u32 %v315_v12, 16  ;;  %v456_v3 = vshrl.u32 %v315_v12, 16  ;;  %v581_v9 = vrot.slane %v579_v0, 2  ;;  %v398_v33 = vrot.slane %v396_v8, 6  ;;  %v11611_v12 = vld [vmem:[#allocation2 + $0xc] sm:$0xf] }
  0xae   :  { %v491_v5 = vld.sshfl [vmem:[#allocation1 + $0x10] sm:$0xff pattern:$0x75643120]  ;;  %v401_v7 = vrot.slane %v399_v19, 7  ;;  %v384_v35 = vrot.slane %v382_v49, 7  ;;  %v318_v15 = vrot.slane %v316_v52, 2  ;;  %v177_v44 = vsel %vm155_vm5, %v134_v57, %v150_v37 }
  0xaf   :  { %v458_v43 = vrot.slane %v456_v3, 6  ;;  %517 = vrot.lane.b32.xlu0 %v491_v5, %s11144_s0  ;;  %502 = vst [vmem:[#allocation1 + $0x10] ss:$2 sm:$0xff] %v436_v46  ;;  %v658_v20 = vrot.slane %v656_v1, 2  ;;  %v635_v16 = vsel %vm11529_vm15, %v633_v23, %v634_v28  ;;  %v292_v32 = vsel %vm159_vm1, %v250_v60, %v266_v24  ;;  %v547_v60 = vld [vmem:[#allocation2 + $0xc] sm:$0x7] }
  0xb0   :  { %v11570_v10 = vld.sshfl [vmem:[#allocation1] sm:$0xff pattern:$0x75643120]  ;;  %504 = vst [vmem:[#allocation1 + $0x11] ss:$2 sm:$0xff] %v446_v63  ;;  %v810_v58 = vrot.slane %v11580_v50, 2  ;;  %v11598_v5 = vsel %vm155_vm5, %v752_v4, %v768_v38  ;;  %v385_v57 = vsel %vm11405_vm2, %v381_v14, %v384_v35  ;;  %v11607_v23 = vsel %vm159_vm1, %v752_v4, %v768_v38 }
  0xb1   :  { %674 = vst [vmem:[#allocation1] ss:$2 sm:$0xff] %v632_v59  ;;  %v11589_v59 = vrot.slane %v609_v22, 7  ;;  %v11602_v25 = vrot.slane %v452_v31, 7  ;;  %v11604_v22 = vld [vmem:[#allocation2 + $0x10] sm:$0xe]  ;;  %v402_v63 = vor.u32 %v401_v7, %v398_v33 }
  0xb2   :  { %677 = vst [vmem:[#allocation1 + $0x1] ss:$2 sm:$0xff] %v635_v16  ;;  %v636_v13 = vrot.slane %v634_v28, 2  ;;  %v637_v8 = vrot.slane %v581_v9, 7  ;;  %v462_v0 = vshll.u32 %v318_v15, 16  ;;  %v294_v49 = vrot.slane %v292_v32, 2 }
  0xb3   :  { %214 = vst [vmem:[#allocation1 + $0x30] ss:$2 sm:$0xff] %v177_v44  ;;  %v232_v24 = vld.sshfl [vmem:[#allocation1 + $0x20] sm:$0xff pattern:$0x75643120]  ;;  %v459_v19 = vor.u32 %v458_v43, %v11602_v25  ;;  %v386_v37 = vshrl.u32 %v291_v40, 16 }
  0xb4   :  { %v906_v14 = vshrl.u32 %v11574_v54, 16  ;;  %482 = vst [vmem:[#allocation1 + $0x21] ss:$2 sm:$0xff] %v385_v57  ;;  %v771_v28 = vrot.slane %v11604_v22, 2  ;;  %v786_v9 = vrot.slane %v11607_v23, 2  ;;  %v392_v52 = vshll.u32 %v294_v49, 16 }
  0xb5   :  { %246 = vst.msk [vmem:[#allocation3 + $0x30] sm:$0xf] %vm40_vm3, %v232_v24  ;;  %v388_v4 = vrot.slane %v386_v37, 6  ;;  %v563_v38 = vrot.slane %v547_v60, 2  ;;  %v638_v43 = vsel %vm11529_vm15, %v636_v13, %v637_v8  ;;  %v639_v15 = vrot.slane %v637_v8, 2 }
  0xb6   :  { %v843_v40 = vshrl.u32 %v11598_v5, 16  ;;  %479 = vst [vmem:[#allocation1 + $0x20] ss:$2 sm:$0xff] %v11562_v11  ;;  %v403_v31 = vrot.slane %v402_v63, 2  ;;  %v460_v3 = vrot.slane %v459_v19, 2  ;;  %v464_v46 = vrot.slane %v462_v0, 7 }
  0xb7   :  { %v11620_v33 = vld.sshfl [vmem:[#allocation1 + $0x10] sm:$0xff pattern:$0x75643120]  ;;  %v389_v7 = vor.u32 %v388_v4, %v384_v35  ;;  %v394_v44 = vrot.slane %v392_v52, 7  ;;  %vm16002_vm10 = vsmask.f32 256  ;;  %v657_v11 = vsel %vm11529_vm15, %v655_v61, %v656_v1 }
  0xb8   :  { %vm11624_vm11 = vmor %vm16002_vm10, %vm824_vm7  ;;  %680 = vst [vmem:[#allocation1 + $0x10] ss:$2 sm:$0xff] %v638_v43  ;;  %v770_v57 = vrot.slane %v11611_v12, 2  ;;  %v11639_v35 = vsel %vm159_vm1, %v11604_v22, %v771_v28  ;;  %v660_v13 = vsel %vm11529_vm15, %v658_v20, %v11589_v59  ;;  %v11646_v1 = vsel %vm155_vm5, %v547_v60, %v563_v38 }
  0xb9   :  { %v696_v32 = vld.sshfl [vmem:[#allocation1] sm:$0xff pattern:$0x75643120]  ;;  %v390_v61 = vrot.slane %v389_v7, 2  ;;  %v11650_v8 = vshrl.u32 %v810_v58, 16  ;;  %v16005_v63 = vrot.slane %v11395_v6, 7  ;;  %vm11663_vm7 = vmor %vm11624_vm11, %vm826_vm12  ;;  %v465_v52 = vsel %vm11405_vm2, %v460_v3, %v464_v46 }
  0xba   :  { %722 = vrot.lane.b32.xlu1 %v696_v32, %s11145_s15  ;;  %705 = vst [vmem:[#allocation1] ss:$2 sm:$0xff] %v657_v11  ;;  %v220_v2 = vld.sshfl [vmem:[#allocation1 + $0x30] sm:$0xff pattern:$0x75643120]  ;;  %v11656_v19 = vrot.slane %v843_v40, 7  ;;  %v796_v20 = vsel %vm159_vm1, %v11611_v12, %v770_v57  ;;  %vm11696_vm12 = vmor %vm11663_vm7, %vm828_vm14 }
  0xbb   :  { %v641_v24 = vsel %vm11529_vm15, %v639_v15, %v16005_v63  ;;  %707 = vst [vmem:[#allocation1 + $0x1] ss:$2 sm:$0xff] %v660_v13  ;;  %v846_v49 = vshll.u32 %v11598_v5, 16  ;;  %v11670_v6 = vshrl.u32 %v786_v9, 16  ;;  %v395_v37 = vsel %vm11405_vm2, %v390_v61, %v394_v44 }
  0xbc   :  { %683 = vst [vmem:[#allocation1 + $0x11] ss:$2 sm:$0xff] %v641_v24  ;;  %v804_v4 = vrot.slane %v11639_v35, 2  ;;  %v16008_v43 = vrot.slane %v11426_v39, 7  ;;  %v593_v5 = vsel %vm159_vm1, %v547_v60, %v563_v38  ;;  %v646_v40 = vrot.slane %v11646_v1, 7 }
  0xbd   :  { %485 = vst [vmem:[#allocation1 + $0x30] ss:$2 sm:$0xff] %v395_v37  ;;  %v16009_v7 = vrot.slane %v11487_v26, 7  ;;  %v16010_v44 = vrot.slane %v11350_v41, 2  ;;  %v798_v39 = vrot.slane %v796_v20, 2  ;;  %v11703_v41 = vrot.slane %v906_v14, 7 }
  0xbe   :  { %v408_v15 = vsel %vm11405_vm2, %v403_v31, %v16008_v43  ;;  %v11691_v46 = vld.sshfl [vmem:[#allocation1 + $0x20] sm:$0xff pattern:$0x75643120]  ;;  %v661_v31 = vrot.slane %v11589_v59, 2  ;;  %v848_v21 = vor.u32 %v846_v49, %v11656_v19  ;;  %v918_v11 = vshll.u32 %v810_v58, 16 }
  0xbf   :  { %v840_v16 = vor.u32 %v11508_v47, %v16009_v7  ;;  %v455_v3 = vsel %vm11405_vm2, %v16010_v44, %v11602_v25  ;;  %488 = vst [vmem:[#allocation1 + $0x31] ss:$2 sm:$0xff] %v408_v15  ;;  %v16013_v38 = vmov %v16009_v7  ;;  %v863_v25 = vshll.u32 %v11423_v34, 16  ;;  %v551_v1 = vld [vmem:[#allocation2 + $0x1c] sm:$0x7] }
  0xc0   :  { %v842_v47 = vrot.slane %v16013_v38, 2  ;;  %506 = vst [vmem:[#allocation1 + $0x20] ss:$2 sm:$0xff] %v455_v3  ;;  %v648_v32 = vrot.slane %v646_v40, 2  ;;  %v8125_v13 = vrot.slane %v593_v5, 9  ;;  %v913_v61 = vrot.slane %v11703_v41, 2 }
  0xc1   :  { %508 = vst [vmem:[#allocation1 + $0x21] ss:$2 sm:$0xff] %v465_v52  ;;  %v917_v26 = vrot.slane %v11650_v8, 7  ;;  %v16014_v59 = vrot.slane %v11374_v55, 2  ;;  %v11717_v63 = vsel %vm155_vm5, %v11611_v12, %v770_v57  ;;  %v841_v34 = vsel %vm11696_vm12, %v11506_v51, %v840_v16  ;;  %v10596_v60 = vld [vmem:[%s15966_s1 + $0x94] sm:$0xf0] }
  0xc2   :  { %243 = vst.msk [vmem:[#allocation3 + $0x18] sm:$0xf] %vm40_vm3, %v220_v2  ;;  %v854_v50 = vrot.slane %v11670_v6, 7  ;;  %v11724_v58 = vld.sshfl [vmem:[#allocation1] sm:$0xff pattern:$0x75643120]  ;;  %v849_v57 = vsel %vm11696_vm12, %v842_v47, %v848_v21  ;;  %v650_v0 = vsel %vm11529_vm15, %v648_v32, %v8125_v13  ;;  %v666_v37 = vsel %vm11529_vm15, %v11371_v53, %v11386_v62 }
  0xc3   :  { %v598_v14 = vsel %vm155_vm5, %v11374_v55, %v16014_v59  ;;  %v886_v24 = vshrl.u32 %v798_v39, 16  ;;  %v898_v20 = vshrl.u32 %v804_v4, 16  ;;  %v16015_v55 = vrot.slane %v11330_v17, 7  ;;  %957 = vst [vmem:[#allocation1] ss:$2 sm:$0xff] %v841_v34 }
  0xc4   :  { %v698_v2 = vld.sshfl [vmem:[#allocation1 + $0x10] sm:$0xff pattern:$0x75643120]  ;;  %v645_v51 = vrot.slane %v11520_v27, 2  ;;  %960 = vst [vmem:[#allocation1 + $0x1] ss:$2 sm:$0xff] %v849_v57  ;;  %v644_v53 = vsel %vm11529_vm15, %v11516_v42, %v11520_v27 }
  0xc5   :  { %v663_v12 = vsel %vm11529_vm15, %v661_v31, %v16015_v55  ;;  %724 = vrot.lane.b32.xlu2 %v698_v2, %s11145_s15  ;;  %v8126_v49 = vrot.slane %v598_v14, 9  ;;  %v877_v6 = vshrl.u32 %v11717_v63, 16  ;;  %v909_v17 = vshll.u32 %v11574_v54, 16  ;;  %711 = vst [vmem:[#allocation1 + $0x11] ss:$2 sm:$0xff] %v666_v37 }
  0xc6   :  { %v16016_v52 = vrot.slane %v11376_v56, 2  ;;  %v567_v15 = vrot.slane %v551_v1, 2  ;;  %709 = vst [vmem:[#allocation1 + $0x10] ss:$2 sm:$0xff] %v663_v12  ;;  %v801_v54 = vsel %vm155_vm5, %v11604_v22, %v771_v28  ;;  %v888_v7 = vrot.slane %v886_v24, 7 }
  0xc7   :  { %v11750_v5 = vld.sshfl [vmem:[#allocation1 + $0x30] sm:$0xff pattern:$0x75643120]  ;;  %v889_v16 = vshll.u32 %v798_v39, 16  ;;  %v900_v44 = vrot.slane %v898_v20, 7  ;;  %v855_v3 = vshll.u32 %v786_v9, 16  ;;  %v647_v47 = vsel %vm11529_vm15, %v645_v51, %v646_v40 }
  0xc8   :  { %v11748_v43 = vsel %vm159_vm1, %v11376_v56, %v16016_v52  ;;  %v920_v56 = vor.u32 %v918_v11, %v917_v26  ;;  %v11764_v38 = vld.sshfl [vmem:[#allocation1 + $0x20] sm:$0xff pattern:$0x75643120]  ;;  %692 = vst [vmem:[#allocation1 + $0x30] ss:$2 sm:$0xff] %v650_v0  ;;  %v654_v22 = vsel %vm11529_vm15, %v8126_v49, %v11451_v29  ;;  %v11771_v28 = vrot.slane %v877_v6, 7 }
  0xc9   :  { %689 = vst [vmem:[#allocation1 + $0x21] ss:$2 sm:$0xff] %v647_v47  ;;  %v905_v42 = vrot.slane %v900_v44, 2  ;;  %v911_v27 = vor.u32 %v909_v17, %v11703_v41  ;;  %v857_v39 = vor.u32 %v855_v3, %v854_v50  ;;  %v619_v23 = vsel %vm155_vm5, %v551_v1, %v567_v15  ;;  %v758_v24 = vld [vmem:[#allocation2 + $0x1c] sm:$0xf] }
  0xca   :  { %695 = vst [vmem:[#allocation1 + $0x31] ss:$2 sm:$0xff] %v654_v22  ;;  %v893_v9 = vshrl.u32 %v801_v54, 16  ;;  %v901_v31 = vshll.u32 %v804_v4, 16  ;;  %v865_v40 = vor.u32 %v863_v25, %v11524_v36  ;;  %v859_v21 = vrot.slane %v854_v50, 2 }
  0xcb   :  { %v884_v11 = vrot.slane %v11771_v28, 2  ;;  %v891_v29 = vor.u32 %v889_v16, %v888_v7  ;;  %686 = vst [vmem:[#allocation1 + $0x20] ss:$2 sm:$0xff] %v644_v53  ;;  %v16017_v32 = vrot.slane %v11333_v18, 2  ;;  %v792_v41 = vrot.slane %v11748_v43, 2 }
  0xcc   :  { %v850_v59 = vrot.slane %v11656_v19, 2  ;;  %v921_v14 = vsel %vm11696_vm12, %v913_v61, %v920_v56  ;;  %v979_v35 = vld.sshfl [vmem:[#allocation1] sm:$0xff pattern:$0x75643120]  ;;  %v16018_v4 = vshrl.u32 %v11339_v30, 16  ;;  %v621_v34 = vsel %vm159_vm1, %v551_v1, %v567_v15 }
  0xcd   :  { %v11781_v13 = vshrl.u32 %v16017_v32, 16  ;;  %v668_v50 = vrot.slane %v619_v23, 7  ;;  %519 = vrot.lane.b32.xlu2 %v11691_v46, %s11144_s0  ;;  %1005 = vrot.lane.b32.xlu0 %v979_v35, %s11146_s16  ;;  %990 = vst [vmem:[#allocation1 + $0x1] ss:$2 sm:$0xff] %v921_v14  ;;  %v912_v19 = vsel %vm11696_vm12, %v905_v42, %v911_v27  ;;  %v8129_v55 = vrot.slane %v893_v9, 9 }
  0xce   :  { %v925_v25 = vrot.slane %v16018_v4, 7  ;;  %v858_v61 = vsel %vm11696_vm12, %v850_v59, %v857_v39  ;;  %v11797_v20 = vld.sshfl [vmem:[#allocation1 + $0x10] sm:$0xff pattern:$0x75643120]  ;;  %v903_v12 = vor.u32 %v901_v31, %v900_v44  ;;  %988 = vst [vmem:[#allocation1] ss:$2 sm:$0xff] %v912_v19  ;;  %v16019_v57 = vmov %v16017_v32 }
  0xcf   :  { %v667_v1 = vrot.slane %v11386_v62, 2  ;;  %v935_v46 = vshll.u32 %v16019_v57, 16  ;;  %v866_v2 = vsel %vm11696_vm12, %v859_v21, %v865_v40  ;;  %963 = vst [vmem:[#allocation1 + $0x10] ss:$2 sm:$0xff] %v858_v61  ;;  %v892_v51 = vsel %vm11696_vm12, %v884_v11, %v891_v29  ;;  %v1037_v11 = vld [vmem:[#allocation2 + $0xc] sm:$0xf] }
  0xd0   :  { %v934_v0 = vrot.slane %v11781_v13, 7  ;;  %v670_v49 = vrot.slane %v668_v50, 2  ;;  %v8127_v6 = vrot.slane %v621_v34, 9  ;;  %966 = vst [vmem:[#allocation1 + $0x11] ss:$2 sm:$0xff] %v866_v2  ;;  %v869_v17 = vshrl.u32 %v792_v41, 16 }
  0xd1   :  { %v774_v37 = vrot.slane %v758_v24, 2  ;;  %v702_v52 = vld.sshfl [vmem:[#allocation1 + $0x30] sm:$0xff pattern:$0x75643120]  ;;  %v16020_v62 = vshll.u32 %v11339_v30, 16  ;;  %v904_v18 = vsel %vm11696_vm12, %v8129_v55, %v903_v12  ;;  %v930_v54 = vrot.slane %v925_v25, 2 }
  0xd2   :  { %975 = vst [vmem:[#allocation1 + $0x30] ss:$2 sm:$0xff] %v892_v51  ;;  %v700_v15 = vld.sshfl [vmem:[#allocation1 + $0x20] sm:$0xff pattern:$0x75643120]  ;;  %v922_v7 = vrot.slane %v917_v26, 2  ;;  %v669_v16 = vsel %vm11529_vm15, %v667_v1, %v668_v50  ;;  %v937_v53 = vor.u32 %v935_v46, %v934_v0  ;;  %v672_v3 = vsel %vm11529_vm15, %v670_v49, %v8127_v6 }
  0xd3   :  { %v928_v43 = vor.u32 %v16020_v62, %v925_v25  ;;  %v820_v44 = vsel %vm159_vm1, %v758_v24, %v774_v37  ;;  %978 = vst [vmem:[#allocation1 + $0x31] ss:$2 sm:$0xff] %v904_v18  ;;  %v1034_v30 = vld [vmem:[#allocation2] sm:$0xc]  ;;  %v872_v56 = vshll.u32 %v792_v41, 16  ;;  %v871_v47 = vrot.slane %v869_v17, 7 }
  0xd4   :  { %713 = vst [vmem:[#allocation1 + $0x20] ss:$2 sm:$0xff] %v669_v16  ;;  %v880_v22 = vshll.u32 %v11717_v63, 16  ;;  %v819_v26 = vsel %vm155_vm5, %v758_v24, %v774_v37  ;;  %v822_v42 = vrot.slane %v820_v44, 2  ;;  %v867_v39 = vrot.slane %v11524_v36, 2 }
  0xd5   :  { %728 = vrot.lane.b32.xlu2 %v702_v52, %s11145_s15  ;;  %521 = vrot.lane.b32.xlu0 %v11750_v5, %s11144_s0  ;;  %715 = vst [vmem:[#allocation1 + $0x21] ss:$2 sm:$0xff] %v672_v3  ;;  %v11824_v8 = vld.sshfl [vmem:[#allocation1] sm:$0xff pattern:$0x75643120]  ;;  %v929_v48 = vsel %vm11696_vm12, %v922_v7, %v928_v43  ;;  %v874_v23 = vor.u32 %v872_v56, %v871_v47  ;;  %v940_v5 = vshrl.u32 %v819_v26, 16 }
  0xd6   :  { %1043 = vst.sshfl [vmem:[#allocation1] sm:$0xff pattern:$0x75643120] %v1034_v30  ;;  %v938_v63 = vsel %vm11696_vm12, %v930_v54, %v937_v53  ;;  %v876_v9 = vrot.slane %v871_v47, 2  ;;  %v882_v31 = vor.u32 %v880_v22, %v11771_v28  ;;  %v949_v40 = vshrl.u32 %v822_v42, 16 }
  0xd7   :  { %v981_v27 = vld.sshfl [vmem:[#allocation1 + $0x10] sm:$0xff pattern:$0x75643120]  ;;  %v875_v29 = vsel %vm11696_vm12, %v867_v39, %v874_v23  ;;  %v942_v32 = vrot.slane %v940_v5, 7  ;;  %v943_v41 = vshll.u32 %v819_v26, 16  ;;  %v952_v4 = vshll.u32 %v822_v42, 16 }
  0xd8   :  { %992 = vst [vmem:[#allocation1 + $0x10] ss:$2 sm:$0xff] %v929_v48  ;;  %1007 = vrot.lane.b32.xlu1 %v981_v27, %s11146_s16  ;;  %v883_v59 = vsel %vm11696_vm12, %v876_v9, %v882_v31  ;;  %v1038_v14 = vld [vmem:[#allocation2 + $0x10] sm:$0xc]  ;;  %v951_v35 = vrot.slane %v949_v40, 7  ;;  %v939_v12 = vrot.slane %v934_v0, 2 }
  0xd9   :  { %994 = vst [vmem:[#allocation1 + $0x11] ss:$2 sm:$0xff] %v938_v63  ;;  %v1035_v25 = vld [vmem:[#allocation2 + $0x4] sm:$0xf]  ;;  %v945_v50 = vor.u32 %v943_v41, %v942_v32  ;;  %v947_v24 = vrot.slane %v942_v32, 2  ;;  %vm536_vm14 = vcmask 519424  }
  0xda   :  { %v985_v21 = vld.sshfl [vmem:[#allocation1 + $0x30] sm:$0xff pattern:$0x75643120]  ;;  %v954_v19 = vor.u32 %v952_v4, %v951_v35  ;;  %v1041_v61 = vld [vmem:[#allocation2 + $0x1c] sm:$0xf]  ;;  %vm1307_vm2 = vcmask 261120  }
  0xdb   :  { %1049 = vst.sshfl [vmem:[#allocation1 + $0x30] sm:$0xff pattern:$0x75643120] %v1037_v11  ;;  %v946_v1 = vsel %vm11696_vm12, %v939_v12, %v945_v50  ;;  %v1039_v51 = vld [vmem:[#allocation2 + $0x14] sm:$0xf]  ;;  %vm1711_vm15 = vcmask 1041409  }
  0xdc   :  { %v11836_v36 = vld.sshfl [vmem:[#allocation1 + $0x20] sm:$0xff pattern:$0x75643120]  ;;  %v955_v46 = vsel %vm11696_vm12, %v947_v24, %v954_v19  ;;  %v8228_v49 = vld [vmem:[%s15966_s1 + $0x90] sm:$0xf]  ;;  %vm1719_vm10 = vcmask 1043459  }
  0xdd   :  { %523 = vrot.lane.b32.xlu2 %v11570_v10, %s11144_s0  ;;  %969 = vst [vmem:[#allocation1 + $0x20] ss:$2 sm:$0xff] %v875_v29  ;;  %v1051_v28 = vld [vmem:[#allocation1 + $0x1] ss:$2 sm:$0xff]  ;;  %v10595_v17 = vld [vmem:[%s15966_s1 + $0x94] sm:$0xf]  ;;  %v8229_v37 = vor.u32 %v10596_v60, %v8228_v49 }
  0xde   :  { %972 = vst [vmem:[#allocation1 + $0x21] ss:$2 sm:$0xff] %v883_v59  ;;  %v8230_v52 = vld [vmem:[%s15966_s1 + $0x98] sm:$0xf0]  ;;  %v8220_v62 = vld [vmem:[%s15966_s1 + $0x80] sm:$0xf] }
  0xdf   :  { %1065 = vst.sshfl [vmem:[#allocation1] sm:$0xff pattern:$0x75643120] %v1038_v14  ;;  %v8233_v43 = vor.u32 %v10595_v17, %v8230_v52  ;;  %v10594_v18 = vld [vmem:[%s15966_s1 + $0x84] sm:$0xf0]  ;;  %1354 = vmatpush.bf16.msra.mxu1 %v8229_v37  ;;  %vm2263_vm11 = vcmask 1045509  }
  0xe0   :  { %726 = vrot.lane.b32.xlu1 %v700_v15, %s11145_s15  ;;  %1079 = vst [vmem:[#allocation1] ss:$2 sm:$0xff] %v1051_v28  ;;  %v11843_v34 = vld.sshfl [vmem:[#allocation1 + $0x10] sm:$0xff pattern:$0x75643120]  ;;  %vm2269_vm7 = vcmask 1047559  }
  0xe1   :  { %1045 = vst.sshfl [vmem:[#allocation1 + $0x10] sm:$0xff pattern:$0x75643120] %v1035_v25  ;;  %v10593_v15 = vld [vmem:[%s15966_s1 + $0x84] sm:$0xf]  ;;  %1410 = vmatpush.bf16.msra.mxu3 %v8233_v43  ;;  %vm16021_vm12 = vcmask 1044484  }
  0xe2   :  { %v11845_v55 = vld [vmem:[#allocation1 + $0x30] ss:$2 sm:$0xff]  ;;  %v1063_v10 = vld [vmem:[#allocation1 + $0x31] ss:$2 sm:$0xff]  ;;  %v8222_v54 = vld [vmem:[%s15966_s1 + $0x88] sm:$0xf0] }
  0xe3   :  { %1071 = vst.sshfl [vmem:[#allocation1 + $0x30] sm:$0xff pattern:$0x75643120] %v1041_v61  ;;  %v1036_v7 = vld [vmem:[#allocation2 + $0x8] sm:$0xf]  ;;  %v8225_v44 = vor.u32 %v10593_v15, %v8222_v54 }
  0xe4   :  { %v8212_v9 = vld [vmem:[%s15966_s1 + $0x70] sm:$0xf]  ;;  %v10592_v31 = vld [vmem:[%s15966_s1 + $0x74] sm:$0xf0]  ;;  %v8214_v11 = vld [vmem:[%s15966_s1 + $0x78] sm:$0xf0] }
  0xe5   :  { %v983_v57 = vld.sshfl [vmem:[#allocation1 + $0x20] sm:$0xff pattern:$0x75643120]  ;;  %732 = vrot.lane.b32.xlu2 %v11797_v20, %s11145_s15  ;;  %1411 = vmatpush.bf16.msra.mxu3 %v8225_v44  ;;  %v8213_v40 = vor.u32 %v10592_v31, %v8212_v9  ;;  %v10590_v32 = vld [vmem:[%s15966_s1 + $0x64] sm:$0xf0] }
  0xe6   :  { %996 = vst [vmem:[#allocation1 + $0x20] ss:$2 sm:$0xff] %v946_v1  ;;  %1009 = vrot.lane.b32.xlu0 %v983_v57, %s11146_s16  ;;  %v1072_v2 = vld [vmem:[#allocation1 + $0x1] ss:$2 sm:$0xff]  ;;  %v8196_v25 = vld [vmem:[%s15966_s1 + $0x50] sm:$0xf] }
  0xe7   :  { %998 = vst [vmem:[#allocation1 + $0x21] ss:$2 sm:$0xff] %v955_v46  ;;  %v10589_v41 = vld [vmem:[%s15966_s1 + $0x64] sm:$0xf]  ;;  %1320 = vmatpush.bf16.msra.mxu0 %v8213_v40  ;;  %v8206_v14 = vld [vmem:[%s15966_s1 + $0x68] sm:$0xf0] }
  0xe8   :  { %1011 = vrot.lane.b32.xlu1 %v985_v21, %s11146_s16  ;;  %v1053_v13 = vld [vmem:[#allocation1 + $0x10] ss:$2 sm:$0xff]  ;;  %v1055_v0 = vld [vmem:[#allocation1 + $0x11] ss:$2 sm:$0xff]  ;;  %v8209_v35 = vor.u32 %v10589_v41, %v8206_v14  ;;  %v8188_v61 = vld [vmem:[%s15966_s1 + $0x40] sm:$0xf] }
  0xe9   :  { %1067 = vst.sshfl [vmem:[#allocation1 + $0x10] sm:$0xff pattern:$0x75643120] %v1039_v51  ;;  %v10591_v21 = vld [vmem:[%s15966_s1 + $0x74] sm:$0xf] }
  0xea   :  { %v1077_v6 = vld [vmem:[#allocation1 + $0x30] ss:$2 sm:$0xff]  ;;  %v1078_v20 = vld [vmem:[#allocation1 + $0x31] ss:$2 sm:$0xff]  ;;  %1081 = vst [vmem:[#allocation1 + $0x1] ss:$2 sm:$0xff] %v1053_v13  ;;  %v8217_v29 = vor.u32 %v10591_v21, %v8214_v11 }
  0xeb   :  { %1091 = vst [vmem:[#allocation1 + $0x30] ss:$2 sm:$0xff] %v1063_v10  ;;  %v10587_v50 = vld [vmem:[%s15966_s1 + $0x54] sm:$0xf]  ;;  %v8198_v19 = vld [vmem:[%s15966_s1 + $0x58] sm:$0xf0] }
  0xec   :  { %1093 = vst [vmem:[#allocation1 + $0x31] ss:$2 sm:$0xff] %v1072_v2  ;;  %1376 = vmatpush.bf16.msra.mxu2 %v8217_v29  ;;  %v8201_v12 = vor.u32 %v10587_v50, %v8198_v19  ;;  %v10585_v1 = vld [vmem:[%s15966_s1 + $0x44] sm:$0xf]  ;;  %v8190_v57 = vld [vmem:[%s15966_s1 + $0x48] sm:$0xf0] }
  0xed   :  { %527 = vrot.lane.b32.xlu2 %v11764_v38, %s11144_s0  ;;  %v8221_v38 = vor.u32 %v10594_v18, %v8220_v62  ;;  %v8193_v51 = vor.u32 %v10585_v1, %v8190_v57  ;;  %v10584_v49 = vld [vmem:[%s15966_s1 + $0x34] sm:$0xf0]  ;;  %v8182_v60 = vld [vmem:[%s15966_s1 + $0x38] sm:$0xf0]  ;;  %v8172_v17 = vld [vmem:[%s15966_s1 + $0x20] sm:$0xf] }
  0xee   :  { %525 = vrot.lane.b32.xlu0 %v11620_v33, %s11144_s0  ;;  %v1003_v16 = vld.sshfl [vmem:[#allocation1 + $0x20] sm:$0xff pattern:$0x75643120]  ;;  %v10582_v37 = vld [vmem:[%s15966_s1 + $0x24] sm:$0xf0] }
  0xef   :  { %1047 = vst.sshfl [vmem:[#allocation1 + $0x20] sm:$0xff pattern:$0x75643120] %v1036_v7  ;;  %1355 = vmatpush.bf16.msra.mxu1 %v8221_v38  ;;  %v1040_v33 = vld [vmem:[#allocation2 + $0x18] sm:$0xf]  ;;  %v8173_v15 = vor.u32 %v10582_v37, %v8172_v17 }
  0xf0   :  { %730 = vrot.lane.b32.xlu1 %v11724_v58, %s11145_s15  ;;  %v1073_v53 = vld [vmem:[#allocation1 + $0x10] ss:$2 sm:$0xff]  ;;  %v1074_v30 = vld [vmem:[#allocation1 + $0x11] ss:$2 sm:$0xff]  ;;  %1377 = vmatpush.bf16.msra.mxu2 %v8209_v35  ;;  %v10581_v62 = vld [vmem:[%s15966_s1 + $0x24] sm:$0xf] }
  0xf1   :  { %1083 = vst [vmem:[#allocation1 + $0x10] ss:$2 sm:$0xff] %v1055_v0  ;;  %v1094_v56 = vld.sshfl [vmem:[#allocation1] sm:$0xff pattern:$0x75643120] }
  0xf2   :  { %1114 = vst.msk [vmem:[#allocation3 + $0x4] sm:$0xf] %vm40_vm3, %v1094_v56  ;;  %v8180_v0 = vld [vmem:[%s15966_s1 + $0x30] sm:$0xf]  ;;  %v8174_v43 = vld [vmem:[%s15966_s1 + $0x28] sm:$0xf0] }
  0xf3   :  { %v1097_v3 = vld.sshfl [vmem:[#allocation1 + $0x30] sm:$0xff pattern:$0x75643120]  ;;  %1098 = vst [vmem:[#allocation1] ss:$2 sm:$0xff] %v1073_v53  ;;  %v8177_v54 = vor.u32 %v10581_v62, %v8174_v43 }
  0xf4   :  { %1117 = vst.msk [vmem:[#allocation3 + $0x1c] sm:$0xf] %vm40_vm3, %v1097_v3  ;;  %1378 = vmatpush.bf16.msra.mxu2 %v8201_v12  ;;  %v8164_v53 = vld [vmem:[%s15966_s1 + $0x10] sm:$0xf]  ;;  %v10579_v56 = vld [vmem:[%s15966_s1 + $0x14] sm:$0xf] }
  0xf5   :  { %1099 = vst [vmem:[#allocation1 + $0x1] ss:$2 sm:$0xff] %v1074_v30  ;;  %v10580_v30 = vld [vmem:[%s15966_s1 + $0x14] sm:$0xf0]  ;;  %v10615_v31 = vld [vmem:[%s15967_s2 + $0x94] sm:$0xf] }
  0xf6   :  { %1013 = vrot.lane.b32.xlu0 %v11824_v8, %s11146_s16  ;;  %v1057_v47 = vld [vmem:[#allocation1 + $0x20] ss:$2 sm:$0xff]  ;;  %v1059_v22 = vld [vmem:[#allocation1 + $0x21] ss:$2 sm:$0xff]  ;;  %v8165_v3 = vor.u32 %v10580_v30, %v8164_v53  ;;  %v10616_v9 = vld [vmem:[%s15967_s2 + $0x94] sm:$0xf0] }
  0xf7   :  { %1069 = vst.sshfl [vmem:[#allocation1 + $0x20] sm:$0xff pattern:$0x75643120] %v1040_v33  ;;  %v8166_v33 = vld [vmem:[%s15966_s1 + $0x18] sm:$0xf0] }
  0xf8   :  { %1085 = vst [vmem:[#allocation1 + $0x11] ss:$2 sm:$0xff] %v1057_v47  ;;  %1015 = vrot.lane.b32.xlu1 %v11843_v34, %s11146_s16  ;;  %v10588_v34 = vld [vmem:[%s15966_s1 + $0x54] sm:$0xf0]  ;;  %1379 = vmatpush.bf16.msra.mxu2 %v8193_v51  ;;  %v8156_v47 = vld [vmem:[%s15966_s1] sm:$0xf] }
  0xf9   :  { %v10571_v23 = vld [vmem:[#allocation3 + $0x4] sm:$0xf]  ;;  %v8197_v24 = vor.u32 %v10588_v34, %v8196_v25  ;;  %v8318_v21 = vld [vmem:[%s15967_s2 + $0x98] sm:$0xf0]  ;;  %v8300_v11 = vld [vmem:[%s15967_s2 + $0x70] sm:$0xf] }
  0xfa   :  { %v10612_v29 = vld [vmem:[%s15967_s2 + $0x74] sm:$0xf0]  ;;  %v10611_v41 = vld [vmem:[%s15967_s2 + $0x74] sm:$0xf]  ;;  %v10610_v25 = vld [vmem:[%s15967_s2 + $0x64] sm:$0xf0] }
  0xfb   :  { %v8142_v10 = vld [vmem:[#allocation3 + $0x18] sm:$0xf0]  ;;  %v10608_v12 = vld [vmem:[%s15967_s2 + $0x54] sm:$0xf0]  ;;  %v8286_v51 = vld [vmem:[%s15967_s2 + $0x58] sm:$0xf0] }
  0xfc   :  { %v1104_v58 = vld.sshfl [vmem:[#allocation1] sm:$0xff pattern:$0x75643120]  ;;  %v10604_v53 = vld [vmem:[%s15967_s2 + $0x34] sm:$0xf0] }
  0xfd   :  { %1118 = vst.msk [vmem:[#allocation3 + $0x24] sm:$0xf] %vm40_vm3, %v1104_v58  ;;  %v10609_v34 = vld [vmem:[%s15967_s2 + $0x64] sm:$0xf] }
  0xfe   :  { %v1075_v26 = vld [vmem:[#allocation1 + $0x20] ss:$2 sm:$0xff]  ;;  %v1076_v42 = vld [vmem:[#allocation1 + $0x21] ss:$2 sm:$0xff]  ;;  %734 = vrot.lane.b32.xlu0 %v11836_v36, %s11145_s15 }
  0xff   :  { %v1095_v48 = vld.sshfl [vmem:[#allocation1 + $0x10] sm:$0xff pattern:$0x75643120]  ;;  %1087 = vst [vmem:[#allocation1 + $0x20] ss:$2 sm:$0xff] %v1059_v22 }
 0x100   :  { %1100 = vst [vmem:[#allocation1 + $0x10] ss:$2 sm:$0xff] %v1075_v26  ;;  %1017 = vrot.lane.b32.xlu1 %v1003_v16, %s11146_s16  ;;  %v8204_v36 = vld [vmem:[%s15966_s1 + $0x60] sm:$0xf]  ;;  %v10578_v22 = vld [vmem:[%s15966_s1 + $0x4] sm:$0xf0]  ;;  %v8169_v26 = vor.u32 %v10579_v56, %v8166_v33 }
 0x101   :  { %1101 = vst [vmem:[#allocation1 + $0x11] ss:$2 sm:$0xff] %v1076_v42  ;;  %v8205_v28 = vor.u32 %v10590_v32, %v8204_v36  ;;  %v10577_v42 = vld [vmem:[%s15966_s1 + $0x4] sm:$0xf]  ;;  %v8321_v36 = vor.u32 %v10615_v31, %v8318_v21  ;;  %v8301_v32 = vor.u32 %v10612_v29, %v8300_v11  ;;  %v8270_v33 = vld [vmem:[%s15967_s2 + $0x38] sm:$0xf0] }
 0x102   :  { %v516_v8 = vpop.permute.xlu2 %515  ;;  %1089 = vst [vmem:[#allocation1 + $0x21] ss:$2 sm:$0xff] %v11845_v55  ;;  %v10586_v55 = vld [vmem:[%s15966_s1 + $0x44] sm:$0xf0]  ;;  %v10601_v31 = vld [vmem:[%s15967_s2 + $0x24] sm:$0xf] }
 0x103   :  { %1115 = vst.msk [vmem:[#allocation3 + $0xc] sm:$0xf] %vm40_vm3, %v1095_v48  ;;  %1321 = vmatpush.bf16.msra.mxu0 %v8205_v28  ;;  %v8189_v2 = vor.u32 %v10586_v55, %v8188_v61  ;;  %v8158_v48 = vld [vmem:[%s15966_s1 + $0x8] sm:$0xf0]  ;;  %1546 = vmatpush.bf16.msrb.mxu1 %v8301_v32 }
 0x104   :  { %537 = vst.msk [vmem:[#allocation3] sm:$0xf] %vm536_vm14, %v516_v8  ;;  %v10575_v38 = vld [vmem:[#allocation3 + $0x24] sm:$0xf]  ;;  %v8157_v8 = vor.u32 %v10578_v22, %v8156_v47 }
 0x105   :  { %v8262_v21 = vld [vmem:[%s15967_s2 + $0x28] sm:$0xf0] }
 0x106   :  { %v8265_v11 = vor.u32 %v10601_v31, %v8262_v21 }
 0x107   :  { %1322 = vmatpush.bf16.msra.mxu0 %v8197_v24  ;;  %v8294_v24 = vld [vmem:[%s15967_s2 + $0x68] sm:$0xf0] }
 0x108   :  { %v1105_v27 = vld.sshfl [vmem:[#allocation1 + $0x10] sm:$0xff pattern:$0x75643120]  ;;  %v8297_v19 = vor.u32 %v10609_v34, %v8294_v24  ;;  %v10598_v24 = vld [vmem:[%s15967_s2 + $0x4] sm:$0xf0] }
 0x109   :  { %1119 = vst.msk [vmem:[#allocation3 + $0x2c] sm:$0xf] %vm40_vm3, %v1105_v27  ;;  %v1096_v39 = vld.sshfl [vmem:[#allocation1 + $0x20] sm:$0xff pattern:$0x75643120] }
 0x10a   :  { %1102 = vst [vmem:[#allocation1 + $0x20] ss:$2 sm:$0xff] %v1077_v6  ;;  %v8134_v63 = vld [vmem:[#allocation3 + $0x8] sm:$0xf0] }
 0x10b   :  { %1103 = vst [vmem:[#allocation1 + $0x21] ss:$2 sm:$0xff] %v1078_v20  ;;  %v11901_v5 = vor.u32 %v10571_v23, %v8134_v63  ;;  %1323 = vmatpush.bf16.msra.mxu0 %v8189_v2  ;;  %v10583_v6 = vld [vmem:[%s15966_s1 + $0x34] sm:$0xf]  ;;  %v8181_v20 = vor.u32 %v10584_v49, %v8180_v0  ;;  %v8316_v63 = vld [vmem:[%s15967_s2 + $0x90] sm:$0xf] }
 0x10c   :  { %1116 = vst.msk [vmem:[#allocation3 + $0x14] sm:$0xf] %vm40_vm3, %v1096_v39  ;;  %v8185_v52 = vor.u32 %v10583_v6, %v8182_v60  ;;  %v8161_v39 = vor.u32 %v10577_v42, %v8158_v48  ;;  %v8317_v40 = vor.u32 %v10616_v9, %v8316_v63  ;;  %v10607_v2 = vld [vmem:[%s15967_s2 + $0x54] sm:$0xf]  ;;  %v8276_v0 = vld [vmem:[%s15967_s2 + $0x40] sm:$0xf] }
 0x10d   :  { %8234 = vmatmul.msk.bf16.vlgmr.msra.gmra.mxu1 %vm1307_vm2, %v11901_v5  ;;  %8238 = vmatmul.msk.bf16.vlgmr.msra.gmra.mxu3 %vm1307_vm2, %v11901_v5  ;;  %v10606_v49 = vld [vmem:[%s15967_s2 + $0x44] sm:$0xf0]  ;;  %v10605_v6 = vld [vmem:[%s15967_s2 + $0x44] sm:$0xf]  ;;  %v8260_v63 = vld [vmem:[%s15967_s2 + $0x20] sm:$0xf] }
 0x10e   :  { %1380 = vmatpush.bf16.msra.mxu2 %v8185_v52  ;;  %1580 = vmatpush.bf16.msrb.mxu3 %v8317_v40  ;;  %v8277_v37 = vor.u32 %v10606_v49, %v8276_v0  ;;  %v8278_v52 = vld [vmem:[%s15967_s2 + $0x48] sm:$0xf0]  ;;  %v10602_v9 = vld [vmem:[%s15967_s2 + $0x24] sm:$0xf0] }
 0x10f   :  { %1324 = vmatpush.bf16.msra.mxu0 %v8181_v20  ;;  %v8281_v43 = vor.u32 %v10605_v6, %v8278_v52  ;;  %v8261_v40 = vor.u32 %v10602_v9, %v8260_v63 }
 0x110   :  { %v8150_v16 = vld [vmem:[#allocation3 + $0x28] sm:$0xf0] }
 0x111   :  { %v11990_v44 = vor.u32 %v10575_v38, %v8150_v16  ;;  %v8310_v16 = vld [vmem:[%s15967_s2 + $0x88] sm:$0xf0]  ;;  %v8268_v38 = vld [vmem:[%s15967_s2 + $0x30] sm:$0xf] }
 0x112   :  { %v1106_v59 = vld.sshfl [vmem:[#allocation1 + $0x20] sm:$0xff pattern:$0x75643120]  ;;  %1381 = vmatpush.bf16.msra.mxu2 %v8177_v54  ;;  %v8269_v56 = vor.u32 %v10604_v53, %v8268_v38 }
 0x113   :  { %1120 = vst.msk [vmem:[#allocation3 + $0x34] sm:$0xf] %vm40_vm3, %v1106_v59  ;;  %v10573_v4 = vld [vmem:[#allocation3 + $0x14] sm:$0xf]  ;;  %1325 = vmatpush.bf16.msra.mxu0 %v8173_v15  ;;  %v10614_v15 = vld [vmem:[%s15967_s2 + $0x84] sm:$0xf0] }
 0x114   :  { %v11957_v46 = vor.u32 %v10573_v4, %v8142_v10  ;;  %v8302_v59 = vld [vmem:[%s15967_s2 + $0x78] sm:$0xf0]  ;;  %v8292_v4 = vld [vmem:[%s15967_s2 + $0x60] sm:$0xf]  ;;  %v8284_v10 = vld [vmem:[%s15967_s2 + $0x50] sm:$0xf] }
 0x115   :  { %v8305_v28 = vor.u32 %v10611_v41, %v8302_v59  ;;  %v8293_v50 = vor.u32 %v10610_v25, %v8292_v4  ;;  %v8285_v57 = vor.u32 %v10608_v12, %v8284_v10  ;;  %v10613_v54 = vld [vmem:[%s15967_s2 + $0x84] sm:$0xf]  ;;  %v8252_v59 = vld [vmem:[%s15967_s2 + $0x10] sm:$0xf]  ;;  %v10599_v4 = vld [vmem:[%s15967_s2 + $0x14] sm:$0xf] }
 0x116   :  { %1382 = vmatpush.bf16.msra.mxu2 %v8169_v26  ;;  %v8313_v30 = vor.u32 %v10613_v54, %v8310_v16  ;;  %v8254_v25 = vld [vmem:[%s15967_s2 + $0x18] sm:$0xf0]  ;;  %v8246_v10 = vld [vmem:[%s15967_s2 + $0x8] sm:$0xf0] }
 0x117   :  { %1326 = vmatpush.bf16.msra.mxu0 %v8165_v3  ;;  %1547 = vmatpush.bf16.msrb.mxu1 %v8293_v50  ;;  %v10603_v3 = vld [vmem:[%s15967_s2 + $0x34] sm:$0xf]  ;;  %v8257_v34 = vor.u32 %v10599_v4, %v8254_v25  ;;  %v8244_v50 = vld [vmem:[%s15967_s2] sm:$0xf] }
 0x118   :  { %v8273_v22 = vor.u32 %v10603_v3, %v8270_v33  ;;  %v1121_v33 = vld [vmem:[%s15968_s3] sm:$0x3] }
 0x11a   :  { %1383 = vmatpush.bf16.msra.mxu2 %v8161_v39 }
 0x11b   :  { %1327 = vmatpush.bf16.msra.mxu0 %v8157_v8  ;;  %1548 = vmatpush.bf16.msrb.mxu1 %v8285_v57 }
 0x11d   :  { %8235 = vmatmul.msk.bf16.gmra.mxu1 %vm1307_vm2, %v11957_v46  ;;  %8239 = vmatmul.msk.bf16.gmra.mxu3 %vm1307_vm2, %v11957_v46 }
 0x11e   :  { %1636 = vmatpush.bf16.msrb.mxu2 %v8321_v36 }
 0x11f   :  { %v725_v13 = vpop.permute.xlu2 %724  ;;  %1602 = vmatpush.bf16.msrb.mxu0 %v8305_v28  ;;  %1549 = vmatpush.bf16.msrb.mxu1 %v8277_v37  ;;  %v10600_v28 = vld [vmem:[%s15967_s2 + $0x14] sm:$0xf0] }
 0x121   :  { %v518_v18 = vpop.permute.xlu0 %517 }
 0x122   :  { %538 = vst.msk [vmem:[#allocation3 + $0x8] sm:$0xf] %vm536_vm14, %v518_v18  ;;  %v8308_v18 = vld [vmem:[%s15967_s2 + $0x80] sm:$0xf]  ;;  %1637 = vmatpush.bf16.msrb.mxu2 %v8313_v30 }
 0x123   :  { %745 = vst.msk [vmem:[#allocation3 + $0x8] sm:$0xf] %vm743_vm4, %v725_v13  ;;  %1603 = vmatpush.bf16.msrb.mxu0 %v8297_v19  ;;  %v8289_v13 = vor.u32 %v10607_v2, %v8286_v51  ;;  %1550 = vmatpush.bf16.msrb.mxu1 %v8269_v56  ;;  %v8245_v19 = vor.u32 %v10598_v24, %v8244_v50 }
 0x127   :  { %v520_v7 = vpop.permute.xlu2 %519  ;;  %1604 = vmatpush.bf16.msrb.mxu0 %v8289_v13  ;;  %1551 = vmatpush.bf16.msrb.mxu1 %v8261_v40 }
 0x128   :  { %539 = vst.msk [vmem:[#allocation3 + $0x10] sm:$0xf] %vm536_vm14, %v520_v7  ;;  %v8309_v7 = vor.u32 %v10614_v15, %v8308_v18 }
 0x12a   :  { %1581 = vmatpush.bf16.msrb.mxu3 %v8309_v7 }
 0x12b   :  { %1605 = vmatpush.bf16.msrb.mxu0 %v8281_v43 }
 0x12c   :  { %v723_v58 = vpop.permute.xlu1 %722 }
 0x12d   :  { %8236 = vmatmul.msk.bf16.gmra.mxu1 %vm1307_vm2, %v11990_v44  ;;  %8240 = vmatmul.msk.bf16.gmra.mxu3 %vm1307_vm2, %v11990_v44  ;;  %744 = vst.msk [vmem:[#allocation3] sm:$0xf] %vm743_vm4, %v723_v58 }
 0x12f   :  { %v729_v27 = vpop.permute.xlu2 %728  ;;  %1606 = vmatpush.bf16.msrb.mxu0 %v8273_v22  ;;  %v12193_v22 = vperm.slane %v1121_v33, 0 }
 0x133   :  { %1607 = vmatpush.bf16.msrb.mxu0 %v8265_v11 }
 0x137   :  { %v524_v23 = vpop.permute.xlu2 %523  ;;  %1608 = vmatpush.bf16.msrb.mxu0 %v8257_v34 }
 0x138   :  { %541 = vst.msk [vmem:[#allocation3 + $0x20] sm:$0xf] %vm536_vm14, %v524_v23 }
 0x13f   :  { %v12046_v14 = vpop.permute.xlu2 %732  ;;  %v1006_v35 = vpop.permute.xlu0 %1005 }
 0x140   :  { %1027 = vst.msk [vmem:[#allocation3] sm:$0xf] %vm15986_vm13, %v1006_v35  ;;  %v8253_v35 = vor.u32 %v10600_v28, %v8252_v59 }
 0x142   :  { %1552 = vmatpush.bf16.msrb.mxu1 %v8253_v35 }
 0x146   :  { %1553 = vmatpush.bf16.msrb.mxu1 %v8245_v19 }
 0x147   :  { %v528_v61 = vpop.permute.xlu2 %527  ;;  %v522_v55 = vpop.permute.xlu0 %521  ;;  %v8132_v60 = vld [vmem:[#allocation3] sm:$0xf] }
 0x148   :  { %543 = vst.msk [vmem:[#allocation3 + $0x30] sm:$0xf] %vm536_vm14, %v528_v61 }
 0x149   :  { %540 = vst.msk [vmem:[#allocation3 + $0x18] sm:$0xf] %vm536_vm14, %v522_v55  ;;  %v10597_v55 = vld [vmem:[%s15967_s2 + $0x4] sm:$0xf] }
 0x14a   :  { %v1008_v1 = vpop.permute.xlu1 %1007  ;;  %747 = vst.msk [vmem:[#allocation3 + $0x18] sm:$0xf] %vm743_vm4, %v729_v27 }
 0x14b   :  { %1028 = vst.msk [vmem:[#allocation3 + $0x8] sm:$0xf] %vm15986_vm13, %v1008_v1  ;;  %v8249_v1 = vor.u32 %v10597_v55, %v8246_v10 }
 0x14d   :  { %1609 = vmatpush.bf16.msrb.mxu0 %v8249_v1 }
 0x152   :  { %v727_v20 = vpop.permute.xlu1 %726  ;;  %v10572_v17 = vld [vmem:[#allocation3 + $0x4] sm:$0xf0] }
 0x153   :  { %746 = vst.msk [vmem:[#allocation3 + $0x10] sm:$0xf] %vm743_vm4, %v727_v20  ;;  %v12090_v62 = vor.u32 %v10572_v17, %v8132_v60 }
 0x155   :  { %1328 = vmatmul.bf16.vlgmr.msra.gmra.mxu0 %v12090_v62  ;;  %1384 = vmatmul.bf16.vlgmr.msra.gmra.mxu2 %v12090_v62 }
 0x158   :  { %v1010_v47 = vpop.permute.xlu0 %1009 }
 0x159   :  { %1029 = vst.msk [vmem:[#allocation3 + $0x10] sm:$0xf] %vm15986_vm13, %v1010_v47 }
 0x15a   :  { %v1012_v58 = vpop.permute.xlu1 %1011 }
 0x15b   :  { %1030 = vst.msk [vmem:[#allocation3 + $0x18] sm:$0xf] %vm15986_vm13, %v1012_v58 }
 0x160   :  { %v526_v26 = vpop.permute.xlu0 %525  ;;  %v8140_v48 = vld [vmem:[#allocation3 + $0x10] sm:$0xf] }
 0x161   :  { %542 = vst.msk [vmem:[#allocation3 + $0x28] sm:$0xf] %vm536_vm14, %v526_v26  ;;  %vm16022_vm14 = vmmov %vm16021_vm12 }
 0x162   :  { %749 = vst.msk [vmem:[#allocation3 + $0x28] sm:$0xf] %vm743_vm4, %v12046_v14  ;;  %v731_v42 = vpop.permute.xlu1 %730  ;;  %v10574_v8 = vld [vmem:[#allocation3 + $0x14] sm:$0xf0] }
 0x163   :  { %748 = vst.msk [vmem:[#allocation3 + $0x20] sm:$0xf] %vm743_vm4, %v731_v42  ;;  %v8141_v27 = vor.u32 %v10574_v8, %v8140_v48 }
 0x165   :  { %1333 = vmatmul.bf16.gmra.mxu0 %v8141_v27  ;;  %1389 = vmatmul.bf16.gmra.mxu2 %v8141_v27 }
 0x168   :  { %v1014_v39 = vpop.permute.xlu0 %1013 }
 0x169   :  { %1031 = vst.msk [vmem:[#allocation3 + $0x20] sm:$0xf] %vm15986_vm13, %v1014_v39 }
 0x16a   :  { %v1016_v23 = vpop.permute.xlu1 %1015 }
 0x16b   :  { %1032 = vst.msk [vmem:[#allocation3 + $0x28] sm:$0xf] %vm15986_vm13, %v1016_v23 }
 0x170   :  { %v735_v29 = vpop.permute.xlu0 %734  ;;  %v8148_v36 = vld [vmem:[#allocation3 + $0x20] sm:$0xf] }
 0x171   :  { %750 = vst.msk [vmem:[#allocation3 + $0x30] sm:$0xf] %vm743_vm4, %v735_v29  ;;  %vm16027_vm4 = vmmov %vm16021_vm12 }
 0x172   :  { %v1018_v32 = vpop.permute.xlu1 %1017  ;;  %v10576_v41 = vld [vmem:[#allocation3 + $0x24] sm:$0xf0] }
 0x173   :  { %1033 = vst.msk [vmem:[#allocation3 + $0x30] sm:$0xf] %vm15986_vm13, %v1018_v32  ;;  %v8149_v14 = vor.u32 %v10576_v41, %v8148_v36 }
 0x175   :  { %1338 = vmatmul.bf16.gmra.mxu0 %v8149_v14  ;;  %1394 = vmatmul.bf16.gmra.mxu2 %v8149_v14 }
 0x17a   :  { %v1128_v61 = vld [vmem:[#allocation3 + $0x30] sm:$0xff] }
 0x17b   :  { %v1194_v12 = vunpack.c.h.b16 %v1128_v61  ;;  %v1193_v2 = vunpack.c.l.b16 %v1128_v61 }
 0x17d   :  { %v1202_v57 = vpack.c.b16 %v1194_v12, %v1194_v12  ;;  %v1201_v51 = vpack.c.b16 %v1193_v2, %v1193_v2 }
 0x17f   :  { %8237 = vmatmul.msk.bf16.gmra.mxu1 %vm1307_vm2, %v1202_v57  ;;  %8241 = vmatmul.msk.bf16.gmra.mxu3 %vm1307_vm2, %v1202_v57 }
 0x185   :  { %1343 = vmatmul.bf16.gmra.mxu0 %v1201_v51  ;;  %1399 = vmatmul.bf16.gmra.mxu2 %v1201_v51 }
 0x18f   :  { %1554 = vmatmul.bf16.vlgmr.msrb.gmra.mxu1 %v12090_v62  ;;  %8322 = vmatmul.msk.bf16.vlgmr.msrb.gmra.mxu3 %vm1307_vm2, %v11901_v5 }
 0x190   :  { %v1413_v13 = vpop.f32.mrf.mxu3 }
 0x195   :  { %1610 = vmatmul.bf16.vlgmr.msrb.gmra.mxu0 %v12090_v62  ;;  %8326 = vmatmul.msk.bf16.vlgmr.msrb.gmra.mxu2 %vm1307_vm2, %v11901_v5  ;;  %v1357_v5 = vpop.f32.mrf.mxu1 }
 0x198   :  { %v1415_v49 = vpop.f32.mrf.mxu3 }
 0x19d   :  { %v1359_v0 = vpop.f32.mrf.mxu1 }
 0x19f   :  { %1559 = vmatmul.bf16.gmra.mxu1 %v8141_v27  ;;  %8323 = vmatmul.msk.bf16.gmra.mxu3 %vm1307_vm2, %v11957_v46 }
 0x1a0   :  { %v1418_v17 = vpop.f32.mrf.mxu3 }
 0x1a5   :  { %1615 = vmatmul.bf16.gmra.mxu0 %v8141_v27  ;;  %8327 = vmatmul.msk.bf16.gmra.mxu2 %vm1307_vm2, %v11957_v46  ;;  %v12182_v46 = vpop.f32.mrf.mxu1  ;;  %v12198_v27 = vperm.slane %v1121_v33, 1 }
 0x1a8   :  { %v1420_v62 = vpop.f32.mrf.mxu3 }
 0x1ad   :  { %v12184_v37 = vpop.f32.mrf.mxu1 }
 0x1af   :  { %1564 = vmatmul.bf16.gmra.mxu1 %v8149_v14  ;;  %8324 = vmatmul.msk.bf16.gmra.mxu3 %vm1307_vm2, %v11990_v44 }
 0x1b0   :  { %v1423_v54 = vpop.f32.mrf.mxu3 }
 0x1b5   :  { %1620 = vmatmul.bf16.gmra.mxu0 %v8149_v14  ;;  %8328 = vmatmul.msk.bf16.gmra.mxu2 %vm1307_vm2, %v11990_v44  ;;  %v12186_v18 = vpop.f32.mrf.mxu1 }
 0x1b8   :  { %v1425_v30 = vpop.f32.mrf.mxu3 }
 0x1bd   :  { %v12188_v38 = vpop.f32.mrf.mxu1 }
 0x1bf   :  { %1569 = vmatmul.bf16.gmra.mxu1 %v1201_v51  ;;  %8325 = vmatmul.msk.bf16.gmra.mxu3 %vm1307_vm2, %v1202_v57 }
 0x1c5   :  { %1625 = vmatmul.bf16.gmra.mxu0 %v1201_v51  ;;  %8329 = vmatmul.msk.bf16.gmra.mxu2 %vm1307_vm2, %v1202_v57 }
 0x1d2   :  { %v1329_v6 = vpop.f32.mrf.mxu0 }
 0x1d3   :  { %v1330_v11 = vadd.f32 %v1329_v6, %v12193_v22 }
 0x1d5   :  { %v1358_v35 = vadd.f32 %v1357_v5, %v1330_v11 }
 0x1d7   :  { %v1432_v51 = vmax.f32 %v1358_v35, 0.0 }
 0x1d8   :  { %v1385_v20 = vpop.f32.mrf.mxu2 }
 0x1d9   :  { %v1386_v32 = vadd.f32 %v1385_v20, %v12198_v27 }
 0x1da   :  { %v1331_v60 = vpop.f32.mrf.mxu0 }
 0x1db   :  { %v1332_v59 = vadd.f32 %v1331_v60, %v12193_v22  ;;  %v1414_v25 = vadd.f32 %v1413_v13, %v1386_v32 }
 0x1dd   :  { %v12211_v19 = vadd.f32 %v1359_v0, %v1332_v59  ;;  %v1433_v60 = vmax.f32 %v1414_v25, 0.0 }
 0x1e0   :  { %v1387_v52 = vpop.f32.mrf.mxu2 }
 0x1e1   :  { %v1388_v4 = vadd.f32 %v1387_v52, %v12198_v27 }
 0x1e2   :  { %v1334_v44 = vpop.f32.mrf.mxu0 }
 0x1e3   :  { %v1335_v34 = vadd.f32 %v1334_v44, %v12193_v22  ;;  %v1416_v5 = vadd.f32 %v1415_v49, %v1388_v4 }
 0x1e5   :  { %v12220_v52 = vadd.f32 %v12182_v46, %v1335_v34 }
 0x1e8   :  { %v1390_v43 = vpop.f32.mrf.mxu2 }
 0x1e9   :  { %v1391_v50 = vadd.f32 %v1390_v43, %v12198_v27 }
 0x1ea   :  { %v1336_v15 = vpop.f32.mrf.mxu0 }
 0x1eb   :  { %v1337_v61 = vadd.f32 %v1336_v15, %v12193_v22  ;;  %v12222_v44 = vadd.f32 %v1418_v17, %v1391_v50  ;;  %v1434_v15 = vmax.f32 %v12211_v19, 0.0  ;;  %v1435_v17 = vmax.f32 %v1416_v5, 0.0 }
 0x1f0   :  { %v1392_v7 = vpop.f32.mrf.mxu2 }
 0x1f1   :  { %v1393_v55 = vadd.f32 %v1392_v7, %v12198_v27  ;;  %v12226_v7 = vadd.f32 %v12184_v37, %v1337_v61 }
 0x1f2   :  { %v1339_v16 = vpop.f32.mrf.mxu0 }
 0x1f3   :  { %v1340_v12 = vadd.f32 %v1339_v16, %v12193_v22  ;;  %v12228_v16 = vadd.f32 %v1420_v62, %v1393_v55  ;;  %v1436_v62 = vmax.f32 %v12220_v52, 0.0 }
 0x1f8   :  { %v1395_v53 = vpop.f32.mrf.mxu2 }
 0x1f9   :  { %v1396_v1 = vadd.f32 %v1395_v53, %v12198_v27 }
 0x1fa   :  { %v1341_v56 = vpop.f32.mrf.mxu0 }
 0x1fb   :  { %v1342_v13 = vadd.f32 %v1341_v56, %v12193_v22  ;;  %v12232_v56 = vadd.f32 %v12186_v18, %v1340_v12  ;;  %v1438_v18 = vmax.f32 %v12226_v7, 0.0 }
 0x1fc   :  { %v1372_v3 = vpop.f32.mrf.mxu1 }
 0x200   :  { %v1397_v47 = vpop.f32.mrf.mxu2 }
 0x201   :  { %v1398_v6 = vadd.f32 %v1397_v47, %v12198_v27  ;;  %v12237_v47 = vadd.f32 %v12188_v38, %v1342_v13  ;;  %v1440_v38 = vmax.f32 %v12232_v56, 0.0 }
 0x202   :  { %v1344_v58 = vpop.f32.mrf.mxu0  ;;  %v1428_v26 = vpop.f32.mrf.mxu3 }
 0x203   :  { %v1345_v42 = vadd.f32 %v1344_v58, %v12193_v22  ;;  %v12239_v58 = vadd.f32 %v1425_v30, %v1398_v6 }
 0x204   :  { %v1374_v48 = vpop.f32.mrf.mxu1 }
 0x205   :  { %v12196_v8 = vadd.f32 %v1372_v3, %v1345_v42  ;;  %v12234_v3 = vadd.f32 %v1423_v54, %v1396_v1  ;;  %v1439_v54 = vmax.f32 %v12228_v16, 0.0 }
 0x207   :  { %v1441_v30 = vmax.f32 %v12234_v3, 0.0  ;;  %v1444_v50 = vmax.f32 %v12196_v8, 0.0 }
 0x208   :  { %v1400_v39 = vpop.f32.mrf.mxu2 }
 0x209   :  { %v1401_v23 = vadd.f32 %v1400_v39, %v12198_v27 }
 0x20a   :  { %v1346_v63 = vpop.f32.mrf.mxu0  ;;  %v1430_v9 = vpop.f32.mrf.mxu3 }
 0x20b   :  { %v12201_v31 = vadd.f32 %v1428_v26, %v1401_v23  ;;  %v1437_v26 = vmax.f32 %v12222_v44, 0.0  ;;  %v1442_v9 = vmax.f32 %v12237_v47, 0.0 }
 0x20c   :  { %v1555_v40 = vpop.f32.mrf.mxu1 }
 0x20d   :  { %v1556_v41 = vadd.f32 %v1555_v40, %v12193_v22  ;;  %v1443_v40 = vmax.f32 %v12239_v58, 0.0 }
 0x210   :  { %v1402_v21 = vpop.f32.mrf.mxu2 }
 0x212   :  { %v1583_v29 = vpop.f32.mrf.mxu3  ;;  %v1611_v36 = vpop.f32.mrf.mxu0 }
 0x213   :  { %v1584_v14 = vadd.f32 %v1583_v29, %v1556_v41  ;;  %v1612_v24 = vadd.f32 %v1611_v36, %v12198_v27 }
 0x214   :  { %v1557_v28 = vpop.f32.mrf.mxu1 }
 0x215   :  { %v1658_v57 = vmax.f32 %v1584_v14, 0.0  ;;  %v1558_v49 = vadd.f32 %v1557_v28, %v12193_v22 }
 0x217   :  { %v1672_v46 = vmax.f32 %v1432_v51, %v1658_v57 }
 0x218   :  { %v1639_v10 = vpop.f32.mrf.mxu2 }
 0x219   :  { %v1640_v2 = vadd.f32 %v1639_v10, %v1612_v24  ;;  %v1445_v24 = vmax.f32 %v12201_v31, 0.0 }
 0x21a   :  { %v1585_v20 = vpop.f32.mrf.mxu3  ;;  %v1613_v0 = vpop.f32.mrf.mxu0 }
 0x21b   :  { %v1659_v43 = vmax.f32 %v1640_v2, 0.0  ;;  %v1586_v37 = vadd.f32 %v1585_v20, %v1558_v49  ;;  %v1614_v48 = vadd.f32 %v1613_v0, %v12198_v27 }
 0x21c   :  { %v1560_v53 = vpop.f32.mrf.mxu1 }
 0x21d   :  { %v1673_v33 = vmax.f32 %v1433_v60, %v1659_v43  ;;  %v1660_v21 = vmax.f32 %v1586_v37, 0.0  ;;  %v1561_v11 = vadd.f32 %v1560_v53, %v12193_v22 }
 0x21f   :  { %v1686_v42 = vpack.c.bf16 %v1673_v33, %v1672_v46  ;;  %v1674_v57 = vmax.f32 %v1434_v15, %v1660_v21 }
 0x220   :  { %v1641_v39 = vpop.f32.mrf.mxu2 }
 0x221   :  { %v1700_v23 = vrot.slane %v1686_v42, 3  ;;  %v1642_v63 = vadd.f32 %v1641_v39, %v1614_v48 }
 0x222   :  { %v1588_v29 = vpop.f32.mrf.mxu3  ;;  %v1616_v36 = vpop.f32.mrf.mxu0 }
 0x223   :  { %v1710_v32 = vsel %vm73_vm0, %v1686_v42, %v1700_v23  ;;  %v1712_v41 = vsel %vm1711_vm15, %v1686_v42, %v1700_v23  ;;  %v1716_v59 = vsel %vm624_vm6, %v1686_v42, %v1700_v23  ;;  %v1720_v28 = vsel %vm1719_vm10, %v1686_v42, %v1700_v23 }
 0x224   :  { %v1714_v14 = vrot.slane %v1712_v41, 1  ;;  %v1718_v35 = vrot.slane %v1716_v59, 2  ;;  %v1722_v4 = vrot.slane %v1720_v28, 3  ;;  %v1823_v25 = vunpack.c.l.bf16 %v1710_v32  ;;  %v1562_v34 = vpop.f32.mrf.mxu1 }
 0x225   :  { %v1661_v19 = vmax.f32 %v1642_v63, 0.0  ;;  %v1589_v61 = vadd.f32 %v1588_v29, %v1561_v11  ;;  %v1617_v5 = vadd.f32 %v1616_v36, %v12198_v27  ;;  %v1563_v49 = vadd.f32 %v1562_v34, %v12193_v22 }
 0x226   :  { %v1824_v55 = vunpack.c.l.bf16 %v1714_v14  ;;  %v1825_v10 = vunpack.c.l.bf16 %v1718_v35  ;;  %v1826_v12 = vunpack.c.l.bf16 %v1722_v4  ;;  %v8330_v1 = vrot.slane %v1823_v25, 9 }
 0x227   :  { %v1675_v2 = vmax.f32 %v1435_v17, %v1661_v19  ;;  %v1662_v51 = vmax.f32 %v1589_v61, 0.0 }
 0x228   :  { %v8331_v13 = vrot.slane %v1824_v55, 9  ;;  %v8332_v6 = vrot.slane %v1825_v10, 9  ;;  %v8333_v20 = vrot.slane %v1826_v12, 9  ;;  %v12258_v0 = vmax.f32 %v1823_v25, %v8330_v1  ;;  %v1644_v60 = vpop.f32.mrf.mxu2 }
 0x229   :  { %v1687_v52 = vpack.c.bf16 %v1675_v2, %v1674_v57  ;;  %v1676_v43 = vmax.f32 %v1436_v62, %v1662_v51  ;;  %v1645_v53 = vadd.f32 %v1644_v60, %v1617_v5 }
 0x22a   :  { %v12261_v46 = vmax.f32 %v1824_v55, %v8331_v13  ;;  %v12263_v33 = vmax.f32 %v1825_v10, %v8332_v6  ;;  %v12265_v15 = vmax.f32 %v1826_v12, %v8333_v20  ;;  %v2019_v17 = vperm.slane %v12258_v0, 0  ;;  %v1590_v37 = vpop.f32.mrf.mxu3  ;;  %v1618_v42 = vpop.f32.mrf.mxu0 }
 0x22b   :  { %v2020_v48 = vperm.slane %v12258_v0, 2  ;;  %v1701_v39 = vrot.slane %v1687_v52, 3  ;;  %v1663_v23 = vmax.f32 %v1645_v53, 0.0  ;;  %v1591_v63 = vadd.f32 %v1590_v37, %v1563_v49 }
 0x22c   :  { %v2021_v62 = vperm.slane %v12261_v46, 0  ;;  %v2022_v21 = vperm.slane %v12261_v46, 2  ;;  %v1619_v11 = vadd.f32 %v1618_v42, %v12198_v27  ;;  %v1565_v29 = vpop.f32.mrf.mxu1  ;;  %v2023_v36 = vperm.slane %v12263_v33, 0 }
 0x22d   :  { %v12274_v32 = vsel %vm73_vm0, %v1687_v52, %v1701_v39  ;;  %v1729_v41 = vsel %vm624_vm6, %v1687_v52, %v1701_v39  ;;  %v1732_v59 = vsel %vm1719_vm10, %v1687_v52, %v1701_v39  ;;  %v1677_v28 = vmax.f32 %v1437_v26, %v1663_v23 }
 0x22e   :  { %v1731_v14 = vrot.slane %v1729_v41, 2  ;;  %v1734_v35 = vrot.slane %v1732_v59, 3  ;;  %v1827_v4 = vunpack.c.l.bf16 %v12274_v32  ;;  %v1664_v25 = vmax.f32 %v1591_v63, 0.0 }
 0x22f   :  { %v1688_v34 = vpack.c.bf16 %v1677_v28, %v1676_v43  ;;  %v1566_v19 = vadd.f32 %v1565_v29, %v12193_v22  ;;  %v1726_v61 = vsel %vm1711_vm15, %v1687_v52, %v1701_v39  ;;  %v2024_v55 = vperm.slane %v12263_v33, 2 }
 0x230   :  { %v1829_v10 = vunpack.c.l.bf16 %v1731_v14  ;;  %v1830_v12 = vunpack.c.l.bf16 %v1734_v35  ;;  %v1678_v1 = vmax.f32 %v1438_v18, %v1664_v25  ;;  %v1646_v57 = vpop.f32.mrf.mxu2  ;;  %v1728_v44 = vrot.slane %v1726_v61, 1 }
 0x231   :  { %v1702_v26 = vrot.slane %v1688_v34, 3  ;;  %v1647_v2 = vadd.f32 %v1646_v57, %v1619_v11  ;;  %v12288_v51 = vrot.slane %v1827_v4, 9  ;;  %v2025_v5 = vperm.slane %v12265_v15, 0 }
 0x232   :  { %v8336_v13 = vrot.slane %v1829_v10, 9  ;;  %v8337_v6 = vrot.slane %v1830_v12, 9  ;;  %v1593_v20 = vpop.f32.mrf.mxu3  ;;  %v1621_v60 = vpop.f32.mrf.mxu0  ;;  %v1828_v52 = vunpack.c.l.bf16 %v1728_v44  ;;  %v2026_v43 = vperm.slane %v12265_v15, 2 }
 0x233   :  { %v1737_v7 = vsel %vm73_vm0, %v1688_v34, %v1702_v26  ;;  %v1738_v18 = vsel %vm1711_vm15, %v1688_v34, %v1702_v26  ;;  %v1741_v49 = vsel %vm624_vm6, %v1688_v34, %v1702_v26  ;;  %v1744_v53 = vsel %vm1719_vm10, %v1688_v34, %v1702_v26 }
 0x234   :  { %v12296_v37 = vmax.f32 %v1829_v10, %v8336_v13  ;;  %v12298_v42 = vmax.f32 %v1830_v12, %v8337_v6  ;;  %v1740_v39 = vrot.slane %v1738_v18, 1  ;;  %v1743_v23 = vrot.slane %v1741_v49, 2  ;;  %v1567_v63 = vpop.f32.mrf.mxu1 }
 0x235   :  { %v1746_v11 = vrot.slane %v1744_v53, 3  ;;  %v1831_v29 = vunpack.c.l.bf16 %v1737_v7  ;;  %v1665_v41 = vmax.f32 %v1647_v2, 0.0  ;;  %v1594_v59 = vadd.f32 %v1593_v20, %v1566_v19 }
 0x236   :  { %v2031_v28 = vperm.slane %v12296_v37, 0  ;;  %v2032_v14 = vperm.slane %v12296_v37, 2  ;;  %v2033_v35 = vperm.slane %v12298_v42, 0  ;;  %v2034_v25 = vperm.slane %v12298_v42, 2 }
 0x237   :  { %v1832_v34 = vunpack.c.l.bf16 %v1740_v39  ;;  %v1833_v61 = vunpack.c.l.bf16 %v1743_v23  ;;  %v1834_v10 = vunpack.c.l.bf16 %v1746_v11  ;;  %v8338_v12 = vrot.slane %v1831_v29, 9 }
 0x238   :  { %v1679_v57 = vmax.f32 %v1439_v54, %v1665_v41  ;;  %v1666_v44 = vmax.f32 %v1594_v59, 0.0  ;;  %v1622_v26 = vadd.f32 %v1621_v60, %v12198_v27  ;;  %v1568_v19 = vadd.f32 %v1567_v63, %v12193_v22  ;;  %v1649_v2 = vpop.f32.mrf.mxu2 }
 0x239   :  { %v8339_v13 = vrot.slane %v1832_v34, 9  ;;  %v8340_v6 = vrot.slane %v1833_v61, 9  ;;  %v8341_v20 = vrot.slane %v1834_v10, 9  ;;  %v12308_v7 = vmax.f32 %v1831_v29, %v8338_v12 }
 0x23a   :  { %v12310_v18 = vpack.c.bf16 %v1679_v57, %v1678_v1  ;;  %v1680_v49 = vmax.f32 %v1440_v38, %v1666_v44  ;;  %v1650_v53 = vadd.f32 %v1649_v2, %v1622_v26  ;;  %v1595_v39 = vpop.f32.mrf.mxu3  ;;  %v1623_v16 = vpop.f32.mrf.mxu0  ;;  %v8335_v54 = vrot.slane %v1828_v52, 9 }
 0x23b   :  { %v12314_v23 = vmax.f32 %v1832_v34, %v8339_v13  ;;  %v12316_v60 = vmax.f32 %v1833_v61, %v8340_v6  ;;  %v12318_v63 = vmax.f32 %v1834_v10, %v8341_v20  ;;  %v2035_v11 = vperm.slane %v12308_v7, 0 }
 0x23c   :  { %v12323_v1 = vrot.slane %v12310_v18, 3  ;;  %v1667_v41 = vmax.f32 %v1650_v53, 0.0  ;;  %v1596_v56 = vadd.f32 %v1595_v39, %v1568_v19  ;;  %v1570_v38 = vpop.f32.mrf.mxu1  ;;  %v12328_v34 = vadd.f32 %v1623_v16, %v12198_v27 }
 0x23d   :  { %v12331_v61 = vadd.f32 %v1570_v38, %v12193_v22  ;;  %v1967_v20 = vmax.f32 %v1827_v4, %v12288_v51  ;;  %v1968_v53 = vmax.f32 %v1828_v52, %v8335_v54  ;;  %v2131_v39 = vpack.c.bf16 %v2020_v48, %v2019_v17 }
 0x23e   :  { %v12336_v10 = vsel %vm73_vm0, %v12310_v18, %v12323_v1  ;;  %v1753_v57 = vsel %vm624_vm6, %v12310_v18, %v12323_v1  ;;  %v1756_v44 = vsel %vm1719_vm10, %v12310_v18, %v12323_v1  ;;  %v1681_v26 = vmax.f32 %v1441_v30, %v1667_v41 }
 0x23f   :  { %v1755_v19 = vrot.slane %v1753_v57, 2  ;;  %v1758_v2 = vrot.slane %v1756_v44, 3  ;;  %v1835_v22 = vunpack.c.l.bf16 %v12336_v10  ;;  %v1668_v13 = vmax.f32 %v1596_v56, 0.0 }
 0x240   :  { %v1690_v6 = vpack.c.bf16 %v1681_v26, %v1680_v49  ;;  %v12354_v16 = vpop.f32.mrf.mxu2  ;;  %v2132_v32 = vpack.c.bf16 %v2022_v21, %v2021_v62  ;;  %v2027_v51 = vperm.slane %v1967_v20, 0  ;;  %v2028_v52 = vperm.slane %v1967_v20, 2 }
 0x241   :  { %v1837_v3 = vunpack.c.l.bf16 %v1755_v19  ;;  %v1838_v30 = vunpack.c.l.bf16 %v1758_v2  ;;  %v12358_v41 = vmax.f32 %v1442_v9, %v1668_v13  ;;  %v2029_v49 = vperm.slane %v1968_v53, 0 }
 0x242   :  { %v1704_v4 = vrot.slane %v1690_v6, 3  ;;  %v1598_v54 = vpop.f32.mrf.mxu3  ;;  %v1626_v0 = vpop.f32.mrf.mxu0  ;;  %v2030_v56 = vperm.slane %v1968_v53, 2  ;;  %v2133_v47 = vpack.c.bf16 %v2024_v55, %v2023_v36  ;;  %v2134_v36 = vpack.c.bf16 %v2026_v43, %v2025_v5 }
 0x243   :  { %v8344_v17 = vrot.slane %v1837_v3, 9  ;;  %v8345_v48 = vrot.slane %v1838_v30, 9  ;;  %v2135_v55 = vpack.c.bf16 %v2028_v52, %v2027_v51  ;;  %v2200_v53 = vunpack.c.l.b16 %v2131_v39 }
 0x244   :  { %v1761_v9 = vsel %vm73_vm0, %v1690_v6, %v1704_v4  ;;  %v1762_v38 = vsel %vm1711_vm15, %v1690_v6, %v1704_v4  ;;  %v1765_v46 = vsel %vm624_vm6, %v1690_v6, %v1704_v4  ;;  %v12372_v62 = vsel %vm1719_vm10, %v1690_v6, %v1704_v4  ;;  %v1572_v21 = vpop.f32.mrf.mxu1 }
 0x245   :  { %v12374_v57 = vmax.f32 %v1837_v3, %v8344_v17  ;;  %v12376_v44 = vmax.f32 %v1838_v30, %v8345_v48  ;;  %v1764_v26 = vrot.slane %v1762_v38, 1  ;;  %v1767_v19 = vrot.slane %v1765_v46, 2 }
 0x246   :  { %v1839_v33 = vunpack.c.l.bf16 %v1761_v9  ;;  %v2136_v6 = vpack.c.bf16 %v2030_v56, %v2029_v49  ;;  %v2201_v4 = vunpack.c.h.b16 %v2131_v39  ;;  %v2202_v30 = vunpack.c.l.b16 %v2132_v32 }
 0x247   :  { %v1840_v13 = vunpack.c.l.bf16 %v1764_v26  ;;  %v12383_v20 = vunpack.c.l.bf16 %v1767_v19  ;;  %v2203_v17 = vunpack.c.h.b16 %v2132_v32  ;;  %v2204_v46 = vunpack.c.l.b16 %v2133_v47 }
 0x248   :  { %v8346_v3 = vrot.slane %v1839_v33, 9  ;;  %v1654_v48 = vpop.f32.mrf.mxu2  ;;  %v2205_v21 = vunpack.c.h.b16 %v2133_v47  ;;  %v2206_v9 = vunpack.c.l.b16 %v2134_v36  ;;  %v2207_v12 = vunpack.c.h.b16 %v2134_v36 }
 0x249   :  { %v8347_v38 = vrot.slane %v1840_v13, 9  ;;  %v2208_v15 = vunpack.c.l.b16 %v2135_v55  ;;  %v2209_v5 = vunpack.c.h.b16 %v2135_v55  ;;  %v2210_v49 = vunpack.c.l.b16 %v2136_v6 }
 0x24a   :  { %v12385_v2 = vmax.f32 %v1839_v33, %v8346_v3  ;;  %v1600_v43 = vpop.f32.mrf.mxu3  ;;  %v1628_v51 = vpop.f32.mrf.mxu0  ;;  %v2211_v56 = vunpack.c.h.b16 %v2136_v6  ;;  %v2256_v26 = vrot.slane %v2200_v53, 6  ;;  %v2257_v39 = vrot.slane %v2202_v30, 5 }
 0x24b   :  { %v12387_v52 = vmax.f32 %v1840_v13, %v8347_v38  ;;  %v2259_v19 = vrot.slane %v2204_v46, 4  ;;  %v2262_v32 = vrot.slane %v2206_v9, 3  ;;  %v2265_v59 = vrot.slane %v2208_v15, 2 }
 0x24c   :  { %v2268_v29 = vrot.slane %v2210_v49, 1  ;;  %v2271_v47 = vrot.slane %v2201_v4, 6  ;;  %v2258_v33 = vsel %vm1719_vm10, %v2257_v39, %v2256_v26  ;;  %v2272_v36 = vrot.slane %v2203_v17, 5 }
 0x24d   :  { %v2274_v3 = vrot.slane %v2205_v21, 4  ;;  %v2276_v55 = vrot.slane %v2207_v12, 3  ;;  %v2261_v43 = vsel %vm16021_vm12, %v2259_v19, %v2258_v33  ;;  %v2278_v13 = vrot.slane %v2209_v5, 2  ;;  %vm16028_vm12 = vmmov %vm16027_vm4 }
 0x24e   :  { %v2280_v38 = vrot.slane %v2211_v56, 1  ;;  %v1652_v6 = vadd.f32 %v12354_v16, %v12328_v34  ;;  %v2264_v53 = vsel %vm2263_vm11, %v2262_v32, %v2261_v43  ;;  %v2273_v30 = vsel %vm1719_vm10, %v2272_v36, %v2271_v47 }
 0x24f   :  { %v1599_v46 = vadd.f32 %v1598_v54, %v12331_v61  ;;  %v1627_v4 = vadd.f32 %v1626_v0, %v12198_v27  ;;  %v2267_v17 = vsel %vm627_vm9, %v2265_v59, %v2264_v53  ;;  %v2275_v12 = vsel %vm16022_vm14, %v2274_v3, %v2273_v30  ;;  %vm16029_vm14 = vmmov %vm16027_vm4 }
 0x250   :  { %v1656_v9 = vpop.f32.mrf.mxu2  ;;  %v1669_v21 = vmax.f32 %v1652_v6, 0.0  ;;  %v1750_v15 = vsel %vm1711_vm15, %v12310_v18, %v12323_v1  ;;  %v2270_v34 = vsel %vm2269_vm7, %v2268_v29, %v2267_v17  ;;  %v2277_v16 = vsel %vm2263_vm11, %v2276_v55, %v2275_v12 }
 0x251   :  { %v1670_v5 = vmax.f32 %v1599_v46, 0.0  ;;  %v1655_v51 = vadd.f32 %v1654_v48, %v1627_v4  ;;  %v2279_v61 = vsel %vm627_vm9, %v2278_v13, %v2277_v16  ;;  %v1752_v54 = vrot.slane %v1750_v15, 1 }
 0x252   :  { %v1683_v27 = vmax.f32 %v1443_v40, %v1669_v21  ;;  %v8342_v59 = vrot.slane %v1835_v22, 9  ;;  %v2281_v0 = vsel %vm2269_vm7, %v2280_v38, %v2279_v61  ;;  %v2039_v29 = vperm.slane %v12316_v60, 0 }
 0x253   :  { %v1684_v18 = vmax.f32 %v1444_v50, %v1670_v5  ;;  %v1671_v1 = vmax.f32 %v1655_v51, 0.0  ;;  %v2360_v49 = vpack.c.b16 %v2281_v0, %v2270_v34  ;;  %v1836_v56 = vunpack.c.l.bf16 %v1752_v54 }
 0x254   :  { %v1691_v48 = vpack.c.bf16 %v1683_v27, %v12358_v41  ;;  %v1975_v58 = vmax.f32 %v1835_v22, %v8342_v59  ;;  %v2040_v26 = vperm.slane %v12316_v60, 2  ;;  %v2041_v39 = vperm.slane %v12318_v63, 0 }
 0x255   :  { %v1685_v40 = vmax.f32 %v1445_v24, %v1671_v1  ;;  %v2042_v8 = vperm.slane %v12318_v63, 2  ;;  %2364 = vrot.lane.b32.xlu2 %v2360_v49, %s11144_s0  ;;  %v8343_v19 = vrot.slane %v1836_v56, 9  ;;  %v12426_v10 = vpack.c.bf16 %v2032_v14, %v2031_v28 }
 0x256   :  { %v1705_v50 = vrot.slane %v1691_v48, 3  ;;  %v2043_v32 = vperm.slane %v1975_v58, 0  ;;  %v2044_v47 = vperm.slane %v1975_v58, 2  ;;  %v12432_v31 = vpack.c.bf16 %v2034_v25, %v2033_v35 }
 0x257   :  { %v1692_v41 = vpack.c.bf16 %v1685_v40, %v1684_v18  ;;  %v16023_v24 = vperm.slane %v12308_v7, 2  ;;  %v1976_v25 = vmax.f32 %v1836_v56, %v8343_v19  ;;  %v16024_v3 = vperm.slane %v12314_v23, 0 }
 0x258   :  { %v1773_v63 = vsel %vm73_vm0, %v1691_v48, %v1705_v50  ;;  %v1774_v22 = vsel %vm1711_vm15, %v1691_v48, %v1705_v50  ;;  %v1777_v37 = vsel %vm624_vm6, %v1691_v48, %v1705_v50  ;;  %v1780_v28 = vsel %vm1719_vm10, %v1691_v48, %v1705_v50 }
 0x259   :  { %v12438_v60 = vpack.c.bf16 %v16023_v24, %v2035_v11  ;;  %v1776_v14 = vrot.slane %v1774_v22, 1  ;;  %v1779_v33 = vrot.slane %v1777_v37, 2  ;;  %v1782_v36 = vrot.slane %v1780_v28, 3 }
 0x25a   :  { %v1843_v42 = vunpack.c.l.bf16 %v1773_v63  ;;  %v1706_v35 = vrot.slane %v1692_v41, 3  ;;  %v16025_v7 = vperm.slane %v12314_v23, 2  ;;  %v12450_v55 = vpack.c.bf16 %v2040_v26, %v2039_v29 }
 0x25b   :  { %v1844_v43 = vunpack.c.l.bf16 %v1776_v14  ;;  %v1845_v13 = vunpack.c.l.bf16 %v1779_v33  ;;  %v1846_v38 = vunpack.c.l.bf16 %v1782_v36  ;;  %v2045_v40 = vperm.slane %v1976_v25, 0 }
 0x25c   :  { %v12448_v11 = vpack.c.bf16 %v16025_v7, %v16024_v3  ;;  %v8350_v6 = vrot.slane %v1843_v42, 9  ;;  %v1785_v53 = vsel %vm73_vm0, %v1692_v41, %v1706_v35  ;;  %v1786_v30 = vsel %vm1711_vm15, %v1692_v41, %v1706_v35 }
 0x25d   :  { %v1789_v46 = vsel %vm624_vm6, %v1692_v41, %v1706_v35  ;;  %v12456_v4 = vsel %vm1719_vm10, %v1692_v41, %v1706_v35  ;;  %v8351_v9 = vrot.slane %v1844_v43, 9  ;;  %v8352_v17 = vrot.slane %v1845_v13, 9 }
 0x25e   :  { %v8353_v23 = vrot.slane %v1846_v38, 9  ;;  %v12458_v12 = vmax.f32 %v1843_v42, %v8350_v6  ;;  %v1788_v21 = vrot.slane %v1786_v30, 1  ;;  %v1791_v15 = vrot.slane %v1789_v46, 2 }
 0x25f   :  { %v1794_v34 = vrot.slane %v12456_v4, 3  ;;  %v1847_v16 = vunpack.c.l.bf16 %v1785_v53  ;;  %v12461_v5 = vmax.f32 %v1844_v43, %v8351_v9  ;;  %v12463_v51 = vmax.f32 %v1845_v13, %v8352_v17 }
 0x260   :  { %v12465_v61 = vmax.f32 %v1846_v38, %v8353_v23  ;;  %v2059_v27 = vperm.slane %v12458_v12, 0  ;;  %v2060_v54 = vperm.slane %v12458_v12, 2  ;;  %v1848_v59 = vunpack.c.l.bf16 %v1788_v21 }
 0x261   :  { %v12469_v0 = vunpack.c.l.bf16 %v1791_v15  ;;  %v8354_v18 = vrot.slane %v1847_v16, 9  ;;  %v2061_v1 = vperm.slane %v12461_v5, 0  ;;  %v2062_v29 = vperm.slane %v12461_v5, 2 }
 0x262   :  { %v2063_v49 = vperm.slane %v12463_v51, 0  ;;  %v2064_v48 = vperm.slane %v12463_v51, 2  ;;  %v8355_v56 = vrot.slane %v1848_v59, 9  ;;  %v2046_v26 = vperm.slane %v1976_v25, 2 }
 0x263   :  { %v12475_v58 = vmax.f32 %v1847_v16, %v8354_v18  ;;  %v2142_v50 = vpack.c.bf16 %v2042_v8, %v2041_v39  ;;  %v2143_v19 = vpack.c.bf16 %v2044_v47, %v2043_v32  ;;  %v2212_v41 = vunpack.c.l.b16 %v12426_v10 }
 0x264   :  { %v2213_v24 = vunpack.c.h.b16 %v12426_v10  ;;  %v12479_v63 = vmax.f32 %v1848_v59, %v8355_v56  ;;  %v2144_v22 = vpack.c.bf16 %v2046_v26, %v2045_v40  ;;  %v2214_v37 = vunpack.c.l.b16 %v12432_v31 }
 0x265   :  { %v2215_v28 = vunpack.c.h.b16 %v12432_v31  ;;  %v2216_v14 = vunpack.c.l.b16 %v12438_v60  ;;  %v2217_v33 = vunpack.c.h.b16 %v12438_v60  ;;  %v2218_v36 = vunpack.c.l.b16 %v12448_v11 }
 0x266   :  { %v2219_v39 = vunpack.c.h.b16 %v12448_v11  ;;  %v2220_v8 = vunpack.c.l.b16 %v12450_v55  ;;  %v2221_v32 = vunpack.c.h.b16 %v12450_v55  ;;  %v2222_v47 = vunpack.c.l.b16 %v2142_v50 }
 0x267   :  { %v2223_v10 = vunpack.c.h.b16 %v2142_v50  ;;  %v2224_v42 = vunpack.c.l.b16 %v2143_v19  ;;  %v2225_v35 = vunpack.c.h.b16 %v2143_v19  ;;  %v2226_v25 = vunpack.c.l.b16 %v2144_v22 }
 0x268   :  { %v2227_v3 = vunpack.c.h.b16 %v2144_v22  ;;  %v2282_v7 = vrot.slane %v2214_v37, 7  ;;  %v2284_v31 = vrot.slane %v2216_v14, 6  ;;  %v2286_v43 = vrot.slane %v2218_v36, 5 }
 0x269   :  { %v2288_v13 = vrot.slane %v2220_v8, 4  ;;  %v2290_v38 = vrot.slane %v2222_v47, 3  ;;  %v2292_v60 = vrot.slane %v2224_v42, 2  ;;  %v2294_v6 = vrot.slane %v2226_v25, 1 }
 0x26a   :  { %v2296_v53 = vrot.slane %v2215_v28, 7  ;;  %v2283_v11 = vsel %vm1711_vm15, %v2282_v7, %v2212_v41  ;;  %v2298_v30 = vrot.slane %v2217_v33, 6  ;;  %v2300_v46 = vrot.slane %v2219_v39, 5 }
 0x26b   :  { %v2302_v9 = vrot.slane %v2221_v32, 4  ;;  %v2285_v55 = vsel %vm624_vm6, %v2284_v31, %v2283_v11  ;;  %v2304_v23 = vrot.slane %v2223_v10, 3  ;;  %v2306_v21 = vrot.slane %v2225_v35, 2 }
 0x26c   :  { %v2297_v17 = vsel %vm1711_vm15, %v2296_v53, %v2213_v24  ;;  %v2287_v15 = vsel %vm1719_vm10, %v2286_v43, %v2285_v55  ;;  %v2308_v59 = vrot.slane %v2227_v3, 1  ;;  %v16026_v18 = vrot.slane %v12372_v62, 3 }
 0x26d   :  { %v2299_v16 = vsel %vm624_vm6, %v2298_v30, %v2297_v17  ;;  %v2289_v40 = vsel %vm16027_vm4, %v2288_v13, %v2287_v15  ;;  %v8348_v50 = vrot.slane %v12383_v20, 9  ;;  %v2047_v19 = vperm.slane %v12374_v57, 0 }
 0x26e   :  { %v1842_v56 = vunpack.c.l.bf16 %v16026_v18  ;;  %v2301_v26 = vsel %vm1719_vm10, %v2300_v46, %v2299_v16  ;;  %v2291_v41 = vsel %vm2263_vm11, %v2290_v38, %v2289_v40  ;;  %v2048_v37 = vperm.slane %v12374_v57, 2 }
 0x26f   :  { %v2303_v24 = vsel %vm16028_vm12, %v2302_v9, %v2301_v26  ;;  %v2293_v28 = vsel %vm627_vm9, %v2292_v60, %v2291_v41  ;;  %v1981_v14 = vmax.f32 %v12383_v20, %v8348_v50  ;;  %v2049_v33 = vperm.slane %v12376_v44, 0  ;;  %vm16030_vm12 = vmmov %vm16027_vm4 }
 0x270   :  { %v8349_v22 = vrot.slane %v1842_v56, 9  ;;  %v2305_v62 = vsel %vm2263_vm11, %v2304_v23, %v2303_v24  ;;  %v2295_v36 = vsel %vm2269_vm7, %v2294_v6, %v2293_v28  ;;  %v2050_v32 = vperm.slane %v12376_v44, 2 }
 0x271   :  { %v2307_v39 = vsel %vm627_vm9, %v2306_v21, %v2305_v62  ;;  %v2051_v10 = vperm.slane %v12385_v2, 0  ;;  %v2052_v57 = vperm.slane %v12385_v2, 2  ;;  %v2053_v42 = vperm.slane %v12387_v52, 0 }
 0x272   :  { %v1982_v8 = vmax.f32 %v1842_v56, %v8349_v22  ;;  %v2309_v47 = vsel %vm2269_vm7, %v2308_v59, %v2307_v39  ;;  %v2054_v20 = vperm.slane %v12387_v52, 2  ;;  %v2055_v25 = vperm.slane %v1981_v14, 0 }
 0x273   :  { %v2361_v35 = vpack.c.b16 %v2309_v47, %v2295_v36  ;;  %v2056_v3 = vperm.slane %v1981_v14, 2  ;;  %v2145_v43 = vpack.c.bf16 %v2048_v37, %v2047_v19  ;;  %v2146_v13 = vpack.c.bf16 %v2050_v32, %v2049_v33 }
 0x274   :  { %v2057_v7 = vperm.slane %v1982_v8, 0  ;;  %v2058_v31 = vperm.slane %v1982_v8, 2  ;;  %v2147_v44 = vpack.c.bf16 %v2052_v57, %v2051_v10  ;;  %v2148_v38 = vpack.c.bf16 %v2054_v20, %v2053_v42 }
 0x275   :  { %2366 = vrot.lane.b32.xlu0 %v2361_v35, %s11144_s0  ;;  %v2149_v60 = vpack.c.bf16 %v2056_v3, %v2055_v25  ;;  %v1850_v6 = vunpack.c.l.bf16 %v1794_v34  ;;  %v2228_v53 = vunpack.c.l.b16 %v2145_v43  ;;  %v2229_v11 = vunpack.c.h.b16 %v2145_v43 }
 0x276   :  { %v2150_v2 = vpack.c.bf16 %v2058_v31, %v2057_v7  ;;  %v2230_v30 = vunpack.c.l.b16 %v2146_v13  ;;  %v2231_v46 = vunpack.c.h.b16 %v2146_v13  ;;  %v2232_v52 = vunpack.c.l.b16 %v2147_v44 }
 0x277   :  { %v2233_v9 = vunpack.c.h.b16 %v2147_v44  ;;  %v2234_v55 = vunpack.c.l.b16 %v2148_v38  ;;  %v2235_v17 = vunpack.c.h.b16 %v2148_v38  ;;  %v2236_v23 = vunpack.c.l.b16 %v2149_v60 }
 0x278   :  { %v2237_v21 = vunpack.c.h.b16 %v2149_v60  ;;  %v2238_v15 = vunpack.c.l.b16 %v2150_v2  ;;  %v2239_v16 = vunpack.c.h.b16 %v2150_v2  ;;  %v2310_v59 = vrot.slane %v2228_v53, 6 }
 0x279   :  { %v2311_v18 = vrot.slane %v2230_v30, 5  ;;  %v2313_v56 = vrot.slane %v2232_v52, 4  ;;  %v2315_v40 = vrot.slane %v2234_v55, 3  ;;  %v2317_v26 = vrot.slane %v2236_v23, 2 }
 0x27a   :  { %v2319_v4 = vrot.slane %v2238_v15, 1  ;;  %v2321_v34 = vrot.slane %v2229_v11, 6  ;;  %v2322_v19 = vrot.slane %v2231_v46, 5  ;;  %v2324_v41 = vrot.slane %v2233_v9, 4 }
 0x27b   :  { %v2312_v50 = vsel %vm1719_vm10, %v2311_v18, %v2310_v59  ;;  %v2326_v24 = vrot.slane %v2235_v17, 3  ;;  %v2328_v37 = vrot.slane %v2237_v21, 2  ;;  %v2330_v28 = vrot.slane %v2239_v16, 1 }
 0x27c   :  { %v2314_v22 = vsel %vm16029_vm14, %v2313_v56, %v2312_v50  ;;  %v8356_v62 = vrot.slane %v12469_v0, 9  ;;  %v2323_v33 = vsel %vm1719_vm10, %v2322_v19, %v2321_v34  ;;  %v8357_v36 = vrot.slane %v1850_v6, 9  ;;  %vm16031_vm14 = vmmov %vm16027_vm4 }
 0x27d   :  { %v2316_v14 = vsel %vm2263_vm11, %v2315_v40, %v2314_v22  ;;  %v2065_v39 = vperm.slane %v12465_v61, 0  ;;  %v2325_v32 = vsel %vm16027_vm4, %v2324_v41, %v2323_v33  ;;  %v2066_v10 = vperm.slane %v12465_v61, 2 }
 0x27e   :  { %v2318_v8 = vsel %vm627_vm9, %v2317_v26, %v2316_v14  ;;  %v1989_v47 = vmax.f32 %v12469_v0, %v8356_v62  ;;  %v2327_v42 = vsel %vm2263_vm11, %v2326_v24, %v2325_v32  ;;  %v1990_v35 = vmax.f32 %v1850_v6, %v8357_v36 }
 0x27f   :  { %v2320_v57 = vsel %vm2269_vm7, %v2319_v4, %v2318_v8  ;;  %v2067_v20 = vperm.slane %v12475_v58, 0  ;;  %v2329_v25 = vsel %vm627_vm9, %v2328_v37, %v2327_v42  ;;  %v2068_v3 = vperm.slane %v12475_v58, 2 }
 0x280   :  { %v2069_v7 = vperm.slane %v12479_v63, 0  ;;  %v2070_v31 = vperm.slane %v12479_v63, 2  ;;  %v2331_v43 = vsel %vm2269_vm7, %v2330_v28, %v2329_v25  ;;  %v2071_v0 = vperm.slane %v1989_v47, 0 }
 0x281   :  { %v2072_v13 = vperm.slane %v1989_v47, 2  ;;  %v2073_v61 = vperm.slane %v1990_v35, 0  ;;  %v2362_v44 = vpack.c.b16 %v2331_v43, %v2320_v57  ;;  %v2074_v38 = vperm.slane %v1990_v35, 2  ;;  %v2396_v43 = vld [vmem:[#allocation4 + $0x8] sm:$0xf] }
 0x282   :  { %v2151_v60 = vpack.c.bf16 %v2060_v54, %v2059_v27  ;;  %v2152_v58 = vpack.c.bf16 %v2062_v29, %v2061_v1  ;;  %v2153_v63 = vpack.c.bf16 %v2064_v48, %v2063_v49  ;;  %v2154_v6 = vpack.c.bf16 %v2066_v10, %v2065_v39 }
 0x283   :  { %v2155_v2 = vpack.c.bf16 %v2068_v3, %v2067_v20  ;;  %v2156_v53 = vpack.c.bf16 %v2070_v31, %v2069_v7  ;;  %2368 = vrot.lane.b32.xlu1 %v2362_v44, %s11144_s0  ;;  %v2157_v11 = vpack.c.bf16 %v2072_v13, %v2071_v0  ;;  %v2158_v30 = vpack.c.bf16 %v2074_v38, %v2073_v61  ;;  %v2560_v0 = vld [vmem:[#allocation4 + $0x8] sm:$0xf] }
 0x284   :  { %v2240_v46 = vunpack.c.l.b16 %v2151_v60  ;;  %v2242_v12 = vunpack.c.l.b16 %v2152_v58  ;;  %v2244_v27 = vunpack.c.l.b16 %v2153_v63  ;;  %v2243_v54 = vunpack.c.h.b16 %v2152_v58 }
 0x285   :  { %v2245_v52 = vunpack.c.h.b16 %v2153_v63  ;;  %v2246_v9 = vunpack.c.l.b16 %v2154_v6  ;;  %v2248_v5 = vunpack.c.l.b16 %v2155_v2  ;;  %v2241_v1 = vunpack.c.h.b16 %v2151_v60 }
 0x286   :  { %v2249_v29 = vunpack.c.h.b16 %v2155_v2  ;;  %v2250_v55 = vunpack.c.l.b16 %v2156_v53  ;;  %v2252_v17 = vunpack.c.l.b16 %v2157_v11  ;;  %v2247_v51 = vunpack.c.h.b16 %v2154_v6 }
 0x287   :  { %v2251_v49 = vunpack.c.h.b16 %v2156_v53  ;;  %v2332_v48 = vrot.slane %v2242_v12, 7  ;;  %v2334_v23 = vrot.slane %v2244_v27, 6  ;;  %v2253_v21 = vunpack.c.h.b16 %v2157_v11 }
 0x288   :  { %v2254_v15 = vunpack.c.l.b16 %v2158_v30  ;;  %v2336_v16 = vrot.slane %v2246_v9, 5  ;;  %v2338_v59 = vrot.slane %v2248_v5, 4  ;;  %v2340_v56 = vrot.slane %v2250_v55, 3 }
 0x289   :  { %v2333_v18 = vsel %vm1711_vm15, %v2332_v48, %v2240_v46  ;;  %v2346_v40 = vrot.slane %v2243_v54, 7  ;;  %v2348_v26 = vrot.slane %v2245_v52, 6  ;;  %v2255_v4 = vunpack.c.h.b16 %v2158_v30 }
 0x28a   :  { %v2335_v34 = vsel %vm624_vm6, %v2334_v23, %v2333_v18  ;;  %v2342_v50 = vrot.slane %v2252_v17, 2  ;;  %v2352_v19 = vrot.slane %v2249_v29, 4  ;;  %v2350_v22 = vrot.slane %v2247_v51, 5 }
 0x28b   :  { %v2337_v41 = vsel %vm1719_vm10, %v2336_v16, %v2335_v34  ;;  %v2347_v24 = vsel %vm1711_vm15, %v2346_v40, %v2241_v1  ;;  %v2354_v37 = vrot.slane %v2251_v49, 3  ;;  %v2356_v14 = vrot.slane %v2253_v21, 2 }
 0x28c   :  { %v2339_v28 = vsel %vm16030_vm12, %v2338_v59, %v2337_v41  ;;  %v2349_v62 = vsel %vm624_vm6, %v2348_v26, %v2347_v24  ;;  %v2344_v36 = vrot.slane %v2254_v15, 1  ;;  %v2358_v57 = vrot.slane %v2255_v4, 1 }
 0x28d   :  { %v2341_v33 = vsel %vm2263_vm11, %v2340_v56, %v2339_v28  ;;  %v2351_v39 = vsel %vm1719_vm10, %v2350_v22, %v2349_v62  ;;  %vm2385_vm4 = vcmask 1043713   ;;  %vm2386_vm12 = vcmask 1047557   ;;  %v8540_v28 = vld [vmem:[%s15969_s4 + $0x70] sm:$0xf]  ;;  %v10656_v62 = vld [vmem:[%s15969_s4 + $0x74] sm:$0xf0] }
 0x28e   :  { %v2343_v8 = vsel %vm627_vm9, %v2342_v50, %v2341_v33  ;;  %v2353_v32 = vsel %vm16031_vm14, %v2352_v19, %v2351_v39  ;;  %vm12564_vm13 = vmor %vm2386_vm12, %vm2385_vm4  ;;  %v2412_v13 = vrot.slane %v2396_v43, 6  ;;  %v2413_v61 = vrot.slane %v2396_v43, 1  ;;  %v10682_v56 = vld [vmem:[%s15969_s4 + $0x144] sm:$0xf0] }
 0x28f   :  { %v2345_v47 = vsel %vm2269_vm7, %v2344_v36, %v2343_v8  ;;  %v2355_v10 = vsel %vm2263_vm11, %v2354_v37, %v2353_v32  ;;  %v2576_v44 = vrot.slane %v2560_v0, 6  ;;  %v2577_v38 = vrot.slane %v2560_v0, 1  ;;  %v10672_v36 = vld [vmem:[%s15969_s4 + $0xf4] sm:$0xf0] }
 0x290   :  { %v2357_v42 = vsel %vm627_vm9, %v2356_v14, %v2355_v10  ;;  %vm2684_vm9 = vsmask.f32 7452  ;;  %v2428_v60 = vsel %vm624_vm6, %v2412_v13, %v2413_v61  ;;  %vm2443_vm14 = vcmask 1044483   ;;  %v8604_v14 = vld [vmem:[%s15969_s4 + $0xf0] sm:$0xf] }
 0x291   :  { %v2359_v35 = vsel %vm2269_vm7, %v2358_v57, %v2357_v42  ;;  %vm2432_vm7 = vcmask 1042433   ;;  %v2431_v63 = vsel %vm1719_vm10, %v2412_v13, %v2413_v61  ;;  %vm16034_vm4 = vcmask 1044484   ;;  %v8532_v10 = vld [vmem:[%s15969_s4 + $0x60] sm:$0xf]  ;;  %v10654_v57 = vld [vmem:[%s15969_s4 + $0x64] sm:$0xf0] }
 0x292   :  { %v2363_v20 = vpack.c.b16 %v2359_v35, %v2345_v47  ;;  %v2437_v6 = vsel %vm16034_vm4, %v2412_v13, %v2413_v61  ;;  %v2442_v2 = vsel %vm2263_vm11, %v2412_v13, %v2413_v61  ;;  %v2592_v11 = vsel %vm624_vm6, %v2576_v44, %v2577_v38  ;;  %vm16035_vm12 = vmmov %vm16034_vm4  ;;  %v2398_v42 = vld [vmem:[#allocation4 + $0x14] sm:$0x7]  ;;  %v8588_v13 = vld [vmem:[%s15969_s4 + $0xd0] sm:$0xf] }
 0x293   :  { %v2595_v30 = vsel %vm1719_vm10, %v2576_v44, %v2577_v38  ;;  %v2600_v46 = vsel %vm16035_vm12, %v2576_v44, %v2577_v38  ;;  %v2605_v12 = vsel %vm2263_vm11, %v2576_v44, %v2577_v38  ;;  %vm12597_vm4 = vmor %vm11297_vm8, %vm2684_vm9  ;;  %v8541_v33 = vor.u32 %v10656_v62, %v8540_v28  ;;  %v10668_v61 = vld [vmem:[%s15969_s4 + $0xd4] sm:$0xf0]  ;;  %v8500_v62 = vld [vmem:[%s15969_s4 + $0x20] sm:$0xf] }
 0x294   :  { %2370 = vrot.lane.b32.xlu2 %v2363_v20, %s11144_s0  ;;  %vm2389_vm8 = vcmask 1043712   ;;  %vm2390_vm9 = vcmask 1047556   ;;  %v8605_v39 = vor.u32 %v10672_v36, %v8604_v14  ;;  %v8596_v20 = vld [vmem:[%s15969_s4 + $0xe0] sm:$0xf]  ;;  %v8533_v43 = vor.u32 %v10654_v57, %v8532_v10  ;;  %v10646_v14 = vld [vmem:[%s15969_s4 + $0x24] sm:$0xf0] }
 0x295   :  { %4801 = vmatpush.bf16.msra.mxu1 %v8541_v33  ;;  %vm12637_vm12 = vmor %vm2390_vm9, %vm2389_vm8  ;;  %v2415_v44 = vrot.slane %v2398_v42, 6  ;;  %v2416_v38 = vrot.slane %v2398_v42, 1  ;;  %vm16040_vm8 = vcmask 1044484   ;;  %v10732_v32 = vld [vmem:[%s15969_s4 + $0x2d4] sm:$0xf0] }
 0x296   :  { %4820 = vmatpush.bf16.msra.mxu3 %v8605_v39 }
 0x299   :  { %4802 = vmatpush.bf16.msra.mxu1 %v8533_v43  ;;  %v8492_v43 = vld [vmem:[%s15969_s4 + $0x10] sm:$0xf] }
 0x2af   :  { %v2365_v25 = vpop.permute.xlu2 %2364 }
 0x2b0   :  { %v2372_v7 = vrot.slane %v2365_v25, 4 }
 0x2b2   :  { %v2377_v31 = vsel %vm1307_vm2, %v2372_v7, %v2365_v25  ;;  %v10670_v25 = vld [vmem:[%s15969_s4 + $0xe4] sm:$0xf0]  ;;  %v8524_v7 = vld [vmem:[%s15969_s4 + $0x50] sm:$0xf] }
 0x2b3   :  { %2388 = vst.msk [vmem:[#allocation4] sm:$0xee] %vm12564_vm13, %v2377_v31  ;;  %v10652_v31 = vld [vmem:[%s15969_s4 + $0x54] sm:$0xf0]  ;;  %v8597_v0 = vor.u32 %v10670_v25, %v8596_v20 }
 0x2b5   :  { %4821 = vmatpush.bf16.msra.mxu3 %v8597_v0  ;;  %v10644_v0 = vld [vmem:[%s15969_s4 + $0x14] sm:$0xf0] }
 0x2ba   :  { %v2395_v58 = vld [vmem:[#allocation4] sm:$0xff] }
 0x2bb   :  { %v2411_v53 = vrot.slane %v2395_v58, 3 }
 0x2bd   :  { %v2425_v27 = vsel %vm73_vm0, %v2395_v58, %v2411_v53  ;;  %v2430_v54 = vsel %vm1711_vm15, %v2395_v58, %v2411_v53  ;;  %v2436_v52 = vsel %vm624_vm6, %v2395_v58, %v2411_v53  ;;  %v2441_v9 = vsel %vm1719_vm10, %v2395_v58, %v2411_v53 }
 0x2be   :  { %v2429_v5 = vsel %vm155_vm5, %v2425_v27, %v2428_v60  ;;  %v2433_v1 = vsel %vm2432_vm7, %v2430_v54, %v2431_v63  ;;  %v2438_v29 = vsel %vm159_vm1, %v2436_v52, %v2437_v6  ;;  %v2444_v55 = vsel %vm2443_vm14, %v2441_v9, %v2442_v2  ;;  %v8516_v6 = vld [vmem:[%s15969_s4 + $0x40] sm:$0xf]  ;;  %v10650_v2 = vld [vmem:[%s15969_s4 + $0x44] sm:$0xf0] }
 0x2bf   :  { %v2435_v17 = vrot.slane %v2433_v1, 1  ;;  %v2440_v51 = vrot.slane %v2438_v29, 2  ;;  %v2446_v49 = vrot.slane %v2444_v55, 3  ;;  %2503 = vst [vmem:[#allocation1] ss:$4 sm:$0xff] %v2429_v5  ;;  %v2593_v48 = vsel %vm155_vm5, %v2425_v27, %v2592_v11 }
 0x2c0   :  { %v2596_v23 = vsel %vm2432_vm7, %v2430_v54, %v2595_v30  ;;  %v2601_v21 = vsel %vm159_vm1, %v2436_v52, %v2600_v46  ;;  %v12591_v15 = vsel %vm2443_vm14, %v2441_v9, %v2605_v12  ;;  %v2686_v40 = vshrl.u32 %v2593_v48, 16  ;;  %v8580_v11 = vld [vmem:[%s15969_s4 + $0xc0] sm:$0xf]  ;;  %v10666_v30 = vld [vmem:[%s15969_s4 + $0xc4] sm:$0xf0] }
 0x2c1   :  { %2506 = vst [vmem:[#allocation1 + $0x1] ss:$4 sm:$0xff] %v2435_v17  ;;  %v2598_v16 = vrot.slane %v2596_v23, 1  ;;  %v2603_v59 = vrot.slane %v2601_v21, 2  ;;  %v2608_v18 = vrot.slane %v12591_v15, 3  ;;  %v8525_v60 = vor.u32 %v10652_v31, %v8524_v7 }
 0x2c2   :  { %2509 = vst [vmem:[#allocation1 + $0x2] ss:$4 sm:$0xff] %v2440_v51  ;;  %v8589_v58 = vor.u32 %v10668_v61, %v8588_v13  ;;  %v2452_v46 = vsel %vm624_vm6, %v2415_v44, %v2416_v38  ;;  %v8517_v54 = vor.u32 %v10650_v2, %v8516_v6  ;;  %v2455_v52 = vsel %vm1719_vm10, %v2415_v44, %v2416_v38  ;;  %v2402_v51 = vld [vmem:[#allocation4 + $0x38] sm:$0x7]  ;;  %v8508_v21 = vld [vmem:[%s15969_s4 + $0x30] sm:$0xf] }
 0x2c3   :  { %2512 = vst [vmem:[#allocation1 + $0x3] ss:$4 sm:$0xff] %v2446_v49  ;;  %v2691_v26 = vshll.u32 %v2598_v16, 16  ;;  %v12601_v4 = vshrl.u32 %v2598_v16, 16  ;;  %v12603_v34 = vshll.u32 %v2603_v59, 16  ;;  %v12605_v50 = vshrl.u32 %v2603_v59, 16  ;;  %4803 = vmatpush.bf16.msra.mxu1 %v8525_v60 }
 0x2c4   :  { %v12609_v19 = vshll.u32 %v2608_v18, 16  ;;  %4822 = vmatpush.bf16.msra.mxu3 %v8589_v58  ;;  %v2460_v9 = vsel %vm16040_vm8, %v2415_v44, %v2416_v38  ;;  %v8581_v1 = vor.u32 %v10666_v30, %v8580_v11  ;;  %v10648_v16 = vld [vmem:[%s15969_s4 + $0x34] sm:$0xf0]  ;;  %v8572_v59 = vld [vmem:[%s15969_s4 + $0xb0] sm:$0xf]  ;;  %v12706_v28 = vrot.slane %v2402_v51, 1 }
 0x2c5   :  { %v12613_v45 = vsel %vm12597_vm4, %v2686_v40, %v2691_v26  ;;  %v2701_v41 = vsel %vm12597_vm4, %v12601_v4, %v12603_v34  ;;  %v8509_v36 = vor.u32 %v10648_v16, %v8508_v21  ;;  %v8556_v13 = vld [vmem:[%s15969_s4 + $0x90] sm:$0xf]  ;;  %v10660_v61 = vld [vmem:[%s15969_s4 + $0x94] sm:$0xf0]  ;;  %v8484_v44 = vld [vmem:[%s15969_s4] sm:$0xf]  ;;  %v8493_v58 = vor.u32 %v10644_v0, %v8492_v43 }
 0x2c6   :  { %v2709_v24 = vsel %vm12597_vm4, %v12605_v50, %v12609_v19  ;;  %v10642_v38 = vld [vmem:[%s15969_s4 + $0x4] sm:$0xf0]  ;;  %v2400_v2 = vld [vmem:[#allocation4 + $0x2c] sm:$0xf]  ;;  %v2562_v30 = vld [vmem:[#allocation4 + $0x14] sm:$0xf] }
 0x2c7   :  { %4804 = vmatpush.bf16.msra.mxu1 %v8517_v54  ;;  %v10658_v6 = vld [vmem:[%s15969_s4 + $0x84] sm:$0xf0]  ;;  %v8485_v11 = vor.u32 %v10642_v38, %v8484_v44  ;;  %v2579_v54 = vrot.slane %v2562_v30, 6 }
 0x2c8   :  { %4823 = vmatpush.bf16.msra.mxu3 %v8581_v1 }
 0x2ca   :  { %v2523_v22 = vld [vmem:[#allocation1] sm:$0xff]  ;;  %v2524_v37 = vld [vmem:[#allocation1 + $0x8] sm:$0xff] }
 0x2cb   :  { %2550 = vst [vmem:[#allocation5] sm:$0xff] %v2523_v22  ;;  %v10664_v22 = vld [vmem:[%s15969_s4 + $0xb4] sm:$0xf0]  ;;  %4805 = vmatpush.bf16.msra.mxu1 %v8509_v36 }
 0x2cc   :  { %2551 = vst.msk [vmem:[#allocation5 + $0x8] sm:$0xf] %vm40_vm3, %v2524_v37  ;;  %v12704_v37 = vrot.slane %v2402_v51, 6  ;;  %v8573_v39 = vor.u32 %v10664_v22, %v8572_v59 }
 0x2ce   :  { %v2491_v10 = vsel %vm624_vm6, %v12704_v37, %v12706_v28  ;;  %4824 = vmatpush.bf16.msra.mxu3 %v8573_v39 }
 0x2e7   :  { %v2367_v8 = vpop.permute.xlu0 %2366 }
 0x2e8   :  { %v2373_v47 = vrot.slane %v2367_v8, 4 }
 0x2ea   :  { %v2378_v35 = vsel %vm1307_vm2, %v2373_v47, %v2367_v8  ;;  %v8564_v8 = vld [vmem:[%s15969_s4 + $0xa0] sm:$0xf]  ;;  %v10662_v47 = vld [vmem:[%s15969_s4 + $0xa4] sm:$0xf0] }
 0x2eb   :  { %2392 = vst.msk [vmem:[#allocation4 + $0xc] sm:$0xff] %vm12637_vm12, %v2378_v35  ;;  %v8501_v35 = vor.u32 %v10646_v14, %v8500_v62  ;;  %v8565_v20 = vor.u32 %v10662_v47, %v8564_v8  ;;  %v2494_v47 = vsel %vm1719_vm10, %v12704_v37, %v12706_v28 }
 0x2ed   :  { %4806 = vmatpush.bf16.msra.mxu1 %v8501_v35  ;;  %4825 = vmatpush.bf16.msra.mxu3 %v8565_v20 }
 0x2ee   :  { %v2371_v63 = vpop.permute.xlu2 %2370 }
 0x2ef   :  { %v2375_v53 = vrot.slane %v2371_v63, 4 }
 0x2f1   :  { %v2380_v27 = vsel %vm1307_vm2, %v2375_v53, %v2371_v63  ;;  %v8548_v63 = vld [vmem:[%s15969_s4 + $0x80] sm:$0xf]  ;;  %v8557_v53 = vor.u32 %v10660_v61, %v8556_v13  ;;  %4807 = vmatpush.bf16.msra.mxu1 %v8493_v58 }
 0x2f2   :  { %v2397_v12 = vld [vmem:[#allocation4 + $0xc] sm:$0x77]  ;;  %2394 = vst.msk [vmem:[#allocation4 + $0x30] sm:$0xff] %vm12637_vm12, %v2380_v27  ;;  %v2419_v27 = vrot.slane %v2400_v2, 1 }
 0x2f3   :  { %v2414_v5 = vrot.slane %v2397_v12, 3  ;;  %4826 = vmatpush.bf16.msra.mxu3 %v8557_v53 }
 0x2f5   :  { %v2449_v29 = vsel %vm73_vm0, %v2397_v12, %v2414_v5  ;;  %v2454_v55 = vsel %vm1711_vm15, %v2397_v12, %v2414_v5  ;;  %v2459_v17 = vsel %vm624_vm6, %v2397_v12, %v2414_v5  ;;  %v2369_v42 = vpop.permute.xlu1 %2368  ;;  %v2418_v12 = vrot.slane %v2400_v2, 6  ;;  %4808 = vmatpush.bf16.msra.mxu1 %v8485_v11 }
 0x2f6   :  { %v2453_v49 = vsel %vm155_vm5, %v2449_v29, %v2452_v46  ;;  %v2456_v48 = vsel %vm2432_vm7, %v2454_v55, %v2455_v52  ;;  %v2461_v23 = vsel %vm159_vm1, %v2459_v17, %v2460_v9  ;;  %v2374_v31 = vrot.slane %v2369_v42, 4  ;;  %v12759_v9 = vld [vmem:[#allocation4 + $0xc] sm:$0xff] }
 0x2f7   :  { %v2458_v40 = vrot.slane %v2456_v48, 1  ;;  %v2463_v26 = vrot.slane %v2461_v23, 2  ;;  %2514 = vst [vmem:[#allocation1 + $0x20] ss:$4 sm:$0xff] %v2453_v49  ;;  %v8549_v46 = vor.u32 %v10658_v6, %v8548_v63  ;;  %v2580_v52 = vrot.slane %v2562_v30, 1 }
 0x2f8   :  { %v2379_v60 = vsel %vm1307_vm2, %v2374_v31, %v2369_v42  ;;  %v2469_v5 = vsel %vm624_vm6, %v2418_v12, %v2419_v27  ;;  %v2472_v3 = vsel %vm1719_vm10, %v2418_v12, %v2419_v27  ;;  %v2482_v55 = vsel %vm2263_vm11, %v2418_v12, %v2419_v27  ;;  %v2564_v48 = vld [vmem:[#allocation4 + $0x2c] sm:$0xf] }
 0x2f9   :  { %2517 = vst [vmem:[#allocation1 + $0x21] ss:$4 sm:$0xff] %v2458_v40  ;;  %v12714_v33 = vld [vmem:[#allocation4 + $0x30] sm:$0x77]  ;;  %4827 = vmatpush.bf16.msra.mxu3 %v8549_v46  ;;  %v2614_v51 = vsel %vm624_vm6, %v2579_v54, %v2580_v52  ;;  %v2578_v49 = vrot.slane %v12759_v9, 3  ;;  %v2617_v14 = vsel %vm1719_vm10, %v2579_v54, %v2580_v52  ;;  %v2582_v35 = vrot.slane %v2564_v48, 6 }
 0x2fa   :  { %2520 = vst [vmem:[#allocation1 + $0x22] ss:$4 sm:$0xff] %v2463_v26  ;;  %v12726_v57 = vrot.slane %v12714_v33, 3  ;;  %v2583_v43 = vrot.slane %v2564_v48, 1  ;;  %v12802_v44 = vld [vmem:[#allocation4 + $0x30] sm:$0xff] }
 0x2fb   :  { %2393 = vst.msk [vmem:[#allocation4 + $0x24] sm:$0xee] %vm12564_vm13, %v2379_v60  ;;  %vm16041_vm13 = vmmov %vm16040_vm8  ;;  %v2611_v20 = vsel %vm73_vm0, %v12759_v9, %v2578_v49  ;;  %v2621_v0 = vsel %vm624_vm6, %v12759_v9, %v2578_v49  ;;  %v2626_v13 = vsel %vm1719_vm10, %v12759_v9, %v2578_v49  ;;  %v2584_v11 = vrot.slane %v12802_v44, 3 }
 0x2fc   :  { %v2488_v25 = vsel %vm73_vm0, %v12714_v33, %v12726_v57  ;;  %v2477_v29 = vsel %vm16041_vm13, %v2418_v12, %v2419_v27  ;;  %v2493_v42 = vsel %vm1711_vm15, %v12714_v33, %v12726_v57  ;;  %v2498_v31 = vsel %vm624_vm6, %v12714_v33, %v12726_v57  ;;  %vm16042_vm13 = vmmov %vm16040_vm8 }
 0x2fd   :  { %v2492_v7 = vsel %vm155_vm5, %v2488_v25, %v2491_v10  ;;  %v2499_v10 = vsel %vm16040_vm8, %v12704_v37, %v12706_v28  ;;  %v2616_v25 = vsel %vm1711_vm15, %v12759_v9, %v2578_v49  ;;  %v2622_v37 = vsel %vm16042_vm13, %v2579_v54, %v2580_v52  ;;  %vm16043_vm13 = vmmov %vm16040_vm8 }
 0x2fe   :  { %2533 = vst [vmem:[#allocation1 + $0x3] ss:$4 sm:$0xff] %v2492_v7  ;;  %v2566_v7 = vld [vmem:[#allocation4 + $0x38] sm:$0xf]  ;;  %v2627_v28 = vsel %vm2263_vm11, %v2579_v54, %v2580_v52  ;;  %v2495_v61 = vsel %vm2432_vm7, %v2493_v42, %v2494_v47  ;;  %v12805_v33 = vsel %vm155_vm5, %v2611_v20, %v2614_v51  ;;  %v2618_v57 = vsel %vm2432_vm7, %v2616_v25, %v2617_v14 }
 0x2ff   :  { %v2585_v38 = vrot.slane %v2566_v7, 6  ;;  %v2500_v60 = vsel %vm159_vm1, %v2498_v31, %v2499_v10  ;;  %v2623_v58 = vsel %vm159_vm1, %v2621_v0, %v2622_v37  ;;  %v2628_v63 = vsel %vm2443_vm14, %v2626_v13, %v2627_v28 }
 0x300   :  { %v2586_v6 = vrot.slane %v2566_v7, 1  ;;  %v2639_v2 = vsel %vm1719_vm10, %v2582_v35, %v2583_v43  ;;  %v2497_v53 = vrot.slane %v2495_v61, 1  ;;  %v2644_v30 = vsel %vm16040_vm8, %v2582_v35, %v2583_v43 }
 0x301   :  { %v2620_v27 = vrot.slane %v2618_v57, 1  ;;  %v2714_v54 = vshll.u32 %v12805_v33, 16  ;;  %v2502_v52 = vrot.slane %v2500_v60, 2  ;;  %v2660_v49 = vsel %vm1711_vm15, %v12802_v44, %v2584_v11 }
 0x302   :  { %v2399_v1 = vld [vmem:[#allocation4 + $0x24] sm:$0xff]  ;;  %v2666_v51 = vsel %vm16043_vm13, %v2585_v38, %v2586_v6  ;;  %v2636_v48 = vsel %vm624_vm6, %v2582_v35, %v2583_v43  ;;  %v2665_v10 = vsel %vm624_vm6, %v12802_v44, %v2584_v11  ;;  %v2658_v20 = vsel %vm624_vm6, %v2585_v38, %v2586_v6 }
 0x303   :  { %v2417_v17 = vrot.slane %v2399_v1, 3  ;;  %v2671_v4 = vsel %vm2263_vm11, %v2585_v38, %v2586_v6  ;;  %v2670_v34 = vsel %vm1719_vm10, %v12802_v44, %v2584_v11  ;;  %v2655_v31 = vsel %vm73_vm0, %v12802_v44, %v2584_v11 }
 0x304   :  { %v2672_v61 = vsel %vm2443_vm14, %v2670_v34, %v2671_v4  ;;  %vm3015_vm8 = vcmask 1043968  }
 0x305   :  { %v12768_v23 = vsel %vm73_vm0, %v2399_v1, %v2417_v17  ;;  %v2471_v21 = vsel %vm1711_vm15, %v2399_v1, %v2417_v17  ;;  %v2476_v16 = vsel %vm624_vm6, %v2399_v1, %v2417_v17  ;;  %v2481_v59 = vsel %vm1719_vm10, %v2399_v1, %v2417_v17  ;;  %vm13223_vm13 = vmor %vm2390_vm9, %vm3015_vm8 }
 0x306   :  { %v2470_v40 = vsel %vm155_vm5, %v12768_v23, %v2469_v5  ;;  %v2473_v26 = vsel %vm2432_vm7, %v2471_v21, %v2472_v3  ;;  %v2478_v22 = vsel %vm159_vm1, %v2476_v16, %v2477_v29  ;;  %v2483_v62 = vsel %vm2443_vm14, %v2481_v59, %v2482_v55 }
 0x307   :  { %v2475_v36 = vrot.slane %v2473_v26, 1  ;;  %v2480_v39 = vrot.slane %v2478_v22, 2  ;;  %v2485_v8 = vrot.slane %v2483_v62, 3  ;;  %2522 = vst [vmem:[#allocation1 + $0x23] ss:$4 sm:$0xff] %v2470_v40  ;;  %v2649_v5 = vsel %vm2263_vm11, %v2582_v35, %v2583_v43 }
 0x308   :  { %v2625_v1 = vrot.slane %v2623_v58, 2  ;;  %v2630_v3 = vrot.slane %v2628_v63, 3  ;;  %v2640_v29 = vsel %vm2432_vm7, %v2471_v21, %v2639_v2  ;;  %v2710_v55 = vshrl.u32 %v2608_v18, 16 }
 0x309   :  { %2528 = vst [vmem:[#allocation1] ss:$4 sm:$0xff] %v2475_v36  ;;  %v2661_v17 = vsel %vm1719_vm10, %v2585_v38, %v2586_v6  ;;  %v2645_v40 = vsel %vm159_vm1, %v2476_v16, %v2644_v30  ;;  %v2650_v26 = vsel %vm2443_vm14, %v2481_v59, %v2649_v5  ;;  %v2717_v18 = vshrl.u32 %v12805_v33, 16  ;;  %v8388_v16 = vld [vmem:[#allocation5] sm:$0xf] }
 0x30a   :  { %2530 = vst [vmem:[#allocation1 + $0x1] ss:$4 sm:$0xff] %v2480_v39  ;;  %v2716_v15 = vsel %vm12597_vm4, %v2710_v55, %v2714_v54  ;;  %v2722_v62 = vshll.u32 %v2620_v27, 16  ;;  %v2642_v14 = vrot.slane %v2640_v29, 1  ;;  %v2725_v36 = vshrl.u32 %v2620_v27, 16 }
 0x30b   :  { %2532 = vst [vmem:[#allocation1 + $0x2] ss:$4 sm:$0xff] %v2485_v8  ;;  %v2730_v39 = vshll.u32 %v2625_v1, 16  ;;  %v2733_v8 = vshrl.u32 %v2625_v1, 16  ;;  %v2738_v47 = vshll.u32 %v2630_v3, 16  ;;  %v2662_v59 = vsel %vm2432_vm7, %v2660_v49, %v2661_v17 }
 0x30c   :  { %v2647_v42 = vrot.slane %v2645_v40, 2  ;;  %v2652_v35 = vrot.slane %v2650_v26, 3  ;;  %v2746_v43 = vshll.u32 %v2642_v14, 16  ;;  %v2664_v28 = vrot.slane %v2662_v59, 1  ;;  %v2899_v59 = vld [vmem:[#allocation4 + $0x14] sm:$0xf] }
 0x30d   :  { %v2732_v37 = vsel %vm12597_vm4, %v2725_v36, %v2730_v39  ;;  %v2749_v57 = vshrl.u32 %v2642_v14, 16  ;;  %v2740_v60 = vsel %vm12597_vm4, %v2733_v8, %v2738_v47  ;;  %v2659_v58 = vsel %vm155_vm5, %v2655_v31, %v2658_v20  ;;  %v2901_v20 = vld [vmem:[#allocation4 + $0x2c] sm:$0xe] }
 0x30e   :  { %v2525_v46 = vld [vmem:[#allocation1 + $0x20] sm:$0xff]  ;;  %v2526_v12 = vld [vmem:[#allocation1 + $0x28] sm:$0xff]  ;;  %v2754_v38 = vshll.u32 %v2647_v42, 16  ;;  %v2757_v63 = vshrl.u32 %v2647_v42, 16  ;;  %v2762_v6 = vshll.u32 %v2652_v35, 16  ;;  %v2765_v11 = vshrl.u32 %v2652_v35, 16 }
 0x30f   :  { %2552 = vst [vmem:[#allocation5 + $0x30] sm:$0xff] %v2525_v46  ;;  %v2674_v30 = vrot.slane %v2672_v61, 3  ;;  %v2777_v46 = vshll.u32 %v2664_v28, 16  ;;  %v2772_v5 = vshrl.u32 %v2659_v58, 16  ;;  %v2780_v3 = vshrl.u32 %v2664_v28, 16 }
 0x310   :  { %2535 = vst [vmem:[#allocation1 + $0x20] ss:$4 sm:$0xff] %v2497_v53  ;;  %v2756_v27 = vsel %vm12597_vm4, %v2749_v57, %v2754_v38  ;;  %v2764_v1 = vsel %vm12597_vm4, %v2757_v63, %v2762_v6  ;;  %v16044_v35 = vmov 0   ;;  %v3030_v63 = vld [vmem:[#allocation4 + $0x8] sm:$0xe]  ;;  %vm2884_vm11 = vcmask 519168  }
 0x311   :  { %2537 = vst [vmem:[#allocation1 + $0x21] ss:$4 sm:$0xff] %v2502_v52  ;;  %v2779_v17 = vsel %vm12597_vm4, %v2772_v5, %v2777_v46  ;;  %v2793_v49 = vshll.u32 %v2674_v30, 16  ;;  %v3029_v6 = vld [vmem:[#allocation4] sm:$0xee]  ;;  %vm2890_vm7 = vcmask 1041664  }
 0x312   :  { %v2538_v22 = vld [vmem:[#allocation1] sm:$0xff]  ;;  %v2539_v21 = vld [vmem:[#allocation1 + $0x8] sm:$0xff]  ;;  %2553 = vst.msk [vmem:[#allocation5 + $0x38] sm:$0xf] %vm40_vm3, %v2526_v12  ;;  %v2769_v12 = vshll.u32 %v2659_v58, 16  ;;  %vm2891_vm14 = vcmask 1045508  }
 0x313   :  { %2797 = vst [vmem:[#allocation1] ss:$4 sm:$0xff] %v12613_v45  ;;  %v10617_v45 = vld [vmem:[#allocation5 + $0x4] sm:$0xf]  ;;  %vm2894_vm8 = vcmask 517120  }
 0x314   :  { %2800 = vst [vmem:[#allocation1 + $0x1] ss:$4 sm:$0xff] %v2701_v41  ;;  %v2637_v41 = vsel %vm155_vm5, %v12768_v23, %v2636_v48  ;;  %v2667_v23 = vsel %vm159_vm1, %v2665_v10, %v2666_v51  ;;  %v2771_v55 = vsel %vm12597_vm4, %v2765_v11, %v2769_v12  ;;  %vm2557_vm1 = vcmask 254976   ;;  %v3032_v11 = vld [vmem:[#allocation4 + $0x14] sm:$0xf] }
 0x315   :  { %2803 = vst [vmem:[#allocation1 + $0x2] ss:$4 sm:$0xff] %v2709_v24  ;;  %v2724_v24 = vsel %vm12597_vm4, %v2717_v18, %v2722_v62  ;;  %v2741_v33 = vshrl.u32 %v2637_v41, 16  ;;  %v2669_v2 = vrot.slane %v2667_v23, 2  ;;  %v2897_v18 = vld [vmem:[#allocation4 + $0x8] sm:$0xe] }
 0x316   :  { %2806 = vst [vmem:[#allocation1 + $0x3] ss:$4 sm:$0xff] %v2716_v15  ;;  %v10623_v25 = vld [vmem:[#allocation5 + $0x2c] sm:$0xf0]  ;;  %v8390_v7 = vld [vmem:[#allocation5 + $0x30] sm:$0xf0] }
 0x317   :  { %2554 = vst [vmem:[#allocation5 + $0x60] sm:$0xff] %v2538_v22  ;;  %v12852_v50 = vor.u32 %v10623_v25, %v8388_v16  ;;  %v12854_v19 = vor.u32 %v10617_v45, %v8390_v7  ;;  %v2748_v53 = vsel %vm12597_vm4, %v2741_v33, %v2746_v43  ;;  %v2785_v29 = vshll.u32 %v2669_v2, 16  ;;  %v2896_v16 = vld [vmem:[#allocation4] sm:$0xee]  ;;  %v2903_v25 = vld [vmem:[#allocation4 + $0x38] sm:$0xf] }
 0x318   :  { %2555 = vst.msk [vmem:[#allocation5 + $0x68] sm:$0xf] %vm40_vm3, %v2539_v21  ;;  %v2540_v0 = vld [vmem:[#allocation1 + $0x20] sm:$0xff]  ;;  %v2541_v13 = vld [vmem:[#allocation1 + $0x28] sm:$0xff]  ;;  %v2788_v51 = vshrl.u32 %v2669_v2, 16  ;;  %vm2164_vm5 = vcmask 253952  }
 0x319   :  { %4809 = vmatmul.bf16.vlgmr.msra.gmra.mxu1 %v12852_v50  ;;  %4828 = vmatmul.bf16.vlgmr.msra.gmra.mxu3 %v12854_v19  ;;  %2809 = vst [vmem:[#allocation1 + $0x20] ss:$4 sm:$0xff] %v2724_v24  ;;  %v2787_v48 = vsel %vm12597_vm4, %v2780_v3, %v2785_v29  ;;  %v2900_v45 = vld [vmem:[#allocation4 + $0x24] sm:$0xee]  ;;  %v3033_v12 = vld [vmem:[#allocation4 + $0x18] sm:$0x11] }
 0x31a   :  { %2812 = vst [vmem:[#allocation1 + $0x21] ss:$4 sm:$0xff] %v2732_v37  ;;  %v2795_v22 = vsel %vm12597_vm4, %v2788_v51, %v2793_v49  ;;  %v3038_v49 = vld [vmem:[#allocation4 + $0x38] sm:$0xf] }
 0x31b   :  { %2815 = vst [vmem:[#allocation1 + $0x22] ss:$4 sm:$0xff] %v2740_v60 }
 0x31c   :  { %2818 = vst [vmem:[#allocation1 + $0x23] ss:$4 sm:$0xff] %v2748_v53 }
 0x31d   :  { %v2819_v54 = vld [vmem:[#allocation1] sm:$0xff]  ;;  %v2821_v52 = vld [vmem:[#allocation1 + $0x8] sm:$0xff]  ;;  %2556 = vst [vmem:[#allocation5 + $0x90] sm:$0x33] %v2540_v0 }
 0x31e   :  { %2847 = vrot.lane.b32.xlu0 %v2819_v54, %s11144_s0  ;;  %2828 = vst [vmem:[#allocation1] ss:$4 sm:$0xff] %v2756_v27  ;;  %v8436_v62 = vld [vmem:[#allocation5 + $0x60] sm:$0xf]  ;;  %v10629_v36 = vld [vmem:[#allocation5 + $0x64] sm:$0xf] }
 0x31f   :  { %2830 = vst [vmem:[#allocation1 + $0x1] ss:$4 sm:$0xff] %v2764_v1  ;;  %v3036_v1 = vld [vmem:[#allocation4 + $0x2c] sm:$0xe] }
 0x320   :  { %2832 = vst [vmem:[#allocation1 + $0x2] ss:$4 sm:$0xff] %v2771_v55 }
 0x321   :  { %2834 = vst [vmem:[#allocation1 + $0x3] ss:$4 sm:$0xff] %v2779_v17  ;;  %v3035_v17 = vld [vmem:[#allocation4 + $0x24] sm:$0xee] }
 0x322   :  { %2558 = vst.msk [vmem:[#allocation5 + $0x98] sm:$0x3] %vm2557_vm1, %v2541_v13 }
 0x323   :  { %v2823_v40 = vld [vmem:[#allocation1 + $0x20] sm:$0xff]  ;;  %v2825_v26 = vld [vmem:[#allocation1 + $0x28] sm:$0xff]  ;;  %2165 = vst.msk [vmem:[#allocation4 + $0x20] sm:$0x1] %vm2164_vm5, %v16044_v35 }
 0x324   :  { %2851 = vrot.lane.b32.xlu1 %v2823_v40, %s11144_s0  ;;  %2836 = vst [vmem:[#allocation1 + $0x20] ss:$4 sm:$0xff] %v2787_v48  ;;  %v10635_v21 = vld [vmem:[#allocation5 + $0x8c] sm:$0x30]  ;;  %v8438_v15 = vld [vmem:[#allocation5 + $0x90] sm:$0x30] }
 0x325   :  { %2838 = vst [vmem:[#allocation1 + $0x21] ss:$4 sm:$0xff] %v2795_v22  ;;  %v12885_v14 = vor.u32 %v10635_v21, %v8436_v62  ;;  %v12889_v47 = vor.u32 %v10629_v36, %v8438_v15  ;;  %v3039_v40 = vld [vmem:[#allocation4 + $0x3c] sm:$0x11] }
 0x326   :  { %2171 = vst.msk [vmem:[#allocation4 + $0x44] sm:$0x1] %vm2164_vm5, %v16044_v35  ;;  %vm3018_vm5 = vcmask 781312  }
 0x328   :  { %v2839_v39 = vld [vmem:[#allocation1] sm:$0xff]  ;;  %v12887_v8 = vld [vmem:[#allocation1 + $0x8] sm:$0xff] }
 0x329   :  { %2907 = vst [vmem:[#allocation1 + $0x8] sm:$0xff] %v2897_v18  ;;  %2855 = vrot.lane.b32.xlu2 %v2839_v39, %s11144_s0  ;;  %4814 = vmatmul.bf16.gmra.mxu1 %v12885_v14 }
 0x32a   :  { %2905 = vst [vmem:[#allocation1] sm:$0xff] %v2896_v16  ;;  %4833 = vmatmul.bf16.gmra.mxu3 %v12889_v47  ;;  %v3034_v27 = vld [vmem:[#allocation4 + $0x20] sm:$0x1] }
 0x32c   :  { %2853 = vrot.lane.b32.xlu1 %v2825_v26, %s11144_s0  ;;  %v2843_v10 = vld [vmem:[#allocation1 + $0x20] sm:$0xff]  ;;  %v12895_v42 = vld [vmem:[#allocation1 + $0x28] sm:$0xff] }
 0x32d   :  { %2911 = vst [vmem:[#allocation1 + $0x28] sm:$0xff] %v2899_v59  ;;  %2859 = vrot.lane.b32.xlu0 %v2843_v10, %s11144_s0  ;;  %v3040_v21 = vld [vmem:[#allocation4 + $0x44] sm:$0x1] }
 0x32e   :  { %2909 = vst [vmem:[#allocation1 + $0x20] sm:$0xff] %v12759_v9 }
 0x331   :  { %v2913_v4 = vld [vmem:[#allocation1 + $0x1] ss:$4 sm:$0xff]  ;;  %v2915_v34 = vld [vmem:[#allocation1 + $0x2] ss:$4 sm:$0xff]  ;;  %v2917_v41 = vld [vmem:[#allocation1 + $0x3] ss:$4 sm:$0xff] }
 0x332   :  { %2927 = vst [vmem:[#allocation1] sm:$0xff] %v2900_v45 }
 0x333   :  { %2929 = vst [vmem:[#allocation1 + $0x8] sm:$0xff] %v2901_v20 }
 0x334   :  { %2941 = vst [vmem:[#allocation1] ss:$4 sm:$0xff] %v2913_v4 }
 0x335   :  { %v2919_v7 = vld [vmem:[#allocation1 + $0x20] ss:$4 sm:$0xff]  ;;  %v2921_v31 = vld [vmem:[#allocation1 + $0x21] ss:$4 sm:$0xff]  ;;  %v2923_v43 = vld [vmem:[#allocation1 + $0x22] ss:$4 sm:$0xff]  ;;  %2849 = vrot.lane.b32.xlu0 %v2821_v52, %s11144_s0 }
 0x336   :  { %v2925_v24 = vld [vmem:[#allocation1 + $0x23] ss:$4 sm:$0xff] }
 0x337   :  { %2931 = vst [vmem:[#allocation1 + $0x20] sm:$0xff] %v12802_v44 }
 0x338   :  { %2933 = vst [vmem:[#allocation1 + $0x28] sm:$0xff] %v2903_v25 }
 0x33a   :  { %v2934_v37 = vld [vmem:[#allocation1 + $0x1] ss:$4 sm:$0xff]  ;;  %v2935_v28 = vld [vmem:[#allocation1 + $0x2] ss:$4 sm:$0xff]  ;;  %v2936_v23 = vld [vmem:[#allocation1 + $0x3] ss:$4 sm:$0xff] }
 0x33b   :  { %2943 = vst [vmem:[#allocation1 + $0x1] ss:$4 sm:$0xff] %v2915_v34 }
 0x33c   :  { %2945 = vst [vmem:[#allocation1 + $0x2] ss:$4 sm:$0xff] %v2917_v41 }
 0x33d   :  { %2947 = vst [vmem:[#allocation1 + $0x3] ss:$4 sm:$0xff] %v2919_v7 }
 0x33f   :  { %v2937_v0 = vld [vmem:[#allocation1 + $0x20] ss:$4 sm:$0xff]  ;;  %v2938_v13 = vld [vmem:[#allocation1 + $0x21] ss:$4 sm:$0xff]  ;;  %v2939_v61 = vld [vmem:[#allocation1 + $0x22] ss:$4 sm:$0xff] }
 0x340   :  { %2949 = vst [vmem:[#allocation1 + $0x20] ss:$4 sm:$0xff] %v2921_v31  ;;  %v2940_v33 = vld [vmem:[#allocation1 + $0x23] ss:$4 sm:$0xff] }
 0x341   :  { %2951 = vst [vmem:[#allocation1 + $0x21] ss:$4 sm:$0xff] %v2923_v43 }
 0x342   :  { %2953 = vst [vmem:[#allocation1 + $0x22] ss:$4 sm:$0xff] %v2925_v24 }
 0x343   :  { %2955 = vst [vmem:[#allocation1 + $0x23] ss:$4 sm:$0xff] %v2934_v37 }
 0x344   :  { %v2956_v57 = vld [vmem:[#allocation1] sm:$0xff]  ;;  %v2958_v38 = vld [vmem:[#allocation1 + $0x8] sm:$0xff] }
 0x345   :  { %2978 = vrot.lane.b32.xlu1 %v2956_v57, %s11145_s15  ;;  %2964 = vst [vmem:[#allocation1] ss:$4 sm:$0xff] %v2935_v28 }
 0x346   :  { %2965 = vst [vmem:[#allocation1 + $0x1] ss:$4 sm:$0xff] %v2936_v23 }
 0x347   :  { %2966 = vst [vmem:[#allocation1 + $0x2] ss:$4 sm:$0xff] %v2937_v0 }
 0x348   :  { %2967 = vst [vmem:[#allocation1 + $0x3] ss:$4 sm:$0xff] %v2938_v13 }
 0x34a   :  { %v2960_v60 = vld [vmem:[#allocation1 + $0x20] sm:$0xff]  ;;  %v2962_v58 = vld [vmem:[#allocation1 + $0x28] sm:$0xff] }
 0x34b   :  { %2982 = vrot.lane.b32.xlu2 %v2960_v60, %s11145_s15  ;;  %2968 = vst [vmem:[#allocation1 + $0x20] ss:$4 sm:$0xff] %v2939_v61 }
 0x34c   :  { %2969 = vst [vmem:[#allocation1 + $0x21] ss:$4 sm:$0xff] %v2940_v33 }
 0x34d   :  { %2980 = vrot.lane.b32.xlu1 %v2958_v38, %s11145_s15 }
 0x34f   :  { %v12906_v2 = vld [vmem:[#allocation1] sm:$0xff]  ;;  %v12908_v53 = vld [vmem:[#allocation1 + $0x8] sm:$0xff] }
 0x350   :  { %3042 = vst [vmem:[#allocation1] sm:$0xff] %v3029_v6 }
 0x351   :  { %3044 = vst [vmem:[#allocation1 + $0x8] sm:$0xff] %v3030_v63 }
 0x353   :  { %2984 = vrot.lane.b32.xlu2 %v2962_v58, %s11145_s15  ;;  %v2974_v30 = vld [vmem:[#allocation1 + $0x20] sm:$0xff]  ;;  %v12911_v46 = vld [vmem:[#allocation1 + $0x28] sm:$0xff] }
 0x354   :  { %3048 = vst [vmem:[#allocation1 + $0x28] sm:$0xff] %v3032_v11  ;;  %v8668_v11 = vld [vmem:[%s15969_s4 + $0x170] sm:$0xf] }
 0x355   :  { %2990 = vrot.lane.b32.xlu1 %v2974_v30, %s11145_s15  ;;  %3046 = vst [vmem:[#allocation1 + $0x20] sm:$0xff] %v12759_v9  ;;  %v10688_v30 = vld [vmem:[%s15969_s4 + $0x174] sm:$0xf0] }
 0x358   :  { %v3050_v54 = vld [vmem:[#allocation1 + $0x1] ss:$4 sm:$0xff]  ;;  %v3052_v52 = vld [vmem:[#allocation1 + $0x2] ss:$4 sm:$0xff]  ;;  %v3054_v5 = vld [vmem:[#allocation1 + $0x3] ss:$4 sm:$0xff] }
 0x359   :  { %3064 = vst [vmem:[#allocation1] sm:$0xff] %v3033_v12  ;;  %v3088_v15 = vshrl.u32 %v3050_v54, 16  ;;  %v3092_v18 = vshll.u32 %v3052_v52, 16  ;;  %v3095_v16 = vshrl.u32 %v3052_v52, 16  ;;  %v3099_v59 = vshll.u32 %v3054_v5, 16 }
 0x35a   :  { %3066 = vst [vmem:[#allocation1 + $0x8] sm:$0xff] %v3034_v27  ;;  %v3102_v10 = vshrl.u32 %v3054_v5, 16  ;;  %v8669_v27 = vor.u32 %v10688_v30, %v8668_v11  ;;  %v8732_v54 = vld [vmem:[%s15969_s4 + $0x1f0] sm:$0xf]  ;;  %v10704_v52 = vld [vmem:[%s15969_s4 + $0x1f4] sm:$0xf0] }
 0x35b   :  { %v3094_v24 = vsel %vm12597_vm4, %v3088_v15, %v3092_v18  ;;  %v3101_v28 = vsel %vm12597_vm4, %v3095_v16, %v3099_v59  ;;  %v8660_v15 = vld [vmem:[%s15969_s4 + $0x160] sm:$0xf]  ;;  %v10686_v18 = vld [vmem:[%s15969_s4 + $0x164] sm:$0xf0] }
 0x35c   :  { %v3056_v3 = vld [vmem:[#allocation1 + $0x20] ss:$4 sm:$0xff]  ;;  %v3058_v29 = vld [vmem:[#allocation1 + $0x21] ss:$4 sm:$0xff]  ;;  %v3060_v55 = vld [vmem:[#allocation1 + $0x22] ss:$4 sm:$0xff]  ;;  %4839 = vmatpush.bf16.msra.mxu0 %v8669_v27 }
 0x35d   :  { %v3062_v51 = vld [vmem:[#allocation1 + $0x23] ss:$4 sm:$0xff]  ;;  %v3123_v26 = vshrl.u32 %v3060_v55, 16  ;;  %v3106_v35 = vshll.u32 %v3056_v3, 16  ;;  %v3109_v45 = vshrl.u32 %v3056_v3, 16  ;;  %v3113_v4 = vshll.u32 %v3058_v29, 16 }
 0x35e   :  { %3069 = vst [vmem:[#allocation1 + $0x20] sm:$0xff] %v3035_v17  ;;  %v3127_v22 = vshll.u32 %v3062_v51, 16  ;;  %v3116_v23 = vshrl.u32 %v3058_v29, 16  ;;  %v3120_v0 = vshll.u32 %v3060_v55, 16  ;;  %v3130_v61 = vshrl.u32 %v3062_v51, 16 }
 0x35f   :  { %3071 = vst [vmem:[#allocation1 + $0x28] sm:$0xff] %v3036_v1  ;;  %v3108_v13 = vsel %vm12597_vm4, %v3102_v10, %v3106_v35  ;;  %v3115_v33 = vsel %vm12597_vm4, %v3109_v45, %v3113_v4  ;;  %v8733_v3 = vor.u32 %v10704_v52, %v8732_v54  ;;  %v10702_v16 = vld [vmem:[%s15969_s4 + $0x1e4] sm:$0xf0]  ;;  %v8628_v52 = vld [vmem:[%s15969_s4 + $0x120] sm:$0xf] }
 0x360   :  { %v3129_v20 = vsel %vm12597_vm4, %v3123_v26, %v3127_v22  ;;  %v3122_v58 = vsel %vm12597_vm4, %v3116_v23, %v3120_v0  ;;  %v10698_v23 = vld [vmem:[%s15969_s4 + $0x1c4] sm:$0xf0] }
 0x361   :  { %v3067_v48 = vld [vmem:[#allocation1] ss:$4 sm:$0xff]  ;;  %4858 = vmatpush.bf16.msra.mxu2 %v8733_v3  ;;  %v3286_v0 = vld [vmem:[#allocation4 + $0x8] sm:$0xc] }
 0x362   :  { %3076 = vst [vmem:[#allocation1] sm:$0xff] %v12802_v44  ;;  %v3134_v34 = vshll.u32 %v3067_v48, 16  ;;  %v3289_v3 = vld [vmem:[#allocation4 + $0x18] sm:$0x11] }
 0x363   :  { %3078 = vst [vmem:[#allocation1 + $0x8] sm:$0xff] %v3038_v49 }
 0x364   :  { %v3136_v57 = vsel %vm12597_vm4, %v3130_v61, %v3134_v34  ;;  %v8652_v34 = vld [vmem:[%s15969_s4 + $0x150] sm:$0xf] }
 0x366   :  { %v3072_v62 = vld [vmem:[#allocation1 + $0x21] ss:$4 sm:$0xff]  ;;  %v3073_v36 = vld [vmem:[#allocation1 + $0x22] ss:$4 sm:$0xff]  ;;  %v3074_v39 = vld [vmem:[#allocation1 + $0x23] ss:$4 sm:$0xff] }
 0x367   :  { %3080 = vst [vmem:[#allocation1 + $0x20] sm:$0xff] %v3039_v40  ;;  %v3137_v41 = vshrl.u32 %v3072_v62, 16  ;;  %v3141_v25 = vshll.u32 %v3073_v36, 16  ;;  %v3144_v63 = vshrl.u32 %v3073_v36, 16  ;;  %v3148_v6 = vshll.u32 %v3074_v39, 16 }
 0x368   :  { %3082 = vst [vmem:[#allocation1 + $0x28] sm:$0xff] %v3040_v21  ;;  %v3151_v29 = vshrl.u32 %v3074_v39, 16  ;;  %v8661_v36 = vor.u32 %v10686_v18, %v8660_v15  ;;  %v8724_v39 = vld [vmem:[%s15969_s4 + $0x1e0] sm:$0xf]  ;;  %v3292_v18 = vld [vmem:[#allocation4 + $0x2c] sm:$0xc] }
 0x369   :  { %3202 = vst [vmem:[#allocation1 + $0x21] ss:$4 sm:$0xff] %v3129_v20  ;;  %v3143_v38 = vsel %vm12597_vm4, %v3137_v41, %v3141_v25  ;;  %v3150_v48 = vsel %vm12597_vm4, %v3144_v63, %v3148_v6  ;;  %v8725_v20 = vor.u32 %v10702_v16, %v8724_v39  ;;  %v10684_v41 = vld [vmem:[%s15969_s4 + $0x154] sm:$0xf0]  ;;  %v3288_v6 = vld [vmem:[#allocation4 + $0x14] sm:$0xf] }
 0x36a   :  { %v3083_v7 = vld [vmem:[#allocation1] ss:$4 sm:$0xff]  ;;  %v3084_v31 = vld [vmem:[#allocation1 + $0x1] ss:$4 sm:$0xff]  ;;  %v3085_v43 = vld [vmem:[#allocation1 + $0x2] ss:$4 sm:$0xff]  ;;  %4840 = vmatpush.bf16.msra.mxu0 %v8661_v36 }
 0x36b   :  { %v12920_v37 = vld [vmem:[#allocation1 + $0x3] ss:$4 sm:$0xff]  ;;  %3187 = vst [vmem:[#allocation1] ss:$4 sm:$0xff] %v3094_v24  ;;  %v3155_v12 = vshll.u32 %v3083_v7, 16  ;;  %v3158_v5 = vshrl.u32 %v3083_v7, 16  ;;  %4859 = vmatpush.bf16.msra.mxu2 %v8725_v20  ;;  %v8653_v7 = vor.u32 %v10684_v41, %v8652_v34 }
 0x36c   :  { %3190 = vst [vmem:[#allocation1 + $0x1] ss:$4 sm:$0xff] %v3101_v28  ;;  %v3162_v1 = vshll.u32 %v3084_v31, 16  ;;  %v3165_v55 = vshrl.u32 %v3084_v31, 16  ;;  %v3169_v17 = vshll.u32 %v3085_v43, 16  ;;  %v3172_v40 = vshrl.u32 %v3085_v43, 16 }
 0x36d   :  { %3193 = vst [vmem:[#allocation1 + $0x2] ss:$4 sm:$0xff] %v3108_v13  ;;  %v3176_v26 = vshll.u32 %v12920_v37, 16  ;;  %v3157_v21 = vsel %vm12597_vm4, %v3151_v29, %v3155_v12  ;;  %v3179_v45 = vshrl.u32 %v12920_v37, 16  ;;  %v8716_v31 = vld [vmem:[%s15969_s4 + $0x1d0] sm:$0xf] }
 0x36e   :  { %3196 = vst [vmem:[#allocation1 + $0x3] ss:$4 sm:$0xff] %v3115_v33  ;;  %v3164_v62 = vsel %vm12597_vm4, %v3158_v5, %v3162_v1  ;;  %v3171_v35 = vsel %vm12597_vm4, %v3165_v55, %v3169_v17  ;;  %v10700_v43 = vld [vmem:[%s15969_s4 + $0x1d4] sm:$0xf0]  ;;  %v8644_v37 = vld [vmem:[%s15969_s4 + $0x140] sm:$0xf]  ;;  %4841 = vmatpush.bf16.msra.mxu0 %v8653_v7 }
 0x36f   :  { %v3087_v60 = vld [vmem:[#allocation1 + $0x20] ss:$4 sm:$0xff]  ;;  %3205 = vst [vmem:[#allocation1 + $0x22] ss:$4 sm:$0xff] %v3136_v57  ;;  %v3178_v4 = vsel %vm12597_vm4, %v3172_v40, %v3176_v26  ;;  %v8717_v24 = vor.u32 %v10700_v43, %v8716_v31  ;;  %v3285_v13 = vld [vmem:[#allocation4] sm:$0xcc]  ;;  %v8645_v61 = vor.u32 %v10682_v56, %v8644_v37 }
 0x370   :  { %3199 = vst [vmem:[#allocation1 + $0x20] ss:$4 sm:$0xff] %v3122_v58  ;;  %v3183_v22 = vshll.u32 %v3087_v60, 16  ;;  %v8708_v28 = vld [vmem:[%s15969_s4 + $0x1c0] sm:$0xf] }
 0x371   :  { %3208 = vst [vmem:[#allocation1 + $0x23] ss:$4 sm:$0xff] %v3143_v38  ;;  %4860 = vmatpush.bf16.msra.mxu2 %v8717_v24  ;;  %v8709_v33 = vor.u32 %v10698_v23, %v8708_v28  ;;  %v8636_v57 = vld [vmem:[%s15969_s4 + $0x130] sm:$0xf]  ;;  %v10680_v38 = vld [vmem:[%s15969_s4 + $0x134] sm:$0xf0] }
 0x372   :  { %v3185_v25 = vsel %vm12597_vm4, %v3179_v45, %v3183_v22  ;;  %v8700_v60 = vld [vmem:[%s15969_s4 + $0x1b0] sm:$0xf]  ;;  %4842 = vmatpush.bf16.msra.mxu0 %v8645_v61  ;;  %v8637_v12 = vor.u32 %v10680_v38, %v8636_v57  ;;  %v8692_v1 = vld [vmem:[%s15969_s4 + $0x1a0] sm:$0xf]  ;;  %v10692_v26 = vld [vmem:[%s15969_s4 + $0x194] sm:$0xf0] }
 0x373   :  { %v8684_v40 = vld [vmem:[%s15969_s4 + $0x190] sm:$0xf]  ;;  %v3290_v22 = vld [vmem:[#allocation4 + $0x20] sm:$0x1]  ;;  %v3294_v45 = vld [vmem:[#allocation4 + $0x38] sm:$0xf] }
 0x374   :  { %v8685_v36 = vor.u32 %v10692_v26, %v8684_v40  ;;  %v8796_v34 = vld [vmem:[%s15969_s4 + $0x270] sm:$0xf]  ;;  %v3296_v41 = vld [vmem:[#allocation4 + $0x44] sm:$0x1]  ;;  %v10736_v24 = vld [vmem:[%s15969_s4 + $0x2f4] sm:$0xf0] }
 0x375   :  { %v3209_v51 = vld [vmem:[#allocation1] sm:$0xff]  ;;  %v12946_v49 = vld [vmem:[#allocation1 + $0x8] sm:$0xff]  ;;  %4861 = vmatpush.bf16.msra.mxu2 %v8709_v33  ;;  %v8860_v43 = vld [vmem:[%s15969_s4 + $0x2f0] sm:$0xf] }
 0x376   :  { %3237 = vrot.lane.b32.xlu2 %v3209_v51, %s11146_s16  ;;  %3218 = vst [vmem:[#allocation1] ss:$4 sm:$0xff] %v3150_v48  ;;  %4843 = vmatpush.bf16.msra.mxu0 %v8637_v12  ;;  %v8620_v51 = vld [vmem:[%s15969_s4 + $0x110] sm:$0xf]  ;;  %v10676_v48 = vld [vmem:[%s15969_s4 + $0x114] sm:$0xf0]  ;;  %v8861_v23 = vor.u32 %v10736_v24, %v8860_v43  ;;  %vm2892_vm4 = vmor %vm2891_vm14, %vm2890_vm7 }
 0x377   :  { %3220 = vst [vmem:[#allocation1 + $0x1] ss:$4 sm:$0xff] %v3157_v21  ;;  %v8612_v37 = vld [vmem:[%s15969_s4 + $0x100] sm:$0xf]  ;;  %v10674_v33 = vld [vmem:[%s15969_s4 + $0x104] sm:$0xf0] }
 0x378   :  { %v3213_v59 = vld [vmem:[#allocation1 + $0x20] sm:$0xff]  ;;  %v12968_v10 = vld [vmem:[#allocation1 + $0x28] sm:$0xff]  ;;  %3222 = vst [vmem:[#allocation1 + $0x2] ss:$4 sm:$0xff] %v3164_v62  ;;  %v8621_v62 = vor.u32 %v10676_v48, %v8620_v51  ;;  %4896 = vmatpush.bf16.msrb.mxu3 %v8861_v23  ;;  %v8828_v24 = vld [vmem:[%s15969_s4 + $0x2b0] sm:$0xf] }
 0x379   :  { %3241 = vrot.lane.b32.xlu0 %v3213_v59, %s11146_s16  ;;  %3224 = vst [vmem:[#allocation1 + $0x3] ss:$4 sm:$0xff] %v3171_v35  ;;  %v8676_v57 = vld [vmem:[%s15969_s4 + $0x180] sm:$0xf]  ;;  %v10734_v12 = vld [vmem:[%s15969_s4 + $0x2e4] sm:$0xf0] }
 0x37a   :  { %3226 = vst [vmem:[#allocation1 + $0x20] ss:$4 sm:$0xff] %v3178_v4  ;;  %v3295_v4 = vld [vmem:[#allocation4 + $0x3c] sm:$0x11]  ;;  %v10714_v48 = vld [vmem:[%s15969_s4 + $0x244] sm:$0xf0] }
 0x37b   :  { %3228 = vst [vmem:[#allocation1 + $0x21] ss:$4 sm:$0xff] %v3185_v25  ;;  %v8836_v26 = vld [vmem:[%s15969_s4 + $0x2c0] sm:$0xf] }
 0x37c   :  { %v8756_v23 = vld [vmem:[%s15969_s4 + $0x220] sm:$0xf] }
 0x37e   :  { %2857 = vrot.lane.b32.xlu2 %v12887_v8, %s11144_s0  ;;  %v10696_v8 = vld [vmem:[%s15969_s4 + $0x1b4] sm:$0xf0] }
 0x37f   :  { %v8701_v54 = vor.u32 %v10696_v8, %v8700_v60  ;;  %v10690_v60 = vld [vmem:[%s15969_s4 + $0x184] sm:$0xf0] }
 0x380   :  { %v3229_v58 = vld [vmem:[#allocation1] sm:$0xff]  ;;  %v3231_v63 = vld [vmem:[#allocation1 + $0x8] sm:$0xff] }
 0x381   :  { %3245 = vrot.lane.b32.xlu1 %v3229_v58, %s11146_s16  ;;  %3298 = vst [vmem:[#allocation1] sm:$0xff] %v3285_v13  ;;  %2986 = vrot.lane.b32.xlu0 %v12906_v2, %s11145_s15  ;;  %v10678_v2 = vld [vmem:[%s15969_s4 + $0x124] sm:$0xf0]  ;;  %v8788_v58 = vld [vmem:[%s15969_s4 + $0x260] sm:$0xf] }
 0x382   :  { %v3233_v11 = vld [vmem:[#allocation1 + $0x20] sm:$0xff]  ;;  %3300 = vst [vmem:[#allocation1 + $0x8] sm:$0xff] %v3286_v0  ;;  %v13019_v30 = vld [vmem:[#allocation1 + $0x28] sm:$0xff]  ;;  %v8629_v55 = vor.u32 %v10678_v2, %v8628_v52  ;;  %4862 = vmatpush.bf16.msra.mxu2 %v8701_v54  ;;  %v8780_v54 = vld [vmem:[%s15969_s4 + $0x250] sm:$0xf] }
 0x383   :  { %3302 = vst [vmem:[#allocation1 + $0x20] sm:$0xff] %v12759_v9  ;;  %v13022_v27 = vpop.permute.xlu2 %2855  ;;  %v10694_v9 = vld [vmem:[%s15969_s4 + $0x1a4] sm:$0xf0]  ;;  %v8844_v2 = vld [vmem:[%s15969_s4 + $0x2d0] sm:$0xf] }
 0x384   :  { %v2865_v5 = vrot.slane %v13022_v27, 4  ;;  %3304 = vst [vmem:[#allocation1 + $0x28] sm:$0xff] %v3288_v6  ;;  %v8693_v17 = vor.u32 %v10694_v9, %v8692_v1  ;;  %4844 = vmatpush.bf16.msra.mxu0 %v8629_v55  ;;  %v10718_v8 = vld [vmem:[%s15969_s4 + $0x264] sm:$0xf0]  ;;  %v8852_v6 = vld [vmem:[%s15969_s4 + $0x2e0] sm:$0xf]  ;;  %v8845_v51 = vor.u32 %v10732_v32, %v8844_v2 }
 0x385   :  { %v8853_v52 = vor.u32 %v10734_v12, %v8852_v6  ;;  %v10708_v12 = vld [vmem:[%s15969_s4 + $0x214] sm:$0xf0]  ;;  %v8812_v2 = vld [vmem:[%s15969_s4 + $0x290] sm:$0xf]  ;;  %v8740_v32 = vld [vmem:[%s15969_s4 + $0x200] sm:$0xf] }
 0x386   :  { %3249 = vrot.lane.b32.xlu2 %v3233_v11, %s11146_s16  ;;  %v2871_v29 = vsel %vm1307_vm2, %v2865_v5, %v13022_v27  ;;  %4863 = vmatpush.bf16.msra.mxu2 %v8693_v17  ;;  %v8932_v27 = vld [vmem:[%s15969_s4 + $0x380] sm:$0xf] }
 0x387   :  { %2888 = vst.msk [vmem:[#allocation5 + $0x68] sm:$0xff] %vm12637_vm12, %v2871_v29  ;;  %4897 = vmatpush.bf16.msrb.mxu3 %v8853_v52  ;;  %v8772_v29 = vld [vmem:[%s15969_s4 + $0x240] sm:$0xf] }
 0x388   :  { %4845 = vmatpush.bf16.msra.mxu0 %v8621_v62 }
 0x389   :  { %2992 = vrot.lane.b32.xlu1 %v12911_v46, %s11145_s15  ;;  %2861 = vrot.lane.b32.xlu0 %v12895_v42, %s11144_s0  ;;  %v13060_v21 = vld [vmem:[#allocation1 + $0x2] ss:$4 sm:$0xff]  ;;  %v13062_v15 = vld [vmem:[#allocation1 + $0x3] ss:$4 sm:$0xff]  ;;  %s8115_s0 = sshll.u32 %s15976_s11, 4  ;;  %s8116_s0 = int_to_ptr.hbm [resolvable:$true] %s8115_s0 }
 0x38a   :  { %3318 = vst [vmem:[#allocation1] sm:$0xff] %v3289_v3  ;;  %v3291_v46 = vld [vmem:[#allocation4 + $0x24] sm:$0xcc]  ;;  %4864 = vmatpush.bf16.msra.mxu2 %v8685_v36 }
 0x38b   :  { %v13064_v39 = vld [vmem:[#allocation1 + $0x20] ss:$4 sm:$0xff]  ;;  %v13066_v16 = vld [vmem:[#allocation1 + $0x21] ss:$4 sm:$0xff]  ;;  %v13068_v59 = vld [vmem:[#allocation1 + $0x22] ss:$4 sm:$0xff]  ;;  %4898 = vmatpush.bf16.msrb.mxu3 %v8845_v51 }
 0x38c   :  { %v3316_v35 = vld [vmem:[#allocation1 + $0x23] ss:$4 sm:$0xff]  ;;  %3320 = vst [vmem:[#allocation1 + $0x8] sm:$0xff] %v3290_v22 }
 0x38d   :  { %3323 = vst [vmem:[#allocation1 + $0x20] sm:$0xff] %v3291_v46  ;;  %v10730_v22 = vld [vmem:[%s15969_s4 + $0x2c4] sm:$0xf0] }
 0x38e   :  { %3239 = vrot.lane.b32.xlu2 %v12946_v49, %s11146_s16  ;;  %3325 = vst [vmem:[#allocation1 + $0x28] sm:$0xff] %v3292_v18  ;;  %v10720_v49 = vld [vmem:[%s15969_s4 + $0x274] sm:$0xf0] }
 0x38f   :  { %v8797_v31 = vor.u32 %v10720_v49, %v8796_v34  ;;  %v10712_v49 = vld [vmem:[%s15969_s4 + $0x234] sm:$0xf0] }
 0x390   :  { %v13072_v42 = vpop.permute.xlu0 %2847 }
 0x391   :  { %3247 = vrot.lane.b32.xlu1 %v3231_v63, %s11146_s16  ;;  %2988 = vrot.lane.b32.xlu0 %v12908_v53, %s11145_s15  ;;  %v2863_v20 = vrot.slane %v13072_v42, 4  ;;  %v3387_v53 = vld [vmem:[%s15971_s6] sm:$0x3]  ;;  %v8677_v63 = vor.u32 %v10690_v60, %v8676_v57 }
 0x392   :  { %4877 = vmatpush.bf16.msrb.mxu1 %v8797_v31  ;;  %v13107_v13 = vperm.slane %v3387_v53, 0  ;;  %v8837_v53 = vor.u32 %v10730_v22, %v8836_v26  ;;  %v8820_v57 = vld [vmem:[%s15969_s4 + $0x2a0] sm:$0xf]  ;;  %v10722_v22 = vld [vmem:[%s15969_s4 + $0x284] sm:$0xf0] }
 0x393   :  { %v2867_v25 = vsel %vm1307_vm2, %v2863_v20, %v13072_v42  ;;  %v3321_v7 = vld [vmem:[#allocation1] ss:$4 sm:$0xff]  ;;  %4865 = vmatpush.bf16.msra.mxu2 %v8677_v63 }
 0x394   :  { %2883 = vst.msk [vmem:[#allocation5 + $0x8] sm:$0xff] %vm12637_vm12, %v2867_v25  ;;  %4899 = vmatpush.bf16.msrb.mxu3 %v8837_v53  ;;  %v8748_v63 = vld [vmem:[%s15969_s4 + $0x210] sm:$0xf]  ;;  %v8804_v26 = vld [vmem:[%s15969_s4 + $0x280] sm:$0xf] }
 0x395   :  { %v3326_v56 = vld [vmem:[#allocation1 + $0x22] ss:$4 sm:$0xff]  ;;  %v13102_v28 = vld [vmem:[#allocation1 + $0x23] ss:$4 sm:$0xff]  ;;  %3329 = vst [vmem:[#allocation1] sm:$0xff] %v12802_v44  ;;  %v8613_v44 = vor.u32 %v10674_v33, %v8612_v37 }
 0x396   :  { %3251 = vrot.lane.b32.xlu2 %v13019_v30, %s11146_s16  ;;  %v2852_v0 = vpop.permute.xlu1 %2851  ;;  %v4810_v61 = vpop.f32.mrf.mxu1  ;;  %3331 = vst [vmem:[#allocation1 + $0x8] sm:$0xff] %v3294_v45  ;;  %v8789_v30 = vor.u32 %v10718_v8, %v8788_v58 }
 0x397   :  { %v2864_v38 = vrot.slane %v2852_v0, 4  ;;  %3333 = vst [vmem:[#allocation1 + $0x20] sm:$0xff] %v3295_v4  ;;  %4846 = vmatpush.bf16.msra.mxu0 %v8613_v44  ;;  %v4811_v1 = vadd.f32 %v4810_v61, %v13107_v13  ;;  %v8773_v4 = vor.u32 %v10714_v48, %v8772_v29  ;;  %v10726_v44 = vld [vmem:[%s15969_s4 + $0x2a4] sm:$0xf0] }
 0x398   :  { %3335 = vst [vmem:[#allocation1 + $0x28] sm:$0xff] %v3296_v41  ;;  %4878 = vmatpush.bf16.msrb.mxu1 %v8789_v30  ;;  %v8821_v52 = vor.u32 %v10726_v44, %v8820_v57  ;;  %v10706_v29 = vld [vmem:[%s15969_s4 + $0x204] sm:$0xf0]  ;;  %v10768_v57 = vld [vmem:[%s15969_s4 + $0x3f4] sm:$0xf0] }
 0x399   :  { %3243 = vrot.lane.b32.xlu0 %v12968_v10, %s11146_s16  ;;  %v2869_v11 = vsel %vm1307_vm2, %v2864_v38, %v2852_v0  ;;  %3352 = vst [vmem:[#allocation1 + $0x21] ss:$4 sm:$0xff] %v3316_v35  ;;  %v10716_v10 = vld [vmem:[%s15969_s4 + $0x254] sm:$0xf0]  ;;  %v10710_v0 = vld [vmem:[%s15969_s4 + $0x224] sm:$0xf0] }
 0x39a   :  { %2886 = vst.msk [vmem:[#allocation5 + $0x38] sm:$0xff] %vm12637_vm12, %v2869_v11  ;;  %v8781_v9 = vor.u32 %v10716_v10, %v8780_v54  ;;  %vm2998_vm12 = vcmask 523264   ;;  %v8757_v58 = vor.u32 %v10710_v0, %v8756_v23  ;;  %v8924_v23 = vld [vmem:[%s15969_s4 + $0x370] sm:$0xf]  ;;  %v10752_v0 = vld [vmem:[%s15969_s4 + $0x374] sm:$0xf0] }
 0x39b   :  { %3354 = vst [vmem:[#allocation1 + $0x22] ss:$4 sm:$0xff] %v3321_v7  ;;  %v8396_v35 = vld [vmem:[#allocation5 + $0x8] sm:$0xf]  ;;  %v10618_v45 = vld [vmem:[#allocation5 + $0xc] sm:$0xf] }
 0x39c   :  { %3356 = vst [vmem:[#allocation1 + $0x23] ss:$4 sm:$0xff] %v3326_v56  ;;  %v4829_v3 = vpop.f32.mrf.mxu3  ;;  %4879 = vmatpush.bf16.msrb.mxu1 %v8781_v9  ;;  %v8749_v9 = vor.u32 %v10708_v12, %v8748_v63  ;;  %v10786_v10 = vld [vmem:[%s15969_s4 + $0x484] sm:$0xf0] }
 0x39d   :  { %v3340_v55 = vld [vmem:[#allocation1 + $0x3] ss:$4 sm:$0xff]  ;;  %v13151_v17 = vadd.f32 %v4829_v3, %v4811_v1  ;;  %v13209_v60 = vld [vmem:[#allocation1] ss:$4 sm:$0xff]  ;;  %v13214_v8 = vld [vmem:[#allocation1 + $0x1] ss:$4 sm:$0xff] }
 0x39e   :  { %v2854_v40 = vpop.permute.xlu1 %2853  ;;  %3348 = vst [vmem:[#allocation1 + $0x3] ss:$4 sm:$0xff] %v13066_v16  ;;  %v13166_v46 = vpop.f32.mrf.mxu1  ;;  %v8764_v16 = vld [vmem:[%s15969_s4 + $0x230] sm:$0xf] }
 0x39f   :  { %v2870_v18 = vsel %vm1307_vm2, %v2864_v38, %v2854_v40  ;;  %v13164_v62 = vpop.permute.xlu0 %2859  ;;  %v3341_v36 = vld [vmem:[#allocation1 + $0x20] ss:$4 sm:$0xff]  ;;  %v8765_v37 = vor.u32 %v10712_v49, %v8764_v16  ;;  %3342 = vst [vmem:[#allocation1] ss:$4 sm:$0xff] %v13060_v21  ;;  %v3339_v51 = vld [vmem:[#allocation1 + $0x2] ss:$4 sm:$0xff]  ;;  %v8805_v49 = vor.u32 %v10722_v22, %v8804_v26 }
 0x3a0   :  { %2887 = vst.msk [vmem:[#allocation5 + $0x40] sm:$0xf] %vm2884_vm11, %v2870_v18  ;;  %v2866_v34 = vrot.slane %v13164_v62, 4  ;;  %4880 = vmatpush.bf16.msrb.mxu1 %v8773_v4  ;;  %v10630_v16 = vld [vmem:[#allocation5 + $0x6c] sm:$0xf] }
 0x3a1   :  { %3350 = vst [vmem:[#allocation1 + $0x20] ss:$4 sm:$0xff] %v13068_v59  ;;  %v10624_v41 = vld [vmem:[#allocation5 + $0x34] sm:$0xf0]  ;;  %v8398_v25 = vld [vmem:[#allocation5 + $0x38] sm:$0xf0] }
 0x3a2   :  { %v2873_v7 = vsel %vm1307_vm2, %v2866_v34, %v13164_v62  ;;  %v13183_v31 = vor.u32 %v10624_v41, %v8396_v35  ;;  %v13185_v43 = vor.u32 %v10618_v45, %v8398_v25  ;;  %v10728_v59 = vld [vmem:[%s15969_s4 + $0x2b4] sm:$0xf0]  ;;  %3344 = vst [vmem:[#allocation1 + $0x1] ss:$4 sm:$0xff] %v13062_v15  ;;  %v8741_v35 = vor.u32 %v10706_v29, %v8740_v32  ;;  %v8444_v45 = vld [vmem:[#allocation5 + $0x68] sm:$0xf] }
 0x3a3   :  { %2893 = vst.msk [vmem:[#allocation5 + $0x98] sm:$0x33] %vm2892_vm4, %v2873_v7  ;;  %v8829_v33 = vor.u32 %v10728_v59, %v8828_v24  ;;  %v10724_v15 = vld [vmem:[%s15969_s4 + $0x294] sm:$0xf0]  ;;  %v10762_v22 = vld [vmem:[%s15969_s4 + $0x3c4] sm:$0xf0] }
 0x3a4   :  { %4847 = vmatmul.bf16.vlgmr.msra.gmra.mxu0 %v13183_v31  ;;  %4866 = vmatmul.bf16.vlgmr.msra.gmra.mxu2 %v13185_v43  ;;  %v13195_v56 = vpop.f32.mrf.mxu3  ;;  %3346 = vst [vmem:[#allocation1 + $0x2] ss:$4 sm:$0xff] %v13064_v39  ;;  %v8534_v62 = vld [vmem:[%s15969_s4 + $0x68] sm:$0xf0] }
 0x3a5   :  { %v2983_v61 = vpop.permute.xlu2 %2982  ;;  %4881 = vmatpush.bf16.msrb.mxu1 %v8765_v37  ;;  %4900 = vmatpush.bf16.msrb.mxu3 %v8829_v33  ;;  %v8925_v33 = vor.u32 %v10752_v0, %v8924_v23  ;;  %v8948_v23 = vld [vmem:[%s15969_s4 + $0x3a0] sm:$0xf] }
 0x3a6   :  { %v2995_v38 = vrot.slane %v2983_v61, 4  ;;  %v4815_v54 = vpop.f32.mrf.mxu1 }
 0x3a7   :  { %v2850_v30 = vpop.permute.xlu0 %2849  ;;  %v4816_v3 = vadd.f32 %v4815_v54, %v13107_v13  ;;  %4915 = vmatpush.bf16.msrb.mxu0 %v8925_v33  ;;  %v8876_v33 = vld [vmem:[%s15969_s4 + $0x310] sm:$0xf] }
 0x3a8   :  { %v3359_v6 = vld [vmem:[#allocation1 + $0x20] sm:$0xff]  ;;  %v3360_v11 = vld [vmem:[#allocation1 + $0x28] sm:$0xff]  ;;  %v3001_v21 = vsel %vm2998_vm12, %v2995_v38, %v2983_v61  ;;  %v2868_v1 = vsel %vm1307_vm2, %v2863_v20, %v2850_v30  ;;  %v8988_v61 = vld [vmem:[%s15969_s4 + $0x3f0] sm:$0xf] }
 0x3a9   :  { %3365 = vst [vmem:[#allocation1 + $0x20] ss:$4 sm:$0xff] %v3340_v55  ;;  %4882 = vmatpush.bf16.msrb.mxu1 %v8757_v58  ;;  %4901 = vmatpush.bf16.msrb.mxu3 %v8821_v52  ;;  %v8813_v55 = vor.u32 %v10724_v15, %v8812_v2  ;;  %v8908_v2 = vld [vmem:[%s15969_s4 + $0x350] sm:$0xf]  ;;  %v10748_v15 = vld [vmem:[%s15969_s4 + $0x354] sm:$0xf0] }
 0x3aa   :  { %3366 = vst [vmem:[#allocation1 + $0x21] ss:$4 sm:$0xff] %v3341_v36  ;;  %v10636_v18 = vld [vmem:[#allocation5 + $0x94] sm:$0x30]  ;;  %v8446_v36 = vld [vmem:[#allocation5 + $0x98] sm:$0x30]  ;;  %v8909_v32 = vor.u32 %v10748_v15, %v8908_v2 }
 0x3ab   :  { %3381 = vst [vmem:[#allocation5 + $0x54] sm:$0xff] %v3359_v6  ;;  %v13260_v25 = vor.u32 %v10636_v18, %v8444_v45  ;;  %v13262_v53 = vor.u32 %v10630_v16, %v8446_v36  ;;  %v3357_v39 = vld [vmem:[#allocation1] sm:$0xff]  ;;  %v3358_v24 = vld [vmem:[#allocation1 + $0x8] sm:$0xff]  ;;  %v8892_v18 = vld [vmem:[%s15969_s4 + $0x330] sm:$0xf] }
 0x3ac   :  { %3382 = vst.msk [vmem:[#allocation5 + $0x5c] sm:$0xf] %vm40_vm3, %v3360_v11  ;;  %v10744_v36 = vld [vmem:[%s15969_s4 + $0x334] sm:$0xf0]  ;;  %v8956_v45 = vld [vmem:[%s15969_s4 + $0x3b0] sm:$0xf] }
 0x3ad   :  { %3020 = vst.msk [vmem:[#allocation5 + $0x40] sm:$0xff] %vm13223_vm13, %v3001_v21  ;;  %v2985_v42 = vpop.permute.xlu2 %2984  ;;  %v4834_v20 = vpop.f32.mrf.mxu3  ;;  %4883 = vmatpush.bf16.msrb.mxu1 %v8749_v9  ;;  %4902 = vmatpush.bf16.msrb.mxu3 %v8813_v55  ;;  %v10766_v21 = vld [vmem:[%s15969_s4 + $0x3e4] sm:$0xf0]  ;;  %v8972_v9 = vld [vmem:[%s15969_s4 + $0x3d0] sm:$0xf]  ;;  %v8893_v16 = vor.u32 %v10744_v36, %v8892_v18 }
 0x3ae   :  { %2885 = vst.msk [vmem:[#allocation5 + $0x10] sm:$0xf] %vm2884_vm11, %v2868_v1  ;;  %v3002_v48 = vsel %vm2998_vm12, %v2995_v38, %v2985_v42  ;;  %v13249_v40 = vadd.f32 %v4834_v20, %v4816_v3  ;;  %v8989_v38 = vor.u32 %v10768_v57, %v8988_v61  ;;  %v10764_v3 = vld [vmem:[%s15969_s4 + $0x3d4] sm:$0xf0]  ;;  %v8900_v55 = vld [vmem:[%s15969_s4 + $0x340] sm:$0xf] }
 0x3af   :  { %3021 = vst.msk [vmem:[#allocation5 + $0x48] sm:$0xf] %vm3018_vm5, %v3002_v48  ;;  %v8973_v20 = vor.u32 %v10764_v3, %v8972_v9  ;;  %v8964_v48 = vld [vmem:[%s15969_s4 + $0x3c0] sm:$0xf]  ;;  %v10758_v61 = vld [vmem:[%s15969_s4 + $0x3a4] sm:$0xf0] }
 0x3b0   :  { %3379 = vst [vmem:[#allocation5 + $0x24] sm:$0xff] %v3357_v39  ;;  %4934 = vmatpush.bf16.msrb.mxu2 %v8989_v38  ;;  %v10740_v57 = vld [vmem:[%s15969_s4 + $0x314] sm:$0xf0]  ;;  %v9116_v9 = vld [vmem:[%s15969_s4 + $0x4f0] sm:$0xf] }
 0x3b1   :  { %v3370_v4 = vld [vmem:[#allocation1 + $0x28] sm:$0xff]  ;;  %v3369_v41 = vld [vmem:[#allocation1 + $0x20] sm:$0xff]  ;;  %4884 = vmatpush.bf16.msrb.mxu1 %v8741_v35  ;;  %4903 = vmatpush.bf16.msrb.mxu3 %v8805_v49  ;;  %3380 = vst.msk [vmem:[#allocation5 + $0x2c] sm:$0xf] %vm40_vm3, %v3358_v24  ;;  %v8965_v35 = vor.u32 %v10762_v22, %v8964_v48  ;;  %v10800_v3 = vld [vmem:[%s15969_s4 + $0x4f4] sm:$0xf0] }
 0x3b2   :  { %3386 = vst.msk [vmem:[#allocation5 + $0xbc] sm:$0x3] %vm2557_vm1, %v3370_v4  ;;  %v10760_v4 = vld [vmem:[%s15969_s4 + $0x3b4] sm:$0xf0]  ;;  %vm16047_vm1 = vcmask 1044224  }
 0x3b3   :  { %3385 = vst [vmem:[#allocation5 + $0xb4] sm:$0x33] %v3369_v41  ;;  %v8957_v49 = vor.u32 %v10760_v4, %v8956_v45  ;;  %vm13346_vm7 = vmor %vm2390_vm9, %vm16047_vm1  ;;  %v10820_v22 = vld [vmem:[%s15969_s4 + $0x594] sm:$0xf0]  ;;  %v9036_v18 = vld [vmem:[%s15969_s4 + $0x450] sm:$0xf] }
 0x3b4   :  { %4852 = vmatmul.bf16.gmra.mxu0 %v13260_v25  ;;  %4871 = vmatmul.bf16.gmra.mxu2 %v13262_v53  ;;  %3361 = vst [vmem:[#allocation1] ss:$4 sm:$0xff] %v13102_v28  ;;  %v10625_v63 = vld [vmem:[#allocation5 + $0x3c] sm:$0xf0]  ;;  %v8406_v30 = vld [vmem:[#allocation5 + $0x40] sm:$0xf0] }
 0x3b5   :  { %3362 = vst [vmem:[#allocation1 + $0x1] ss:$4 sm:$0xff] %v13209_v60  ;;  %v8916_v28 = vld [vmem:[%s15969_s4 + $0x360] sm:$0xf]  ;;  %v10750_v60 = vld [vmem:[%s15969_s4 + $0x364] sm:$0xf0] }
 0x3b6   :  { %3363 = vst [vmem:[#allocation1 + $0x2] ss:$4 sm:$0xff] %v13214_v8  ;;  %v8980_v8 = vld [vmem:[%s15969_s4 + $0x3e0] sm:$0xf]  ;;  %v8917_v52 = vor.u32 %v10750_v60, %v8916_v28  ;;  %v10738_v60 = vld [vmem:[%s15969_s4 + $0x304] sm:$0xf0] }
 0x3b7   :  { %v2979_v7 = vpop.permute.xlu1 %2978  ;;  %3364 = vst [vmem:[#allocation1 + $0x3] ss:$4 sm:$0xff] %v3339_v51  ;;  %v8981_v1 = vor.u32 %v10766_v21, %v8980_v8  ;;  %v10746_v51 = vld [vmem:[%s15969_s4 + $0x344] sm:$0xf0]  ;;  %v8868_v28 = vld [vmem:[%s15969_s4 + $0x300] sm:$0xf] }
 0x3b8   :  { %v2994_v59 = vrot.slane %v2979_v7, 4  ;;  %4916 = vmatpush.bf16.msrb.mxu0 %v8917_v52  ;;  %v8901_v26 = vor.u32 %v10746_v51, %v8900_v55  ;;  %v10754_v8 = vld [vmem:[%s15969_s4 + $0x384] sm:$0xf0]  ;;  %v9052_v52 = vld [vmem:[%s15969_s4 + $0x470] sm:$0xf]  ;;  %vm3281_vm9 = vcmask 1042176  }
 0x3b9   :  { %4935 = vmatpush.bf16.msrb.mxu2 %v8981_v1  ;;  %v10784_v21 = vld [vmem:[%s15969_s4 + $0x474] sm:$0xf0]  ;;  %v8933_v15 = vor.u32 %v10754_v8, %v8932_v27  ;;  %v9108_v55 = vld [vmem:[%s15969_s4 + $0x4e0] sm:$0xf]  ;;  %v10798_v51 = vld [vmem:[%s15969_s4 + $0x4e4] sm:$0xf0] }
 0x3ba   :  { %v2999_v37 = vsel %vm2998_vm12, %v2994_v59, %v2979_v7  ;;  %v9053_v1 = vor.u32 %v10784_v21, %v9052_v52  ;;  %v9109_v48 = vor.u32 %v10798_v51, %v9108_v55  ;;  %v9100_v45 = vld [vmem:[%s15969_s4 + $0x4d0] sm:$0xf]  ;;  %v10796_v4 = vld [vmem:[%s15969_s4 + $0x4d4] sm:$0xf0]  ;;  %v9076_v51 = vld [vmem:[%s15969_s4 + $0x4a0] sm:$0xf] }
 0x3bb   :  { %3017 = vst.msk [vmem:[#allocation5 + $0x10] sm:$0xff] %vm13223_vm13, %v2999_v37  ;;  %v10742_v37 = vld [vmem:[%s15969_s4 + $0x324] sm:$0xf0]  ;;  %v9164_v27 = vld [vmem:[%s15969_s4 + $0x550] sm:$0xf]  ;;  %vm13579_vm4 = vmor %vm2891_vm14, %vm3281_vm9 }
 0x3bc   :  { %4917 = vmatpush.bf16.msrb.mxu0 %v8909_v32  ;;  %v9117_v32 = vor.u32 %v10800_v3, %v9116_v9  ;;  %4953 = vmatpush.bf16.msra.mxu1 %v9053_v1  ;;  %v10792_v8 = vld [vmem:[%s15969_s4 + $0x4b4] sm:$0xf0]  ;;  %v9012_v9 = vld [vmem:[%s15969_s4 + $0x420] sm:$0xf]  ;;  %v10774_v3 = vld [vmem:[%s15969_s4 + $0x424] sm:$0xf0] }
 0x3bd   :  { %4936 = vmatpush.bf16.msrb.mxu2 %v8973_v20  ;;  %v10812_v52 = vld [vmem:[%s15969_s4 + $0x554] sm:$0xf0]  ;;  %v8662_v7 = vld [vmem:[%s15969_s4 + $0x168] sm:$0xf0] }
 0x3be   :  { %v3367_v29 = vld [vmem:[#allocation1] sm:$0xff]  ;;  %v3368_v42 = vld [vmem:[#allocation1 + $0x8] sm:$0xff]  ;;  %4972 = vmatpush.bf16.msra.mxu3 %v9117_v32  ;;  %v9165_v1 = vor.u32 %v10812_v52, %v9164_v27 }
 0x3bf   :  { %v2981_v44 = vpop.permute.xlu1 %2980  ;;  %3383 = vst [vmem:[#allocation5 + $0x84] sm:$0xff] %v3367_v29  ;;  %v9044_v29 = vld [vmem:[%s15969_s4 + $0x460] sm:$0xf] }
 0x3c0   :  { %v3000_v58 = vsel %vm2998_vm12, %v2994_v59, %v2981_v44  ;;  %3384 = vst.msk [vmem:[#allocation5 + $0x8c] sm:$0xf] %vm40_vm3, %v3368_v42  ;;  %4918 = vmatpush.bf16.msrb.mxu0 %v8901_v26  ;;  %vm3257_vm3 = vcmask 785408   ;;  %v8884_v59 = vld [vmem:[%s15969_s4 + $0x320] sm:$0xf]  ;;  %v8949_v44 = vor.u32 %v10758_v61, %v8948_v23 }
 0x3c1   :  { %3019 = vst.msk [vmem:[#allocation5 + $0x18] sm:$0xf] %vm3018_vm5, %v3000_v58  ;;  %4937 = vmatpush.bf16.msrb.mxu2 %v8965_v35  ;;  %v8885_v0 = vor.u32 %v10742_v37, %v8884_v59  ;;  %v8940_v58 = vld [vmem:[%s15969_s4 + $0x390] sm:$0xf]  ;;  %v10782_v42 = vld [vmem:[%s15969_s4 + $0x464] sm:$0xf0] }
 0x3c2   :  { %v8404_v6 = vld [vmem:[#allocation5 + $0x10] sm:$0xf]  ;;  %v10619_v11 = vld [vmem:[#allocation5 + $0x14] sm:$0xf]  ;;  %v9045_v20 = vor.u32 %v10782_v42, %v9044_v29  ;;  %v9196_v26 = vld [vmem:[%s15969_s4 + $0x590] sm:$0xf]  ;;  %4973 = vmatpush.bf16.msra.mxu3 %v9109_v48 }
 0x3c3   :  { %v13287_v12 = vor.u32 %v10625_v63, %v8404_v6  ;;  %v13289_v54 = vor.u32 %v10619_v11, %v8406_v30  ;;  %v10756_v63 = vld [vmem:[%s15969_s4 + $0x394] sm:$0xf0]  ;;  %v8877_v11 = vor.u32 %v10740_v57, %v8876_v33  ;;  %v9197_v36 = vor.u32 %v10820_v22, %v9196_v26  ;;  %v9028_v37 = vld [vmem:[%s15969_s4 + $0x440] sm:$0xf]  ;;  %v10778_v61 = vld [vmem:[%s15969_s4 + $0x444] sm:$0xf0] }
 0x3c4   :  { %4919 = vmatpush.bf16.msrb.mxu0 %v8893_v16  ;;  %v8941_v30 = vor.u32 %v10756_v63, %v8940_v58  ;;  %4954 = vmatpush.bf16.msra.mxu1 %v9045_v20  ;;  %v10780_v35 = vld [vmem:[%s15969_s4 + $0x454] sm:$0xf0]  ;;  %v9092_v33 = vld [vmem:[%s15969_s4 + $0x4c0] sm:$0xf]  ;;  %v10794_v57 = vld [vmem:[%s15969_s4 + $0x4c4] sm:$0xf0]  ;;  %v9029_v63 = vor.u32 %v10778_v61, %v9028_v37 }
 0x3c5   :  { %4885 = vmatmul.bf16.vlgmr.msrb.gmra.mxu1 %v13287_v12  ;;  %4904 = vmatmul.bf16.vlgmr.msrb.gmra.mxu3 %v13289_v54  ;;  %v9037_v16 = vor.u32 %v10780_v35, %v9036_v18  ;;  %v10816_v59 = vld [vmem:[%s15969_s4 + $0x574] sm:$0xf0]  ;;  %v10814_v58 = vld [vmem:[%s15969_s4 + $0x564] sm:$0xf0]  ;;  %v9156_v42 = vld [vmem:[%s15969_s4 + $0x540] sm:$0xf] }
 0x3c6   :  { %4938 = vmatpush.bf16.msrb.mxu2 %v8957_v49  ;;  %v9101_v49 = vor.u32 %v10796_v4, %v9100_v45  ;;  %v10810_v20 = vld [vmem:[%s15969_s4 + $0x544] sm:$0xf0]  ;;  %v9188_v22 = vld [vmem:[%s15969_s4 + $0x580] sm:$0xf]  ;;  %v9004_v4 = vld [vmem:[%s15969_s4 + $0x410] sm:$0xf] }
 0x3c7   :  { %v10790_v48 = vld [vmem:[%s15969_s4 + $0x4a4] sm:$0xf0]  ;;  %v9157_v35 = vor.u32 %v10810_v20, %v9156_v42  ;;  %v9148_v37 = vld [vmem:[%s15969_s4 + $0x530] sm:$0xf]  ;;  %v9140_v52 = vld [vmem:[%s15969_s4 + $0x520] sm:$0xf] }
 0x3c8   :  { %4920 = vmatpush.bf16.msrb.mxu0 %v8885_v0  ;;  %4955 = vmatpush.bf16.msra.mxu1 %v9037_v16  ;;  %v10818_v18 = vld [vmem:[%s15969_s4 + $0x584] sm:$0xf0]  ;;  %v9068_v61 = vld [vmem:[%s15969_s4 + $0x490] sm:$0xf]  ;;  %v10804_v20 = vld [vmem:[%s15969_s4 + $0x514] sm:$0xf0] }
 0x3c9   :  { %4974 = vmatpush.bf16.msra.mxu3 %v9101_v49  ;;  %v9189_v45 = vor.u32 %v10818_v18, %v9188_v22  ;;  %v9132_v42 = vld [vmem:[%s15969_s4 + $0x510] sm:$0xf]  ;;  %v8542_v22 = vld [vmem:[%s15969_s4 + $0x78] sm:$0xf0]  ;;  %v10671_v18 = vld [vmem:[%s15969_s4 + $0xf4] sm:$0xf] }
 0x3ca   :  { %4939 = vmatpush.bf16.msrb.mxu2 %v8949_v44  ;;  %v9172_v44 = vld [vmem:[%s15969_s4 + $0x560] sm:$0xf] }
 0x3cc   :  { %4921 = vmatpush.bf16.msrb.mxu0 %v8877_v11  ;;  %v9020_v11 = vld [vmem:[%s15969_s4 + $0x430] sm:$0xf]  ;;  %4956 = vmatpush.bf16.msra.mxu1 %v9029_v63 }
 0x3ce   :  { %4940 = vmatpush.bf16.msrb.mxu2 %v8941_v30  ;;  %v9093_v30 = vor.u32 %v10794_v57, %v9092_v33  ;;  %v10788_v33 = vld [vmem:[%s15969_s4 + $0x494] sm:$0xf0] }
 0x3d0   :  { %v13342_v41 = vpop.permute.xlu2 %3237  ;;  %4975 = vmatpush.bf16.msra.mxu3 %v9093_v30 }
 0x3d1   :  { %v3253_v39 = vrot.slane %v13342_v41, 4 }
 0x3d2   :  { %4941 = vmatpush.bf16.msrb.mxu2 %v8933_v15 }
 0x3d3   :  { %v3258_v24 = vsel %vm3257_vm3, %v3253_v39, %v13342_v41  ;;  %v13471_v41 = vpop.permute.xlu1 %2990 }
 0x3d4   :  { %3275 = vst.msk [vmem:[#allocation5 + $0x18] sm:$0xff] %vm13346_vm7, %v3258_v24  ;;  %v9180_v24 = vld [vmem:[%s15969_s4 + $0x570] sm:$0xf] }
 0x3d5   :  { %v9181_v0 = vor.u32 %v10816_v59, %v9180_v24  ;;  %v9077_v24 = vor.u32 %v10790_v48, %v9076_v51  ;;  %v10772_v59 = vld [vmem:[%s15969_s4 + $0x414] sm:$0xf0] }
 0x3d6   :  { %5016 = vmatpush.bf16.msra.mxu2 %v9197_v36  ;;  %v9013_v36 = vor.u32 %v10774_v3, %v9012_v9  ;;  %v10687_v9 = vld [vmem:[%s15969_s4 + $0x174] sm:$0xf] }
 0x3d8   :  { %v2858_v38 = vpop.permute.xlu2 %2857 }
 0x3d9   :  { %v2872_v6 = vsel %vm1307_vm2, %v2865_v5, %v2858_v38  ;;  %v8869_v5 = vor.u32 %v10738_v60, %v8868_v28  ;;  %v10776_v28 = vld [vmem:[%s15969_s4 + $0x434] sm:$0xf0]  ;;  %v9084_v60 = vld [vmem:[%s15969_s4 + $0x4b0] sm:$0xf] }
 0x3da   :  { %2889 = vst.msk [vmem:[#allocation5 + $0x70] sm:$0xf] %vm2884_vm11, %v2872_v6  ;;  %v9173_v6 = vor.u32 %v10814_v58, %v9172_v44  ;;  %v9021_v15 = vor.u32 %v10776_v28, %v9020_v11  ;;  %v9085_v29 = vor.u32 %v10792_v8, %v9084_v60  ;;  %5017 = vmatpush.bf16.msra.mxu2 %v9189_v45  ;;  %v8996_v44 = vld [vmem:[%s15969_s4 + $0x400] sm:$0xf]  ;;  %v10770_v28 = vld [vmem:[%s15969_s4 + $0x404] sm:$0xf0] }
 0x3db   :  { %4922 = vmatpush.bf16.msrb.mxu0 %v8869_v5  ;;  %v8412_v57 = vld [vmem:[#allocation5 + $0x18] sm:$0xf]  ;;  %v9005_v11 = vor.u32 %v10772_v59, %v9004_v4  ;;  %v9069_v8 = vor.u32 %v10788_v33, %v9068_v61  ;;  %vm3027_vm11 = vcmask 779264   ;;  %v8997_v3 = vor.u32 %v10770_v28, %v8996_v44  ;;  %v10653_v59 = vld [vmem:[%s15969_s4 + $0x64] sm:$0xf] }
 0x3dc   :  { %4957 = vmatpush.bf16.msra.mxu1 %v9021_v15  ;;  %4976 = vmatpush.bf16.msra.mxu3 %v9085_v29  ;;  %v9060_v15 = vld [vmem:[%s15969_s4 + $0x480] sm:$0xf]  ;;  %v10802_v33 = vld [vmem:[%s15969_s4 + $0x504] sm:$0xf0]  ;;  %v8526_v28 = vld [vmem:[%s15969_s4 + $0x58] sm:$0xf0] }
 0x3df   :  { %4991 = vmatpush.bf16.msra.mxu0 %v9181_v0 }
 0x3e0   :  { %v13403_v2 = vpop.permute.xlu2 %3249  ;;  %4958 = vmatpush.bf16.msra.mxu1 %v9013_v36  ;;  %4977 = vmatpush.bf16.msra.mxu3 %v9077_v24  ;;  %v8606_v36 = vld [vmem:[%s15969_s4 + $0xf8] sm:$0xf0] }
 0x3e1   :  { %v3256_v32 = vrot.slane %v13403_v2, 4  ;;  %v8609_v24 = vor.u32 %v10671_v18, %v8606_v36  ;;  %v10665_v36 = vld [vmem:[%s15969_s4 + $0xc4] sm:$0xf] }
 0x3e3   :  { %4992 = vmatpush.bf16.msra.mxu0 %v9173_v6 }
 0x3e4   :  { %4959 = vmatpush.bf16.msra.mxu1 %v9005_v11  ;;  %4978 = vmatpush.bf16.msra.mxu3 %v9069_v8  ;;  %v10667_v8 = vld [vmem:[%s15969_s4 + $0xd4] sm:$0xf] }
 0x3e7   :  { %4993 = vmatpush.bf16.msra.mxu0 %v9165_v1  ;;  %v2997_v1 = vrot.slane %v13471_v41, 4 }
 0x3e8   :  { %v3240_v23 = vpop.permute.xlu2 %3239  ;;  %4960 = vmatpush.bf16.msra.mxu1 %v8997_v3  ;;  %v8670_v3 = vld [vmem:[%s15969_s4 + $0x178] sm:$0xf0] }
 0x3e9   :  { %v3259_v38 = vsel %vm3257_vm3, %v3253_v39, %v3240_v23  ;;  %v10808_v23 = vld [vmem:[%s15969_s4 + $0x534] sm:$0xf0]  ;;  %v3005_v61 = vsel %vm2998_vm12, %v2997_v1, %v13471_v41 }
 0x3ea   :  { %3276 = vst [vmem:[#allocation5 + $0x20] sm:$0xf] %v3259_v38  ;;  %v10620_v38 = vld [vmem:[#allocation5 + $0x1c] sm:$0xf]  ;;  %v9149_v30 = vor.u32 %v10808_v23, %v9148_v37  ;;  %v3264_v37 = vsel %vm3257_vm3, %v3256_v32, %v13403_v2  ;;  %v9133_v2 = vor.u32 %v10804_v20, %v9132_v42 }
 0x3eb   :  { %v13473_v39 = vpop.permute.xlu0 %3241  ;;  %4994 = vmatpush.bf16.msra.mxu0 %v9157_v35  ;;  %v10685_v23 = vld [vmem:[%s15969_s4 + $0x164] sm:$0xf] }
 0x3ec   :  { %v3254_v5 = vrot.slane %v13473_v39, 4 }
 0x3ee   :  { %v3260_v21 = vsel %vm3257_vm3, %v3254_v5, %v13473_v39  ;;  %v10697_v39 = vld [vmem:[%s15969_s4 + $0x1c4] sm:$0xf] }
 0x3ef   :  { %3277 = vst.msk [vmem:[#allocation5 + $0x48] sm:$0xff] %vm13346_vm7, %v3260_v21  ;;  %v10806_v21 = vld [vmem:[%s15969_s4 + $0x524] sm:$0xf0]  ;;  %4995 = vmatpush.bf16.msra.mxu0 %v9149_v30 }
 0x3f0   :  { %v3252_v55 = vpop.permute.xlu2 %3251  ;;  %v9141_v29 = vor.u32 %v10806_v21, %v9140_v52  ;;  %v8590_v52 = vld [vmem:[%s15969_s4 + $0xd8] sm:$0xf0] }
 0x3f1   :  { %v3265_v26 = vsel %vm3257_vm3, %v3256_v32, %v3252_v55  ;;  %v10655_v55 = vld [vmem:[%s15969_s4 + $0x74] sm:$0xf]  ;;  %v9124_v32 = vld [vmem:[%s15969_s4 + $0x500] sm:$0xf] }
 0x3f2   :  { %3284 = vst [vmem:[#allocation5 + $0xb0] sm:$0x3] %v3265_v26  ;;  %v9061_v26 = vor.u32 %v10786_v10, %v9060_v15  ;;  %v8545_v4 = vor.u32 %v10655_v55, %v8542_v22  ;;  %v9125_v11 = vor.u32 %v10802_v33, %v9124_v32  ;;  %v8673_v55 = vor.u32 %v10687_v9, %v8670_v3  ;;  %v10647_v32 = vld [vmem:[%s15969_s4 + $0x34] sm:$0xf]  ;;  %v8502_v3 = vld [vmem:[%s15969_s4 + $0x28] sm:$0xf0] }
 0x3f3   :  { %v13528_v16 = vpop.permute.xlu1 %3245  ;;  %v13530_v49 = vpop.permute.xlu0 %2986  ;;  %4996 = vmatpush.bf16.msra.mxu0 %v9141_v29  ;;  %v10701_v29 = vld [vmem:[%s15969_s4 + $0x1e4] sm:$0xf] }
 0x3f4   :  { %v2996_v0 = vrot.slane %v13530_v49, 4  ;;  %4979 = vmatpush.bf16.msra.mxu3 %v9061_v26  ;;  %5029 = vmatpush.bf16.msrb.mxu1 %v8545_v4  ;;  %v3255_v44 = vrot.slane %v13528_v16, 4  ;;  %v8518_v26 = vld [vmem:[%s15969_s4 + $0x48] sm:$0xf0] }
 0x3f6   :  { %v3003_v58 = vsel %vm2998_vm12, %v2996_v0, %v13530_v49  ;;  %v10626_v63 = vld [vmem:[#allocation5 + $0x44] sm:$0xf0]  ;;  %v8414_v6 = vld [vmem:[#allocation5 + $0x48] sm:$0xf0] }
 0x3f7   :  { %3022 = vst.msk [vmem:[#allocation5 + $0x70] sm:$0xff] %vm13223_vm13, %v3003_v58  ;;  %v13560_v60 = vor.u32 %v10626_v63, %v8412_v57  ;;  %v13562_v27 = vor.u32 %v10620_v38, %v8414_v6  ;;  %vm3024_vm13 = vcmask 1041920   ;;  %v8537_v57 = vor.u32 %v10653_v59, %v8534_v62  ;;  %v8598_v38 = vld [vmem:[%s15969_s4 + $0xe8] sm:$0xf0]  ;;  %v10703_v58 = vld [vmem:[%s15969_s4 + $0x1f4] sm:$0xf]  ;;  %4997 = vmatpush.bf16.msra.mxu0 %v9133_v2 }
 0x3f8   :  { %vm13617_vm1 = vmor %vm2891_vm14, %vm3024_vm13  ;;  %5048 = vmatpush.bf16.msrb.mxu3 %v8609_v24  ;;  %v8734_v63 = vld [vmem:[%s15969_s4 + $0x1f8] sm:$0xf0]  ;;  %v10651_v6 = vld [vmem:[%s15969_s4 + $0x54] sm:$0xf]  ;;  %v8665_v62 = vor.u32 %v10685_v23, %v8662_v7 }
 0x3f9   :  { %4923 = vmatmul.bf16.vlgmr.msrb.gmra.mxu0 %v13560_v60  ;;  %4942 = vmatmul.bf16.vlgmr.msrb.gmra.mxu2 %v13562_v27  ;;  %v8737_v30 = vor.u32 %v10703_v58, %v8734_v63  ;;  %v8529_v10 = vor.u32 %v10651_v6, %v8526_v28  ;;  %v8718_v2 = vld [vmem:[%s15969_s4 + $0x1d8] sm:$0xf0]  ;;  %v10679_v23 = vld [vmem:[%s15969_s4 + $0x134] sm:$0xf] }
 0x3fa   :  { %5030 = vmatpush.bf16.msrb.mxu1 %v8537_v57  ;;  %v8510_v57 = vld [vmem:[%s15969_s4 + $0x38] sm:$0xf0] }
 0x3fb   :  { %v2993_v51 = vpop.permute.xlu1 %2992  ;;  %v2862_v48 = vpop.permute.xlu0 %2861  ;;  %5086 = vmatpush.bf16.msrb.mxu2 %v8737_v30  ;;  %4998 = vmatpush.bf16.msra.mxu0 %v9125_v11  ;;  %v8513_v6 = vor.u32 %v10647_v32, %v8510_v57  ;;  %v10683_v30 = vld [vmem:[%s15969_s4 + $0x154] sm:$0xf]  ;;  %v8654_v28 = vld [vmem:[%s15969_s4 + $0x158] sm:$0xf0]  ;;  %v8486_v57 = vld [vmem:[%s15969_s4 + $0x8] sm:$0xf0] }
 0x3fc   :  { %v3006_v35 = vsel %vm2998_vm12, %v2997_v1, %v2993_v51  ;;  %v2874_v45 = vsel %vm1307_vm2, %v2866_v34, %v2862_v48  ;;  %v10669_v34 = vld [vmem:[%s15969_s4 + $0xe4] sm:$0xf]  ;;  %v8593_v1 = vor.u32 %v10667_v8, %v8590_v52  ;;  %v8726_v51 = vld [vmem:[%s15969_s4 + $0x1e8] sm:$0xf0]  ;;  %v8657_v8 = vor.u32 %v10683_v30, %v8654_v28  ;;  %v8638_v7 = vld [vmem:[%s15969_s4 + $0x138] sm:$0xf0] }
 0x3fd   :  { %3028 = vst.msk [vmem:[#allocation5 + $0xa8] sm:$0x3] %vm3027_vm11, %v3006_v35  ;;  %v8601_v41 = vor.u32 %v10669_v34, %v8598_v38  ;;  %v10649_v48 = vld [vmem:[%s15969_s4 + $0x44] sm:$0xf]  ;;  %v8729_v18 = vor.u32 %v10701_v29, %v8726_v51  ;;  %v8582_v35 = vld [vmem:[%s15969_s4 + $0xc8] sm:$0xf0]  ;;  %v8641_v32 = vor.u32 %v10679_v23, %v8638_v7 }
 0x3fe   :  { %3283 = vst.msk [vmem:[#allocation5 + $0xa8] sm:$0x33] %vm13579_vm4, %v3264_v37  ;;  %v8452_v22 = vld [vmem:[#allocation5 + $0x70] sm:$0xf]  ;;  %v10631_v49 = vld [vmem:[#allocation5 + $0x74] sm:$0xf]  ;;  %5031 = vmatpush.bf16.msrb.mxu1 %v8529_v10  ;;  %v8521_v24 = vor.u32 %v10649_v48, %v8518_v26  ;;  %v8585_v37 = vor.u32 %v10665_v36, %v8582_v35 }
 0x3ff   :  { %2895 = vst.msk [vmem:[#allocation5 + $0xa0] sm:$0x3] %vm2894_vm8, %v2874_v45  ;;  %5049 = vmatpush.bf16.msrb.mxu3 %v8601_v41  ;;  %5067 = vmatpush.bf16.msrb.mxu0 %v8673_v55  ;;  %v10699_v34 = vld [vmem:[%s15969_s4 + $0x1d4] sm:$0xf]  ;;  %v10645_v10 = vld [vmem:[%s15969_s4 + $0x24] sm:$0xf] }
 0x400   :  { %3026 = vst.msk [vmem:[#allocation5 + $0xa0] sm:$0x33] %vm13617_vm1, %v3005_v61  ;;  %5087 = vmatpush.bf16.msrb.mxu2 %v8729_v18  ;;  %v8721_v33 = vor.u32 %v10699_v34, %v8718_v2  ;;  %v10663_v38 = vld [vmem:[%s15969_s4 + $0xb4] sm:$0xf]  ;;  %v10661_v29 = vld [vmem:[%s15969_s4 + $0xa4] sm:$0xf] }
 0x401   :  { %v10681_v51 = vld [vmem:[%s15969_s4 + $0x144] sm:$0xf]  ;;  %v8646_v48 = vld [vmem:[%s15969_s4 + $0x148] sm:$0xf0]  ;;  %v10643_v18 = vld [vmem:[%s15969_s4 + $0x14] sm:$0xf] }
 0x402   :  { %5032 = vmatpush.bf16.msrb.mxu1 %v8521_v24  ;;  %v8649_v26 = vor.u32 %v10681_v51, %v8646_v48  ;;  %v8494_v36 = vld [vmem:[%s15969_s4 + $0x18] sm:$0xf0]  ;;  %v10659_v35 = vld [vmem:[%s15969_s4 + $0x94] sm:$0xf]  ;;  %v10733_v23 = vld [vmem:[%s15969_s4 + $0x2e4] sm:$0xf] }
 0x403   :  { %v3248_v21 = vpop.permute.xlu1 %3247  ;;  %v2989_v15 = vpop.permute.xlu0 %2988  ;;  %5050 = vmatpush.bf16.msrb.mxu3 %v8593_v1  ;;  %5068 = vmatpush.bf16.msrb.mxu0 %v8665_v62  ;;  %v8422_v24 = vld [vmem:[#allocation5 + $0x50] sm:$0xf0]  ;;  %v10693_v62 = vld [vmem:[%s15969_s4 + $0x1a4] sm:$0xf]  ;;  %v10622_v51 = vld [vmem:[#allocation5 + $0x2c] sm:$0xf] }
 0x404   :  { %v3263_v42 = vsel %vm3257_vm3, %v3255_v44, %v3248_v21  ;;  %v3004_v20 = vsel %vm2998_vm12, %v2996_v0, %v2989_v15  ;;  %v3262_v0 = vsel %vm3257_vm3, %v3255_v44, %v13528_v16  ;;  %v8574_v44 = vld [vmem:[%s15969_s4 + $0xb8] sm:$0xf0]  ;;  %5088 = vmatpush.bf16.msrb.mxu2 %v8721_v33  ;;  %v10641_v33 = vld [vmem:[%s15969_s4 + $0x4] sm:$0xf] }
 0x405   :  { %3280 = vst [vmem:[#allocation5 + $0x80] sm:$0xf] %v3263_v42  ;;  %v10638_v58 = vld [vmem:[#allocation5 + $0xa4] sm:$0x30]  ;;  %v8462_v63 = vld [vmem:[#allocation5 + $0xa8] sm:$0x30]  ;;  %v8577_v11 = vor.u32 %v10663_v38, %v8574_v44  ;;  %v8489_v30 = vor.u32 %v10641_v33, %v8486_v57 }
 0x406   :  { %3023 = vst.msk [vmem:[#allocation5 + $0x78] sm:$0xf] %vm3018_vm5, %v3004_v20  ;;  %5033 = vmatpush.bf16.msrb.mxu1 %v8513_v6  ;;  %v8566_v42 = vld [vmem:[%s15969_s4 + $0xa8] sm:$0xf0]  ;;  %v8505_v20 = vor.u32 %v10645_v10, %v8502_v3  ;;  %v10657_v38 = vld [vmem:[%s15969_s4 + $0x84] sm:$0xf] }
 0x407   :  { %3279 = vst.msk [vmem:[#allocation5 + $0x78] sm:$0xff] %vm13346_vm7, %v3262_v0  ;;  %v10637_v45 = vld [vmem:[#allocation5 + $0x9c] sm:$0x30]  ;;  %v8454_v4 = vld [vmem:[#allocation5 + $0xa0] sm:$0x30]  ;;  %5051 = vmatpush.bf16.msrb.mxu3 %v8585_v37  ;;  %5069 = vmatpush.bf16.msrb.mxu0 %v8657_v8  ;;  %v8569_v55 = vor.u32 %v10661_v29, %v8566_v42  ;;  %v8497_v37 = vor.u32 %v10643_v18, %v8494_v36 }
 0x408   :  { %v13695_v16 = vor.u32 %v10637_v45, %v8452_v22  ;;  %v13697_v59 = vor.u32 %v10631_v49, %v8454_v4  ;;  %v10695_v22 = vld [vmem:[%s15969_s4 + $0x1b4] sm:$0xf]  ;;  %v8702_v49 = vld [vmem:[%s15969_s4 + $0x1b8] sm:$0xf0]  ;;  %v8420_v4 = vld [vmem:[#allocation5 + $0x20] sm:$0xf] }
 0x409   :  { %v8705_v0 = vor.u32 %v10695_v22, %v8702_v49  ;;  %v8558_v45 = vld [vmem:[%s15969_s4 + $0x98] sm:$0xf0]  ;;  %v8550_v44 = vld [vmem:[%s15969_s4 + $0x88] sm:$0xf0]  ;;  %v10675_v10 = vld [vmem:[%s15969_s4 + $0x114] sm:$0xf] }
 0x40a   :  { %4890 = vmatmul.bf16.gmra.mxu1 %v13695_v16  ;;  %4909 = vmatmul.bf16.gmra.mxu3 %v13697_v59  ;;  %v8561_v2 = vor.u32 %v10659_v35, %v8558_v45  ;;  %v10621_v6 = vld [vmem:[#allocation5 + $0x24] sm:$0xf]  ;;  %v8553_v8 = vor.u32 %v10657_v38, %v8550_v44  ;;  %v8428_v3 = vld [vmem:[#allocation5 + $0x28] sm:$0xf]  ;;  %v8622_v42 = vld [vmem:[%s15969_s4 + $0x118] sm:$0xf0] }
 0x40b   :  { %v3244_v61 = vpop.permute.xlu0 %3243  ;;  %5052 = vmatpush.bf16.msrb.mxu3 %v8577_v11  ;;  %5034 = vmatpush.bf16.msrb.mxu1 %v8505_v20  ;;  %v13814_v28 = vor.u32 %v10621_v6, %v8422_v24  ;;  %v10719_v20 = vld [vmem:[%s15969_s4 + $0x274] sm:$0xf]  ;;  %v8625_v48 = vor.u32 %v10675_v10, %v8622_v42  ;;  %v8862_v49 = vld [vmem:[%s15969_s4 + $0x2f8] sm:$0xf0]  ;;  %v10689_v18 = vld [vmem:[%s15969_s4 + $0x184] sm:$0xf] }
 0x40c   :  { %v3261_v41 = vsel %vm3257_vm3, %v3254_v5, %v3244_v61  ;;  %v8710_v5 = vld [vmem:[%s15969_s4 + $0x1c8] sm:$0xf0]  ;;  %5070 = vmatpush.bf16.msrb.mxu0 %v8649_v26  ;;  %v10735_v22 = vld [vmem:[%s15969_s4 + $0x2f4] sm:$0xf]  ;;  %v10673_v35 = vld [vmem:[%s15969_s4 + $0x104] sm:$0xf] }
 0x40d   :  { %3278 = vst [vmem:[#allocation5 + $0x50] sm:$0xf] %v3261_v41  ;;  %v8713_v15 = vor.u32 %v10697_v39, %v8710_v5  ;;  %v8694_v61 = vld [vmem:[%s15969_s4 + $0x1a8] sm:$0xf0]  ;;  %v10628_v5 = vld [vmem:[#allocation5 + $0x54] sm:$0xf0] }
 0x40e   :  { %v8460_v52 = vld [vmem:[#allocation5 + $0x78] sm:$0xf]  ;;  %v10632_v21 = vld [vmem:[#allocation5 + $0x7c] sm:$0xf]  ;;  %v8697_v11 = vor.u32 %v10693_v62, %v8694_v61  ;;  %v8678_v36 = vld [vmem:[%s15969_s4 + $0x188] sm:$0xf0] }
 0x40f   :  { %v13743_v1 = vor.u32 %v10638_v58, %v8460_v52  ;;  %v13745_v9 = vor.u32 %v10632_v21, %v8462_v63  ;;  %5089 = vmatpush.bf16.msrb.mxu2 %v8713_v15  ;;  %5053 = vmatpush.bf16.msrb.mxu3 %v8569_v55  ;;  %v10677_v58 = vld [vmem:[%s15969_s4 + $0x124] sm:$0xf]  ;;  %v8630_v63 = vld [vmem:[%s15969_s4 + $0x128] sm:$0xf0]  ;;  %v10691_v21 = vld [vmem:[%s15969_s4 + $0x194] sm:$0xf]  ;;  %v8681_v62 = vor.u32 %v10689_v18, %v8678_v36 }
 0x410   :  { %5035 = vmatpush.bf16.msrb.mxu1 %v8497_v37  ;;  %5071 = vmatpush.bf16.msrb.mxu0 %v8641_v32  ;;  %v8633_v39 = vor.u32 %v10677_v58, %v8630_v63  ;;  %v8430_v52 = vld [vmem:[#allocation5 + $0x58] sm:$0xf0]  ;;  %v8686_v15 = vld [vmem:[%s15969_s4 + $0x198] sm:$0xf0]  ;;  %v8614_v45 = vld [vmem:[%s15969_s4 + $0x108] sm:$0xf0] }
 0x411   :  { %4928 = vmatmul.bf16.gmra.mxu0 %v13743_v1  ;;  %4947 = vmatmul.bf16.gmra.mxu2 %v13745_v9  ;;  %v8689_v29 = vor.u32 %v10691_v21, %v8686_v15  ;;  %v8798_v55 = vld [vmem:[%s15969_s4 + $0x278] sm:$0xf0]  ;;  %v10717_v24 = vld [vmem:[%s15969_s4 + $0x264] sm:$0xf]  ;;  %v8790_v37 = vld [vmem:[%s15969_s4 + $0x268] sm:$0xf0]  ;;  %v13865_v7 = vor.u32 %v10622_v51, %v8430_v52  ;;  %v8617_v32 = vor.u32 %v10673_v35, %v8614_v45 }
 0x412   :  { %v8801_v26 = vor.u32 %v10719_v20, %v8798_v55  ;;  %v10767_v57 = vld [vmem:[%s15969_s4 + $0x3f4] sm:$0xf]  ;;  %v8990_v38 = vld [vmem:[%s15969_s4 + $0x3f8] sm:$0xf0]  ;;  %v10765_v15 = vld [vmem:[%s15969_s4 + $0x3e4] sm:$0xf] }
 0x413   :  { %5090 = vmatpush.bf16.msrb.mxu2 %v8705_v0  ;;  %5054 = vmatpush.bf16.msrb.mxu3 %v8561_v2  ;;  %v8865_v0 = vor.u32 %v10735_v22, %v8862_v49  ;;  %v8854_v2 = vld [vmem:[%s15969_s4 + $0x2e8] sm:$0xf0]  ;;  %v10715_v44 = vld [vmem:[%s15969_s4 + $0x254] sm:$0xf]  ;;  %v8993_v63 = vor.u32 %v10767_v57, %v8990_v38  ;;  %v8782_v6 = vld [vmem:[%s15969_s4 + $0x258] sm:$0xf0] }
 0x414   :  { %v10627_v34 = vld [vmem:[#allocation5 + $0x4c] sm:$0xf0]  ;;  %5036 = vmatpush.bf16.msrb.mxu1 %v8489_v30  ;;  %5072 = vmatpush.bf16.msrb.mxu0 %v8633_v39  ;;  %v8857_v61 = vor.u32 %v10733_v23, %v8854_v2  ;;  %v8846_v30 = vld [vmem:[%s15969_s4 + $0x2d8] sm:$0xf0]  ;;  %v10751_v52 = vld [vmem:[%s15969_s4 + $0x374] sm:$0xf] }
 0x415   :  { %v13806_v41 = vor.u32 %v10627_v34, %v8420_v4  ;;  %v13854_v4 = vor.u32 %v10628_v5, %v8428_v3  ;;  %v8793_v34 = vor.u32 %v10717_v24, %v8790_v37  ;;  %v8470_v39 = vld [vmem:[#allocation5 + $0xb0] sm:$0x30]  ;;  %v8785_v5 = vor.u32 %v10715_v44, %v8782_v6  ;;  %v8982_v3 = vld [vmem:[%s15969_s4 + $0x3e8] sm:$0xf0]  ;;  %v10729_v55 = vld [vmem:[%s15969_s4 + $0x2c4] sm:$0xf] }
 0x416   :  { %v8926_v21 = vld [vmem:[%s15969_s4 + $0x378] sm:$0xf0]  ;;  %v8774_v42 = vld [vmem:[%s15969_s4 + $0x248] sm:$0xf0]  ;;  %v8985_v20 = vor.u32 %v10765_v15, %v8982_v3  ;;  %v10639_v22 = vld [vmem:[#allocation5 + $0xac] sm:$0x30] }
 0x417   :  { %5091 = vmatpush.bf16.msrb.mxu2 %v8697_v11  ;;  %5055 = vmatpush.bf16.msrb.mxu3 %v8553_v8  ;;  %v10731_v11 = vld [vmem:[%s15969_s4 + $0x2d4] sm:$0xf]  ;;  %v8468_v8 = vld [vmem:[#allocation5 + $0x80] sm:$0xf]  ;;  %v8929_v10 = vor.u32 %v10751_v52, %v8926_v21  ;;  %v8838_v51 = vld [vmem:[%s15969_s4 + $0x2c8] sm:$0xf0] }
 0x418   :  { %5073 = vmatpush.bf16.msrb.mxu0 %v8625_v48  ;;  %v10749_v48 = vld [vmem:[%s15969_s4 + $0x364] sm:$0xf]  ;;  %v10633_v49 = vld [vmem:[#allocation5 + $0x84] sm:$0xf]  ;;  %v8841_v36 = vor.u32 %v10729_v55, %v8838_v51  ;;  %v13922_v35 = vor.u32 %v10639_v22, %v8468_v8  ;;  %v10640_v23 = vld [vmem:[#allocation5 + $0xb4] sm:$0x30] }
 0x419   :  { %v13924_v45 = vor.u32 %v10633_v49, %v8470_v39  ;;  %v10763_v2 = vld [vmem:[%s15969_s4 + $0x3d4] sm:$0xf]  ;;  %v8766_v38 = vld [vmem:[%s15969_s4 + $0x238] sm:$0xf0]  ;;  %v10761_v39 = vld [vmem:[%s15969_s4 + $0x3c4] sm:$0xf] }
 0x41a   :  { %4961 = vmatmul.bf16.vlgmr.msra.gmra.mxu1 %v13806_v41  ;;  %4980 = vmatmul.bf16.vlgmr.msra.gmra.mxu3 %v13814_v28  ;;  %v10727_v44 = vld [vmem:[%s15969_s4 + $0x2b4] sm:$0xf]  ;;  %v8910_v8 = vld [vmem:[%s15969_s4 + $0x358] sm:$0xf0]  ;;  %v10709_v52 = vld [vmem:[%s15969_s4 + $0x224] sm:$0xf] }
 0x41b   :  { %5105 = vmatpush.bf16.msra.mxu1 %v8801_v26  ;;  %5092 = vmatpush.bf16.msrb.mxu2 %v8689_v29  ;;  %v10713_v29 = vld [vmem:[%s15969_s4 + $0x244] sm:$0xf]  ;;  %v8918_v26 = vld [vmem:[%s15969_s4 + $0x368] sm:$0xf0] }
 0x41c   :  { %5124 = vmatpush.bf16.msra.mxu3 %v8865_v0  ;;  %5074 = vmatpush.bf16.msrb.mxu0 %v8617_v32  ;;  %v8777_v0 = vor.u32 %v10713_v29, %v8774_v42  ;;  %v8921_v37 = vor.u32 %v10749_v48, %v8918_v26  ;;  %v8974_v32 = vld [vmem:[%s15969_s4 + $0x3d8] sm:$0xf0]  ;;  %v8758_v21 = vld [vmem:[%s15969_s4 + $0x228] sm:$0xf0]  ;;  %v10725_v3 = vld [vmem:[%s15969_s4 + $0x2a4] sm:$0xf] }
 0x41d   :  { %v8977_v57 = vor.u32 %v10763_v2, %v8974_v32  ;;  %v8822_v29 = vld [vmem:[%s15969_s4 + $0x2a8] sm:$0xf0]  ;;  %v10745_v42 = vld [vmem:[%s15969_s4 + $0x344] sm:$0xf]  ;;  %v8761_v51 = vor.u32 %v10709_v52, %v8758_v21  ;;  %v10723_v2 = vld [vmem:[%s15969_s4 + $0x294] sm:$0xf] }
 0x41e   :  { %v8825_v48 = vor.u32 %v10725_v3, %v8822_v29  ;;  %v8902_v26 = vld [vmem:[%s15969_s4 + $0x348] sm:$0xf0]  ;;  %v8814_v32 = vld [vmem:[%s15969_s4 + $0x298] sm:$0xf0]  ;;  %v14040_v29 = vpop.f32.mrf.mxu1 }
 0x41f   :  { %5106 = vmatpush.bf16.msra.mxu1 %v8793_v34  ;;  %5093 = vmatpush.bf16.msrb.mxu2 %v8681_v62  ;;  %v8478_v34 = vld [vmem:[#allocation5 + $0xb8] sm:$0x30]  ;;  %v8905_v22 = vor.u32 %v10745_v42, %v8902_v26  ;;  %v10755_v42 = vld [vmem:[%s15969_s4 + $0x394] sm:$0xf] }
 0x420   :  { %5125 = vmatpush.bf16.msra.mxu3 %v8857_v61  ;;  %v10711_v61 = vld [vmem:[%s15969_s4 + $0x234] sm:$0xf] }
 0x421   :  { %4999 = vmatmul.bf16.vlgmr.msra.gmra.mxu0 %v13854_v4  ;;  %9202 = vmatmul.msk.bf16.vlgmr.msra.gmra.mxu2 %vm1307_vm2, %v13865_v7  ;;  %v4848_v33 = vpop.f32.mrf.mxu0  ;;  %v8769_v6 = vor.u32 %v10711_v61, %v8766_v38  ;;  %v10757_v38 = vld [vmem:[%s15969_s4 + $0x3a4] sm:$0xf] }
 0x422   :  { %v4849_v58 = vadd.f32 %v4848_v33, %v13151_v17  ;;  %v8849_v17 = vor.u32 %v10731_v11, %v8846_v30  ;;  %5143 = vmatpush.bf16.msra.mxu0 %v8929_v10  ;;  %v8476_v33 = vld [vmem:[#allocation5 + $0x88] sm:$0xf]  ;;  %v10747_v30 = vld [vmem:[%s15969_s4 + $0x354] sm:$0xf] }
 0x423   :  { %5162 = vmatpush.bf16.msra.mxu2 %v8993_v63  ;;  %5107 = vmatpush.bf16.msra.mxu1 %v8785_v5  ;;  %v10634_v63 = vld [vmem:[#allocation5 + $0x8c] sm:$0xf]  ;;  %v8913_v5 = vor.u32 %v10747_v30, %v8910_v8  ;;  %v13968_v15 = vor.u32 %v10640_v23, %v8476_v33  ;;  %v8817_v33 = vor.u32 %v10723_v2, %v8814_v32  ;;  %v8806_v30 = vld [vmem:[%s15969_s4 + $0x288] sm:$0xf0]  ;;  %v10741_v8 = vld [vmem:[%s15969_s4 + $0x324] sm:$0xf] }
 0x424   :  { %5126 = vmatpush.bf16.msra.mxu3 %v8849_v17  ;;  %v8966_v17 = vld [vmem:[%s15969_s4 + $0x3c8] sm:$0xf0] }
 0x425   :  { %v8969_v10 = vor.u32 %v10761_v39, %v8966_v17  ;;  %v8886_v39 = vld [vmem:[%s15969_s4 + $0x328] sm:$0xf0] }
 0x426   :  { %5144 = vmatpush.bf16.msra.mxu0 %v8921_v37  ;;  %v8889_v3 = vor.u32 %v10741_v8, %v8886_v39  ;;  %v8934_v32 = vld [vmem:[%s15969_s4 + $0x388] sm:$0xf0]  ;;  %v10819_v8 = vld [vmem:[%s15969_s4 + $0x594] sm:$0xf]  ;;  %v9198_v39 = vld [vmem:[%s15969_s4 + $0x598] sm:$0xf0] }
 0x427   :  { %v4867_v18 = vpop.f32.mrf.mxu2  ;;  %5163 = vmatpush.bf16.msra.mxu2 %v8985_v20  ;;  %5108 = vmatpush.bf16.msra.mxu1 %v8777_v0  ;;  %v13979_v20 = vor.u32 %v10634_v63, %v8478_v34  ;;  %v8958_v0 = vld [vmem:[%s15969_s4 + $0x3b8] sm:$0xf0]  ;;  %v10705_v63 = vld [vmem:[%s15969_s4 + $0x204] sm:$0xf] }
 0x428   :  { %v13926_v24 = vadd.f32 %v4867_v18, %v4849_v58  ;;  %5127 = vmatpush.bf16.msra.mxu3 %v8841_v36  ;;  %v8830_v58 = vld [vmem:[%s15969_s4 + $0x2b8] sm:$0xf0]  ;;  %v10759_v18 = vld [vmem:[%s15969_s4 + $0x3b4] sm:$0xf] }
 0x429   :  { %v13928_v62 = vpop.f32.mrf.mxu0  ;;  %v8833_v11 = vor.u32 %v10727_v44, %v8830_v58  ;;  %v10707_v36 = vld [vmem:[%s15969_s4 + $0x214] sm:$0xf]  ;;  %v8961_v23 = vor.u32 %v10759_v18, %v8958_v0  ;;  %v8750_v34 = vld [vmem:[%s15969_s4 + $0x218] sm:$0xf0]  ;;  %v8950_v58 = vld [vmem:[%s15969_s4 + $0x3a8] sm:$0xf0] }
 0x42a   :  { %4966 = vmatmul.bf16.gmra.mxu1 %v13922_v35  ;;  %4985 = vmatmul.bf16.gmra.mxu3 %v13924_v45  ;;  %v8753_v61 = vor.u32 %v10707_v36, %v8750_v34  ;;  %v8953_v17 = vor.u32 %v10757_v38, %v8950_v58  ;;  %v9054_v18 = vld [vmem:[%s15969_s4 + $0x478] sm:$0xf0]  ;;  %v10753_v34 = vld [vmem:[%s15969_s4 + $0x384] sm:$0xf] }
 0x42b   :  { %5164 = vmatpush.bf16.msra.mxu2 %v8977_v57  ;;  %5109 = vmatpush.bf16.msra.mxu1 %v8769_v6  ;;  %v8894_v57 = vld [vmem:[%s15969_s4 + $0x338] sm:$0xf0]  ;;  %v8742_v6 = vld [vmem:[%s15969_s4 + $0x208] sm:$0xf0]  ;;  %v10797_v38 = vld [vmem:[%s15969_s4 + $0x4e4] sm:$0xf] }
 0x42c   :  { %5128 = vmatpush.bf16.msra.mxu3 %v8833_v11  ;;  %5145 = vmatpush.bf16.msra.mxu0 %v8913_v5  ;;  %v10721_v11 = vld [vmem:[%s15969_s4 + $0x284] sm:$0xf]  ;;  %v8745_v52 = vor.u32 %v10705_v63, %v8742_v6  ;;  %v9110_v63 = vld [vmem:[%s15969_s4 + $0x4e8] sm:$0xf0]  ;;  %v14092_v6 = vpop.f32.mrf.mxu3 }
 0x42f   :  { %v13981_v55 = vpop.f32.mrf.mxu2  ;;  %5165 = vmatpush.bf16.msra.mxu2 %v8969_v10  ;;  %5110 = vmatpush.bf16.msra.mxu1 %v8761_v51  ;;  %v8809_v10 = vor.u32 %v10721_v11, %v8806_v30  ;;  %v8942_v51 = vld [vmem:[%s15969_s4 + $0x398] sm:$0xf0]  ;;  %v9113_v30 = vor.u32 %v10797_v38, %v9110_v63 }
 0x430   :  { %5129 = vmatpush.bf16.msra.mxu3 %v8825_v48  ;;  %5146 = vmatpush.bf16.msra.mxu0 %v8905_v22  ;;  %v10739_v48 = vld [vmem:[%s15969_s4 + $0x314] sm:$0xf]  ;;  %v8945_v26 = vor.u32 %v10755_v42, %v8942_v51  ;;  %v8878_v22 = vld [vmem:[%s15969_s4 + $0x318] sm:$0xf0] }
 0x431   :  { %5004 = vmatmul.bf16.gmra.mxu0 %v13968_v15  ;;  %9203 = vmatmul.msk.bf16.gmra.mxu2 %vm1307_vm2, %v13979_v20  ;;  %v4853_v49 = vpop.f32.mrf.mxu0  ;;  %v8881_v0 = vor.u32 %v10739_v48, %v8878_v22  ;;  %v9102_v42 = vld [vmem:[%s15969_s4 + $0x4d8] sm:$0xf0]  ;;  %v10815_v22 = vld [vmem:[%s15969_s4 + $0x574] sm:$0xf] }
 0x432   :  { %v4854_v37 = vadd.f32 %v4853_v49, %v13249_v40  ;;  %v10743_v40 = vld [vmem:[%s15969_s4 + $0x334] sm:$0xf]  ;;  %v9022_v38 = vld [vmem:[%s15969_s4 + $0x438] sm:$0xf0] }
 0x433   :  { %v8897_v44 = vor.u32 %v10743_v40, %v8894_v57  ;;  %5166 = vmatpush.bf16.msra.mxu2 %v8961_v23  ;;  %5111 = vmatpush.bf16.msra.mxu1 %v8753_v61  ;;  %v10783_v49 = vld [vmem:[%s15969_s4 + $0x474] sm:$0xf]  ;;  %v9118_v23 = vld [vmem:[%s15969_s4 + $0x4f8] sm:$0xf0]  ;;  %v10737_v61 = vld [vmem:[%s15969_s4 + $0x304] sm:$0xf] }
 0x434   :  { %5130 = vmatpush.bf16.msra.mxu3 %v8817_v33  ;;  %v9057_v36 = vor.u32 %v10783_v49, %v9054_v18  ;;  %v8870_v33 = vld [vmem:[%s15969_s4 + $0x308] sm:$0xf0]  ;;  %v10781_v40 = vld [vmem:[%s15969_s4 + $0x464] sm:$0xf]  ;;  %v9182_v49 = vld [vmem:[%s15969_s4 + $0x578] sm:$0xf0] }
 0x435   :  { %5147 = vmatpush.bf16.msra.mxu0 %v8897_v44  ;;  %v9046_v57 = vld [vmem:[%s15969_s4 + $0x468] sm:$0xf0]  ;;  %v8937_v44 = vor.u32 %v10753_v34, %v8934_v32  ;;  %v8873_v11 = vor.u32 %v10737_v61, %v8870_v33  ;;  %v10777_v18 = vld [vmem:[%s15969_s4 + $0x444] sm:$0xf]  ;;  %v9086_v63 = vld [vmem:[%s15969_s4 + $0x4b8] sm:$0xf0] }
 0x436   :  { %v9049_v58 = vor.u32 %v10781_v40, %v9046_v57  ;;  %v9174_v34 = vld [vmem:[%s15969_s4 + $0x568] sm:$0xf0]  ;;  %v10775_v57 = vld [vmem:[%s15969_s4 + $0x434] sm:$0xf] }
 0x437   :  { %v4872_v5 = vpop.f32.mrf.mxu2  ;;  %5167 = vmatpush.bf16.msra.mxu2 %v8953_v17  ;;  %5112 = vmatpush.bf16.msra.mxu1 %v8745_v52  ;;  %v9201_v52 = vor.u32 %v10819_v8, %v9198_v39 }
 0x438   :  { %v14038_v21 = vadd.f32 %v4872_v5, %v4854_v37  ;;  %5131 = vmatpush.bf16.msra.mxu3 %v8809_v10  ;;  %v10799_v37 = vld [vmem:[%s15969_s4 + $0x4f4] sm:$0xf]  ;;  %v9038_v10 = vld [vmem:[%s15969_s4 + $0x458] sm:$0xf0] }
 0x439   :  { %5148 = vmatpush.bf16.msra.mxu0 %v8889_v3  ;;  %v9121_v2 = vor.u32 %v10799_v37, %v9118_v23  ;;  %v10779_v5 = vld [vmem:[%s15969_s4 + $0x454] sm:$0xf]  ;;  %v9094_v37 = vld [vmem:[%s15969_s4 + $0x4c8] sm:$0xf0]  ;;  %v10813_v23 = vld [vmem:[%s15969_s4 + $0x564] sm:$0xf] }
 0x43a   :  { %5037 = vmatmul.bf16.vlgmr.msrb.gmra.mxu1 %v12852_v50  ;;  %5056 = vmatmul.bf16.vlgmr.msrb.gmra.mxu3 %v12854_v19  ;;  %v10795_v3 = vld [vmem:[%s15969_s4 + $0x4d4] sm:$0xf]  ;;  %v9041_v48 = vor.u32 %v10779_v5, %v9038_v10  ;;  %v9177_v33 = vor.u32 %v10813_v23, %v9174_v34  ;;  %v10773_v5 = vld [vmem:[%s15969_s4 + $0x424] sm:$0xf]  ;;  %v9078_v10 = vld [vmem:[%s15969_s4 + $0x4a8] sm:$0xf0] }
 0x43b   :  { %5181 = vmatpush.bf16.msrb.mxu1 %v9057_v36  ;;  %5168 = vmatpush.bf16.msra.mxu2 %v8945_v26  ;;  %v9105_v26 = vor.u32 %v10795_v3, %v9102_v42  ;;  %v10793_v36 = vld [vmem:[%s15969_s4 + $0x4c4] sm:$0xf]  ;;  %v9158_v42 = vld [vmem:[%s15969_s4 + $0x548] sm:$0xf0] }
 0x43c   :  { %5200 = vmatpush.bf16.msrb.mxu3 %v9121_v2  ;;  %v9097_v32 = vor.u32 %v10793_v36, %v9094_v37  ;;  %v10809_v3 = vld [vmem:[%s15969_s4 + $0x544] sm:$0xf]  ;;  %v10787_v36 = vld [vmem:[%s15969_s4 + $0x494] sm:$0xf]  ;;  %v9070_v37 = vld [vmem:[%s15969_s4 + $0x498] sm:$0xf0] }
 0x43d   :  { %5149 = vmatpush.bf16.msra.mxu0 %v8881_v0  ;;  %v9185_v0 = vor.u32 %v10815_v22, %v9182_v49  ;;  %v10817_v22 = vld [vmem:[%s15969_s4 + $0x584] sm:$0xf]  ;;  %v9190_v49 = vld [vmem:[%s15969_s4 + $0x588] sm:$0xf0]  ;;  %v9073_v34 = vor.u32 %v10787_v36, %v9070_v37 }
 0x43f   :  { %5182 = vmatpush.bf16.msrb.mxu1 %v9049_v58  ;;  %5169 = vmatpush.bf16.msra.mxu2 %v8937_v44  ;;  %v10791_v44 = vld [vmem:[%s15969_s4 + $0x4b4] sm:$0xf]  ;;  %v9025_v58 = vor.u32 %v10775_v57, %v9022_v38  ;;  %v8998_v57 = vld [vmem:[%s15969_s4 + $0x408] sm:$0xf0]  ;;  %v10785_v38 = vld [vmem:[%s15969_s4 + $0x484] sm:$0xf] }
 0x440   :  { %5201 = vmatpush.bf16.msrb.mxu3 %v9113_v30  ;;  %v9166_v30 = vld [vmem:[%s15969_s4 + $0x558] sm:$0xf0]  ;;  %v9089_v8 = vor.u32 %v10791_v44, %v9086_v63  ;;  %v9062_v44 = vld [vmem:[%s15969_s4 + $0x488] sm:$0xf0] }
 0x441   :  { %5075 = vmatmul.bf16.vlgmr.msrb.gmra.mxu0 %v13183_v31  ;;  %5094 = vmatmul.bf16.vlgmr.msrb.gmra.mxu2 %v13185_v43  ;;  %v9142_v63 = vld [vmem:[%s15969_s4 + $0x528] sm:$0xf0] }
 0x442   :  { %v4886_v17 = vpop.f32.mrf.mxu1  ;;  %5150 = vmatpush.bf16.msra.mxu0 %v8873_v11  ;;  %v10811_v11 = vld [vmem:[%s15969_s4 + $0x554] sm:$0xf] }
 0x443   :  { %v4887_v51 = vadd.f32 %v4886_v17, %v13926_v24  ;;  %5244 = vmatpush.bf16.msrb.mxu2 %v9201_v52  ;;  %v9030_v24 = vld [vmem:[%s15969_s4 + $0x448] sm:$0xf0]  ;;  %5183 = vmatpush.bf16.msrb.mxu1 %v9041_v48  ;;  %v9169_v39 = vor.u32 %v10811_v11, %v9166_v30  ;;  %v10789_v52 = vld [vmem:[%s15969_s4 + $0x4a4] sm:$0xf]  ;;  %v9065_v30 = vor.u32 %v10785_v38, %v9062_v44  ;;  %v10848_v38 = vld [vmem:[%s15970_s5 + $0xd4] sm:$0xf0] }
 0x444   :  { %5202 = vmatpush.bf16.msrb.mxu3 %v9105_v26  ;;  %v9033_v2 = vor.u32 %v10777_v18, %v9030_v24  ;;  %v9014_v17 = vld [vmem:[%s15969_s4 + $0x428] sm:$0xf0]  ;;  %v9081_v48 = vor.u32 %v10789_v52, %v9078_v10  ;;  %v9161_v26 = vor.u32 %v10809_v3, %v9158_v42  ;;  %v10771_v18 = vld [vmem:[%s15969_s4 + $0x414] sm:$0xf]  ;;  %v9006_v24 = vld [vmem:[%s15969_s4 + $0x418] sm:$0xf0] }
 0x445   :  { %v9009_v23 = vor.u32 %v10771_v18, %v9006_v24  ;;  %v10836_v52 = vld [vmem:[%s15970_s5 + $0x74] sm:$0xf0]  ;;  %v9328_v10 = vld [vmem:[%s15970_s5 + $0xf0] sm:$0xf]  ;;  %v10834_v18 = vld [vmem:[%s15970_s5 + $0x64] sm:$0xf0] }
 0x446   :  { %5219 = vmatpush.bf16.msrb.mxu0 %v9185_v0  ;;  %v9193_v0 = vor.u32 %v10817_v22, %v9190_v49  ;;  %v10852_v3 = vld [vmem:[%s15970_s5 + $0xf4] sm:$0xf0]  ;;  %v9126_v22 = vld [vmem:[%s15969_s4 + $0x508] sm:$0xf0]  ;;  %v9256_v49 = vld [vmem:[%s15970_s5 + $0x60] sm:$0xf] }
 0x447   :  { %5184 = vmatpush.bf16.msrb.mxu1 %v9033_v2  ;;  %v10807_v2 = vld [vmem:[%s15969_s4 + $0x534] sm:$0xf]  ;;  %v10850_v24 = vld [vmem:[%s15970_s5 + $0xe4] sm:$0xf0]  ;;  %v9257_v36 = vor.u32 %v10834_v18, %v9256_v49  ;;  %v9440_v49 = vld [vmem:[%s15970_s5 + $0x1d0] sm:$0xf] }
 0x448   :  { %v4905_v61 = vpop.f32.mrf.mxu3  ;;  %5203 = vmatpush.bf16.msrb.mxu3 %v9097_v32  ;;  %v9150_v32 = vld [vmem:[%s15969_s4 + $0x538] sm:$0xf0]  ;;  %5245 = vmatpush.bf16.msrb.mxu2 %v9193_v0  ;;  %v9320_v0 = vld [vmem:[%s15970_s5 + $0xe0] sm:$0xf]  ;;  %v10880_v18 = vld [vmem:[%s15970_s5 + $0x1d4] sm:$0xf0] }
 0x449   :  { %v14139_v40 = vadd.f32 %v4905_v61, %v4887_v51  ;;  %v9017_v51 = vor.u32 %v10773_v5, %v9014_v17  ;;  %v10769_v61 = vld [vmem:[%s15969_s4 + $0x404] sm:$0xf]  ;;  %v9134_v5 = vld [vmem:[%s15969_s4 + $0x518] sm:$0xf0]  ;;  %v9264_v17 = vld [vmem:[%s15970_s5 + $0x70] sm:$0xf]  ;;  %v9321_v37 = vor.u32 %v10850_v24, %v9320_v0  ;;  %v9441_v24 = vor.u32 %v10880_v18, %v9440_v49  ;;  %v14383_v18 = vpop.f32.mrf.mxu2 }
 0x44a   :  { %5042 = vmatmul.bf16.gmra.mxu1 %v12885_v14  ;;  %5061 = vmatmul.bf16.gmra.mxu3 %v12889_v47  ;;  %v9001_v11 = vor.u32 %v10769_v61, %v8998_v57  ;;  %v9312_v57 = vld [vmem:[%s15970_s5 + $0xd0] sm:$0xf]  ;;  %v10840_v49 = vld [vmem:[%s15970_s5 + $0x94] sm:$0xf0] }
 0x44b   :  { %5220 = vmatpush.bf16.msrb.mxu0 %v9177_v33  ;;  %5185 = vmatpush.bf16.msrb.mxu1 %v9025_v58  ;;  %v9153_v33 = vor.u32 %v10807_v2, %v9150_v32  ;;  %v10805_v58 = vld [vmem:[%s15969_s4 + $0x524] sm:$0xf]  ;;  %v10884_v2 = vld [vmem:[%s15970_s5 + $0x1f4] sm:$0xf0]  ;;  %v9248_v32 = vld [vmem:[%s15970_s5 + $0x50] sm:$0xf] }
 0x44c   :  { %5204 = vmatpush.bf16.msrb.mxu3 %v9089_v8  ;;  %v9145_v8 = vor.u32 %v10805_v58, %v9142_v63  ;;  %v9313_v58 = vor.u32 %v10848_v38, %v9312_v57  ;;  %v9392_v63 = vld [vmem:[%s15970_s5 + $0x170] sm:$0xf]  ;;  %v14337_v57 = vpop.f32.mrf.mxu0  ;;  %v9432_v38 = vld [vmem:[%s15970_s5 + $0x1c0] sm:$0xf] }
 0x44d   :  { %v9232_v0 = vld [vmem:[%s15970_s5 + $0x30] sm:$0xf] }
 0x44f   :  { %5221 = vmatpush.bf16.msrb.mxu0 %v9169_v39  ;;  %5186 = vmatpush.bf16.msrb.mxu1 %v9017_v51  ;;  %v10803_v39 = vld [vmem:[%s15969_s4 + $0x514] sm:$0xf]  ;;  %v9265_v51 = vor.u32 %v10836_v52, %v9264_v17  ;;  %v9240_v17 = vld [vmem:[%s15970_s5 + $0x40] sm:$0xf]  ;;  %v10830_v52 = vld [vmem:[%s15970_s5 + $0x44] sm:$0xf0] }
 0x450   :  { %5205 = vmatpush.bf16.msrb.mxu3 %v9081_v48  ;;  %v9137_v42 = vor.u32 %v10803_v39, %v9134_v5  ;;  %v9329_v48 = vor.u32 %v10852_v3, %v9328_v10  ;;  %v10882_v39 = vld [vmem:[%s15970_s5 + $0x1e4] sm:$0xf0]  ;;  %v9304_v10 = vld [vmem:[%s15970_s5 + $0xc0] sm:$0xf]  ;;  %v9241_v3 = vor.u32 %v10830_v52, %v9240_v17 }
 0x451   :  { %5080 = vmatmul.bf16.gmra.mxu0 %v13260_v25  ;;  %5099 = vmatmul.bf16.gmra.mxu2 %v13262_v53  ;;  %v10862_v17 = vld [vmem:[%s15970_s5 + $0x144] sm:$0xf0] }
 0x453   :  { %5222 = vmatpush.bf16.msrb.mxu0 %v9161_v26  ;;  %5187 = vmatpush.bf16.msrb.mxu1 %v9009_v23  ;;  %v10801_v26 = vld [vmem:[%s15969_s4 + $0x504] sm:$0xf]  ;;  %s8113_s4 = sshll.u32 %s11147_s18, 4  ;;  %s8114_s4 = int_to_ptr.vmem [resolvable:$true] %s8113_s4 }
 0x454   :  { %5206 = vmatpush.bf16.msrb.mxu3 %v9073_v34  ;;  %v9129_v23 = vor.u32 %v10801_v26, %v9126_v22  ;;  %v9456_v34 = vld [vmem:[%s15970_s5 + $0x1f0] sm:$0xf] }
 0x455   :  { %v9457_v61 = vor.u32 %v10884_v2, %v9456_v34 }
 0x457   :  { %5223 = vmatpush.bf16.msrb.mxu0 %v9153_v33  ;;  %5188 = vmatpush.bf16.msrb.mxu1 %v9001_v11  ;;  %v10832_v33 = vld [vmem:[%s15970_s5 + $0x54] sm:$0xf0] }
 0x458   :  { %5207 = vmatpush.bf16.msrb.mxu3 %v9065_v30  ;;  %v9249_v44 = vor.u32 %v10832_v33, %v9248_v32  ;;  %v10868_v11 = vld [vmem:[%s15970_s5 + $0x174] sm:$0xf0]  ;;  %v9376_v32 = vld [vmem:[%s15970_s5 + $0x150] sm:$0xf] }
 0x459   :  { %v9393_v30 = vor.u32 %v10868_v11, %v9392_v63  ;;  %v9224_v63 = vld [vmem:[%s15970_s5 + $0x20] sm:$0xf]  ;;  %v10826_v11 = vld [vmem:[%s15970_s5 + $0x24] sm:$0xf0] }
 0x45a   :  { %5113 = vmatmul.bf16.vlgmr.msra.gmra.mxu1 %v13287_v12  ;;  %5132 = vmatmul.bf16.vlgmr.msra.gmra.mxu3 %v13289_v54 }
 0x45b   :  { %5224 = vmatpush.bf16.msrb.mxu0 %v9145_v8  ;;  %6165 = vmatpush.bf16.msra.mxu1 %v9265_v51  ;;  %v9448_v8 = vld [vmem:[%s15970_s5 + $0x1e0] sm:$0xf] }
 0x45c   :  { %6184 = vmatpush.bf16.msra.mxu3 %v9329_v48  ;;  %v9449_v5 = vor.u32 %v10882_v39, %v9448_v8  ;;  %v9384_v51 = vld [vmem:[%s15970_s5 + $0x160] sm:$0xf]  ;;  %v10866_v48 = vld [vmem:[%s15970_s5 + $0x164] sm:$0xf0]  ;;  %v9225_v8 = vor.u32 %v10826_v11, %v9224_v63 }
 0x45d   :  { %v9385_v22 = vor.u32 %v10866_v48, %v9384_v51  ;;  %v10842_v39 = vld [vmem:[%s15970_s5 + $0xa4] sm:$0xf0]  ;;  %v9216_v51 = vld [vmem:[%s15970_s5 + $0x10] sm:$0xf]  ;;  %v9352_v11 = vld [vmem:[%s15970_s5 + $0x120] sm:$0xf] }
 0x45f   :  { %5225 = vmatpush.bf16.msrb.mxu0 %v9137_v42  ;;  %6166 = vmatpush.bf16.msra.mxu1 %v9257_v36  ;;  %v10846_v42 = vld [vmem:[%s15970_s5 + $0xc4] sm:$0xf0]  ;;  %v10828_v36 = vld [vmem:[%s15970_s5 + $0x34] sm:$0xf0] }
 0x460   :  { %6185 = vmatpush.bf16.msra.mxu3 %v9321_v37  ;;  %v9305_v26 = vor.u32 %v10846_v42, %v9304_v10  ;;  %v9296_v37 = vld [vmem:[%s15970_s5 + $0xb0] sm:$0xf]  ;;  %v9233_v34 = vor.u32 %v10828_v36, %v9232_v0  ;;  %v10876_v42 = vld [vmem:[%s15970_s5 + $0x1b4] sm:$0xf0] }
 0x461   :  { %5151 = vmatmul.bf16.vlgmr.msra.gmra.mxu0 %v13560_v60  ;;  %5170 = vmatmul.bf16.vlgmr.msra.gmra.mxu2 %v13562_v27  ;;  %v9360_v36 = vld [vmem:[%s15970_s5 + $0x130] sm:$0xf] }
 0x462   :  { %6222 = vmatpush.bf16.msra.mxu2 %v9457_v61  ;;  %v10864_v61 = vld [vmem:[%s15970_s5 + $0x154] sm:$0xf0] }
 0x463   :  { %5226 = vmatpush.bf16.msrb.mxu0 %v9129_v23  ;;  %6167 = vmatpush.bf16.msra.mxu1 %v9249_v44  ;;  %v10844_v23 = vld [vmem:[%s15970_s5 + $0xb4] sm:$0xf0]  ;;  %v9377_v33 = vor.u32 %v10864_v61, %v9376_v32  ;;  %v10878_v44 = vld [vmem:[%s15970_s5 + $0x1c4] sm:$0xf0] }
 0x464   :  { %6186 = vmatpush.bf16.msra.mxu3 %v9313_v58  ;;  %v9297_v2 = vor.u32 %v10844_v23, %v9296_v37  ;;  %v9433_v58 = vor.u32 %v10878_v44, %v9432_v38  ;;  %v10860_v37 = vld [vmem:[%s15970_s5 + $0x134] sm:$0xf0]  ;;  %v10874_v32 = vld [vmem:[%s15970_s5 + $0x1a4] sm:$0xf0]  ;;  %v9208_v38 = vld [vmem:[%s15970_s5] sm:$0xf] }
 0x465   :  { %v9361_v23 = vor.u32 %v10860_v37, %v9360_v36  ;;  %v10822_v44 = vld [vmem:[%s15970_s5 + $0x4] sm:$0xf0]  ;;  %v9400_v37 = vld [vmem:[%s15970_s5 + $0x180] sm:$0xf] }
 0x466   :  { %6223 = vmatpush.bf16.msra.mxu2 %v9449_v5  ;;  %v9368_v5 = vld [vmem:[%s15970_s5 + $0x140] sm:$0xf]  ;;  %v9209_v63 = vor.u32 %v10822_v44, %v9208_v38  ;;  %v10898_v44 = vld [vmem:[%s15970_s5 + $0x264] sm:$0xf0] }
 0x467   :  { %6203 = vmatpush.bf16.msra.mxu0 %v9393_v30  ;;  %6168 = vmatpush.bf16.msra.mxu1 %v9241_v3  ;;  %v9288_v30 = vld [vmem:[%s15970_s5 + $0xa0] sm:$0xf]  ;;  %v9369_v10 = vor.u32 %v10862_v17, %v9368_v5  ;;  %v9424_v3 = vld [vmem:[%s15970_s5 + $0x1b0] sm:$0xf]  ;;  %v10872_v17 = vld [vmem:[%s15970_s5 + $0x194] sm:$0xf0] }
 0x468   :  { %6187 = vmatpush.bf16.msra.mxu3 %v9305_v26  ;;  %v9289_v52 = vor.u32 %v10842_v39, %v9288_v30  ;;  %v9425_v48 = vor.u32 %v10876_v42, %v9424_v3  ;;  %v10824_v26 = vld [vmem:[%s15970_s5 + $0x14] sm:$0xf0]  ;;  %v10858_v30 = vld [vmem:[%s15970_s5 + $0x124] sm:$0xf0]  ;;  %v9408_v5 = vld [vmem:[%s15970_s5 + $0x190] sm:$0xf] }
 0x469   :  { %v9217_v0 = vor.u32 %v10824_v26, %v9216_v51  ;;  %v9353_v39 = vor.u32 %v10858_v30, %v9352_v11  ;;  %v10856_v3 = vld [vmem:[%s15970_s5 + $0x114] sm:$0xf0]  ;;  %v9520_v42 = vld [vmem:[%s15970_s5 + $0x270] sm:$0xf] }
 0x46a   :  { %5118 = vmatmul.bf16.gmra.mxu1 %v13695_v16  ;;  %5137 = vmatmul.bf16.gmra.mxu3 %v13697_v59  ;;  %v10900_v51 = vld [vmem:[%s15970_s5 + $0x274] sm:$0xf0]  ;;  %v9712_v30 = vld [vmem:[%s15970_s5 + $0x3f0] sm:$0xf] }
 0x46b   :  { %6204 = vmatpush.bf16.msra.mxu0 %v9385_v22  ;;  %6224 = vmatpush.bf16.msra.mxu2 %v9441_v24  ;;  %v9280_v22 = vld [vmem:[%s15970_s5 + $0x90] sm:$0xf] }
 0x46c   :  { %6169 = vmatpush.bf16.msra.mxu1 %v9233_v34  ;;  %6188 = vmatpush.bf16.msra.mxu3 %v9297_v2  ;;  %v9281_v24 = vor.u32 %v10840_v49, %v9280_v22  ;;  %v9416_v2 = vld [vmem:[%s15970_s5 + $0x1a0] sm:$0xf]  ;;  %v9521_v22 = vor.u32 %v10900_v51, %v9520_v42  ;;  %v9584_v49 = vld [vmem:[%s15970_s5 + $0x2f0] sm:$0xf]  ;;  %v10932_v51 = vld [vmem:[%s15970_s5 + $0x374] sm:$0xf0] }
 0x46d   :  { %v9648_v42 = vld [vmem:[%s15970_s5 + $0x370] sm:$0xf] }
 0x46f   :  { %6205 = vmatpush.bf16.msra.mxu0 %v9377_v33  ;;  %6225 = vmatpush.bf16.msra.mxu2 %v9433_v58  ;;  %v9417_v33 = vor.u32 %v10874_v32, %v9416_v2  ;;  %v9272_v58 = vld [vmem:[%s15970_s5 + $0x80] sm:$0xf] }
 0x470   :  { %6170 = vmatpush.bf16.msra.mxu1 %v9225_v8  ;;  %6189 = vmatpush.bf16.msra.mxu3 %v9289_v52  ;;  %v9344_v52 = vld [vmem:[%s15970_s5 + $0x110] sm:$0xf]  ;;  %v9336_v32 = vld [vmem:[%s15970_s5 + $0x100] sm:$0xf] }
 0x471   :  { %5156 = vmatmul.bf16.gmra.mxu0 %v13743_v1  ;;  %5175 = vmatmul.bf16.gmra.mxu2 %v13745_v9  ;;  %v9345_v26 = vor.u32 %v10856_v3, %v9344_v52  ;;  %v9568_v52 = vld [vmem:[%s15970_s5 + $0x2d0] sm:$0xf] }
 0x473   :  { %6206 = vmatpush.bf16.msra.mxu0 %v9369_v10  ;;  %6226 = vmatpush.bf16.msra.mxu2 %v9425_v48  ;;  %v9409_v10 = vor.u32 %v10872_v17, %v9408_v5  ;;  %v10896_v17 = vld [vmem:[%s15970_s5 + $0x254] sm:$0xf0] }
 0x474   :  { %6171 = vmatpush.bf16.msra.mxu1 %v9217_v0  ;;  %6190 = vmatpush.bf16.msra.mxu3 %v9281_v24  ;;  %v10916_v0 = vld [vmem:[%s15970_s5 + $0x2f4] sm:$0xf0] }
 0x475   :  { %v9585_v36 = vor.u32 %v10916_v0, %v9584_v49 }
 0x476   :  { %v4924_v34 = vpop.f32.mrf.mxu0 }
 0x477   :  { %v4925_v61 = vadd.f32 %v4924_v34, %v14139_v40  ;;  %6207 = vmatpush.bf16.msra.mxu0 %v9361_v23  ;;  %v10838_v40 = vld [vmem:[%s15970_s5 + $0x84] sm:$0xf0]  ;;  %6227 = vmatpush.bf16.msra.mxu2 %v9417_v33  ;;  %v14450_v34 = vpop.f32.mrf.mxu1  ;;  %v9512_v33 = vld [vmem:[%s15970_s5 + $0x260] sm:$0xf] }
 0x478   :  { %v9273_v8 = vor.u32 %v10838_v40, %v9272_v58  ;;  %6172 = vmatpush.bf16.msra.mxu1 %v9209_v63  ;;  %v10870_v23 = vld [vmem:[%s15970_s5 + $0x184] sm:$0xf0]  ;;  %v9576_v58 = vld [vmem:[%s15970_s5 + $0x2e0] sm:$0xf]  ;;  %v9513_v40 = vor.u32 %v10898_v44, %v9512_v33 }
 0x479   :  { %v9401_v2 = vor.u32 %v10870_v23, %v9400_v37  ;;  %v10914_v63 = vld [vmem:[%s15970_s5 + $0x2e4] sm:$0xf0]  ;;  %v9560_v33 = vld [vmem:[%s15970_s5 + $0x2c0] sm:$0xf] }
 0x47a   :  { %5189 = vmatmul.bf16.vlgmr.msrb.gmra.mxu1 %v13806_v41  ;;  %5208 = vmatmul.bf16.vlgmr.msrb.gmra.mxu3 %v13814_v28  ;;  %v9577_v11 = vor.u32 %v10914_v63, %v9576_v58  ;;  %v10946_v37 = vld [vmem:[%s15970_s5 + $0x3e4] sm:$0xf0]  ;;  %v9640_v44 = vld [vmem:[%s15970_s5 + $0x360] sm:$0xf] }
 0x47b   :  { %6191 = vmatpush.bf16.msra.mxu3 %v9273_v8  ;;  %6208 = vmatpush.bf16.msra.mxu0 %v9353_v39  ;;  %v10948_v8 = vld [vmem:[%s15970_s5 + $0x3f4] sm:$0xf0]  ;;  %v9504_v39 = vld [vmem:[%s15970_s5 + $0x250] sm:$0xf]  ;;  %v10930_v58 = vld [vmem:[%s15970_s5 + $0x364] sm:$0xf0] }
 0x47c   :  { %v4943_v48 = vpop.f32.mrf.mxu2  ;;  %6241 = vmatpush.bf16.msrb.mxu1 %v9521_v22  ;;  %6228 = vmatpush.bf16.msra.mxu2 %v9409_v10  ;;  %v9713_v5 = vor.u32 %v10948_v8, %v9712_v30  ;;  %v10912_v10 = vld [vmem:[%s15970_s5 + $0x2d4] sm:$0xf0]  ;;  %v9505_v3 = vor.u32 %v10896_v17, %v9504_v39  ;;  %v9649_v22 = vor.u32 %v10932_v51, %v9648_v42  ;;  %v9488_v8 = vld [vmem:[%s15970_s5 + $0x230] sm:$0xf] }
 0x47d   :  { %v14442_v24 = vadd.f32 %v4943_v48, %v4925_v61  ;;  %v10854_v61 = vld [vmem:[%s15970_s5 + $0x104] sm:$0xf0]  ;;  %v14497_v48 = vpop.f32.mrf.mxu3  ;;  %v10944_v30 = vld [vmem:[%s15970_s5 + $0x3d4] sm:$0xf0]  ;;  %v9552_v17 = vld [vmem:[%s15970_s5 + $0x2b0] sm:$0xf] }
 0x47e   :  { %v9337_v38 = vor.u32 %v10854_v61, %v9336_v32  ;;  %v14499_v49 = vpop.f32.mrf.mxu0  ;;  %v9496_v32 = vld [vmem:[%s15970_s5 + $0x240] sm:$0xf]  ;;  %v10894_v61 = vld [vmem:[%s15970_s5 + $0x244] sm:$0xf0]  ;;  %v9632_v51 = vld [vmem:[%s15970_s5 + $0x350] sm:$0xf] }
 0x47f   :  { %6260 = vmatpush.bf16.msrb.mxu3 %v9585_v36  ;;  %6209 = vmatpush.bf16.msra.mxu0 %v9345_v26  ;;  %v9569_v26 = vor.u32 %v10912_v10, %v9568_v52  ;;  %v9704_v36 = vld [vmem:[%s15970_s5 + $0x3e0] sm:$0xf]  ;;  %v10908_v52 = vld [vmem:[%s15970_s5 + $0x2b4] sm:$0xf0]  ;;  %v4818_v10 = vadd.f32 %v14040_v29, %v13107_v13 }
 0x480   :  { %6229 = vmatpush.bf16.msra.mxu2 %v9401_v2  ;;  %6242 = vmatpush.bf16.msrb.mxu1 %v9513_v40  ;;  %v9705_v2 = vor.u32 %v10946_v37, %v9704_v36  ;;  %v9641_v40 = vor.u32 %v10930_v58, %v9640_v44  ;;  %v9544_v58 = vld [vmem:[%s15970_s5 + $0x2a0] sm:$0xf] }
 0x481   :  { %5227 = vmatmul.bf16.vlgmr.msrb.gmra.mxu0 %v13854_v4  ;;  %9204 = vmatmul.msk.bf16.vlgmr.msrb.gmra.mxu2 %vm1307_vm2, %v13865_v7  ;;  %v4837_v36 = vadd.f32 %v14092_v6, %v4818_v10 }
 0x483   :  { %6210 = vmatpush.bf16.msra.mxu0 %v9337_v38  ;;  %6261 = vmatpush.bf16.msrb.mxu3 %v9577_v11  ;;  %v9497_v38 = vor.u32 %v10894_v61, %v9496_v32  ;;  %v9696_v11 = vld [vmem:[%s15970_s5 + $0x3d0] sm:$0xf]  ;;  %v4813_v32 = vadd.f32 %v13166_v46, %v13107_v13  ;;  %v9480_v46 = vld [vmem:[%s15970_s5 + $0x220] sm:$0xf] }
 0x484   :  { %6298 = vmatpush.bf16.msrb.mxu2 %v9713_v5  ;;  %6243 = vmatpush.bf16.msrb.mxu1 %v9505_v3  ;;  %v9697_v39 = vor.u32 %v10944_v30, %v9696_v11  ;;  %v10892_v5 = vld [vmem:[%s15970_s5 + $0x234] sm:$0xf0]  ;;  %v14548_v3 = vpop.f32.mrf.mxu2  ;;  %v9624_v11 = vld [vmem:[%s15970_s5 + $0x340] sm:$0xf]  ;;  %v10926_v30 = vld [vmem:[%s15970_s5 + $0x344] sm:$0xf0] }
 0x485   :  { %v9489_v42 = vor.u32 %v10892_v5, %v9488_v8  ;;  %v9680_v5 = vld [vmem:[%s15970_s5 + $0x3b0] sm:$0xf] }
 0x487   :  { %v4891_v0 = vpop.f32.mrf.mxu1  ;;  %6279 = vmatpush.bf16.msrb.mxu0 %v9649_v22  ;;  %6262 = vmatpush.bf16.msrb.mxu3 %v9569_v26  ;;  %v10928_v26 = vld [vmem:[%s15970_s5 + $0x354] sm:$0xf0] }
 0x488   :  { %v4892_v23 = vadd.f32 %v4891_v0, %v14038_v21  ;;  %v10910_v21 = vld [vmem:[%s15970_s5 + $0x2c4] sm:$0xf0]  ;;  %6299 = vmatpush.bf16.msrb.mxu2 %v9705_v2  ;;  %6244 = vmatpush.bf16.msrb.mxu1 %v9497_v38  ;;  %v9633_v0 = vor.u32 %v10928_v26, %v9632_v51  ;;  %v9553_v2 = vor.u32 %v10908_v52, %v9552_v17  ;;  %v10940_v17 = vld [vmem:[%s15970_s5 + $0x3b4] sm:$0xf0]  ;;  %v9472_v52 = vld [vmem:[%s15970_s5 + $0x210] sm:$0xf] }
 0x489   :  { %v9561_v63 = vor.u32 %v10910_v21, %v9560_v33  ;;  %v9688_v33 = vld [vmem:[%s15970_s5 + $0x3c0] sm:$0xf]  ;;  %v10942_v38 = vld [vmem:[%s15970_s5 + $0x3c4] sm:$0xf0]  ;;  %v4856_v21 = vadd.f32 %v14337_v57, %v4837_v36  ;;  %v9536_v51 = vld [vmem:[%s15970_s5 + $0x290] sm:$0xf] }
 0x48a   :  { %5194 = vmatmul.bf16.gmra.mxu1 %v13922_v35  ;;  %5213 = vmatmul.bf16.gmra.mxu3 %v13924_v45  ;;  %v9689_v6 = vor.u32 %v10942_v38, %v9688_v33  ;;  %v10904_v36 = vld [vmem:[%s15970_s5 + $0x294] sm:$0xf0] }
 0x48b   :  { %6280 = vmatpush.bf16.msrb.mxu0 %v9641_v40  ;;  %6263 = vmatpush.bf16.msrb.mxu3 %v9561_v63  ;;  %v4832_v63 = vadd.f32 %v13195_v56, %v4813_v32  ;;  %v10906_v40 = vld [vmem:[%s15970_s5 + $0x2a4] sm:$0xf0]  ;;  %v4875_v56 = vadd.f32 %v14383_v18, %v4856_v21  ;;  %v10888_v18 = vld [vmem:[%s15970_s5 + $0x214] sm:$0xf0] }
 0x48c   :  { %6300 = vmatpush.bf16.msrb.mxu2 %v9697_v39  ;;  %6245 = vmatpush.bf16.msrb.mxu1 %v9489_v42  ;;  %v9545_v8 = vor.u32 %v10906_v40, %v9544_v58  ;;  %v9625_v39 = vor.u32 %v10926_v30, %v9624_v11  ;;  %v9681_v42 = vor.u32 %v10940_v17, %v9680_v5  ;;  %v9528_v11 = vld [vmem:[%s15970_s5 + $0x280] sm:$0xf]  ;;  %v10936_v5 = vld [vmem:[%s15970_s5 + $0x394] sm:$0xf0] }
 0x48d   :  { %v4910_v22 = vpop.f32.mrf.mxu3  ;;  %v4851_v10 = vadd.f32 %v13928_v62, %v4832_v63  ;;  %v9616_v62 = vld [vmem:[%s15970_s5 + $0x330] sm:$0xf]  ;;  %v9608_v30 = vld [vmem:[%s15970_s5 + $0x320] sm:$0xf] }
 0x48e   :  { %v4911_v37 = vadd.f32 %v4910_v22, %v4892_v23  ;;  %v4929_v29 = vpop.f32.mrf.mxu0  ;;  %v10890_v23 = vld [vmem:[%s15970_s5 + $0x224] sm:$0xf0] }
 0x48f   :  { %v4893_v61 = vpop.f32.mrf.mxu1  ;;  %6281 = vmatpush.bf16.msrb.mxu0 %v9633_v0  ;;  %v9481_v57 = vor.u32 %v10890_v23, %v9480_v46  ;;  %6264 = vmatpush.bf16.msrb.mxu3 %v9553_v2  ;;  %v9473_v0 = vor.u32 %v10888_v18, %v9472_v52  ;;  %v9537_v46 = vor.u32 %v10904_v36, %v9536_v51  ;;  %v9672_v23 = vld [vmem:[%s15970_s5 + $0x3a0] sm:$0xf]  ;;  %v9776_v18 = vld [vmem:[%s15970_s5 + $0x470] sm:$0xf]  ;;  %v10980_v36 = vld [vmem:[%s15970_s5 + $0x4f4] sm:$0xf0] }
 0x490   :  { %v4930_v44 = vadd.f32 %v4929_v29, %v4911_v37  ;;  %6301 = vmatpush.bf16.msrb.mxu2 %v9689_v6  ;;  %v4894_v26 = vadd.f32 %v4893_v61, %v4875_v56  ;;  %v10924_v37 = vld [vmem:[%s15970_s5 + $0x334] sm:$0xf0]  ;;  %v4870_v29 = vadd.f32 %v13981_v55, %v4851_v10  ;;  %v10938_v55 = vld [vmem:[%s15970_s5 + $0x3a4] sm:$0xf0]  ;;  %v9600_v10 = vld [vmem:[%s15970_s5 + $0x310] sm:$0xf] }
 0x491   :  { %5232 = vmatmul.bf16.gmra.mxu0 %v13968_v15  ;;  %9205 = vmatmul.msk.bf16.gmra.mxu2 %vm1307_vm2, %v13979_v20  ;;  %v9617_v61 = vor.u32 %v10924_v37, %v9616_v62  ;;  %v9673_v63 = vor.u32 %v10938_v55, %v9672_v23 }
 0x492   :  { %6246 = vmatpush.bf16.msrb.mxu1 %v9481_v57  ;;  %v4889_v21 = vadd.f32 %v14450_v34, %v4870_v29  ;;  %v9464_v34 = vld [vmem:[%s15970_s5 + $0x200] sm:$0xf]  ;;  %v10886_v57 = vld [vmem:[%s15970_s5 + $0x204] sm:$0xf0] }
 0x493   :  { %6282 = vmatpush.bf16.msrb.mxu0 %v9625_v39  ;;  %6265 = vmatpush.bf16.msrb.mxu3 %v9545_v8  ;;  %v9465_v40 = vor.u32 %v10886_v57, %v9464_v34  ;;  %v10922_v8 = vld [vmem:[%s15970_s5 + $0x324] sm:$0xf0]  ;;  %v9664_v39 = vld [vmem:[%s15970_s5 + $0x390] sm:$0xf]  ;;  %v9832_v57 = vld [vmem:[%s15970_s5 + $0x4e0] sm:$0xf] }
 0x494   :  { %v4948_v22 = vpop.f32.mrf.mxu2  ;;  %6302 = vmatpush.bf16.msrb.mxu2 %v9681_v42  ;;  %v4908_v56 = vadd.f32 %v14497_v48, %v4889_v21  ;;  %v9609_v48 = vor.u32 %v10922_v8, %v9608_v30  ;;  %v9665_v52 = vor.u32 %v10936_v5, %v9664_v39  ;;  %v10920_v42 = vld [vmem:[%s15970_s5 + $0x314] sm:$0xf0]  ;;  %v10962_v34 = vld [vmem:[%s15970_s5 + $0x464] sm:$0xf0]  ;;  %v9760_v39 = vld [vmem:[%s15970_s5 + $0x450] sm:$0xf] }
 0x495   :  { %v4912_v2 = vpop.f32.mrf.mxu3  ;;  %v14615_v32 = vadd.f32 %v4948_v22, %v4930_v44  ;;  %v10964_v22 = vld [vmem:[%s15970_s5 + $0x474] sm:$0xf0] }
 0x496   :  { %v4913_v33 = vadd.f32 %v4912_v2, %v4894_v26  ;;  %v4931_v38 = vpop.f32.mrf.mxu0  ;;  %6247 = vmatpush.bf16.msrb.mxu1 %v9473_v0  ;;  %v4927_v51 = vadd.f32 %v14499_v49, %v4908_v56  ;;  %v9840_v0 = vld [vmem:[%s15970_s5 + $0x4f0] sm:$0xf]  ;;  %v9777_v29 = vor.u32 %v10964_v22, %v9776_v18  ;;  %v11000_v8 = vld [vmem:[%s15970_s5 + $0x594] sm:$0xf0] }
 0x497   :  { %v4962_v6 = vpop.f32.mrf.mxu1  ;;  %6283 = vmatpush.bf16.msrb.mxu0 %v9617_v61  ;;  %6266 = vmatpush.bf16.msrb.mxu3 %v9537_v46  ;;  %v9841_v49 = vor.u32 %v10980_v36, %v9840_v0  ;;  %v10934_v46 = vld [vmem:[%s15970_s5 + $0x384] sm:$0xf0]  ;;  %v9920_v56 = vld [vmem:[%s15970_s5 + $0x590] sm:$0xf] }
 0x498   :  { %v4932_v58 = vadd.f32 %v4931_v38, %v4913_v33  ;;  %v4963_v44 = vadd.f32 %v4962_v6, %v14442_v24  ;;  %v10902_v24 = vld [vmem:[%s15970_s5 + $0x284] sm:$0xf0]  ;;  %6303 = vmatpush.bf16.msrb.mxu2 %v9673_v63  ;;  %v4946_v2 = vadd.f32 %v14548_v3, %v4927_v51  ;;  %v9601_v38 = vor.u32 %v10920_v42, %v9600_v10  ;;  %v9656_v6 = vld [vmem:[%s15970_s5 + $0x380] sm:$0xf]  ;;  %v9904_v51 = vld [vmem:[%s15970_s5 + $0x570] sm:$0xf] }
 0x499   :  { %v9529_v17 = vor.u32 %v10902_v24, %v9528_v11  ;;  %v9592_v3 = vld [vmem:[%s15970_s5 + $0x300] sm:$0xf]  ;;  %v9921_v5 = vor.u32 %v11000_v8, %v9920_v56 }
 0x49a   :  { %6173 = vmatmul.bf16.vlgmr.msra.gmra.mxu1 %v12852_v50  ;;  %6192 = vmatmul.bf16.vlgmr.msra.gmra.mxu3 %v12854_v19  ;;  %v9768_v63 = vld [vmem:[%s15970_s5 + $0x460] sm:$0xf] }
 0x49b   :  { %6248 = vmatpush.bf16.msrb.mxu1 %v9465_v40  ;;  %6284 = vmatpush.bf16.msrb.mxu0 %v9609_v48  ;;  %v10978_v40 = vld [vmem:[%s15970_s5 + $0x4e4] sm:$0xf0]  ;;  %v9769_v24 = vor.u32 %v10962_v34, %v9768_v63  ;;  %v9824_v48 = vld [vmem:[%s15970_s5 + $0x4d0] sm:$0xf]  ;;  %v10972_v34 = vld [vmem:[%s15970_s5 + $0x4b4] sm:$0xf0] }
 0x49c   :  { %v4950_v26 = vpop.f32.mrf.mxu2  ;;  %6267 = vmatpush.bf16.msrb.mxu3 %v9529_v17  ;;  %6304 = vmatpush.bf16.msrb.mxu2 %v9665_v52  ;;  %v9833_v30 = vor.u32 %v10978_v40, %v9832_v57  ;;  %v10960_v17 = vld [vmem:[%s15970_s5 + $0x454] sm:$0xf0]  ;;  %v9808_v63 = vld [vmem:[%s15970_s5 + $0x4b0] sm:$0xf] }
 0x49d   :  { %v14671_v62 = vadd.f32 %v4950_v26, %v4932_v58  ;;  %v4981_v37 = vpop.f32.mrf.mxu3  ;;  %v9657_v58 = vor.u32 %v10934_v46, %v9656_v6  ;;  %v10976_v52 = vld [vmem:[%s15970_s5 + $0x4d4] sm:$0xf0]  ;;  %v9761_v42 = vor.u32 %v10960_v17, %v9760_v39  ;;  %v9896_v46 = vld [vmem:[%s15970_s5 + $0x560] sm:$0xf]  ;;  %v9888_v57 = vld [vmem:[%s15970_s5 + $0x550] sm:$0xf] }
 0x49e   :  { %v4982_v61 = vadd.f32 %v4981_v37, %v4963_v44  ;;  %v5000_v33 = vpop.f32.mrf.mxu0  ;;  %v10918_v44 = vld [vmem:[%s15970_s5 + $0x304] sm:$0xf0]  ;;  %v9825_v18 = vor.u32 %v10976_v52, %v9824_v48  ;;  %v10996_v26 = vld [vmem:[%s15970_s5 + $0x574] sm:$0xf0] }
 0x49f   :  { %v4964_v21 = vpop.f32.mrf.mxu1  ;;  %6317 = vmatpush.bf16.msra.mxu1 %v9777_v29  ;;  %6285 = vmatpush.bf16.msrb.mxu0 %v9601_v38  ;;  %v9593_v11 = vor.u32 %v10918_v44, %v9592_v3  ;;  %v9905_v36 = vor.u32 %v10996_v26, %v9904_v51  ;;  %v10958_v38 = vld [vmem:[%s15970_s5 + $0x444] sm:$0xf0]  ;;  %v9744_v3 = vld [vmem:[%s15970_s5 + $0x430] sm:$0xf]  ;;  %v10956_v44 = vld [vmem:[%s15970_s5 + $0x434] sm:$0xf0] }
 0x4a0   :  { %v4965_v23 = vadd.f32 %v4964_v21, %v4946_v2  ;;  %v5001_v55 = vadd.f32 %v5000_v33, %v4982_v61  ;;  %6336 = vmatpush.bf16.msra.mxu3 %v9841_v49  ;;  %6305 = vmatpush.bf16.msrb.mxu2 %v9657_v58  ;;  %v9752_v33 = vld [vmem:[%s15970_s5 + $0x440] sm:$0xf]  ;;  %v10992_v40 = vld [vmem:[%s15970_s5 + $0x554] sm:$0xf0]  ;;  %v10970_v26 = vld [vmem:[%s15970_s5 + $0x4a4] sm:$0xf0] }
 0x4a1   :  { %6211 = vmatmul.bf16.vlgmr.msra.gmra.mxu0 %v13183_v31  ;;  %6230 = vmatmul.bf16.vlgmr.msra.gmra.mxu2 %v13185_v43  ;;  %v9816_v21 = vld [vmem:[%s15970_s5 + $0x4c0] sm:$0xf]  ;;  %v9753_v6 = vor.u32 %v10958_v38, %v9752_v33  ;;  %v9889_v17 = vor.u32 %v10992_v40, %v9888_v57  ;;  %v10952_v38 = vld [vmem:[%s15970_s5 + $0x414] sm:$0xf0] }
 0x4a2   :  { %v9800_v51 = vld [vmem:[%s15970_s5 + $0x4a0] sm:$0xf] }
 0x4a3   :  { %6318 = vmatpush.bf16.msra.mxu1 %v9769_v24  ;;  %6286 = vmatpush.bf16.msrb.mxu0 %v9593_v11  ;;  %v9745_v24 = vor.u32 %v10956_v44, %v9744_v3  ;;  %v11115_v57 = vld [vmem:[%s15971_s6] sm:$0x3] }
 0x4a4   :  { %v5019_v10 = vpop.f32.mrf.mxu2  ;;  %6337 = vmatpush.bf16.msra.mxu3 %v9833_v30  ;;  %6380 = vmatpush.bf16.msra.mxu2 %v9921_v5  ;;  %v9809_v30 = vor.u32 %v10972_v34, %v9808_v63  ;;  %v14817_v40 = vperm.slane %v11115_v57, 1  ;;  %v9322_v57 = vld [vmem:[%s15970_s5 + $0xe8] sm:$0xf0] }
 0x4a5   :  { %v4983_v22 = vpop.f32.mrf.mxu3  ;;  %v14724_v0 = vadd.f32 %v5019_v10, %v5001_v55 }
 0x4a6   :  { %v4984_v37 = vadd.f32 %v4983_v22, %v4965_v23  ;;  %v5002_v29 = vpop.f32.mrf.mxu0  ;;  %v10994_v23 = vld [vmem:[%s15970_s5 + $0x564] sm:$0xf0]  ;;  %v9880_v22 = vld [vmem:[%s15970_s5 + $0x540] sm:$0xf] }
 0x4a7   :  { %v4967_v49 = vpop.f32.mrf.mxu1  ;;  %6355 = vmatpush.bf16.msra.mxu0 %v9905_v36  ;;  %6319 = vmatpush.bf16.msra.mxu1 %v9761_v42  ;;  %v9897_v58 = vor.u32 %v10994_v23, %v9896_v46  ;;  %v9736_v42 = vld [vmem:[%s15970_s5 + $0x420] sm:$0xf]  ;;  %v10990_v36 = vld [vmem:[%s15970_s5 + $0x544] sm:$0xf0] }
 0x4a8   :  { %v4968_v2 = vadd.f32 %v4967_v49, %v14615_v32  ;;  %v5003_v61 = vadd.f32 %v5002_v29, %v4984_v37  ;;  %6338 = vmatpush.bf16.msra.mxu3 %v9825_v18  ;;  %v10974_v32 = vld [vmem:[%s15970_s5 + $0x4c4] sm:$0xf0]  ;;  %v9801_v37 = vor.u32 %v10970_v26, %v9800_v51  ;;  %v9881_v29 = vor.u32 %v10990_v36, %v9880_v22  ;;  %v9912_v49 = vld [vmem:[%s15970_s5 + $0x580] sm:$0xf]  ;;  %v10851_v26 = vld [vmem:[%s15970_s5 + $0xf4] sm:$0xf] }
 0x4a9   :  { %v9817_v55 = vor.u32 %v10974_v32, %v9816_v21  ;;  %v10954_v18 = vld [vmem:[%s15970_s5 + $0x424] sm:$0xf0]  ;;  %v9792_v21 = vld [vmem:[%s15970_s5 + $0x490] sm:$0xf]  ;;  %v9330_v22 = vld [vmem:[%s15970_s5 + $0xf8] sm:$0xf0] }
 0x4aa   :  { %6178 = vmatmul.bf16.gmra.mxu1 %v12885_v14  ;;  %6197 = vmatmul.bf16.gmra.mxu3 %v12889_v47 }
 0x4ab   :  { %6320 = vmatpush.bf16.msra.mxu1 %v9753_v6  ;;  %6356 = vmatpush.bf16.msra.mxu0 %v9897_v58  ;;  %v10968_v6 = vld [vmem:[%s15970_s5 + $0x494] sm:$0xf0] }
 0x4ac   :  { %v5021_v11 = vpop.f32.mrf.mxu2  ;;  %6339 = vmatpush.bf16.msra.mxu3 %v9817_v55  ;;  %v9793_v23 = vor.u32 %v10968_v6, %v9792_v21  ;;  %v9872_v55 = vld [vmem:[%s15970_s5 + $0x530] sm:$0xf]  ;;  %v10988_v58 = vld [vmem:[%s15970_s5 + $0x534] sm:$0xf0] }
 0x4ad   :  { %v4986_v56 = vpop.f32.mrf.mxu3  ;;  %v14765_v8 = vadd.f32 %v5021_v11, %v5003_v61  ;;  %v9728_v61 = vld [vmem:[%s15970_s5 + $0x410] sm:$0xf] }
 0x4ae   :  { %v4987_v39 = vadd.f32 %v4986_v56, %v4968_v2  ;;  %v5005_v5 = vpop.f32.mrf.mxu0  ;;  %v10998_v2 = vld [vmem:[%s15970_s5 + $0x584] sm:$0xf0]  ;;  %v9729_v46 = vor.u32 %v10952_v38, %v9728_v61  ;;  %v9720_v56 = vld [vmem:[%s15970_s5 + $0x400] sm:$0xf]  ;;  %v9333_v61 = vor.u32 %v10851_v26, %v9330_v22  ;;  %v10867_v26 = vld [vmem:[%s15970_s5 + $0x174] sm:$0xf] }
 0x4af   :  { %v4969_v48 = vpop.f32.mrf.mxu1  ;;  %6321 = vmatpush.bf16.msra.mxu1 %v9745_v24  ;;  %6357 = vmatpush.bf16.msra.mxu0 %v9889_v17  ;;  %v9913_v33 = vor.u32 %v10998_v2, %v9912_v49  ;;  %v9873_v24 = vor.u32 %v10988_v58, %v9872_v55  ;;  %v10984_v49 = vld [vmem:[%s15970_s5 + $0x514] sm:$0xf0]  ;;  %v9848_v55 = vld [vmem:[%s15970_s5 + $0x500] sm:$0xf]  ;;  %v10982_v58 = vld [vmem:[%s15970_s5 + $0x504] sm:$0xf0] }
 0x4b0   :  { %v4970_v52 = vadd.f32 %v4969_v48, %v14671_v62  ;;  %v5006_v10 = vadd.f32 %v5005_v5, %v4987_v39  ;;  %6340 = vmatpush.bf16.msra.mxu3 %v9809_v30  ;;  %v9737_v62 = vor.u32 %v10954_v18, %v9736_v42  ;;  %v10950_v39 = vld [vmem:[%s15970_s5 + $0x404] sm:$0xf0]  ;;  %v9784_v5 = vld [vmem:[%s15970_s5 + $0x480] sm:$0xf]  ;;  %v10835_v18 = vld [vmem:[%s15970_s5 + $0x74] sm:$0xf] }
 0x4b1   :  { %6216 = vmatmul.bf16.gmra.mxu0 %v13260_v25  ;;  %6235 = vmatmul.bf16.gmra.mxu2 %v13262_v53  ;;  %v9721_v17 = vor.u32 %v10950_v39, %v9720_v56  ;;  %v10966_v48 = vld [vmem:[%s15970_s5 + $0x484] sm:$0xf0]  ;;  %v9458_v56 = vld [vmem:[%s15970_s5 + $0x1f8] sm:$0xf0]  ;;  %v10831_v39 = vld [vmem:[%s15970_s5 + $0x54] sm:$0xf] }
 0x4b2   :  { %6381 = vmatpush.bf16.msra.mxu2 %v9913_v33  ;;  %v9785_v42 = vor.u32 %v10966_v48, %v9784_v5  ;;  %v9849_v5 = vor.u32 %v10982_v58, %v9848_v55  ;;  %v9250_v48 = vld [vmem:[%s15970_s5 + $0x58] sm:$0xf0]  ;;  %v10845_v55 = vld [vmem:[%s15970_s5 + $0xc4] sm:$0xf] }
 0x4b3   :  { %6322 = vmatpush.bf16.msra.mxu1 %v9737_v62  ;;  %6358 = vmatpush.bf16.msra.mxu0 %v9881_v29  ;;  %v9266_v62 = vld [vmem:[%s15970_s5 + $0x78] sm:$0xf0]  ;;  %v9856_v29 = vld [vmem:[%s15970_s5 + $0x510] sm:$0xf] }
 0x4b4   :  { %v5024_v32 = vpop.f32.mrf.mxu2  ;;  %6341 = vmatpush.bf16.msra.mxu3 %v9801_v37  ;;  %v9269_v2 = vor.u32 %v10835_v18, %v9266_v62  ;;  %v9394_v22 = vld [vmem:[%s15970_s5 + $0x178] sm:$0xf0] }
 0x4b5   :  { %v4988_v3 = vpop.f32.mrf.mxu3  ;;  %v14812_v44 = vadd.f32 %v5024_v32, %v5006_v10  ;;  %v10986_v10 = vld [vmem:[%s15970_s5 + $0x524] sm:$0xf0] }
 0x4b6   :  { %v4989_v63 = vadd.f32 %v4988_v3, %v4970_v52  ;;  %v5007_v34 = vpop.f32.mrf.mxu0  ;;  %v9864_v52 = vld [vmem:[%s15970_s5 + $0x520] sm:$0xf]  ;;  %v10833_v3 = vld [vmem:[%s15970_s5 + $0x64] sm:$0xf] }
 0x4b7   :  { %v5038_v11 = vpop.f32.mrf.mxu1  ;;  %6323 = vmatpush.bf16.msra.mxu1 %v9729_v46  ;;  %6359 = vmatpush.bf16.msra.mxu0 %v9873_v24  ;;  %v9865_v51 = vor.u32 %v10986_v10, %v9864_v52  ;;  %v9857_v46 = vor.u32 %v10984_v49, %v9856_v29  ;;  %v10847_v52 = vld [vmem:[%s15970_s5 + $0xd4] sm:$0xf]  ;;  %v9314_v10 = vld [vmem:[%s15970_s5 + $0xd8] sm:$0xf0]  ;;  %v9397_v29 = vor.u32 %v10867_v26, %v9394_v22 }
 0x4b8   :  { %v5008_v30 = vadd.f32 %v5007_v34, %v4989_v63  ;;  %6342 = vmatpush.bf16.msra.mxu3 %v9793_v23  ;;  %v5039_v36 = vadd.f32 %v5038_v11, %v14817_v40  ;;  %v9258_v63 = vld [vmem:[%s15970_s5 + $0x68] sm:$0xf0]  ;;  %v10849_v34 = vld [vmem:[%s15970_s5 + $0xe4] sm:$0xf]  ;;  %v9317_v62 = vor.u32 %v10847_v52, %v9314_v10 }
 0x4b9   :  { %v9261_v11 = vor.u32 %v10833_v3, %v9258_v63  ;;  %v9325_v24 = vor.u32 %v10849_v34, %v9322_v57  ;;  %v9306_v3 = vld [vmem:[%s15970_s5 + $0xc8] sm:$0xf0]  ;;  %v10865_v63 = vld [vmem:[%s15970_s5 + $0x164] sm:$0xf] }
 0x4ba   :  { %6249 = vmatmul.bf16.vlgmr.msrb.gmra.mxu1 %v13287_v12  ;;  %6268 = vmatmul.bf16.vlgmr.msrb.gmra.mxu3 %v13289_v54  ;;  %v9386_v34 = vld [vmem:[%s15970_s5 + $0x168] sm:$0xf0]  ;;  %v9309_v57 = vor.u32 %v10845_v55, %v9306_v3  ;;  %v10861_v3 = vld [vmem:[%s15970_s5 + $0x144] sm:$0xf] }
 0x4bb   :  { %6324 = vmatpush.bf16.msra.mxu1 %v9721_v17  ;;  %6360 = vmatpush.bf16.msra.mxu0 %v9865_v51  ;;  %v9253_v51 = vor.u32 %v10831_v39, %v9250_v48  ;;  %v9298_v48 = vld [vmem:[%s15970_s5 + $0xb8] sm:$0xf0] }
 0x4bc   :  { %v5026_v37 = vpop.f32.mrf.mxu2  ;;  %6343 = vmatpush.bf16.msra.mxu3 %v9785_v42 }
 0x4bd   :  { %v14858_v33 = vadd.f32 %v5026_v37, %v5008_v30  ;;  %v5057_v38 = vpop.f32.mrf.mxu3  ;;  %v10883_v30 = vld [vmem:[%s15970_s5 + $0x1f4] sm:$0xf] }
 0x4be   :  { %v5058_v21 = vadd.f32 %v5057_v38, %v5039_v36  ;;  %v5076_v6 = vpop.f32.mrf.mxu0  ;;  %v9461_v17 = vor.u32 %v10883_v30, %v9458_v56  ;;  %v9450_v38 = vld [vmem:[%s15970_s5 + $0x1e8] sm:$0xf0]  ;;  %v9442_v30 = vld [vmem:[%s15970_s5 + $0x1d8] sm:$0xf0]  ;;  %v10827_v56 = vld [vmem:[%s15970_s5 + $0x34] sm:$0xf] }
 0x4bf   :  { %6393 = vmatpush.bf16.msrb.mxu1 %v9269_v2  ;;  %v5040_v32 = vpop.f32.mrf.mxu1  ;;  %6361 = vmatpush.bf16.msra.mxu0 %v9857_v46  ;;  %v10829_v46 = vld [vmem:[%s15970_s5 + $0x44] sm:$0xf] }
 0x4c0   :  { %6412 = vmatpush.bf16.msrb.mxu3 %v9333_v61  ;;  %v5077_v23 = vadd.f32 %v5076_v6, %v5058_v21  ;;  %v5041_v42 = vadd.f32 %v5040_v32, %v14817_v40  ;;  %v10881_v61 = vld [vmem:[%s15970_s5 + $0x1e4] sm:$0xf] }
 0x4c1   :  { %6287 = vmatmul.bf16.vlgmr.msrb.gmra.mxu0 %v13560_v60  ;;  %6306 = vmatmul.bf16.vlgmr.msrb.gmra.mxu2 %v13562_v27  ;;  %v9453_v6 = vor.u32 %v10881_v61, %v9450_v38  ;;  %v9434_v61 = vld [vmem:[%s15970_s5 + $0x1c8] sm:$0xf0] }
 0x4c2   :  { %6450 = vmatpush.bf16.msrb.mxu2 %v9461_v17  ;;  %v10843_v17 = vld [vmem:[%s15970_s5 + $0xb4] sm:$0xf] }
 0x4c3   :  { %6394 = vmatpush.bf16.msrb.mxu1 %v9261_v11  ;;  %6362 = vmatpush.bf16.msra.mxu0 %v9849_v5  ;;  %v9389_v11 = vor.u32 %v10865_v63, %v9386_v34  ;;  %v9234_v5 = vld [vmem:[%s15970_s5 + $0x38] sm:$0xf0]  ;;  %v9370_v63 = vld [vmem:[%s15970_s5 + $0x148] sm:$0xf0] }
 0x4c4   :  { %v5095_v18 = vpop.f32.mrf.mxu2  ;;  %6413 = vmatpush.bf16.msrb.mxu3 %v9325_v24  ;;  %v10879_v24 = vld [vmem:[%s15970_s5 + $0x1d4] sm:$0xf] }
 0x4c5   :  { %v5059_v36 = vpop.f32.mrf.mxu3  ;;  %v14905_v37 = vadd.f32 %v5095_v18, %v5077_v23  ;;  %v9242_v23 = vld [vmem:[%s15970_s5 + $0x48] sm:$0xf0]  ;;  %v9445_v39 = vor.u32 %v10879_v24, %v9442_v30  ;;  %v9301_v18 = vor.u32 %v10843_v17, %v9298_v48  ;;  %v9426_v24 = vld [vmem:[%s15970_s5 + $0x1b8] sm:$0xf0]  ;;  %v10823_v30 = vld [vmem:[%s15970_s5 + $0x14] sm:$0xf] }
 0x4c6   :  { %v5060_v49 = vadd.f32 %v5059_v36, %v5041_v42  ;;  %v5078_v2 = vpop.f32.mrf.mxu0  ;;  %6451 = vmatpush.bf16.msrb.mxu2 %v9453_v6  ;;  %v9245_v58 = vor.u32 %v10829_v46, %v9242_v23  ;;  %v9237_v42 = vor.u32 %v10827_v56, %v9234_v5  ;;  %v9226_v46 = vld [vmem:[%s15970_s5 + $0x28] sm:$0xf0]  ;;  %v10841_v23 = vld [vmem:[%s15970_s5 + $0xa4] sm:$0xf]  ;;  %v10839_v5 = vld [vmem:[%s15970_s5 + $0x94] sm:$0xf] }
 0x4c7   :  { %v5043_v21 = vpop.f32.mrf.mxu1  ;;  %6395 = vmatpush.bf16.msrb.mxu1 %v9253_v51  ;;  %6431 = vmatpush.bf16.msrb.mxu0 %v9397_v29  ;;  %v10863_v51 = vld [vmem:[%s15970_s5 + $0x154] sm:$0xf]  ;;  %v9282_v17 = vld [vmem:[%s15970_s5 + $0x98] sm:$0xf0] }
 0x4c8   :  { %v5079_v32 = vadd.f32 %v5078_v2, %v5060_v49  ;;  %6414 = vmatpush.bf16.msrb.mxu3 %v9317_v62  ;;  %v5044_v52 = vadd.f32 %v5043_v21, %v14817_v40  ;;  %v9378_v62 = vld [vmem:[%s15970_s5 + $0x158] sm:$0xf0]  ;;  %v10877_v2 = vld [vmem:[%s15970_s5 + $0x1c4] sm:$0xf] }
 0x4c9   :  { %v9381_v49 = vor.u32 %v10863_v51, %v9378_v62  ;;  %v9437_v21 = vor.u32 %v10877_v2, %v9434_v61  ;;  %v9362_v51 = vld [vmem:[%s15970_s5 + $0x138] sm:$0xf0]  ;;  %v9418_v2 = vld [vmem:[%s15970_s5 + $0x1a8] sm:$0xf0] }
 0x4ca   :  { %6254 = vmatmul.bf16.gmra.mxu1 %v13695_v16  ;;  %6273 = vmatmul.bf16.gmra.mxu3 %v13697_v59 }
 0x4cb   :  { %6396 = vmatpush.bf16.msrb.mxu1 %v9245_v58  ;;  %6432 = vmatpush.bf16.msrb.mxu0 %v9389_v11  ;;  %v9290_v58 = vld [vmem:[%s15970_s5 + $0xa8] sm:$0xf0]  ;;  %v10875_v11 = vld [vmem:[%s15970_s5 + $0x1b4] sm:$0xf] }
 0x4cc   :  { %v5097_v10 = vpop.f32.mrf.mxu2  ;;  %6415 = vmatpush.bf16.msrb.mxu3 %v9309_v57  ;;  %6452 = vmatpush.bf16.msrb.mxu2 %v9445_v39  ;;  %v9293_v34 = vor.u32 %v10841_v23, %v9290_v58  ;;  %v9373_v57 = vor.u32 %v10861_v3, %v9370_v63  ;;  %v9429_v56 = vor.u32 %v10875_v11, %v9426_v24  ;;  %v9218_v39 = vld [vmem:[%s15970_s5 + $0x18] sm:$0xf0]  ;;  %v9210_v23 = vld [vmem:[%s15970_s5 + $0x8] sm:$0xf0] }
 0x4cd   :  { %v5062_v26 = vpop.f32.mrf.mxu3  ;;  %v14958_v22 = vadd.f32 %v5097_v10, %v5079_v32  ;;  %v10825_v32 = vld [vmem:[%s15970_s5 + $0x24] sm:$0xf]  ;;  %v9221_v10 = vor.u32 %v10823_v30, %v9218_v39  ;;  %v9274_v3 = vld [vmem:[%s15970_s5 + $0x88] sm:$0xf0]  ;;  %v9410_v11 = vld [vmem:[%s15970_s5 + $0x198] sm:$0xf0] }
 0x4ce   :  { %v5063_v36 = vadd.f32 %v5062_v26, %v5044_v52  ;;  %v5081_v29 = vpop.f32.mrf.mxu0  ;;  %v9229_v55 = vor.u32 %v10825_v32, %v9226_v46  ;;  %v9354_v63 = vld [vmem:[%s15970_s5 + $0x128] sm:$0xf0]  ;;  %v10899_v39 = vld [vmem:[%s15970_s5 + $0x274] sm:$0xf] }
 0x4cf   :  { %v5045_v38 = vpop.f32.mrf.mxu1  ;;  %6397 = vmatpush.bf16.msrb.mxu1 %v9237_v42  ;;  %6433 = vmatpush.bf16.msrb.mxu0 %v9381_v49  ;;  %v9285_v42 = vor.u32 %v10839_v5, %v9282_v17  ;;  %v10873_v49 = vld [vmem:[%s15970_s5 + $0x1a4] sm:$0xf]  ;;  %v9522_v5 = vld [vmem:[%s15970_s5 + $0x278] sm:$0xf0] }
 0x4d0   :  { %v5082_v6 = vadd.f32 %v5081_v29, %v5063_v36  ;;  %6416 = vmatpush.bf16.msrb.mxu3 %v9301_v18  ;;  %6453 = vmatpush.bf16.msrb.mxu2 %v9437_v21  ;;  %v5046_v48 = vadd.f32 %v5045_v38, %v14817_v40  ;;  %v10859_v18 = vld [vmem:[%s15970_s5 + $0x134] sm:$0xf]  ;;  %v9421_v21 = vor.u32 %v10873_v49, %v9418_v2  ;;  %v10869_v49 = vld [vmem:[%s15970_s5 + $0x184] sm:$0xf]  ;;  %v9402_v2 = vld [vmem:[%s15970_s5 + $0x188] sm:$0xf0] }
 0x4d1   :  { %6292 = vmatmul.bf16.gmra.mxu0 %v13743_v1  ;;  %6311 = vmatmul.bf16.gmra.mxu2 %v13745_v9  ;;  %v9365_v38 = vor.u32 %v10859_v18, %v9362_v51 }
 0x4d3   :  { %6398 = vmatpush.bf16.msrb.mxu1 %v9229_v55  ;;  %6434 = vmatpush.bf16.msrb.mxu0 %v9373_v57  ;;  %v10837_v55 = vld [vmem:[%s15970_s5 + $0x84] sm:$0xf]  ;;  %v10871_v57 = vld [vmem:[%s15970_s5 + $0x194] sm:$0xf] }
 0x4d4   :  { %v5100_v52 = vpop.f32.mrf.mxu2  ;;  %6417 = vmatpush.bf16.msrb.mxu3 %v9293_v34  ;;  %6454 = vmatpush.bf16.msrb.mxu2 %v9429_v56  ;;  %v9277_v34 = vor.u32 %v10837_v55, %v9274_v3  ;;  %v9413_v30 = vor.u32 %v10871_v57, %v9410_v11  ;;  %v10855_v56 = vld [vmem:[%s15970_s5 + $0x114] sm:$0xf]  ;;  %v10897_v55 = vld [vmem:[%s15970_s5 + $0x264] sm:$0xf]  ;;  %v9578_v3 = vld [vmem:[%s15970_s5 + $0x2e8] sm:$0xf0] }
 0x4d5   :  { %v5064_v62 = vpop.f32.mrf.mxu3  ;;  %v15011_v26 = vadd.f32 %v5100_v52, %v5082_v6  ;;  %v10821_v6 = vld [vmem:[%s15970_s5 + $0x4] sm:$0xf]  ;;  %v9525_v52 = vor.u32 %v10899_v39, %v9522_v5  ;;  %v9714_v57 = vld [vmem:[%s15970_s5 + $0x3f8] sm:$0xf0]  ;;  %v10895_v11 = vld [vmem:[%s15970_s5 + $0x254] sm:$0xf] }
 0x4d6   :  { %v5065_v36 = vadd.f32 %v5064_v62, %v5046_v48  ;;  %v5083_v29 = vpop.f32.mrf.mxu0  ;;  %v9213_v58 = vor.u32 %v10821_v6, %v9210_v23  ;;  %v9346_v48 = vld [vmem:[%s15970_s5 + $0x118] sm:$0xf0]  ;;  %v9338_v23 = vld [vmem:[%s15970_s5 + $0x108] sm:$0xf0]  ;;  %v10911_v39 = vld [vmem:[%s15970_s5 + $0x2d4] sm:$0xf] }
 0x4d7   :  { %v5114_v61 = vpop.f32.mrf.mxu1  ;;  %6399 = vmatpush.bf16.msrb.mxu1 %v9221_v10  ;;  %6435 = vmatpush.bf16.msrb.mxu0 %v9365_v38  ;;  %v10915_v10 = vld [vmem:[%s15970_s5 + $0x2f4] sm:$0xf]  ;;  %v9349_v38 = vor.u32 %v10855_v56, %v9346_v48  ;;  %v9506_v56 = vld [vmem:[%s15970_s5 + $0x258] sm:$0xf0] }
 0x4d8   :  { %v5084_v32 = vadd.f32 %v5083_v29, %v5065_v36  ;;  %v5115_v46 = vadd.f32 %v5114_v61, %v14905_v37  ;;  %6418 = vmatpush.bf16.msrb.mxu3 %v9285_v42  ;;  %v10857_v37 = vld [vmem:[%s15970_s5 + $0x124] sm:$0xf]  ;;  %6455 = vmatpush.bf16.msrb.mxu2 %v9421_v21  ;;  %v9586_v42 = vld [vmem:[%s15970_s5 + $0x2f8] sm:$0xf0]  ;;  %v9405_v21 = vor.u32 %v10869_v49, %v9402_v2 }
 0x4d9   :  { %v9357_v24 = vor.u32 %v10857_v37, %v9354_v63  ;;  %v9589_v62 = vor.u32 %v10915_v10, %v9586_v42  ;;  %v9570_v5 = vld [vmem:[%s15970_s5 + $0x2d8] sm:$0xf0]  ;;  %v9509_v48 = vor.u32 %v10895_v11, %v9506_v56  ;;  %v10931_v10 = vld [vmem:[%s15970_s5 + $0x374] sm:$0xf] }
 0x4da   :  { %6325 = vmatmul.bf16.vlgmr.msra.gmra.mxu1 %v13806_v41  ;;  %6344 = vmatmul.bf16.vlgmr.msra.gmra.mxu3 %v13814_v28  ;;  %v9650_v42 = vld [vmem:[%s15970_s5 + $0x378] sm:$0xf0]  ;;  %v10891_v11 = vld [vmem:[%s15970_s5 + $0x234] sm:$0xf] }
 0x4db   :  { %6400 = vmatpush.bf16.msrb.mxu1 %v9213_v58  ;;  %6436 = vmatpush.bf16.msrb.mxu0 %v9357_v24  ;;  %v10913_v58 = vld [vmem:[%s15970_s5 + $0x2e4] sm:$0xf]  ;;  %v10907_v56 = vld [vmem:[%s15970_s5 + $0x2b4] sm:$0xf] }
 0x4dc   :  { %v5102_v17 = vpop.f32.mrf.mxu2  ;;  %6419 = vmatpush.bf16.msrb.mxu3 %v9277_v34  ;;  %6456 = vmatpush.bf16.msrb.mxu2 %v9413_v30  ;;  %v9581_v63 = vor.u32 %v10913_v58, %v9578_v3  ;;  %v10947_v34 = vld [vmem:[%s15970_s5 + $0x3f4] sm:$0xf]  ;;  %v10929_v58 = vld [vmem:[%s15970_s5 + $0x364] sm:$0xf]  ;;  %v9642_v3 = vld [vmem:[%s15970_s5 + $0x368] sm:$0xf0] }
 0x4dd   :  { %v15064_v18 = vadd.f32 %v5102_v17, %v5084_v32  ;;  %v5133_v51 = vpop.f32.mrf.mxu3  ;;  %v9717_v30 = vor.u32 %v10947_v34, %v9714_v57  ;;  %v10943_v34 = vld [vmem:[%s15970_s5 + $0x3d4] sm:$0xf]  ;;  %v9698_v57 = vld [vmem:[%s15970_s5 + $0x3d8] sm:$0xf0] }
 0x4de   :  { %v5134_v36 = vadd.f32 %v5133_v51, %v5115_v46  ;;  %v5152_v29 = vpop.f32.mrf.mxu0  ;;  %v10853_v46 = vld [vmem:[%s15970_s5 + $0x104] sm:$0xf] }
 0x4df   :  { %6469 = vmatpush.bf16.msra.mxu1 %v9525_v52  ;;  %v5116_v61 = vpop.f32.mrf.mxu1  ;;  %6437 = vmatpush.bf16.msrb.mxu0 %v9349_v38  ;;  %v9341_v24 = vor.u32 %v10853_v46, %v9338_v23  ;;  %v9573_v52 = vor.u32 %v10911_v39, %v9570_v5  ;;  %v9706_v38 = vld [vmem:[%s15970_s5 + $0x3e8] sm:$0xf0]  ;;  %v9554_v39 = vld [vmem:[%s15970_s5 + $0x2b8] sm:$0xf0] }
 0x4e0   :  { %v5117_v32 = vadd.f32 %v5116_v61, %v14958_v22  ;;  %v5153_v6 = vadd.f32 %v5152_v29, %v5134_v36  ;;  %6488 = vmatpush.bf16.msra.mxu3 %v9589_v62  ;;  %v9514_v22 = vld [vmem:[%s15970_s5 + $0x268] sm:$0xf0]  ;;  %6457 = vmatpush.bf16.msrb.mxu2 %v9405_v21  ;;  %v9653_v36 = vor.u32 %v10931_v10, %v9650_v42  ;;  %v10945_v61 = vld [vmem:[%s15970_s5 + $0x3e4] sm:$0xf]  ;;  %v9634_v10 = vld [vmem:[%s15970_s5 + $0x358] sm:$0xf0] }
 0x4e1   :  { %6363 = vmatmul.bf16.vlgmr.msra.gmra.mxu0 %v13854_v4  ;;  %9926 = vmatmul.msk.bf16.vlgmr.msra.gmra.mxu2 %vm1307_vm2, %v13865_v7  ;;  %v9517_v37 = vor.u32 %v10897_v55, %v9514_v22  ;;  %v9498_v23 = vld [vmem:[%s15970_s5 + $0x248] sm:$0xf0]  ;;  %v10909_v55 = vld [vmem:[%s15970_s5 + $0x2c4] sm:$0xf] }
 0x4e3   :  { %6470 = vmatpush.bf16.msra.mxu1 %v9517_v37  ;;  %6438 = vmatpush.bf16.msrb.mxu0 %v9341_v24  ;;  %v9701_v24 = vor.u32 %v10943_v34, %v9698_v57  ;;  %v9682_v34 = vld [vmem:[%s15970_s5 + $0x3b8] sm:$0xf0]  ;;  %v10887_v57 = vld [vmem:[%s15970_s5 + $0x214] sm:$0xf] }
 0x4e4   :  { %v5171_v17 = vpop.f32.mrf.mxu2  ;;  %6489 = vmatpush.bf16.msra.mxu3 %v9581_v63  ;;  %6526 = vmatpush.bf16.msra.mxu2 %v9717_v30  ;;  %v9645_v63 = vor.u32 %v10929_v58, %v9642_v3  ;;  %v9490_v30 = vld [vmem:[%s15970_s5 + $0x238] sm:$0xf0]  ;;  %v9626_v58 = vld [vmem:[%s15970_s5 + $0x348] sm:$0xf0] }
 0x4e5   :  { %v5135_v51 = vpop.f32.mrf.mxu3  ;;  %v15118_v62 = vadd.f32 %v5171_v17, %v5153_v6  ;;  %v9709_v6 = vor.u32 %v10945_v61, %v9706_v38  ;;  %v9493_v17 = vor.u32 %v10891_v11, %v9490_v30  ;;  %v10941_v61 = vld [vmem:[%s15970_s5 + $0x3c4] sm:$0xf]  ;;  %v9690_v38 = vld [vmem:[%s15970_s5 + $0x3c8] sm:$0xf0]  ;;  %v10903_v30 = vld [vmem:[%s15970_s5 + $0x294] sm:$0xf] }
 0x4e6   :  { %v5136_v29 = vadd.f32 %v5135_v51, %v5117_v32  ;;  %v5154_v49 = vpop.f32.mrf.mxu0  ;;  %v10893_v32 = vld [vmem:[%s15970_s5 + $0x244] sm:$0xf] }
 0x4e7   :  { %v5119_v2 = vpop.f32.mrf.mxu1  ;;  %6471 = vmatpush.bf16.msra.mxu1 %v9509_v48  ;;  %6507 = vmatpush.bf16.msra.mxu0 %v9653_v36  ;;  %v9501_v22 = vor.u32 %v10893_v32, %v9498_v23  ;;  %v9557_v48 = vor.u32 %v10907_v56, %v9554_v39  ;;  %v9482_v23 = vld [vmem:[%s15970_s5 + $0x228] sm:$0xf0]  ;;  %v9538_v56 = vld [vmem:[%s15970_s5 + $0x298] sm:$0xf0] }
 0x4e8   :  { %v5120_v21 = vadd.f32 %v5119_v2, %v15011_v26  ;;  %v5155_v46 = vadd.f32 %v5154_v49, %v5136_v29  ;;  %6490 = vmatpush.bf16.msra.mxu3 %v9573_v52  ;;  %v9562_v26 = vld [vmem:[%s15970_s5 + $0x2c8] sm:$0xf0]  ;;  %6527 = vmatpush.bf16.msra.mxu2 %v9709_v6  ;;  %v10927_v52 = vld [vmem:[%s15970_s5 + $0x354] sm:$0xf] }
 0x4e9   :  { %v9565_v37 = vor.u32 %v10909_v55, %v9562_v26  ;;  %v9637_v49 = vor.u32 %v10927_v52, %v9634_v10  ;;  %v10905_v55 = vld [vmem:[%s15970_s5 + $0x2a4] sm:$0xf]  ;;  %v9618_v52 = vld [vmem:[%s15970_s5 + $0x338] sm:$0xf0] }
 0x4ea   :  { %6330 = vmatmul.bf16.gmra.mxu1 %v13922_v35  ;;  %6349 = vmatmul.bf16.gmra.mxu3 %v13924_v45  ;;  %v10925_v26 = vld [vmem:[%s15970_s5 + $0x344] sm:$0xf] }
 0x4eb   :  { %6472 = vmatpush.bf16.msra.mxu1 %v9501_v22  ;;  %6508 = vmatpush.bf16.msra.mxu0 %v9645_v63  ;;  %v9546_v22 = vld [vmem:[%s15970_s5 + $0x2a8] sm:$0xf0]  ;;  %v10939_v63 = vld [vmem:[%s15970_s5 + $0x3b4] sm:$0xf] }
 0x4ec   :  { %v5173_v5 = vpop.f32.mrf.mxu2  ;;  %6491 = vmatpush.bf16.msra.mxu3 %v9565_v37  ;;  %6528 = vmatpush.bf16.msra.mxu2 %v9701_v24  ;;  %v9549_v3 = vor.u32 %v10905_v55, %v9546_v22  ;;  %v9629_v37 = vor.u32 %v10925_v26, %v9626_v58  ;;  %v9685_v11 = vor.u32 %v10939_v63, %v9682_v34  ;;  %v9474_v24 = vld [vmem:[%s15970_s5 + $0x218] sm:$0xf0]  ;;  %v10901_v55 = vld [vmem:[%s15970_s5 + $0x284] sm:$0xf]  ;;  %v9610_v26 = vld [vmem:[%s15970_s5 + $0x328] sm:$0xf0] }
 0x4ed   :  { %v5138_v42 = vpop.f32.mrf.mxu3  ;;  %v15171_v51 = vadd.f32 %v5173_v5, %v5155_v46  ;;  %v9693_v46 = vor.u32 %v10941_v61, %v9690_v38  ;;  %v9477_v5 = vor.u32 %v10887_v57, %v9474_v24  ;;  %v10937_v61 = vld [vmem:[%s15970_s5 + $0x3a4] sm:$0xf]  ;;  %v9674_v38 = vld [vmem:[%s15970_s5 + $0x3a8] sm:$0xf0]  ;;  %v10919_v57 = vld [vmem:[%s15970_s5 + $0x314] sm:$0xf] }
 0x4ee   :  { %v5139_v36 = vadd.f32 %v5138_v42, %v5120_v21  ;;  %v5157_v29 = vpop.f32.mrf.mxu0  ;;  %v10889_v21 = vld [vmem:[%s15970_s5 + $0x224] sm:$0xf]  ;;  %v9602_v24 = vld [vmem:[%s15970_s5 + $0x318] sm:$0xf0] }
 0x4ef   :  { %v5121_v2 = vpop.f32.mrf.mxu1  ;;  %6473 = vmatpush.bf16.msra.mxu1 %v9493_v17  ;;  %6509 = vmatpush.bf16.msra.mxu0 %v9637_v49  ;;  %v9541_v17 = vor.u32 %v10903_v30, %v9538_v56  ;;  %v10921_v22 = vld [vmem:[%s15970_s5 + $0x324] sm:$0xf]  ;;  %v10979_v56 = vld [vmem:[%s15970_s5 + $0x4f4] sm:$0xf] }
 0x4f0   :  { %v5122_v6 = vadd.f32 %v5121_v2, %v15064_v18  ;;  %v5158_v32 = vadd.f32 %v5157_v29, %v5139_v36  ;;  %6492 = vmatpush.bf16.msra.mxu3 %v9557_v48  ;;  %v9485_v18 = vor.u32 %v10889_v21, %v9482_v23  ;;  %6529 = vmatpush.bf16.msra.mxu2 %v9693_v46  ;;  %v10923_v48 = vld [vmem:[%s15970_s5 + $0x334] sm:$0xf]  ;;  %v9466_v23 = vld [vmem:[%s15970_s5 + $0x208] sm:$0xf0] }
 0x4f1   :  { %6368 = vmatmul.bf16.gmra.mxu0 %v13968_v15  ;;  %9927 = vmatmul.msk.bf16.gmra.mxu2 %vm1307_vm2, %v13979_v20  ;;  %v9621_v2 = vor.u32 %v10923_v48, %v9618_v52  ;;  %v9613_v63 = vor.u32 %v10921_v22, %v9610_v26  ;;  %v10959_v22 = vld [vmem:[%s15970_s5 + $0x454] sm:$0xf] }
 0x4f3   :  { %6474 = vmatpush.bf16.msra.mxu1 %v9485_v18  ;;  %6510 = vmatpush.bf16.msra.mxu0 %v9629_v37  ;;  %v9666_v37 = vld [vmem:[%s15970_s5 + $0x398] sm:$0xf0] }
 0x4f4   :  { %v5176_v39 = vpop.f32.mrf.mxu2  ;;  %6493 = vmatpush.bf16.msra.mxu3 %v9549_v3  ;;  %6530 = vmatpush.bf16.msra.mxu2 %v9685_v11  ;;  %v10935_v3 = vld [vmem:[%s15970_s5 + $0x394] sm:$0xf] }
 0x4f5   :  { %v5140_v10 = vpop.f32.mrf.mxu3  ;;  %v15225_v42 = vadd.f32 %v5176_v39, %v5158_v32  ;;  %v9677_v32 = vor.u32 %v10937_v61, %v9674_v38  ;;  %v9669_v34 = vor.u32 %v10935_v3, %v9666_v37  ;;  %v9842_v39 = vld [vmem:[%s15970_s5 + $0x4f8] sm:$0xf0]  ;;  %v10975_v37 = vld [vmem:[%s15970_s5 + $0x4d4] sm:$0xf] }
 0x4f6   :  { %v5141_v36 = vadd.f32 %v5140_v10, %v5122_v6  ;;  %v5159_v29 = vpop.f32.mrf.mxu0  ;;  %v10885_v6 = vld [vmem:[%s15970_s5 + $0x204] sm:$0xf]  ;;  %v9845_v48 = vor.u32 %v10979_v56, %v9842_v39  ;;  %v9762_v3 = vld [vmem:[%s15970_s5 + $0x458] sm:$0xf0] }
 0x4f7   :  { %v5190_v49 = vpop.f32.mrf.mxu1  ;;  %6475 = vmatpush.bf16.msra.mxu1 %v9477_v5  ;;  %v9469_v18 = vor.u32 %v10885_v6, %v9466_v23  ;;  %6511 = vmatpush.bf16.msra.mxu0 %v9621_v2  ;;  %v9658_v2 = vld [vmem:[%s15970_s5 + $0x388] sm:$0xf0]  ;;  %v10961_v6 = vld [vmem:[%s15970_s5 + $0x464] sm:$0xf] }
 0x4f8   :  { %v5160_v46 = vadd.f32 %v5159_v29, %v5141_v36  ;;  %v5191_v21 = vadd.f32 %v5190_v49, %v15118_v62  ;;  %6494 = vmatpush.bf16.msra.mxu3 %v9541_v17  ;;  %v9530_v62 = vld [vmem:[%s15970_s5 + $0x288] sm:$0xf0]  ;;  %6531 = vmatpush.bf16.msra.mxu2 %v9677_v32  ;;  %v9605_v29 = vor.u32 %v10919_v57, %v9602_v24  ;;  %v10933_v49 = vld [vmem:[%s15970_s5 + $0x384] sm:$0xf] }
 0x4f9   :  { %v9533_v58 = vor.u32 %v10901_v55, %v9530_v62  ;;  %v9594_v32 = vld [vmem:[%s15970_s5 + $0x308] sm:$0xf0]  ;;  %v10977_v23 = vld [vmem:[%s15970_s5 + $0x4e4] sm:$0xf]  ;;  %v9765_v57 = vor.u32 %v10959_v22, %v9762_v3 }
 0x4fa   :  { %6401 = vmatmul.bf16.vlgmr.msrb.gmra.mxu1 %v12852_v50  ;;  %6420 = vmatmul.bf16.vlgmr.msrb.gmra.mxu3 %v12854_v19  ;;  %v10963_v50 = vld [vmem:[%s15970_s5 + $0x474] sm:$0xf]  ;;  %v9778_v19 = vld [vmem:[%s15970_s5 + $0x478] sm:$0xf0]  ;;  %v9834_v55 = vld [vmem:[%s15970_s5 + $0x4e8] sm:$0xf0] }
 0x4fb   :  { %6476 = vmatpush.bf16.msra.mxu1 %v9469_v18  ;;  %v9781_v30 = vor.u32 %v10963_v50, %v9778_v19  ;;  %6512 = vmatpush.bf16.msra.mxu0 %v9613_v63  ;;  %v9837_v62 = vor.u32 %v10977_v23, %v9834_v55  ;;  %v9826_v63 = vld [vmem:[%s15970_s5 + $0x4d8] sm:$0xf0]  ;;  %v10995_v19 = vld [vmem:[%s15970_s5 + $0x574] sm:$0xf] }
 0x4fc   :  { %v5178_v11 = vpop.f32.mrf.mxu2  ;;  %6495 = vmatpush.bf16.msra.mxu3 %v9533_v58  ;;  %6532 = vmatpush.bf16.msra.mxu2 %v9669_v34  ;;  %v9829_v50 = vor.u32 %v10975_v37, %v9826_v63  ;;  %v9890_v23 = vld [vmem:[%s15970_s5 + $0x558] sm:$0xf0] }
 0x4fd   :  { %v15278_v5 = vadd.f32 %v5178_v11, %v5160_v46  ;;  %v5209_v17 = vpop.f32.mrf.mxu3  ;;  %v9661_v46 = vor.u32 %v10933_v49, %v9658_v2  ;;  %v9906_v11 = vld [vmem:[%s15970_s5 + $0x578] sm:$0xf0]  ;;  %v10973_v49 = vld [vmem:[%s15970_s5 + $0x4c4] sm:$0xf] }
 0x4fe   :  { %v5210_v52 = vadd.f32 %v5209_v17, %v5191_v21  ;;  %v5228_v10 = vpop.f32.mrf.mxu0  ;;  %v10917_v21 = vld [vmem:[%s15970_s5 + $0x304] sm:$0xf]  ;;  %v9909_v56 = vor.u32 %v10995_v19, %v9906_v11  ;;  %v9802_v19 = vld [vmem:[%s15970_s5 + $0x4a8] sm:$0xf0] }
 0x4ff   :  { %6545 = vmatpush.bf16.msrb.mxu1 %v9781_v30  ;;  %v5192_v36 = vpop.f32.mrf.mxu1  ;;  %6513 = vmatpush.bf16.msra.mxu0 %v9605_v29  ;;  %v9597_v26 = vor.u32 %v10917_v21, %v9594_v32  ;;  %v9754_v29 = vld [vmem:[%s15970_s5 + $0x448] sm:$0xf0]  ;;  %v10955_v32 = vld [vmem:[%s15970_s5 + $0x434] sm:$0xf]  ;;  %v10989_v11 = vld [vmem:[%s15970_s5 + $0x544] sm:$0xf] }
 0x500   :  { %v5193_v61 = vadd.f32 %v5192_v36, %v15171_v51  ;;  %v5229_v38 = vadd.f32 %v5228_v10, %v5210_v52  ;;  %6564 = vmatpush.bf16.msrb.mxu3 %v9845_v48  ;;  %v9770_v51 = vld [vmem:[%s15970_s5 + $0x468] sm:$0xf0]  ;;  %6533 = vmatpush.bf16.msra.mxu2 %v9661_v46  ;;  %v10957_v36 = vld [vmem:[%s15970_s5 + $0x444] sm:$0xf] }
 0x501   :  { %6439 = vmatmul.bf16.vlgmr.msrb.gmra.mxu0 %v13183_v31  ;;  %6458 = vmatmul.bf16.vlgmr.msrb.gmra.mxu2 %v13185_v43  ;;  %v9773_v18 = vor.u32 %v10961_v6, %v9770_v51  ;;  %v10999_v31 = vld [vmem:[%s15970_s5 + $0x594] sm:$0xf]  ;;  %v9922_v43 = vld [vmem:[%s15970_s5 + $0x598] sm:$0xf0]  ;;  %v9757_v2 = vor.u32 %v10957_v36, %v9754_v29 }
 0x502   :  { %v9925_v58 = vor.u32 %v10999_v31, %v9922_v43  ;;  %v9746_v6 = vld [vmem:[%s15970_s5 + $0x438] sm:$0xf0]  ;;  %v10971_v51 = vld [vmem:[%s15970_s5 + $0x4b4] sm:$0xf] }
 0x503   :  { %6546 = vmatpush.bf16.msrb.mxu1 %v9773_v18  ;;  %6514 = vmatpush.bf16.msra.mxu0 %v9597_v26  ;;  %v9749_v18 = vor.u32 %v10955_v32, %v9746_v6  ;;  %v9794_v36 = vld [vmem:[%s15970_s5 + $0x498] sm:$0xf0] }
 0x504   :  { %v5247_v34 = vpop.f32.mrf.mxu2  ;;  %6565 = vmatpush.bf16.msrb.mxu3 %v9837_v62  ;;  %6608 = vmatpush.bf16.msrb.mxu2 %v9925_v58 }
 0x505   :  { %v5211_v24 = vpop.f32.mrf.mxu3  ;;  %v15331_v30 = vadd.f32 %v5247_v34, %v5229_v38  ;;  %v9898_v38 = vld [vmem:[%s15970_s5 + $0x568] sm:$0xf0]  ;;  %v10953_v34 = vld [vmem:[%s15970_s5 + $0x424] sm:$0xf] }
 0x506   :  { %v5212_v39 = vadd.f32 %v5211_v24, %v5193_v61  ;;  %v5230_v17 = vpop.f32.mrf.mxu0  ;;  %v10993_v61 = vld [vmem:[%s15970_s5 + $0x564] sm:$0xf]  ;;  %v9882_v24 = vld [vmem:[%s15970_s5 + $0x548] sm:$0xf0] }
 0x507   :  { %v5195_v48 = vpop.f32.mrf.mxu1  ;;  %6547 = vmatpush.bf16.msrb.mxu1 %v9765_v57  ;;  %6583 = vmatpush.bf16.msrb.mxu0 %v9909_v56  ;;  %v9901_v21 = vor.u32 %v10993_v61, %v9898_v38  ;;  %v9738_v57 = vld [vmem:[%s15970_s5 + $0x428] sm:$0xf0]  ;;  %v9874_v61 = vld [vmem:[%s15970_s5 + $0x538] sm:$0xf0] }
 0x508   :  { %v5196_v52 = vadd.f32 %v5195_v48, %v15225_v42  ;;  %v5231_v10 = vadd.f32 %v5230_v17, %v5212_v39  ;;  %6566 = vmatpush.bf16.msrb.mxu3 %v9829_v50  ;;  %v9818_v42 = vld [vmem:[%s15970_s5 + $0x4c8] sm:$0xf0]  ;;  %v10969_v50 = vld [vmem:[%s15970_s5 + $0x4a4] sm:$0xf]  ;;  %v9885_v39 = vor.u32 %v10989_v11, %v9882_v24  ;;  %v10951_v17 = vld [vmem:[%s15970_s5 + $0x414] sm:$0xf] }
 0x509   :  { %v9821_v46 = vor.u32 %v10973_v49, %v9818_v42  ;;  %v9805_v56 = vor.u32 %v10969_v50, %v9802_v19  ;;  %v10987_v42 = vld [vmem:[%s15970_s5 + $0x534] sm:$0xf]  ;;  %v10981_v24 = vld [vmem:[%s15970_s5 + $0x504] sm:$0xf] }
 0x50a   :  { %6406 = vmatmul.bf16.gmra.mxu1 %v12885_v14  ;;  %6425 = vmatmul.bf16.gmra.mxu3 %v12889_v47  ;;  %v9810_v14 = vld [vmem:[%s15970_s5 + $0x4b8] sm:$0xf0]  ;;  %v10991_v47 = vld [vmem:[%s15970_s5 + $0x554] sm:$0xf] }
 0x50b   :  { %6548 = vmatpush.bf16.msrb.mxu1 %v9757_v2  ;;  %v9813_v62 = vor.u32 %v10971_v51, %v9810_v14  ;;  %6584 = vmatpush.bf16.msrb.mxu0 %v9901_v21  ;;  %v9893_v58 = vor.u32 %v10991_v47, %v9890_v23  ;;  %v9877_v51 = vor.u32 %v10987_v42, %v9874_v61  ;;  %v10949_v47 = vld [vmem:[%s15970_s5 + $0x404] sm:$0xf]  ;;  %v9722_v23 = vld [vmem:[%s15970_s5 + $0x408] sm:$0xf0] }
 0x50c   :  { %v5249_v55 = vpop.f32.mrf.mxu2  ;;  %6567 = vmatpush.bf16.msrb.mxu3 %v9821_v46 }
 0x50d   :  { %v5214_v31 = vpop.f32.mrf.mxu3  ;;  %v15372_v43 = vadd.f32 %v5249_v55, %v5231_v10  ;;  %v10967_v10 = vld [vmem:[%s15970_s5 + $0x494] sm:$0xf]  ;;  %v10965_v55 = vld [vmem:[%s15970_s5 + $0x484] sm:$0xf] }
 0x50e   :  { %v5215_v22 = vadd.f32 %v5214_v31, %v5196_v52  ;;  %v5233_v26 = vpop.f32.mrf.mxu0  ;;  %v9730_v52 = vld [vmem:[%s15970_s5 + $0x418] sm:$0xf0]  ;;  %v9797_v2 = vor.u32 %v10967_v10, %v9794_v36  ;;  %v10985_v31 = vld [vmem:[%s15970_s5 + $0x524] sm:$0xf] }
 0x50f   :  { %v5197_v3 = vpop.f32.mrf.mxu1  ;;  %6549 = vmatpush.bf16.msrb.mxu1 %v9749_v18  ;;  %6585 = vmatpush.bf16.msrb.mxu0 %v9893_v58  ;;  %v9733_v49 = vor.u32 %v10951_v17, %v9730_v52  ;;  %v9725_v18 = vor.u32 %v10949_v47, %v9722_v23 }
 0x510   :  { %v5198_v37 = vadd.f32 %v5197_v3, %v15278_v5  ;;  %v5234_v63 = vadd.f32 %v5233_v26, %v5215_v22  ;;  %6568 = vmatpush.bf16.msrb.mxu3 %v9813_v62  ;;  %v9741_v5 = vor.u32 %v10953_v34, %v9738_v57  ;;  %v9786_v62 = vld [vmem:[%s15970_s5 + $0x488] sm:$0xf0]  ;;  %v9858_v34 = vld [vmem:[%s15970_s5 + $0x518] sm:$0xf0] }
 0x511   :  { %6444 = vmatmul.bf16.gmra.mxu0 %v13260_v25  ;;  %6463 = vmatmul.bf16.gmra.mxu2 %v13262_v53  ;;  %v10997_v25 = vld [vmem:[%s15970_s5 + $0x584] sm:$0xf]  ;;  %v9914_v53 = vld [vmem:[%s15970_s5 + $0x588] sm:$0xf0]  ;;  %v9789_v26 = vor.u32 %v10965_v55, %v9786_v62 }
 0x512   :  { %v9917_v48 = vor.u32 %v10997_v25, %v9914_v53  ;;  %v9866_v22 = vld [vmem:[%s15970_s5 + $0x528] sm:$0xf0] }
 0x513   :  { %6550 = vmatpush.bf16.msrb.mxu1 %v9741_v5  ;;  %6586 = vmatpush.bf16.msrb.mxu0 %v9885_v39  ;;  %v9869_v58 = vor.u32 %v10985_v31, %v9866_v22 }
 0x514   :  { %v5252_v29 = vpop.f32.mrf.mxu2  ;;  %6569 = vmatpush.bf16.msrb.mxu3 %v9805_v56  ;;  %6609 = vmatpush.bf16.msrb.mxu2 %v9917_v48  ;;  %v9850_v56 = vld [vmem:[%s15970_s5 + $0x508] sm:$0xf0] }
 0x515   :  { %v5216_v38 = vpop.f32.mrf.mxu3  ;;  %v15419_v46 = vadd.f32 %v5252_v29, %v5234_v63  ;;  %v10983_v63 = vld [vmem:[%s15970_s5 + $0x514] sm:$0xf]  ;;  %v9853_v39 = vor.u32 %v10981_v24, %v9850_v56 }
 0x516   :  { %v5217_v21 = vadd.f32 %v5216_v38, %v5198_v37  ;;  %v5235_v32 = vpop.f32.mrf.mxu0  ;;  %v9861_v19 = vor.u32 %v10983_v63, %v9858_v34 }
 0x517   :  { %v6174_v6 = vpop.f32.mrf.mxu1  ;;  %6551 = vmatpush.bf16.msrb.mxu1 %v9733_v49  ;;  %6587 = vmatpush.bf16.msrb.mxu0 %v9877_v51 }
 0x518   :  { %v5236_v14 = vadd.f32 %v5235_v32, %v5217_v21  ;;  %6570 = vmatpush.bf16.msrb.mxu3 %v9797_v2  ;;  %v6175_v3 = vadd.f32 %v6174_v6, %v13107_v13 }
 0x51a   :  { %6477 = vmatmul.bf16.vlgmr.msra.gmra.mxu1 %v13287_v12  ;;  %6496 = vmatmul.bf16.vlgmr.msra.gmra.mxu3 %v13289_v54 }
 0x51b   :  { %6552 = vmatpush.bf16.msrb.mxu1 %v9725_v18  ;;  %6588 = vmatpush.bf16.msrb.mxu0 %v9869_v58 }
 0x51c   :  { %v5254_v37 = vpop.f32.mrf.mxu2  ;;  %6571 = vmatpush.bf16.msrb.mxu3 %v9789_v26 }
 0x51d   :  { %v15448_v57 = vadd.f32 %v5254_v37, %v5236_v14  ;;  %v6193_v12 = vpop.f32.mrf.mxu3 }
 0x51e   :  { %v6194_v54 = vadd.f32 %v6193_v12, %v6175_v3  ;;  %v6212_v50 = vpop.f32.mrf.mxu0 }
 0x51f   :  { %v6176_v5 = vpop.f32.mrf.mxu1  ;;  %6589 = vmatpush.bf16.msrb.mxu0 %v9861_v19 }
 0x520   :  { %v6213_v11 = vadd.f32 %v6212_v50, %v6194_v54 }
 0x521   :  { %6515 = vmatmul.bf16.vlgmr.msra.gmra.mxu0 %v13560_v60  ;;  %6534 = vmatmul.bf16.vlgmr.msra.gmra.mxu2 %v13562_v27 }
 0x523   :  { %6590 = vmatpush.bf16.msrb.mxu0 %v9853_v39 }
 0x524   :  { %v6231_v25 = vpop.f32.mrf.mxu2 }
 0x525   :  { %v6195_v53 = vpop.f32.mrf.mxu3  ;;  %v6232_v17 = vadd.f32 %v6231_v25, %v6213_v11 }
 0x526   :  { %v6214_v48 = vpop.f32.mrf.mxu0 }
 0x527   :  { %v6179_v52 = vpop.f32.mrf.mxu1 }
 0x528   :  { %v6180_v10 = vadd.f32 %v6179_v52, %v13107_v13 }
 0x52a   :  { %6482 = vmatmul.bf16.gmra.mxu1 %v13695_v16  ;;  %6501 = vmatmul.bf16.gmra.mxu3 %v13697_v59 }
 0x52c   :  { %v6233_v36 = vpop.f32.mrf.mxu2 }
 0x52d   :  { %v6198_v29 = vpop.f32.mrf.mxu3 }
 0x52e   :  { %v6199_v49 = vadd.f32 %v6198_v29, %v6180_v10  ;;  %v6217_v60 = vpop.f32.mrf.mxu0 }
 0x52f   :  { %v6181_v2 = vpop.f32.mrf.mxu1 }
 0x530   :  { %v6218_v27 = vadd.f32 %v6217_v60, %v6199_v49 }
 0x531   :  { %6520 = vmatmul.bf16.gmra.mxu0 %v13743_v1  ;;  %6539 = vmatmul.bf16.gmra.mxu2 %v13745_v9 }
 0x534   :  { %v6236_v42 = vpop.f32.mrf.mxu2 }
 0x535   :  { %v6200_v61 = vpop.f32.mrf.mxu3  ;;  %v6237_v38 = vadd.f32 %v6236_v42, %v6218_v27 }
 0x536   :  { %v6219_v21 = vpop.f32.mrf.mxu0 }
 0x537   :  { %v6250_v32 = vpop.f32.mrf.mxu1 }
 0x538   :  { %v6251_v16 = vadd.f32 %v6250_v32, %v6232_v17 }
 0x53a   :  { %6553 = vmatmul.bf16.vlgmr.msrb.gmra.mxu1 %v13806_v41  ;;  %6572 = vmatmul.bf16.vlgmr.msrb.gmra.mxu3 %v13814_v28  ;;  %v6182_v41 = vadd.f32 %v6181_v2, %v13107_v13 }
 0x53c   :  { %v6238_v59 = vpop.f32.mrf.mxu2  ;;  %v6201_v22 = vadd.f32 %v6200_v61, %v6182_v41 }
 0x53d   :  { %v6269_v6 = vpop.f32.mrf.mxu3 }
 0x53e   :  { %v6270_v51 = vadd.f32 %v6269_v6, %v6251_v16  ;;  %v6288_v14 = vpop.f32.mrf.mxu0  ;;  %v6220_v63 = vadd.f32 %v6219_v21, %v6201_v22 }
 0x53f   :  { %v6252_v47 = vpop.f32.mrf.mxu1 }
 0x540   :  { %v6289_v23 = vadd.f32 %v6288_v14, %v6270_v51  ;;  %v6239_v34 = vadd.f32 %v6238_v59, %v6220_v63 }
 0x541   :  { %6591 = vmatmul.bf16.vlgmr.msrb.gmra.mxu0 %v13854_v4  ;;  %9928 = vmatmul.msk.bf16.vlgmr.msrb.gmra.mxu2 %vm1307_vm2, %v13865_v7  ;;  %v6177_v7 = vadd.f32 %v6176_v5, %v13107_v13 }
 0x544   :  { %v6307_v1 = vpop.f32.mrf.mxu2 }
 0x545   :  { %v6271_v9 = vpop.f32.mrf.mxu3  ;;  %v6308_v55 = vadd.f32 %v6307_v1, %v6289_v23 }
 0x546   :  { %v6290_v18 = vpop.f32.mrf.mxu0 }
 0x547   :  { %v6255_v62 = vpop.f32.mrf.mxu1 }
 0x548   :  { %v6256_v31 = vadd.f32 %v6255_v62, %v6237_v38 }
 0x54a   :  { %6558 = vmatmul.bf16.gmra.mxu1 %v13922_v35  ;;  %6577 = vmatmul.bf16.gmra.mxu3 %v13924_v45  ;;  %v6196_v35 = vadd.f32 %v6195_v53, %v6177_v7 }
 0x54c   :  { %v6309_v28 = vpop.f32.mrf.mxu2  ;;  %v6215_v19 = vadd.f32 %v6214_v48, %v6196_v35 }
 0x54d   :  { %v6274_v26 = vpop.f32.mrf.mxu3 }
 0x54e   :  { %v6275_v58 = vadd.f32 %v6274_v26, %v6256_v31  ;;  %v6293_v4 = vpop.f32.mrf.mxu0  ;;  %v6234_v39 = vadd.f32 %v6233_v36, %v6215_v19  ;;  %v5257_v36 = vmax.f32 %v14724_v0, 0.0 }
 0x54f   :  { %v6257_v3 = vpop.f32.mrf.mxu1 }
 0x550   :  { %v6294_v37 = vadd.f32 %v6293_v4, %v6275_v58  ;;  %v6258_v12 = vadd.f32 %v6257_v3, %v6239_v34  ;;  %v6253_v13 = vadd.f32 %v6252_v47, %v6234_v39  ;;  %v5261_v3 = vmax.f32 %v14812_v44, 0.0 }
 0x551   :  { %6596 = vmatmul.bf16.gmra.mxu0 %v13968_v15  ;;  %9929 = vmatmul.msk.bf16.gmra.mxu2 %vm1307_vm2, %v13979_v20 }
 0x552   :  { %v6272_v17 = vadd.f32 %v6271_v9, %v6253_v13 }
 0x554   :  { %v6312_v45 = vpop.f32.mrf.mxu2  ;;  %v6291_v49 = vadd.f32 %v6290_v18, %v6272_v17 }
 0x555   :  { %v6276_v54 = vpop.f32.mrf.mxu3  ;;  %v6313_v50 = vadd.f32 %v6312_v45, %v6294_v37 }
 0x556   :  { %v6295_v11 = vpop.f32.mrf.mxu0  ;;  %v6277_v24 = vadd.f32 %v6276_v54, %v6258_v12  ;;  %v6310_v2 = vadd.f32 %v6309_v28, %v6291_v49  ;;  %v5263_v54 = vmax.f32 %v14858_v33, 0.0 }
 0x557   :  { %v6326_v56 = vpop.f32.mrf.mxu1 }
 0x558   :  { %v6327_v25 = vadd.f32 %v6326_v56, %v6308_v55  ;;  %v6296_v5 = vadd.f32 %v6295_v11, %v6277_v24  ;;  %v5259_v55 = vmax.f32 %v14765_v8, 0.0 }
 0x55c   :  { %v6314_v52 = vpop.f32.mrf.mxu2 }
 0x55d   :  { %v6315_v15 = vadd.f32 %v6314_v52, %v6296_v5  ;;  %v6345_v10 = vpop.f32.mrf.mxu3 }
 0x55e   :  { %v6346_v29 = vadd.f32 %v6345_v10, %v6327_v25  ;;  %v6364_v20 = vpop.f32.mrf.mxu0 }
 0x55f   :  { %v6328_v53 = vpop.f32.mrf.mxu1 }
 0x560   :  { %v6365_v60 = vadd.f32 %v6364_v20, %v6346_v29  ;;  %v6329_v27 = vadd.f32 %v6328_v53, %v6310_v2  ;;  %v11008_v20 = vld [vmem:[%s15972_s7 + $0x38] sm:$0xff] }
 0x561   :  { %7173 = vmatpush.bf16.msra.mxu0 %v11008_v20 }
 0x564   :  { %v6383_v42 = vpop.f32.mrf.mxu2 }
 0x565   :  { %v6347_v48 = vpop.f32.mrf.mxu3  ;;  %v6384_v61 = vadd.f32 %v6383_v42, %v6365_v60  ;;  %v11007_v60 = vld [vmem:[%s15972_s7 + $0x30] sm:$0xff] }
 0x566   :  { %v6348_v38 = vadd.f32 %v6347_v48, %v6329_v27  ;;  %v6366_v21 = vpop.f32.mrf.mxu0  ;;  %7174 = vmatpush.bf16.msra.mxu0 %v11007_v60 }
 0x567   :  { %v6621_v32 = vmax.f32 %v6384_v61, 0.0  ;;  %v6331_v16 = vpop.f32.mrf.mxu1  ;;  %v11006_v61 = vld [vmem:[%s15972_s7 + $0x28] sm:$0xff] }
 0x568   :  { %v6332_v59 = vadd.f32 %v6331_v16, %v6313_v50  ;;  %v6367_v6 = vadd.f32 %v6366_v21, %v6348_v38  ;;  %v11005_v21 = vld [vmem:[%s15972_s7 + $0x20] sm:$0xff] }
 0x569   :  { %v15476_v51 = vmax.f32 %v5257_v36, %v6621_v32  ;;  %v11022_v36 = vld [vmem:[%s15972_s7 + $0xa8] sm:$0xff] }
 0x56a   :  { %7175 = vmatpush.bf16.msra.mxu0 %v11006_v61  ;;  %7039 = vmatpush.bf16.msra.mxu1 %v11022_v36  ;;  %v11034_v61 = vld [vmem:[%s15972_s7 + $0x108] sm:$0xff]  ;;  %v11028_v36 = vld [vmem:[%s15972_s7 + $0xd8] sm:$0xff] }
 0x56b   :  { %7054 = vmatpush.bf16.msra.mxu3 %v11028_v36 }
 0x56c   :  { %v6385_v14 = vpop.f32.mrf.mxu2 }
 0x56d   :  { %v6350_v47 = vpop.f32.mrf.mxu3  ;;  %v6386_v23 = vadd.f32 %v6385_v14, %v6367_v6 }
 0x56e   :  { %v6351_v1 = vadd.f32 %v6350_v47, %v6332_v59  ;;  %v6369_v9 = vpop.f32.mrf.mxu0  ;;  %7176 = vmatpush.bf16.msra.mxu0 %v11005_v21 }
 0x56f   :  { %v6623_v18 = vmax.f32 %v6386_v23, 0.0  ;;  %v6333_v62 = vpop.f32.mrf.mxu1 }
 0x570   :  { %v6334_v31 = vadd.f32 %v6333_v62, %v6315_v15  ;;  %v6370_v41 = vadd.f32 %v6369_v9, %v6351_v1 }
 0x571   :  { %v15479_v28 = vmax.f32 %v5259_v55, %v6623_v18 }
 0x574   :  { %v6388_v0 = vpop.f32.mrf.mxu2 }
 0x575   :  { %v6352_v22 = vpop.f32.mrf.mxu3  ;;  %v6389_v26 = vadd.f32 %v6388_v0, %v6370_v41 }
 0x576   :  { %v6353_v58 = vadd.f32 %v6352_v22, %v6334_v31  ;;  %v6371_v4 = vpop.f32.mrf.mxu0 }
 0x577   :  { %v6625_v7 = vmax.f32 %v6389_v26, 0.0  ;;  %v6402_v37 = vpop.f32.mrf.mxu1 }
 0x578   :  { %v6372_v63 = vadd.f32 %v6371_v4, %v6353_v58  ;;  %v6403_v14 = vadd.f32 %v6402_v37, %v14817_v40  ;;  %v11021_v37 = vld [vmem:[%s15972_s7 + $0xa0] sm:$0xff] }
 0x579   :  { %v15482_v35 = vmax.f32 %v5261_v3, %v6625_v7  ;;  %v11004_v3 = vld [vmem:[%s15972_s7 + $0x18] sm:$0xff]  ;;  %7040 = vmatpush.bf16.msra.mxu1 %v11021_v37 }
 0x57a   :  { %v11036_v7 = vld [vmem:[%s15972_s7 + $0x118] sm:$0xff]  ;;  %7177 = vmatpush.bf16.msra.mxu0 %v11004_v3 }
 0x57b   :  { %7336 = vmatpush.bf16.msra.mxu2 %v11036_v7 }
 0x57c   :  { %v6390_v34 = vpop.f32.mrf.mxu2 }
 0x57d   :  { %v6391_v8 = vadd.f32 %v6390_v34, %v6372_v63  ;;  %v6421_v45 = vpop.f32.mrf.mxu3 }
 0x57e   :  { %v6440_v12 = vpop.f32.mrf.mxu0  ;;  %v6422_v47 = vadd.f32 %v6421_v45, %v6403_v14  ;;  %v11003_v45 = vld [vmem:[%s15972_s7 + $0x10] sm:$0xff] }
 0x57f   :  { %v6627_v50 = vmax.f32 %v6391_v8, 0.0  ;;  %v6404_v19 = vpop.f32.mrf.mxu1  ;;  %7178 = vmatpush.bf16.msra.mxu0 %v11003_v45 }
 0x580   :  { %v6441_v55 = vadd.f32 %v6440_v12, %v6422_v47  ;;  %v6405_v62 = vadd.f32 %v6404_v19, %v14817_v40  ;;  %v11035_v12 = vld [vmem:[%s15972_s7 + $0x110] sm:$0xff]  ;;  %v11020_v19 = vld [vmem:[%s15972_s7 + $0x98] sm:$0xff] }
 0x581   :  { %v15485_v11 = vmax.f32 %v5263_v54, %v6627_v50  ;;  %7337 = vmatpush.bf16.msra.mxu2 %v11035_v12  ;;  %7041 = vmatpush.bf16.msra.mxu1 %v11020_v19 }
 0x584   :  { %v6459_v24 = vpop.f32.mrf.mxu2 }
 0x585   :  { %v6423_v56 = vpop.f32.mrf.mxu3  ;;  %v6460_v31 = vadd.f32 %v6459_v24, %v6441_v55  ;;  %7338 = vmatpush.bf16.msra.mxu2 %v11034_v61 }
 0x586   :  { %v6442_v39 = vpop.f32.mrf.mxu0  ;;  %v6424_v41 = vadd.f32 %v6423_v56, %v6405_v62 }
 0x587   :  { %v6407_v25 = vpop.f32.mrf.mxu1 }
 0x588   :  { %v6443_v63 = vadd.f32 %v6442_v39, %v6424_v41  ;;  %v6408_v8 = vadd.f32 %v6407_v25, %v14817_v40 }
 0x58c   :  { %v6461_v44 = vpop.f32.mrf.mxu2 }
 0x58d   :  { %v6426_v13 = vpop.f32.mrf.mxu3  ;;  %v6462_v54 = vadd.f32 %v6461_v44, %v6443_v63  ;;  %v11026_v63 = vld [vmem:[%s15972_s7 + $0xc8] sm:$0xff] }
 0x58e   :  { %v15487_v5 = vpop.f32.mrf.mxu0  ;;  %v6427_v24 = vadd.f32 %v6426_v13, %v6408_v8 }
 0x58f   :  { %v6409_v17 = vpop.f32.mrf.mxu1 }
 0x590   :  { %v6410_v52 = vadd.f32 %v6409_v17, %v14817_v40 }
 0x594   :  { %v15490_v15 = vpop.f32.mrf.mxu2 }
 0x595   :  { %v6428_v10 = vpop.f32.mrf.mxu3 }
 0x596   :  { %v6429_v29 = vadd.f32 %v6428_v10, %v6410_v52  ;;  %v6447_v33 = vpop.f32.mrf.mxu0  ;;  %v6446_v10 = vadd.f32 %v15487_v5, %v6427_v24  ;;  %v11019_v5 = vld [vmem:[%s15972_s7 + $0x90] sm:$0xff] }
 0x597   :  { %v6478_v53 = vpop.f32.mrf.mxu1  ;;  %7042 = vmatpush.bf16.msra.mxu1 %v11019_v5 }
 0x598   :  { %v6448_v49 = vadd.f32 %v6447_v33, %v6429_v29  ;;  %v6479_v0 = vadd.f32 %v6478_v53, %v6460_v31  ;;  %v6465_v20 = vadd.f32 %v15490_v15, %v6446_v10  ;;  %v11050_v31 = vld [vmem:[%s15972_s7 + $0x188] sm:$0xff]  ;;  %v11025_v10 = vld [vmem:[%s15972_s7 + $0xc0] sm:$0xff] }
 0x59c   :  { %v6466_v2 = vpop.f32.mrf.mxu2 }
 0x59d   :  { %v15498_v27 = vadd.f32 %v6466_v2, %v6448_v49  ;;  %v6497_v42 = vpop.f32.mrf.mxu3 }
 0x59e   :  { %v6516_v48 = vpop.f32.mrf.mxu0  ;;  %v6498_v26 = vadd.f32 %v6497_v42, %v6479_v0  ;;  %v11032_v0 = vld [vmem:[%s15972_s7 + $0xf8] sm:$0xff] }
 0x59f   :  { %v6480_v38 = vpop.f32.mrf.mxu1 }
 0x5a0   :  { %v6517_v50 = vadd.f32 %v6516_v48, %v6498_v26  ;;  %v6481_v56 = vadd.f32 %v6480_v38, %v6462_v54  ;;  %v11002_v48 = vld [vmem:[%s15972_s7 + $0x8] sm:$0xff]  ;;  %v11031_v54 = vld [vmem:[%s15972_s7 + $0xf0] sm:$0xff] }
 0x5a1   :  { %7179 = vmatpush.bf16.msra.mxu0 %v11002_v48 }
 0x5a4   :  { %v6535_v32 = vpop.f32.mrf.mxu2 }
 0x5a5   :  { %v6499_v16 = vpop.f32.mrf.mxu3  ;;  %v6536_v40 = vadd.f32 %v6535_v32, %v6517_v50 }
 0x5a6   :  { %v6518_v59 = vpop.f32.mrf.mxu0  ;;  %v6500_v25 = vadd.f32 %v6499_v16, %v6481_v56  ;;  %v11001_v16 = vld [vmem:[%s15972_s7] sm:$0xff] }
 0x5a7   :  { %v6483_v6 = vpop.f32.mrf.mxu1  ;;  %7180 = vmatpush.bf16.msra.mxu0 %v11001_v16 }
 0x5a8   :  { %v6519_v53 = vadd.f32 %v6518_v59, %v6500_v25  ;;  %v6484_v49 = vadd.f32 %v6483_v6, %v6465_v20  ;;  %v11033_v59 = vld [vmem:[%s15972_s7 + $0x100] sm:$0xff]  ;;  %v5258_v6 = vmax.f32 %v15331_v30, 0.0 }
 0x5a9   :  { %7339 = vmatpush.bf16.msra.mxu2 %v11033_v59 }
 0x5ab   :  { %7500 = vmatpush.bf16.msrb.mxu0 %v11050_v31 }
 0x5ac   :  { %v6537_v23 = vpop.f32.mrf.mxu2 }
 0x5ad   :  { %v6502_v1 = vpop.f32.mrf.mxu3  ;;  %v6538_v13 = vadd.f32 %v6537_v23, %v6519_v53  ;;  %v11018_v23 = vld [vmem:[%s15972_s7 + $0x88] sm:$0xff]  ;;  %7340 = vmatpush.bf16.msra.mxu2 %v11032_v0 }
 0x5ae   :  { %v15510_v9 = vpop.f32.mrf.mxu0  ;;  %v6503_v2 = vadd.f32 %v6502_v1, %v6484_v49  ;;  %v11027_v1 = vld [vmem:[%s15972_s7 + $0xd0] sm:$0xff]  ;;  %7043 = vmatpush.bf16.msra.mxu1 %v11018_v23 }
 0x5af   :  { %v15512_v18 = vpop.f32.mrf.mxu1  ;;  %7055 = vmatpush.bf16.msra.mxu3 %v11027_v1 }
 0x5b0   :  { %v6522_v55 = vadd.f32 %v15510_v9, %v6503_v2  ;;  %v6486_v26 = vadd.f32 %v15512_v18, %v15498_v27  ;;  %v11017_v9 = vld [vmem:[%s15972_s7 + $0x80] sm:$0xff] }
 0x5b1   :  { %v11049_v27 = vld [vmem:[%s15972_s7 + $0x180] sm:$0xff]  ;;  %7341 = vmatpush.bf16.msra.mxu2 %v11031_v54 }
 0x5b2   :  { %7044 = vmatpush.bf16.msra.mxu1 %v11017_v9  ;;  %7501 = vmatpush.bf16.msrb.mxu0 %v11049_v27  ;;  %v11024_v9 = vld [vmem:[%s15972_s7 + $0xb8] sm:$0xff]  ;;  %v11014_v27 = vld [vmem:[%s15972_s7 + $0x68] sm:$0xff] }
 0x5b3   :  { %7056 = vmatpush.bf16.msra.mxu3 %v11026_v63  ;;  %v11047_v63 = vld [vmem:[%s15972_s7 + $0x170] sm:$0xff] }
 0x5b4   :  { %v6540_v22 = vpop.f32.mrf.mxu2 }
 0x5b5   :  { %v15515_v58 = vpop.f32.mrf.mxu3  ;;  %v6541_v41 = vadd.f32 %v6540_v22, %v6522_v55 }
 0x5b6   :  { %v15517_v4 = vpop.f32.mrf.mxu0 }
 0x5b7   :  { %v6554_v34 = vpop.f32.mrf.mxu1  ;;  %7057 = vmatpush.bf16.msra.mxu3 %v11025_v10 }
 0x5b8   :  { %v6555_v17 = vadd.f32 %v6554_v34, %v6536_v40 }
 0x5bb   :  { %7058 = vmatpush.bf16.msra.mxu3 %v11024_v9  ;;  %v11044_v9 = vld [vmem:[%s15972_s7 + $0x158] sm:$0xff] }
 0x5bc   :  { %v15538_v39 = vpop.f32.mrf.mxu2 }
 0x5bd   :  { %v6573_v52 = vpop.f32.mrf.mxu3 }
 0x5be   :  { %v6592_v44 = vpop.f32.mrf.mxu0  ;;  %v6574_v29 = vadd.f32 %v6573_v52, %v6555_v17 }
 0x5bf   :  { %v6556_v33 = vpop.f32.mrf.mxu1 }
 0x5c0   :  { %v6593_v60 = vadd.f32 %v6592_v44, %v6574_v29  ;;  %v6557_v38 = vadd.f32 %v6556_v33, %v6538_v13  ;;  %v11048_v44 = vld [vmem:[%s15972_s7 + $0x178] sm:$0xff]  ;;  %v5260_v29 = vmax.f32 %v15372_v43, 0.0 }
 0x5c1   :  { %7502 = vmatpush.bf16.msrb.mxu0 %v11048_v44 }
 0x5c4   :  { %v6611_v42 = vpop.f32.mrf.mxu2 }
 0x5c5   :  { %v6575_v15 = vpop.f32.mrf.mxu3  ;;  %v6612_v21 = vadd.f32 %v6611_v42, %v6593_v60  ;;  %7503 = vmatpush.bf16.msrb.mxu0 %v11047_v63 }
 0x5c6   :  { %v6594_v32 = vpop.f32.mrf.mxu0  ;;  %v6576_v14 = vadd.f32 %v6575_v15, %v6557_v38 }
 0x5c7   :  { %v6622_v47 = vmax.f32 %v6612_v21, 0.0  ;;  %v6559_v62 = vpop.f32.mrf.mxu1 }
 0x5c8   :  { %v6595_v7 = vadd.f32 %v6594_v32, %v6576_v14  ;;  %v6560_v37 = vadd.f32 %v6559_v62, %v6541_v41 }
 0x5c9   :  { %v6630_v30 = vmax.f32 %v5258_v6, %v6622_v47 }
 0x5cb   :  { %v6637_v3 = vpack.c.bf16 %v6630_v30, %v15476_v51  ;;  %v6505_v51 = vadd.f32 %v15515_v58, %v6486_v26  ;;  %v11016_v58 = vld [vmem:[%s15972_s7 + $0x78] sm:$0xff] }
 0x5cc   :  { %v6613_v22 = vpop.f32.mrf.mxu2  ;;  %7045 = vmatpush.bf16.msra.mxu1 %v11016_v58  ;;  %v11023_v58 = vld [vmem:[%s15972_s7 + $0xb0] sm:$0xff] }
 0x5cd   :  { %v6645_v18 = vrot.slane %v6637_v3, 3  ;;  %v6578_v34 = vpop.f32.mrf.mxu3  ;;  %v6614_v8 = vadd.f32 %v6613_v22, %v6595_v7  ;;  %v6524_v33 = vadd.f32 %v15517_v4, %v6505_v51  ;;  %v11015_v7 = vld [vmem:[%s15972_s7 + $0x70] sm:$0xff]  ;;  %7059 = vmatpush.bf16.msra.mxu3 %v11023_v58 }
 0x5ce   :  { %v6579_v45 = vadd.f32 %v6578_v34, %v6560_v37  ;;  %v6597_v12 = vpop.f32.mrf.mxu0 }
 0x5cf   :  { %v6651_v50 = vsel %vm73_vm0, %v6637_v3, %v6645_v18  ;;  %v6652_v19 = vsel %vm1711_vm15, %v6637_v3, %v6645_v18  ;;  %v6655_v24 = vsel %vm624_vm6, %v6637_v3, %v6645_v18  ;;  %v6658_v56 = vsel %vm1719_vm10, %v6637_v3, %v6645_v18  ;;  %v6561_v60 = vpop.f32.mrf.mxu1 }
 0x5d0   :  { %v6654_v40 = vrot.slane %v6652_v19, 1  ;;  %v6657_v25 = vrot.slane %v6655_v24, 2  ;;  %v6660_v17 = vrot.slane %v6658_v56, 3  ;;  %v6705_v52 = vunpack.c.l.bf16 %v6651_v50  ;;  %7046 = vmatpush.bf16.msra.mxu1 %v11015_v7  ;;  %v11029_v50 = vld [vmem:[%s15972_s7 + $0xe0] sm:$0xff] }
 0x5d1   :  { %v6624_v20 = vmax.f32 %v6614_v8, 0.0  ;;  %v6543_v2 = vadd.f32 %v15538_v39, %v6524_v33  ;;  %v6598_v61 = vadd.f32 %v6597_v12, %v6579_v45  ;;  %v5262_v39 = vmax.f32 %v15419_v46, 0.0  ;;  %v11030_v46 = vld [vmem:[%s15972_s7 + $0xe8] sm:$0xff] }
 0x5d2   :  { %v6706_v53 = vunpack.c.l.bf16 %v6654_v40  ;;  %v6707_v49 = vunpack.c.l.bf16 %v6657_v25  ;;  %v6708_v13 = vunpack.c.l.bf16 %v6660_v17  ;;  %v9930_v42 = vrot.slane %v6705_v52, 9  ;;  %7342 = vmatpush.bf16.msra.mxu2 %v11030_v46 }
 0x5d3   :  { %v6632_v48 = vmax.f32 %v5260_v29, %v6624_v20  ;;  %v6562_v4 = vadd.f32 %v6561_v60, %v6543_v2  ;;  %v5264_v19 = vmax.f32 %v15448_v57, 0.0  ;;  %v11064_v57 = vld [vmem:[%s15972_s7 + $0x1f8] sm:$0xff] }
 0x5d4   :  { %v9931_v5 = vrot.slane %v6706_v53, 9  ;;  %v9932_v38 = vrot.slane %v6707_v49, 9  ;;  %v9933_v15 = vrot.slane %v6708_v13, 9  ;;  %v6616_v21 = vpop.f32.mrf.mxu2  ;;  %v6775_v16 = vmax.f32 %v6705_v52, %v9930_v42  ;;  %7188 = vmatpush.bf16.msrb.mxu1 %v11014_v27  ;;  %v11046_v52 = vld [vmem:[%s15972_s7 + $0x168] sm:$0xff] }
 0x5d5   :  { %v6638_v43 = vpack.c.bf16 %v6632_v48, %v15479_v28  ;;  %v6580_v36 = vpop.f32.mrf.mxu3  ;;  %v6617_v32 = vadd.f32 %v6616_v21, %v6598_v61  ;;  %7504 = vmatpush.bf16.msrb.mxu0 %v11046_v52  ;;  %v11043_v52 = vld [vmem:[%s15972_s7 + $0x150] sm:$0xff] }
 0x5d6   :  { %v6581_v6 = vadd.f32 %v6580_v36, %v6562_v4  ;;  %v15608_v47 = vmax.f32 %v6706_v53, %v9931_v5  ;;  %v15610_v23 = vmax.f32 %v6707_v49, %v9932_v38  ;;  %v15612_v1 = vmax.f32 %v6708_v13, %v9933_v15  ;;  %v6599_v55 = vpop.f32.mrf.mxu0  ;;  %v11013_v53 = vld [vmem:[%s15972_s7 + $0x60] sm:$0xff]  ;;  %v11042_v49 = vld [vmem:[%s15972_s7 + $0x148] sm:$0xff]  ;;  %7343 = vmatpush.bf16.msra.mxu2 %v11029_v50 }
 0x5d7   :  { %v6646_v59 = vrot.slane %v6638_v43, 3  ;;  %v6626_v14 = vmax.f32 %v6617_v32, 0.0  ;;  %v6803_v51 = vperm.slane %v6775_v16, 0  ;;  %v6804_v18 = vperm.slane %v6775_v16, 2  ;;  %v11045_v36 = vld [vmem:[%s15972_s7 + $0x160] sm:$0xff]  ;;  %v11063_v32 = vld [vmem:[%s15972_s7 + $0x1f0] sm:$0xff]  ;;  %7351 = vmatpush.bf16.msrb.mxu3 %v11042_v49 }
 0x5d8   :  { %v6600_v22 = vadd.f32 %v6599_v55, %v6581_v6  ;;  %v6806_v10 = vperm.slane %v15608_v47, 2  ;;  %7189 = vmatpush.bf16.msrb.mxu1 %v11013_v53  ;;  %v6807_v53 = vperm.slane %v15610_v23, 0 }
 0x5d9   :  { %v6663_v62 = vsel %vm73_vm0, %v6638_v43, %v6646_v59  ;;  %v6664_v28 = vsel %vm1711_vm15, %v6638_v43, %v6646_v59  ;;  %v6667_v31 = vsel %vm624_vm6, %v6638_v43, %v6646_v59  ;;  %v6670_v30 = vsel %vm1719_vm10, %v6638_v43, %v6646_v59  ;;  %7505 = vmatpush.bf16.msrb.mxu0 %v11045_v36 }
 0x5da   :  { %v6666_v41 = vrot.slane %v6664_v28, 1  ;;  %v6669_v0 = vrot.slane %v6667_v31, 2  ;;  %v6672_v26 = vrot.slane %v6670_v30, 3  ;;  %v6709_v3 = vunpack.c.l.bf16 %v6663_v62  ;;  %7664 = vmatpush.bf16.msrb.mxu2 %v11064_v57  ;;  %v11061_v57 = vld [vmem:[%s15972_s7 + $0x1e0] sm:$0xff] }
 0x5db   :  { %v6634_v37 = vmax.f32 %v5262_v39, %v6626_v14  ;;  %v15641_v40 = vpack.c.bf16 %v6804_v18, %v6803_v51  ;;  %v11012_v14 = vld [vmem:[%s15972_s7 + $0x58] sm:$0xff]  ;;  %v11041_v39 = vld [vmem:[%s15972_s7 + $0x140] sm:$0xff] }
 0x5dc   :  { %v6710_v34 = vunpack.c.l.bf16 %v6666_v41  ;;  %v6711_v8 = vunpack.c.l.bf16 %v6669_v0  ;;  %v6712_v45 = vunpack.c.l.bf16 %v6672_v26  ;;  %v9934_v12 = vrot.slane %v6709_v3, 9  ;;  %v6618_v54 = vpop.f32.mrf.mxu2  ;;  %7190 = vmatpush.bf16.msrb.mxu1 %v11012_v14  ;;  %7352 = vmatpush.bf16.msrb.mxu3 %v11041_v39  ;;  %v11040_v51 = vld [vmem:[%s15972_s7 + $0x138] sm:$0xff] }
 0x5dd   :  { %v6639_v24 = vpack.c.bf16 %v6634_v37, %v15482_v35  ;;  %v6619_v56 = vadd.f32 %v6618_v54, %v6600_v22  ;;  %v6805_v35 = vperm.slane %v15608_v47, 0  ;;  %v7067_v2 = vunpack.c.l.b16 %v15641_v40  ;;  %v11062_v37 = vld [vmem:[%s15972_s7 + $0x1e8] sm:$0xff]  ;;  %7506 = vmatpush.bf16.msrb.mxu0 %v11044_v9 }
 0x5de   :  { %v9935_v25 = vrot.slane %v6710_v34, 9  ;;  %v9937_v17 = vrot.slane %v6712_v45, 9  ;;  %v9936_v44 = vrot.slane %v6711_v8, 9  ;;  %v15651_v29 = vmax.f32 %v6709_v3, %v9934_v12  ;;  %7665 = vmatpush.bf16.msrb.mxu2 %v11063_v32  ;;  %v11009_v32 = vld [vmem:[%s15972_s7 + $0x40] sm:$0xff] }
 0x5df   :  { %v6647_v33 = vrot.slane %v6639_v24, 3  ;;  %v6628_v20 = vmax.f32 %v6619_v56, 0.0  ;;  %v7068_v42 = vunpack.c.h.b16 %v15641_v40  ;;  %v15677_v31 = vpack.c.bf16 %v6806_v10, %v6805_v35  ;;  %v11010_v10 = vld [vmem:[%s15972_s7 + $0x48] sm:$0xff] }
 0x5e0   :  { %v6780_v13 = vmax.f32 %v6710_v34, %v9935_v25  ;;  %v6782_v60 = vmax.f32 %v6712_v45, %v9937_v17  ;;  %v15679_v30 = vmax.f32 %v6711_v8, %v9936_v44  ;;  %v10033_v18 = vunpack.i.l.s16 %v7067_v2  ;;  %7353 = vmatpush.bf16.msrb.mxu3 %v11040_v51  ;;  %v11039_v44 = vld [vmem:[%s15972_s7 + $0x130] sm:$0xff] }
 0x5e1   :  { %v6675_v48 = vsel %vm73_vm0, %v6639_v24, %v6647_v33  ;;  %v6676_v61 = vsel %vm1711_vm15, %v6639_v24, %v6647_v33  ;;  %v6679_v5 = vsel %vm624_vm6, %v6639_v24, %v6647_v33  ;;  %v6682_v38 = vsel %vm1719_vm10, %v6639_v24, %v6647_v33  ;;  %7507 = vmatpush.bf16.msrb.mxu0 %v11043_v52 }
 0x5e2   :  { %v6813_v15 = vperm.slane %v6780_v13, 0  ;;  %v6814_v21 = vperm.slane %v6780_v13, 2  ;;  %v6678_v43 = vrot.slane %v6676_v61, 1  ;;  %v6681_v4 = vrot.slane %v6679_v5, 2  ;;  %7666 = vmatpush.bf16.msrb.mxu2 %v11062_v37  ;;  %v11091_v37 = vld [vmem:[%s15972_s7 + $0x2d0] sm:$0xff] }
 0x5e3   :  { %v6684_v16 = vrot.slane %v6682_v38, 3  ;;  %v6713_v59 = vunpack.c.l.bf16 %v6675_v48  ;;  %v6636_v6 = vmax.f32 %v5264_v19, %v6628_v20  ;;  %v6817_v47 = vperm.slane %v6782_v60, 0 }
 0x5e4   :  { %v6714_v55 = vunpack.c.l.bf16 %v6678_v43  ;;  %v6715_v62 = vunpack.c.l.bf16 %v6681_v4  ;;  %v6818_v28 = vperm.slane %v6782_v60, 2  ;;  %v15684_v3 = vpack.c.bf16 %v6814_v21, %v6813_v15  ;;  %v11092_v43 = vld [vmem:[%s15972_s7 + $0x2d8] sm:$0xff]  ;;  %7354 = vmatpush.bf16.msrb.mxu3 %v11039_v44 }
 0x5e5   :  { %v15681_v41 = vunpack.c.l.bf16 %v6684_v16  ;;  %v9938_v0 = vrot.slane %v6713_v59, 9  ;;  %v6640_v26 = vpack.c.bf16 %v6636_v6, %v15485_v11  ;;  %v11011_v11 = vld [vmem:[%s15972_s7 + $0x50] sm:$0xff]  ;;  %v15698_v34 = vunpack.i.l.s16 %v7068_v42  ;;  %v11060_v4 = vld [vmem:[%s15972_s7 + $0x1d8] sm:$0xff]  ;;  %v11038_v16 = vld [vmem:[%s15972_s7 + $0x128] sm:$0xff] }
 0x5e6   :  { %v9939_v46 = vrot.slane %v6714_v55, 9  ;;  %v9940_v7 = vrot.slane %v6715_v62, 9  ;;  %v6866_v22 = vpack.c.bf16 %v6818_v28, %v6817_v47  ;;  %v6932_v54 = vunpack.c.l.b16 %v15677_v31  ;;  %7191 = vmatpush.bf16.msrb.mxu1 %v11011_v11  ;;  %7667 = vmatpush.bf16.msrb.mxu2 %v11061_v57 }
 0x5e7   :  { %v6783_v63 = vmax.f32 %v6713_v59, %v9938_v0  ;;  %v6648_v27 = vrot.slane %v6640_v26, 3  ;;  %v9941_v8 = vrot.slane %v15681_v41, 9  ;;  %v6933_v20 = vunpack.c.h.b16 %v15677_v31 }
 0x5e8   :  { %v7069_v45 = vunpack.c.l.b16 %v6866_v22  ;;  %v7070_v12 = vunpack.c.h.b16 %v6866_v22  ;;  %v6784_v50 = vmax.f32 %v6714_v55, %v9939_v46  ;;  %v15704_v58 = vmax.f32 %v6715_v62, %v9940_v7  ;;  %7355 = vmatpush.bf16.msrb.mxu3 %v11038_v16 }
 0x5e9   :  { %v6687_v19 = vsel %vm73_vm0, %v6640_v26, %v6648_v27  ;;  %v6688_v24 = vsel %vm1711_vm15, %v6640_v26, %v6648_v27  ;;  %v6819_v56 = vperm.slane %v6783_v63, 0  ;;  %v6820_v33 = vperm.slane %v6783_v63, 2  ;;  %v11059_v63 = vld [vmem:[%s15972_s7 + $0x1d0] sm:$0xff] }
 0x5ea   :  { %v6690_v40 = vrot.slane %v6688_v24, 1  ;;  %v6717_v25 = vunpack.c.l.bf16 %v6687_v19  ;;  %v10035_v17 = vunpack.i.l.s16 %v7069_v45  ;;  %v15712_v35 = vunpack.i.l.s16 %v7070_v12  ;;  %7192 = vmatpush.bf16.msrb.mxu1 %v11010_v10  ;;  %7668 = vmatpush.bf16.msrb.mxu2 %v11060_v4  ;;  %v11037_v45 = vld [vmem:[%s15972_s7 + $0x120] sm:$0xff] }
 0x5eb   :  { %v6808_v2 = vperm.slane %v15610_v23, 2  ;;  %v6867_v42 = vpack.c.bf16 %v6820_v33, %v6819_v56  ;;  %v9972_v48 = vunpack.i.l.s16 %v6932_v54  ;;  %v6821_v61 = vperm.slane %v6784_v50, 0 }
 0x5ec   :  { %v6718_v49 = vunpack.c.l.bf16 %v6690_v40  ;;  %v9942_v13 = vrot.slane %v6717_v25, 9  ;;  %v7079_v60 = vrot.slane %v10035_v17, 7  ;;  %v6822_v5 = vperm.slane %v6784_v50, 2  ;;  %v11056_v40 = vld [vmem:[%s15972_s7 + $0x1b8] sm:$0xff]  ;;  %7356 = vmatpush.bf16.msrb.mxu3 %v11037_v45 }
 0x5ed   :  { %v6861_v36 = vpack.c.bf16 %v6808_v2, %v6807_v53  ;;  %v6934_v59 = vunpack.c.l.b16 %v6867_v42  ;;  %v6935_v6 = vunpack.c.h.b16 %v6867_v42  ;;  %v9973_v28 = vunpack.i.l.s16 %v6933_v20  ;;  %v11090_v20 = vld [vmem:[%s15972_s7 + $0x2c8] sm:$0xff] }
 0x5ee   :  { %v9943_v38 = vrot.slane %v6718_v49, 9  ;;  %v6787_v15 = vmax.f32 %v6717_v25, %v9942_v13  ;;  %v7080_v21 = vsel %vm1711_vm15, %v7079_v60, %v10033_v18  ;;  %v6868_v14 = vpack.c.bf16 %v6822_v5, %v6821_v61  ;;  %7193 = vmatpush.bf16.msrb.mxu1 %v11009_v32  ;;  %v11070_v25 = vld [vmem:[%s15972_s7 + $0x228] sm:$0xff]  ;;  %7669 = vmatpush.bf16.msrb.mxu2 %v11059_v63 }
 0x5ef   :  { %v7083_v23 = vpack.c.b16 %v7080_v21, %v7080_v21  ;;  %v7230_v62 = vunpack.c.l.b16 %v6861_v36  ;;  %v9974_v31 = vunpack.i.l.s16 %v6934_v59  ;;  %v9975_v0 = vunpack.i.l.s16 %v6935_v6  ;;  %v11058_v53 = vld [vmem:[%s15972_s7 + $0x1c8] sm:$0xff] }
 0x5f0   :  { %v6788_v39 = vmax.f32 %v6718_v49, %v9943_v38  ;;  %v6827_v47 = vperm.slane %v6787_v15, 0  ;;  %v6828_v55 = vperm.slane %v6787_v15, 2  ;;  %v7232_v26 = vunpack.c.l.b16 %v6868_v14  ;;  %v11055_v38 = vld [vmem:[%s15972_s7 + $0x1b0] sm:$0xff]  ;;  %v11098_v6 = vld [vmem:[%s15972_s7 + $0x308] sm:$0xff] }
 0x5f1   :  { %7181 = vmatmul.bf16.vlgmr.msra.gmra.mxu0 %v7083_v23  ;;  %v7233_v22 = vunpack.c.h.b16 %v6868_v14  ;;  %v6944_v27 = vrot.slane %v9974_v31, 7  ;;  %v6946_v11 = vrot.slane %v9975_v0, 7  ;;  %v7231_v51 = vunpack.c.h.b16 %v6861_v36  ;;  %v11068_v31 = vld [vmem:[%s15972_s7 + $0x218] sm:$0xff] }
 0x5f2   :  { %v6829_v46 = vperm.slane %v6788_v39, 0  ;;  %v6830_v7 = vperm.slane %v6788_v39, 2  ;;  %v15736_v9 = vpack.c.bf16 %v6828_v55, %v6827_v47  ;;  %7992 = vmatpush.bf16.msra.mxu0 %v11092_v43  ;;  %v10122_v18 = vunpack.i.l.s16 %v7230_v62  ;;  %7670 = vmatpush.bf16.msrb.mxu2 %v11058_v53  ;;  %v11057_v43 = vld [vmem:[%s15972_s7 + $0x1c0] sm:$0xff]  ;;  %v11054_v55 = vld [vmem:[%s15972_s7 + $0x1a8] sm:$0xff] }
 0x5f3   :  { %v10124_v50 = vunpack.i.l.s16 %v7232_v26  ;;  %v10125_v19 = vunpack.i.l.s16 %v7233_v22  ;;  %v6945_v24 = vsel %vm1711_vm15, %v6944_v27, %v9972_v48  ;;  %v6947_v56 = vsel %vm1711_vm15, %v6946_v11, %v9973_v28  ;;  %v11097_v27 = vld [vmem:[%s15972_s7 + $0x300] sm:$0xff] }
 0x5f4   :  { %v15747_v12 = vpack.c.bf16 %v6830_v7, %v6829_v46  ;;  %v7725_v54 = vunpack.c.h.b16 %v15736_v9  ;;  %v6809_v17 = vperm.slane %v15612_v1, 0  ;;  %v6810_v52 = vperm.slane %v15612_v1, 2 }
 0x5f5   :  { %v6948_v44 = vpack.c.b16 %v6945_v24, %v6945_v24  ;;  %v6949_v33 = vpack.c.b16 %v6947_v56, %v6947_v56  ;;  %v7242_v49 = vrot.slane %v10124_v50, 7  ;;  %v6823_v1 = vperm.slane %v15704_v58, 0 }
 0x5f6   :  { %v15760_v57 = vunpack.i.l.s16 %v7725_v54  ;;  %v7889_v10 = vunpack.c.h.b16 %v15747_v12  ;;  %7993 = vmatpush.bf16.msra.mxu0 %v11091_v37  ;;  %v6824_v13 = vperm.slane %v15704_v58, 2  ;;  %v6862_v60 = vpack.c.bf16 %v6810_v52, %v6809_v17  ;;  %v11069_v58 = vld [vmem:[%s15972_s7 + $0x220] sm:$0xff]  ;;  %7671 = vmatpush.bf16.msrb.mxu2 %v11057_v43 }
 0x5f7   :  { %v6786_v2 = vmax.f32 %v15681_v41, %v9941_v8  ;;  %7047 = vmatmul.bf16.vlgmr.msra.gmra.mxu1 %v6948_v44  ;;  %10032 = vmatmul.msk.bf16.vlgmr.msra.gmra.mxu3 %vm3257_vm3, %v6949_v33  ;;  %v10123_v42 = vunpack.i.l.s16 %v7231_v51  ;;  %v7081_v48 = vrot.slane %v15712_v35, 7  ;;  %v7244_v61 = vrot.slane %v10125_v19, 7  ;;  %v11089_v35 = vld [vmem:[%s15972_s7 + $0x2c0] sm:$0xff] }
 0x5f8   :  { %7515 = vmatpush.bf16.msra.mxu1 %v11056_v40  ;;  %v7243_v5 = vsel %vm1711_vm15, %v7242_v49, %v10122_v18  ;;  %7679 = vmatpush.bf16.msra.mxu3 %v11070_v25  ;;  %v6869_v41 = vpack.c.bf16 %v6824_v13, %v6823_v1  ;;  %v7394_v8 = vunpack.c.l.b16 %v6862_v60  ;;  %v7395_v15 = vunpack.c.h.b16 %v6862_v60  ;;  %v11096_v49 = vld [vmem:[%s15972_s7 + $0x2f8] sm:$0xff] }
 0x5f9   :  { %v7246_v21 = vpack.c.b16 %v7243_v5, %v7243_v5  ;;  %v15791_v4 = vsel %vm1711_vm15, %v7081_v48, %v15698_v34  ;;  %v15794_v36 = vsel %vm1711_vm15, %v7244_v61, %v10123_v42  ;;  %v7736_v23 = vrot.slane %v15760_v57, 7  ;;  %v11052_v61 = vld [vmem:[%s15972_s7 + $0x198] sm:$0xff] }
 0x5fa   :  { %7994 = vmatpush.bf16.msra.mxu0 %v11090_v20  ;;  %v15797_v32 = vunpack.i.l.s16 %v7889_v10  ;;  %v7396_v16 = vunpack.c.l.b16 %v6869_v41  ;;  %v7397_v59 = vunpack.c.h.b16 %v6869_v41  ;;  %v10211_v14 = vunpack.i.l.s16 %v7394_v8  ;;  %v11087_v10 = vld [vmem:[%s15972_s7 + $0x2b0] sm:$0xff] }
 0x5fb   :  { %7344 = vmatmul.bf16.vlgmr.msra.gmra.mxu2 %v7246_v21  ;;  %v10212_v39 = vunpack.i.l.s16 %v7395_v15  ;;  %v6811_v47 = vperm.slane %v15651_v29, 0  ;;  %v6812_v34 = vperm.slane %v15651_v29, 2  ;;  %v6825_v0 = vperm.slane %v6786_v2, 0  ;;  %v11088_v29 = vld [vmem:[%s15972_s7 + $0x2b8] sm:$0xff]  ;;  %v11086_v21 = vld [vmem:[%s15972_s7 + $0x2a8] sm:$0xff] }
 0x5fc   :  { %7516 = vmatpush.bf16.msra.mxu1 %v11055_v38  ;;  %7680 = vmatpush.bf16.msra.mxu3 %v11069_v58  ;;  %v10213_v62 = vunpack.i.l.s16 %v7396_v16  ;;  %v10214_v28 = vunpack.i.l.s16 %v7397_v59  ;;  %v6826_v26 = vperm.slane %v6786_v2, 2  ;;  %v6815_v7 = vperm.slane %v15679_v30, 0  ;;  %v11066_v38 = vld [vmem:[%s15972_s7 + $0x208] sm:$0xff] }
 0x5fd   :  { %v6863_v46 = vpack.c.bf16 %v6812_v34, %v6811_v47  ;;  %v6816_v37 = vperm.slane %v15679_v30, 2  ;;  %v7888_v22 = vunpack.c.l.b16 %v15747_v12  ;;  %8007 = vmatpush.bf16.msra.mxu2 %v11098_v6  ;;  %v7723_v18 = vunpack.c.h.b16 %v15684_v3  ;;  %v11053_v30 = vld [vmem:[%s15972_s7 + $0x1a0] sm:$0xff]  ;;  %v11067_v12 = vld [vmem:[%s15972_s7 + $0x210] sm:$0xff]  ;;  %v11078_v6 = vld [vmem:[%s15972_s7 + $0x268] sm:$0xff] }
 0x5fe   :  { %7995 = vmatpush.bf16.msra.mxu0 %v11089_v35  ;;  %v7406_v63 = vrot.slane %v10213_v62, 7  ;;  %v6870_v11 = vpack.c.bf16 %v6826_v26, %v6825_v0  ;;  %v7408_v51 = vrot.slane %v10214_v28, 7  ;;  %v7900_v17 = vrot.slane %v15797_v32, 7  ;;  %v11084_v34 = vld [vmem:[%s15972_s7 + $0x298] sm:$0xff]  ;;  %v11077_v28 = vld [vmem:[%s15972_s7 + $0x260] sm:$0xff] }
 0x5ff   :  { %v7558_v45 = vunpack.c.l.b16 %v6863_v46  ;;  %v7559_v54 = vunpack.c.h.b16 %v6863_v46  ;;  %v6865_v50 = vpack.c.bf16 %v6816_v37, %v6815_v7  ;;  %v10480_v19 = vunpack.i.l.s16 %v7888_v22  ;;  %v11093_v0 = vld [vmem:[%s15972_s7 + $0x2e0] sm:$0xff]  ;;  %v11082_v46 = vld [vmem:[%s15972_s7 + $0x288] sm:$0xff]  ;;  %v11075_v22 = vld [vmem:[%s15972_s7 + $0x250] sm:$0xff] }
 0x600   :  { %7517 = vmatpush.bf16.msra.mxu1 %v11054_v55  ;;  %v7407_v24 = vsel %vm1711_vm15, %v7406_v63, %v10211_v14  ;;  %7681 = vmatpush.bf16.msra.mxu3 %v11068_v31  ;;  %v7560_v56 = vunpack.c.l.b16 %v6870_v11  ;;  %v7561_v40 = vunpack.c.h.b16 %v6870_v11  ;;  %v15828_v25 = vsel %vm1711_vm15, %v7408_v51, %v10212_v39  ;;  %v11085_v14 = vld [vmem:[%s15972_s7 + $0x2a0] sm:$0xff]  ;;  %v11094_v55 = vld [vmem:[%s15972_s7 + $0x2e8] sm:$0xff]  ;;  %v11083_v31 = vld [vmem:[%s15972_s7 + $0x290] sm:$0xff] }
 0x601   :  { %v7410_v52 = vpack.c.b16 %v7407_v24, %v7407_v24  ;;  %v7084_v44 = vpack.c.b16 %v15791_v4, %v15791_v4  ;;  %v7886_v33 = vunpack.c.l.b16 %v6865_v50  ;;  %8008 = vmatpush.bf16.msra.mxu2 %v11097_v27  ;;  %v7887_v1 = vunpack.c.h.b16 %v6865_v50  ;;  %v11081_v63 = vld [vmem:[%s15972_s7 + $0x280] sm:$0xff]  ;;  %v11074_v11 = vld [vmem:[%s15972_s7 + $0x248] sm:$0xff]  ;;  %v11080_v51 = vld [vmem:[%s15972_s7 + $0x278] sm:$0xff] }
 0x602   :  { %7996 = vmatpush.bf16.msra.mxu0 %v11088_v29  ;;  %v10302_v20 = vunpack.i.l.s16 %v7560_v56  ;;  %v10303_v53 = vunpack.i.l.s16 %v7561_v40  ;;  %v7898_v13 = vrot.slane %v10480_v19, 7  ;;  %v10300_v60 = vunpack.i.l.s16 %v7558_v45  ;;  %v11076_v29 = vld [vmem:[%s15972_s7 + $0x258] sm:$0xff]  ;;  %v11079_v45 = vld [vmem:[%s15972_s7 + $0x270] sm:$0xff] }
 0x603   :  { %7508 = vmatmul.bf16.vlgmr.msrb.gmra.mxu0 %v7410_v52  ;;  %v10301_v2 = vunpack.i.l.s16 %v7559_v54  ;;  %v10478_v42 = vunpack.i.l.s16 %v7886_v33  ;;  %v10390_v48 = vunpack.i.l.s16 %v7723_v18  ;;  %v10479_v58 = vunpack.i.l.s16 %v7887_v1  ;;  %v11073_v18 = vld [vmem:[%s15972_s7 + $0x240] sm:$0xff]  ;;  %v11072_v54 = vld [vmem:[%s15972_s7 + $0x238] sm:$0xff]  ;;  %v11071_v19 = vld [vmem:[%s15972_s7 + $0x230] sm:$0xff] }
 0x604   :  { %7518 = vmatpush.bf16.msra.mxu1 %v11053_v30  ;;  %7682 = vmatpush.bf16.msra.mxu3 %v11067_v12  ;;  %v7570_v5 = vrot.slane %v10302_v20, 7  ;;  %v7572_v41 = vrot.slane %v10303_v53, 7  ;;  %v7724_v8 = vunpack.c.l.b16 %v15736_v9  ;;  %v7247_v15 = vpack.c.b16 %v15794_v36, %v15794_v36  ;;  %v11095_v9 = vld [vmem:[%s15972_s7 + $0x2f0] sm:$0xff]  ;;  %v11106_v40 = vld [vmem:[%s15974_s9 + $0x38] sm:$0xff]  ;;  %v11104_v33 = vld [vmem:[%s15974_s9 + $0x28] sm:$0xff] }
 0x605   :  { %v7899_v35 = vsel %vm1711_vm15, %v7898_v13, %v10478_v42  ;;  %v15855_v43 = vsel %vm1711_vm15, %v7736_v23, %v10390_v48  ;;  %v7722_v4 = vunpack.c.l.b16 %v15684_v3  ;;  %8009 = vmatpush.bf16.msra.mxu2 %v11096_v49  ;;  %v7901_v16 = vsel %vm1711_vm15, %v7900_v17, %v10479_v58  ;;  %v11051_v3 = vld [vmem:[%s15972_s7 + $0x190] sm:$0xff]  ;;  %v11065_v23 = vld [vmem:[%s15972_s7 + $0x200] sm:$0xff] }
 0x606   :  { %7997 = vmatpush.bf16.msra.mxu0 %v11087_v10  ;;  %v7571_v32 = vsel %vm1711_vm15, %v7570_v5, %v10300_v60  ;;  %v7573_v36 = vsel %vm1711_vm15, %v7572_v41, %v10301_v2  ;;  %v10391_v57 = vunpack.i.l.s16 %v7724_v8  ;;  %v7902_v26 = vpack.c.b16 %v7899_v35, %v7899_v35  ;;  %v11105_v10 = vld [vmem:[%s15974_s9 + $0x30] sm:$0xff]  ;;  %v11103_v1 = vld [vmem:[%s15974_s9 + $0x20] sm:$0xff]  ;;  %v11102_v60 = vld [vmem:[%s15974_s9 + $0x18] sm:$0xff] }
 0x607   :  { %10093 = vmatmul.msk.bf16.vlgmr.msrb.gmra.mxu1 %vm3257_vm3, %v7084_v44  ;;  %10182 = vmatmul.msk.bf16.vlgmr.msrb.gmra.mxu3 %vm3257_vm3, %v7247_v15  ;;  %v7574_v59 = vpack.c.b16 %v7571_v32, %v7571_v32  ;;  %v10389_v39 = vunpack.i.l.s16 %v7722_v4  ;;  %v7411_v7 = vpack.c.b16 %v15828_v25, %v15828_v25  ;;  %v7575_v37 = vpack.c.b16 %v7573_v36, %v7573_v36  ;;  %v11101_v58 = vld [vmem:[%s15974_s9 + $0x10] sm:$0xff]  ;;  %v11100_v8 = vld [vmem:[%s15974_s9 + $0x8] sm:$0xff]  ;;  %v11099_v35 = vld [vmem:[%s15974_s9] sm:$0xff] }
 0x608   :  { %7519 = vmatpush.bf16.msra.mxu1 %v11052_v61  ;;  %7683 = vmatpush.bf16.msra.mxu3 %v11066_v38  ;;  %v7734_v47 = vrot.slane %v10391_v57, 7  ;;  %v7903_v27 = vpack.c.b16 %v7901_v16, %v7901_v16  ;;  %v7739_v50 = vpack.c.b16 %v15855_v43, %v15855_v43 }
 0x609   :  { %8010 = vmatpush.bf16.msra.mxu2 %v11095_v9 }
 0x60a   :  { %7998 = vmatpush.bf16.msra.mxu0 %v11086_v21  ;;  %v7735_v62 = vsel %vm1711_vm15, %v7734_v47, %v10389_v39 }
 0x60b   :  { %7672 = vmatmul.bf16.vlgmr.msrb.gmra.mxu2 %v7574_v59  ;;  %v7738_v24 = vpack.c.b16 %v7735_v62, %v7735_v62 }
 0x60c   :  { %7520 = vmatpush.bf16.msra.mxu1 %v11051_v3  ;;  %7684 = vmatpush.bf16.msra.mxu3 %v11065_v23 }
 0x60d   :  { %8011 = vmatpush.bf16.msra.mxu2 %v11094_v55 }
 0x60e   :  { %7999 = vmatpush.bf16.msra.mxu0 %v11085_v14 }
 0x610   :  { %7828 = vmatpush.bf16.msrb.mxu1 %v11078_v6  ;;  %7843 = vmatpush.bf16.msrb.mxu3 %v11084_v34 }
 0x611   :  { %8012 = vmatpush.bf16.msra.mxu2 %v11093_v0 }
 0x613   :  { %8000 = vmatmul.bf16.vlgmr.msra.gmra.mxu0 %v7902_v26 }
 0x614   :  { %7829 = vmatpush.bf16.msrb.mxu1 %v11077_v28  ;;  %7844 = vmatpush.bf16.msrb.mxu3 %v11083_v31  ;;  %v11113_v31 = vld [vmem:[%s15973_s8] ss:$0 sm:$0xff] }
 0x617   :  { %10271 = vmatmul.msk.bf16.vlgmr.msra.gmra.mxu1 %vm3257_vm3, %v7411_v7  ;;  %10360 = vmatmul.msk.bf16.vlgmr.msra.gmra.mxu3 %vm3257_vm3, %v7575_v37 }
 0x618   :  { %7830 = vmatpush.bf16.msrb.mxu1 %v11076_v29  ;;  %7845 = vmatpush.bf16.msrb.mxu3 %v11082_v46 }
 0x61b   :  { %10538 = vmatmul.msk.bf16.vlgmr.msra.gmra.mxu2 %vm3257_vm3, %v7903_v27 }
 0x61c   :  { %7831 = vmatpush.bf16.msrb.mxu1 %v11075_v22  ;;  %7846 = vmatpush.bf16.msrb.mxu3 %v11081_v63  ;;  %v11114_v22 = vld [vmem:[%s15975_s10] ss:$0 sm:$0xff] }
 0x620   :  { %7832 = vmatpush.bf16.msrb.mxu1 %v11074_v11  ;;  %7847 = vmatpush.bf16.msrb.mxu3 %v11080_v51 }
 0x624   :  { %7833 = vmatpush.bf16.msrb.mxu1 %v11073_v18  ;;  %7848 = vmatpush.bf16.msrb.mxu3 %v11079_v45 }
 0x627   :  { %10449 = vmatmul.msk.bf16.vlgmr.msrb.gmra.mxu3 %vm3257_vm3, %v7739_v50 }
 0x628   :  { %7834 = vmatpush.bf16.msrb.mxu1 %v11072_v54  ;;  %8094 = vmatpush.bf16.msra.mxu3 %v11106_v40 }
 0x62c   :  { %7835 = vmatpush.bf16.msrb.mxu1 %v11071_v19  ;;  %8095 = vmatpush.bf16.msra.mxu3 %v11105_v10 }
 0x62f   :  { %7836 = vmatmul.bf16.vlgmr.msrb.gmra.mxu1 %v7738_v24 }
 0x630   :  { %8096 = vmatpush.bf16.msra.mxu3 %v11104_v33 }
 0x634   :  { %8097 = vmatpush.bf16.msra.mxu3 %v11103_v1 }
 0x638   :  { %8098 = vmatpush.bf16.msra.mxu3 %v11102_v60 }
 0x63c   :  { %8099 = vmatpush.bf16.msra.mxu3 %v11101_v58 }
 0x640   :  { %8100 = vmatpush.bf16.msra.mxu3 %v11100_v8 }
 0x644   :  { %8101 = vmatpush.bf16.msra.mxu3 %v11099_v35 }
 0x66e   :  { %v7182_v30 = vpop.f32.mrf.mxu0 }
 0x674   :  { %v7048_v12 = vpop.f32.mrf.mxu1 }
 0x676   :  { %v7184_v56 = vpop.f32.mrf.mxu0 }
 0x67a   :  { %v7061_v25 = vpop.f32.mrf.mxu3 }
 0x67b   :  { %v7062_v32 = vadd.f32 %v7061_v25, %v7048_v12 }
 0x67c   :  { %v7050_v17 = vpop.f32.mrf.mxu1 }
 0x67d   :  { %v7183_v36 = vadd.f32 %v7182_v30, %v7062_v32 }
 0x67e   :  { %v7345_v52 = vpop.f32.mrf.mxu2 }
 0x680   :  { %v7509_v44 = vpop.f32.mrf.mxu0 }
 0x682   :  { %v7063_v20 = vpop.f32.mrf.mxu3 }
 0x684   :  { %v7195_v53 = vpop.f32.mrf.mxu1 }
 0x685   :  { %v7196_v57 = vadd.f32 %v7195_v53, %v7183_v36 }
 0x686   :  { %v7347_v49 = vpop.f32.mrf.mxu2 }
 0x688   :  { %v7511_v13 = vpop.f32.mrf.mxu0 }
 0x68a   :  { %v7358_v2 = vpop.f32.mrf.mxu3 }
 0x68b   :  { %v7359_v16 = vadd.f32 %v7358_v2, %v7345_v52 }
 0x68c   :  { %v7197_v42 = vpop.f32.mrf.mxu1 }
 0x68d   :  { %v7362_v59 = vadd.f32 %v7359_v16, %v7196_v57 }
 0x68e   :  { %v7673_v48 = vpop.f32.mrf.mxu2 }
 0x690   :  { %v8001_v61 = vpop.f32.mrf.mxu0 }
 0x692   :  { %v7360_v5 = vpop.f32.mrf.mxu3 }
 0x694   :  { %v7522_v38 = vpop.f32.mrf.mxu1 }
 0x695   :  { %v7523_v3 = vadd.f32 %v7522_v38, %v7509_v44 }
 0x696   :  { %v7675_v41 = vpop.f32.mrf.mxu2 }
 0x697   :  { %v7526_v14 = vadd.f32 %v7523_v3, %v7362_v59 }
 0x698   :  { %v8003_v15 = vpop.f32.mrf.mxu0 }
 0x69a   :  { %v7686_v21 = vpop.f32.mrf.mxu3 }
 0x69b   :  { %v7687_v6 = vadd.f32 %v7686_v21, %v7673_v48 }
 0x69c   :  { %v7524_v43 = vpop.f32.mrf.mxu1 }
 0x69d   :  { %v7690_v34 = vadd.f32 %v7687_v6, %v7526_v14 }
 0x69e   :  { %v8014_v4 = vpop.f32.mrf.mxu2 }
 0x69f   :  { %v8015_v62 = vadd.f32 %v8014_v4, %v8001_v61 }
 0x6a2   :  { %v7688_v9 = vpop.f32.mrf.mxu3 }
 0x6a6   :  { %v8016_v23 = vpop.f32.mrf.mxu2 }
 0x6aa   :  { %v7850_v47 = vpop.f32.mrf.mxu3 }
 0x6ac   :  { %v7837_v39 = vpop.f32.mrf.mxu1 }
 0x6ad   :  { %v7851_v55 = vadd.f32 %v7850_v47, %v7837_v39 }
 0x6af   :  { %v7854_v28 = vadd.f32 %v7851_v55, %v7690_v34 }
 0x6b1   :  { %v8018_v0 = vadd.f32 %v8015_v62, %v7854_v28 }
 0x6b2   :  { %v7852_v46 = vpop.f32.mrf.mxu3 }
 0x6b3   :  { %v8023_v26 = vadd.f32 %v11113_v31, %v8018_v0 }
 0x6b4   :  { %v7839_v29 = vpop.f32.mrf.mxu1 }
 0x6b5   :  { %v8024_v7 = vmax.f32 %v8023_v26, 0.0 }
 0x6b7   :  { %v8025_v37 = vpack.c.bf16 %v8024_v7, %v8024_v7 }
 0x6b9   :  { %8102 = vmatmul.bf16.vlgmr.msra.gmra.mxu3 %v8025_v37 }
 0x73c   :  { %v8103_v63 = vpop.f32.mrf.mxu3 }
 0x73d   :  { %v8104_v27 = vadd.f32 %v11114_v22, %v8103_v63 }
 0x73f   :  { %8107 = vst [vmem:[#allocation6] sm:$0x3] %v8104_v27 }
 0x740   :  { %8118 = dma.vmem_to_hbm [thread:$0]  %s8114_s4, 32, %s8116_s0, [#allocation7]  }
 0x744   :  { %v8105_v11 = vpop.f32.mrf.mxu3 }
 0x745   :  { %11140 = dma.done.wait [#allocation7], 32  }
 0x746   :  { %11141 = vsyncadd [#allocation7], 4294967264 }
 0x747   :  { %8123 = vsyncpa [#allocation7], 1 }

</bundles_post_ra>
